<compile_context>
chip_gen: v7x
topology: tpu7x:2x2x1
jax: 0.10.0
libtpu: 0.0.40
codegen_flags: <defaults>
</compile_context>

<pallas_src>
import math

import jax
import jax.numpy as jnp
from jax.experimental import pallas as pl
from jax.experimental.pallas import tpu as pltpu

# ---------------- config (matches the PyTorch module) ----------------
RATING_SIZE = 256
HIDDEN_SIZE = 128
INTERMEDIATE_SIZE = HIDDEN_SIZE * 4
NUM_LAYERS = 4
NUM_HEADS = 8
HEAD_DIM = HIDDEN_SIZE // NUM_HEADS
LN_EPS = 1e-12

# small example shapes
BATCH = 2
SEQ = 8
NUM_STATS = 8

MASK_MIN = float(jnp.finfo(jnp.float32).min)


# ---------------- in-kernel helpers ----------------
def _layer_norm(x, g, b):
    # one-pass LN: E[x] and E[x^2] together (halves the XLU reductions)
    mu = jnp.mean(x, axis=-1, keepdims=True)
    ms = jnp.mean(x * x, axis=-1, keepdims=True)
    var = ms - mu * mu
    return (x - mu) * jax.lax.rsqrt(var + LN_EPS) * g + b


def _gelu_exact(x):
    # exact (erf-based) GELU, as used by HF Bert "gelu"
    return 0.5 * x * (1.0 + jax.lax.erf(x * (1.0 / math.sqrt(2.0))))


# ---------------- single fused Pallas kernel ----------------
def _rating_generator_kernel(
    ratings_ref, ginfo_ref, mask_ref,
    w_in_r_ref, w_in_g_ref, b_in_ref,
    wqkv_ref, bqkv_ref, wo_ref, bo_ref,
    ln1g_ref, ln1b_ref, w1_ref, b1_ref, w2_ref, b2_ref, ln2g_ref, ln2b_ref,
    w_out_ref, b_out_ref,
    o_ref,
):
    B, S, _ = ratings_ref.shape
    BS = B * S
    H = HIDDEN_SIZE
    Dh = HEAD_DIM
    NH = NUM_HEADS

    # ---- fused linear_in: the [B*S, R+stats] concat is never materialized ----
    r = ratings_ref[...].reshape(BS, RATING_SIZE).astype(jnp.bfloat16)
    g = ginfo_ref[...].reshape(BS, NUM_STATS).astype(jnp.bfloat16)
    h = (jnp.dot(r, w_in_r_ref[...], preferred_element_type=jnp.float32)
         + jnp.dot(g, w_in_g_ref[...], preferred_element_type=jnp.float32)
         + b_in_ref[...])                                         # [BS, H] f32

    # ---- additive attention mask, built once in the head-batched layout ----
    mask_add = (1.0 - mask_ref[...]) * MASK_MIN                   # [B, 1, S]
    mask_full = jnp.broadcast_to(mask_add, (B, S, S))             # [B, S, S]
    mask_heads = jnp.broadcast_to(
        mask_full.reshape(1, B, S, S), (NH, B, S, S)
    ).reshape(NH * B, S, S)                                       # [NH*B, S, S]

    scale = 1.0 / math.sqrt(Dh)

    def split_heads(t):                                           # [BS, H] -> [NH*B, S, Dh]
        parts = [t[:, hh * Dh:(hh + 1) * Dh].reshape(1, B, S, Dh)
                 for hh in range(NH)]
        return jnp.concatenate(parts, axis=0).reshape(NH * B, S, Dh)

    for l in range(NUM_LAYERS):                                   # static unroll
        x = h                                                     # [BS, H] f32
        xb = x.astype(jnp.bfloat16)

        # fused QKV projection: one [BS,128] @ [128,384] matmul
        qkv = (jnp.dot(xb, wqkv_ref[l], preferred_element_type=jnp.float32)
               + bqkv_ref[l])                                     # [BS, 3H]
        q = qkv[:, 0 * H:1 * H] * scale       # 128-lane-aligned slices (free)
        k = qkv[:, 1 * H:2 * H]
        v = qkv[:, 2 * H:3 * H]

        # head-batched attention: 2 einsums + 1 softmax for all heads
        qh = split_heads(q)
        kh = split_heads(k)
        vh = split_heads(v)

        s = jnp.einsum("bqd,bkd->bqk", qh, kh,
                       preferred_element_type=jnp.float32) + mask_heads
        s = s - jnp.max(s, axis=-1, keepdims=True)
        p = jnp.exp(s)
        p = p / jnp.sum(p, axis=-1, keepdims=True)                # exact division
        ctx = jnp.einsum("bqk,bkd->bqd", p, vh,
                         preferred_element_type=jnp.float32)      # [NH*B, S, Dh]

        # merge heads back to [BS, H] and do ONE K=128 output projection
        ctx_cat = jnp.concatenate(
            [ctx[hh * B:(hh + 1) * B].reshape(BS, Dh) for hh in range(NH)],
            axis=-1)                                              # [BS, H]
        attn = (jnp.dot(ctx_cat.astype(jnp.bfloat16), wo_ref[l],
                        preferred_element_type=jnp.float32) + bo_ref[l])

        h1 = _layer_norm(attn + x, ln1g_ref[l], ln1b_ref[l])      # residual + LN

        ff = (jnp.dot(h1.astype(jnp.bfloat16), w1_ref[l],
                      preferred_element_type=jnp.float32) + b1_ref[l])
        ff = _gelu_exact(ff)
        ff2 = (jnp.dot(ff.astype(jnp.bfloat16), w2_ref[l],
                       preferred_element_type=jnp.float32) + b2_ref[l])
        h = _layer_norm(ff2 + h1, ln2g_ref[l], ln2b_ref[l])       # residual + LN

    # dropout(p=0.0) == identity; final linear_out
    out = (jnp.dot(h.astype(jnp.bfloat16), w_out_ref[...],
                   preferred_element_type=jnp.float32) + b_out_ref[...])
    o_ref[...] = out.reshape(B, S, RATING_SIZE)


# ---------------- parameter init (deterministic, synthetic) ----------------
def _w(key, fan_in, fan_out):
    return jax.random.normal(key, (fan_in, fan_out), jnp.float32) * 0.02


def init_params(key):
    keys = jax.random.split(key, 2 + NUM_LAYERS * 6)
    params = {}

    # linear_in weight split once so the input concat is fused into two matmuls
    w_in = _w(keys[0], RATING_SIZE + NUM_STATS, HIDDEN_SIZE)
    params["lin_in_w_r"] = w_in[:RATING_SIZE, :].astype(jnp.bfloat16)
    params["lin_in_w_g"] = w_in[RATING_SIZE:, :].astype(jnp.bfloat16)
    params["lin_in_b"] = jnp.zeros((1, HIDDEN_SIZE), jnp.float32)

    params["lin_out_w"] = _w(keys[1], HIDDEN_SIZE, RATING_SIZE).astype(jnp.bfloat16)
    params["lin_out_b"] = jnp.zeros((1, RATING_SIZE), jnp.float32)

    names = ["wqkv", "bqkv", "wo", "bo", "ln1_g", "ln1_b",
             "w1", "b1", "w2", "b2", "ln2_g", "ln2_b"]
    acc = {n: [] for n in names}
    for l in range(NUM_LAYERS):
        kq, kk, kv, ko, k1, k2 = keys[2 + l * 6: 2 + (l + 1) * 6]
        # fused QKV weight [H, 3H] (column order: q | k | v)
        acc["wqkv"].append(jnp.concatenate(
            [_w(kq, HIDDEN_SIZE, HIDDEN_SIZE),
             _w(kk, HIDDEN_SIZE, HIDDEN_SIZE),
             _w(kv, HIDDEN_SIZE, HIDDEN_SIZE)], axis=1))
        acc["bqkv"].append(jnp.zeros((1, 3 * HIDDEN_SIZE), jnp.float32))
        acc["wo"].append(_w(ko, HIDDEN_SIZE, HIDDEN_SIZE))
        acc["bo"].append(jnp.zeros((1, HIDDEN_SIZE), jnp.float32))
        acc["ln1_g"].append(jnp.ones((1, HIDDEN_SIZE), jnp.float32))
        acc["ln1_b"].append(jnp.zeros((1, HIDDEN_SIZE), jnp.float32))
        acc["w1"].append(_w(k1, HIDDEN_SIZE, INTERMEDIATE_SIZE))
        acc["b1"].append(jnp.zeros((1, INTERMEDIATE_SIZE), jnp.float32))
        acc["w2"].append(_w(k2, INTERMEDIATE_SIZE, HIDDEN_SIZE))
        acc["b2"].append(jnp.zeros((1, HIDDEN_SIZE), jnp.float32))
        acc["ln2_g"].append(jnp.ones((1, HIDDEN_SIZE), jnp.float32))
        acc["ln2_b"].append(jnp.zeros((1, HIDDEN_SIZE), jnp.float32))

    bf16_names = {"wqkv", "wo", "w1", "w2"}      # big matrices -> bf16 (halve HBM bytes)
    for n in names:
        stacked = jnp.stack(acc[n], axis=0)      # leading layer axis
        params[n] = stacked.astype(jnp.bfloat16) if n in bf16_names else stacked
    return params


# ---------------- forward: ONE fused pallas_call ----------------
@jax.jit
def rating_generator_forward(params, ratings, game_info, mask):
    # ratings: [B, S, RATING_SIZE], game_info: [B, S, NUM_STATS], mask: [B, S]
    B, S, _ = ratings.shape
    BS = B * S
    mask3 = mask.astype(jnp.float32).reshape(B, 1, S)

    operands = [
        ratings, game_info, mask3,
        params["lin_in_w_r"], params["lin_in_w_g"], params["lin_in_b"],
        params["wqkv"], params["bqkv"], params["wo"], params["bo"],
        params["ln1_g"], params["ln1_b"], params["w1"], params["b1"],
        params["w2"], params["b2"], params["ln2_g"], params["ln2_b"],
        params["lin_out_w"], params["lin_out_b"],
    ]

    # advisory cost estimate so XLA can overlap the (dominant) weight DMA
    flops = (
        2 * BS * (RATING_SIZE + NUM_STATS) * HIDDEN_SIZE
        + NUM_LAYERS * 2 * BS * (HIDDEN_SIZE * 3 * HIDDEN_SIZE
                                 + HIDDEN_SIZE * HIDDEN_SIZE
                                 + 2 * HIDDEN_SIZE * INTERMEDIATE_SIZE)
        + NUM_LAYERS * 4 * B * NUM_HEADS * S * S * HEAD_DIM
        + 2 * BS * HIDDEN_SIZE * RATING_SIZE
    )
    transcendentals = NUM_LAYERS * (BS * INTERMEDIATE_SIZE + B * NUM_HEADS * S * S)
    bytes_accessed = int(sum(int(x.size) * x.dtype.itemsize for x in operands)
                         + B * S * RATING_SIZE * 4)

    vmem_spec = pl.BlockSpec(memory_space=pltpu.MemorySpace.VMEM)
    return pl.pallas_call(
        _rating_generator_kernel,
        out_shape=jax.ShapeDtypeStruct((B, S, RATING_SIZE), jnp.float32),
        in_specs=[vmem_spec] * len(operands),
        out_specs=vmem_spec,
        cost_estimate=pl.CostEstimate(flops=flops,
                                      transcendentals=transcendentals,
                                      bytes_accessed=bytes_accessed),
    )(*operands)


if __name__ == "__main__":
    key = jax.random.PRNGKey(0)
    kp, kr, kg = jax.random.split(key, 3)

    params = init_params(kp)

    ratings = jax.random.normal(kr, (BATCH, SEQ, RATING_SIZE), jnp.float32)
    game_info = jax.random.normal(kg, (BATCH, SEQ, NUM_STATS), jnp.float32)
    # mask mirrors (games_ten[:, :, 0] > 0).float()
    mask = (game_info[:, :, 0] > 0).astype(jnp.float32)          # [B, S]

    out = rating_generator_forward(params, ratings, game_info, mask)
    out = jax.block_until_ready(out)
    assert out.shape == (BATCH, SEQ, RATING_SIZE)
    assert bool(jnp.all(jnp.isfinite(out)))
    print("KERNEL_OK")
</pallas_src>

<mosaic_0001>
module attributes {stable_mosaic.version = 11 : i64} {
  func.func @_rating_generator_kernel(%arg0: memref<2x8x256xf32, #tpu.memory_space<vmem>>, %arg1: memref<2x8x8xf32, #tpu.memory_space<vmem>>, %arg2: memref<2x1x8xf32, #tpu.memory_space<vmem>>, %arg3: memref<256x128xbf16, #tpu.memory_space<vmem>>, %arg4: memref<8x128xbf16, #tpu.memory_space<vmem>>, %arg5: memref<1x128xf32, #tpu.memory_space<vmem>>, %arg6: memref<4x128x384xbf16, #tpu.memory_space<vmem>>, %arg7: memref<4x1x384xf32, #tpu.memory_space<vmem>>, %arg8: memref<4x128x128xbf16, #tpu.memory_space<vmem>>, %arg9: memref<4x1x128xf32, #tpu.memory_space<vmem>>, %arg10: memref<4x1x128xf32, #tpu.memory_space<vmem>>, %arg11: memref<4x1x128xf32, #tpu.memory_space<vmem>>, %arg12: memref<4x128x512xbf16, #tpu.memory_space<vmem>>, %arg13: memref<4x1x512xf32, #tpu.memory_space<vmem>>, %arg14: memref<4x512x128xbf16, #tpu.memory_space<vmem>>, %arg15: memref<4x1x128xf32, #tpu.memory_space<vmem>>, %arg16: memref<4x1x128xf32, #tpu.memory_space<vmem>>, %arg17: memref<4x1x128xf32, #tpu.memory_space<vmem>>, %arg18: memref<128x256xbf16, #tpu.memory_space<vmem>>, %arg19: memref<1x256xf32, #tpu.memory_space<vmem>>, %arg20: memref<2x8x256xf32, #tpu.memory_space<vmem>>) attributes {dimension_semantics = [], scalar_prefetch = 0 : i64, scratch_operands = 0 : i64, tpu.core_type = #tpu.core_type<tc>} {
    %c0 = arith.constant 0 : index
    %c0_0 = arith.constant 0 : index
    %c0_1 = arith.constant 0 : index
    %0 = vector.load %arg0[%c0, %c0_0, %c0_1] : memref<2x8x256xf32, #tpu.memory_space<vmem>>, vector<2x8x256xf32>
    %1 = vector.shape_cast %0 : vector<2x8x256xf32> to vector<16x256xf32>
    %2 = arith.truncf %1 : vector<16x256xf32> to vector<16x256xbf16>
    %c0_2 = arith.constant 0 : index
    %c0_3 = arith.constant 0 : index
    %c0_4 = arith.constant 0 : index
    %3 = vector.load %arg1[%c0_2, %c0_3, %c0_4] : memref<2x8x8xf32, #tpu.memory_space<vmem>>, vector<2x8x8xf32>
    %4 = vector.shape_cast %3 : vector<2x8x8xf32> to vector<16x8xf32>
    %5 = arith.truncf %4 : vector<16x8xf32> to vector<16x8xbf16>
    %c0_5 = arith.constant 0 : index
    %c0_6 = arith.constant 0 : index
    %6 = vector.load %arg3[%c0_5, %c0_6] : memref<256x128xbf16, #tpu.memory_space<vmem>>, vector<256x128xbf16>
    %cst = arith.constant dense<0.000000e+00> : vector<16x128xf32>
    %7 = tpu.matmul %2, %6, %cst {dimension_numbers = #tpu.dot_dimension_numbers<[1], [0], [0], [1], [0, 0, 1, 1], [], []>} : vector<16x256xbf16>, vector<256x128xbf16>, vector<16x128xf32> -> vector<16x128xf32>
    %c0_7 = arith.constant 0 : index
    %c0_8 = arith.constant 0 : index
    %8 = vector.load %arg4[%c0_7, %c0_8] : memref<8x128xbf16, #tpu.memory_space<vmem>>, vector<8x128xbf16>
    %cst_9 = arith.constant dense<0.000000e+00> : vector<16x128xf32>
    %9 = tpu.matmul %5, %8, %cst_9 {dimension_numbers = #tpu.dot_dimension_numbers<[1], [0], [0], [1], [0, 0, 1, 1], [], []>} : vector<16x8xbf16>, vector<8x128xbf16>, vector<16x128xf32> -> vector<16x128xf32>
    %10 = arith.addf %7, %9 : vector<16x128xf32>
    %c0_10 = arith.constant 0 : index
    %c0_11 = arith.constant 0 : index
    %11 = vector.load %arg5[%c0_10, %c0_11] : memref<1x128xf32, #tpu.memory_space<vmem>>, vector<1x128xf32>
    %12 = vector.broadcast %11 : vector<1x128xf32> to vector<16x128xf32>
    %13 = arith.addf %10, %12 : vector<16x128xf32>
    %c0_12 = arith.constant 0 : index
    %c0_13 = arith.constant 0 : index
    %c0_14 = arith.constant 0 : index
    %14 = vector.load %arg2[%c0_12, %c0_13, %c0_14] : memref<2x1x8xf32, #tpu.memory_space<vmem>>, vector<2x1x8xf32>
    %cst_15 = arith.constant 1.000000e+00 : f32
    %15 = vector.broadcast %cst_15 : f32 to vector<2x1x8xf32>
    %16 = arith.subf %15, %14 : vector<2x1x8xf32>
    %cst_16 = arith.constant -3.40282347E+38 : f32
    %17 = vector.broadcast %cst_16 : f32 to vector<2x1x8xf32>
    %18 = arith.mulf %16, %17 : vector<2x1x8xf32>
    %19 = vector.shape_cast %18 : vector<2x1x8xf32> to vector<2x1x8xf32>
    %20 = vector.broadcast %19 : vector<2x1x8xf32> to vector<2x8x8xf32>
    %21 = vector.shape_cast %20 : vector<2x8x8xf32> to vector<1x2x8x8xf32>
    %22 = vector.shape_cast %21 : vector<1x2x8x8xf32> to vector<1x2x8x8xf32>
    %23 = vector.broadcast %22 : vector<1x2x8x8xf32> to vector<8x2x8x8xf32>
    %24 = vector.shape_cast %23 : vector<8x2x8x8xf32> to vector<16x8x8xf32>
    %25 = arith.truncf %13 : vector<16x128xf32> to vector<16x128xbf16>
    %c0_17 = arith.constant 0 : index
    %c0_18 = arith.constant 0 : index
    %c0_19 = arith.constant 0 : index
    %26 = vector.load %arg6[%c0_17, %c0_18, %c0_19] : memref<4x128x384xbf16, #tpu.memory_space<vmem>>, vector<1x128x384xbf16>
    %27 = vector.shape_cast %26 : vector<1x128x384xbf16> to vector<128x384xbf16>
    %cst_20 = arith.constant dense<0.000000e+00> : vector<16x384xf32>
    %28 = tpu.matmul %25, %27, %cst_20 {dimension_numbers = #tpu.dot_dimension_numbers<[1], [0], [0], [1], [0, 0, 1, 1], [], []>} : vector<16x128xbf16>, vector<128x384xbf16>, vector<16x384xf32> -> vector<16x384xf32>
    %c0_21 = arith.constant 0 : index
    %c0_22 = arith.constant 0 : index
    %c0_23 = arith.constant 0 : index
    %29 = vector.load %arg7[%c0_21, %c0_22, %c0_23] : memref<4x1x384xf32, #tpu.memory_space<vmem>>, vector<1x1x384xf32>
    %30 = vector.shape_cast %29 : vector<1x1x384xf32> to vector<1x384xf32>
    %31 = vector.broadcast %30 : vector<1x384xf32> to vector<16x384xf32>
    %32 = arith.addf %28, %31 : vector<16x384xf32>
    %33 = vector.extract_strided_slice %32 {offsets = [0, 0], sizes = [16, 128], strides = [1, 1]} : vector<16x384xf32> to vector<16x128xf32>
    %cst_24 = arith.constant 2.500000e-01 : f32
    %34 = vector.broadcast %cst_24 : f32 to vector<16x128xf32>
    %35 = arith.mulf %33, %34 : vector<16x128xf32>
    %36 = vector.extract_strided_slice %32 {offsets = [0, 128], sizes = [16, 128], strides = [1, 1]} : vector<16x384xf32> to vector<16x128xf32>
    %37 = vector.extract_strided_slice %32 {offsets = [0, 256], sizes = [16, 128], strides = [1, 1]} : vector<16x384xf32> to vector<16x128xf32>
    %38 = vector.extract_strided_slice %35 {offsets = [0, 0], sizes = [16, 16], strides = [1, 1]} : vector<16x128xf32> to vector<16x16xf32>
    %39 = vector.shape_cast %38 : vector<16x16xf32> to vector<1x2x8x16xf32>
    %40 = vector.extract_strided_slice %35 {offsets = [0, 16], sizes = [16, 16], strides = [1, 1]} : vector<16x128xf32> to vector<16x16xf32>
    %41 = vector.shape_cast %40 : vector<16x16xf32> to vector<1x2x8x16xf32>
    %42 = vector.extract_strided_slice %35 {offsets = [0, 32], sizes = [16, 16], strides = [1, 1]} : vector<16x128xf32> to vector<16x16xf32>
    %43 = vector.shape_cast %42 : vector<16x16xf32> to vector<1x2x8x16xf32>
    %44 = vector.extract_strided_slice %35 {offsets = [0, 48], sizes = [16, 16], strides = [1, 1]} : vector<16x128xf32> to vector<16x16xf32>
    %45 = vector.shape_cast %44 : vector<16x16xf32> to vector<1x2x8x16xf32>
    %46 = vector.extract_strided_slice %35 {offsets = [0, 64], sizes = [16, 16], strides = [1, 1]} : vector<16x128xf32> to vector<16x16xf32>
    %47 = vector.shape_cast %46 : vector<16x16xf32> to vector<1x2x8x16xf32>
    %48 = vector.extract_strided_slice %35 {offsets = [0, 80], sizes = [16, 16], strides = [1, 1]} : vector<16x128xf32> to vector<16x16xf32>
    %49 = vector.shape_cast %48 : vector<16x16xf32> to vector<1x2x8x16xf32>
    %50 = vector.extract_strided_slice %35 {offsets = [0, 96], sizes = [16, 16], strides = [1, 1]} : vector<16x128xf32> to vector<16x16xf32>
    %51 = vector.shape_cast %50 : vector<16x16xf32> to vector<1x2x8x16xf32>
    %52 = vector.extract_strided_slice %35 {offsets = [0, 112], sizes = [16, 16], strides = [1, 1]} : vector<16x128xf32> to vector<16x16xf32>
    %53 = vector.shape_cast %52 : vector<16x16xf32> to vector<1x2x8x16xf32>
    %54 = tpu.concatenate %39, %41, %43, %45, %47, %49, %51, %53 in 0 : vector<1x2x8x16xf32>, vector<1x2x8x16xf32>, vector<1x2x8x16xf32>, vector<1x2x8x16xf32>, vector<1x2x8x16xf32>, vector<1x2x8x16xf32>, vector<1x2x8x16xf32>, vector<1x2x8x16xf32> -> vector<8x2x8x16xf32>
    %55 = vector.shape_cast %54 : vector<8x2x8x16xf32> to vector<16x8x16xf32>
    %56 = vector.extract_strided_slice %36 {offsets = [0, 0], sizes = [16, 16], strides = [1, 1]} : vector<16x128xf32> to vector<16x16xf32>
    %57 = vector.shape_cast %56 : vector<16x16xf32> to vector<1x2x8x16xf32>
    %58 = vector.extract_strided_slice %36 {offsets = [0, 16], sizes = [16, 16], strides = [1, 1]} : vector<16x128xf32> to vector<16x16xf32>
    %59 = vector.shape_cast %58 : vector<16x16xf32> to vector<1x2x8x16xf32>
    %60 = vector.extract_strided_slice %36 {offsets = [0, 32], sizes = [16, 16], strides = [1, 1]} : vector<16x128xf32> to vector<16x16xf32>
    %61 = vector.shape_cast %60 : vector<16x16xf32> to vector<1x2x8x16xf32>
    %62 = vector.extract_strided_slice %36 {offsets = [0, 48], sizes = [16, 16], strides = [1, 1]} : vector<16x128xf32> to vector<16x16xf32>
    %63 = vector.shape_cast %62 : vector<16x16xf32> to vector<1x2x8x16xf32>
    %64 = vector.extract_strided_slice %36 {offsets = [0, 64], sizes = [16, 16], strides = [1, 1]} : vector<16x128xf32> to vector<16x16xf32>
    %65 = vector.shape_cast %64 : vector<16x16xf32> to vector<1x2x8x16xf32>
    %66 = vector.extract_strided_slice %36 {offsets = [0, 80], sizes = [16, 16], strides = [1, 1]} : vector<16x128xf32> to vector<16x16xf32>
    %67 = vector.shape_cast %66 : vector<16x16xf32> to vector<1x2x8x16xf32>
    %68 = vector.extract_strided_slice %36 {offsets = [0, 96], sizes = [16, 16], strides = [1, 1]} : vector<16x128xf32> to vector<16x16xf32>
    %69 = vector.shape_cast %68 : vector<16x16xf32> to vector<1x2x8x16xf32>
    %70 = vector.extract_strided_slice %36 {offsets = [0, 112], sizes = [16, 16], strides = [1, 1]} : vector<16x128xf32> to vector<16x16xf32>
    %71 = vector.shape_cast %70 : vector<16x16xf32> to vector<1x2x8x16xf32>
    %72 = tpu.concatenate %57, %59, %61, %63, %65, %67, %69, %71 in 0 : vector<1x2x8x16xf32>, vector<1x2x8x16xf32>, vector<1x2x8x16xf32>, vector<1x2x8x16xf32>, vector<1x2x8x16xf32>, vector<1x2x8x16xf32>, vector<1x2x8x16xf32>, vector<1x2x8x16xf32> -> vector<8x2x8x16xf32>
    %73 = vector.shape_cast %72 : vector<8x2x8x16xf32> to vector<16x8x16xf32>
    %74 = vector.extract_strided_slice %37 {offsets = [0, 0], sizes = [16, 16], strides = [1, 1]} : vector<16x128xf32> to vector<16x16xf32>
    %75 = vector.shape_cast %74 : vector<16x16xf32> to vector<1x2x8x16xf32>
    %76 = vector.extract_strided_slice %37 {offsets = [0, 16], sizes = [16, 16], strides = [1, 1]} : vector<16x128xf32> to vector<16x16xf32>
    %77 = vector.shape_cast %76 : vector<16x16xf32> to vector<1x2x8x16xf32>
    %78 = vector.extract_strided_slice %37 {offsets = [0, 32], sizes = [16, 16], strides = [1, 1]} : vector<16x128xf32> to vector<16x16xf32>
    %79 = vector.shape_cast %78 : vector<16x16xf32> to vector<1x2x8x16xf32>
    %80 = vector.extract_strided_slice %37 {offsets = [0, 48], sizes = [16, 16], strides = [1, 1]} : vector<16x128xf32> to vector<16x16xf32>
    %81 = vector.shape_cast %80 : vector<16x16xf32> to vector<1x2x8x16xf32>
    %82 = vector.extract_strided_slice %37 {offsets = [0, 64], sizes = [16, 16], strides = [1, 1]} : vector<16x128xf32> to vector<16x16xf32>
    %83 = vector.shape_cast %82 : vector<16x16xf32> to vector<1x2x8x16xf32>
    %84 = vector.extract_strided_slice %37 {offsets = [0, 80], sizes = [16, 16], strides = [1, 1]} : vector<16x128xf32> to vector<16x16xf32>
    %85 = vector.shape_cast %84 : vector<16x16xf32> to vector<1x2x8x16xf32>
    %86 = vector.extract_strided_slice %37 {offsets = [0, 96], sizes = [16, 16], strides = [1, 1]} : vector<16x128xf32> to vector<16x16xf32>
    %87 = vector.shape_cast %86 : vector<16x16xf32> to vector<1x2x8x16xf32>
    %88 = vector.extract_strided_slice %37 {offsets = [0, 112], sizes = [16, 16], strides = [1, 1]} : vector<16x128xf32> to vector<16x16xf32>
    %89 = vector.shape_cast %88 : vector<16x16xf32> to vector<1x2x8x16xf32>
    %90 = tpu.concatenate %75, %77, %79, %81, %83, %85, %87, %89 in 0 : vector<1x2x8x16xf32>, vector<1x2x8x16xf32>, vector<1x2x8x16xf32>, vector<1x2x8x16xf32>, vector<1x2x8x16xf32>, vector<1x2x8x16xf32>, vector<1x2x8x16xf32>, vector<1x2x8x16xf32> -> vector<8x2x8x16xf32>
    %91 = vector.shape_cast %90 : vector<8x2x8x16xf32> to vector<16x8x16xf32>
    "tpu.trace_start"() <{level = 10 : i32, message = "bqd,bkd->bqk"}> : () -> ()
    %cst_25 = arith.constant dense<0.000000e+00> : vector<16x8x8xf32>
    %92 = tpu.matmul %55, %73, %cst_25 {dimension_numbers = #tpu.dot_dimension_numbers<[2], [2], [1], [1], [0, 0, 0, 1, 1, 1], [0], [0]>} : vector<16x8x16xf32>, vector<16x8x16xf32>, vector<16x8x8xf32> -> vector<16x8x8xf32>
    "tpu.trace_stop"() : () -> ()
    %93 = arith.addf %92, %24 : vector<16x8x8xf32>
    %cst_26 = arith.constant dense<0xFF800000> : vector<16x8xf32>
    %94 = vector.multi_reduction <maximumf>, %93, %cst_26 [2] : vector<16x8x8xf32> to vector<16x8xf32>
    %95 = vector.shape_cast %94 : vector<16x8xf32> to vector<16x8x1xf32>
    %96 = vector.broadcast %95 : vector<16x8x1xf32> to vector<16x8x8xf32>
    %97 = arith.subf %93, %96 : vector<16x8x8xf32>
    %98 = math.exp %97 : vector<16x8x8xf32>
    %cst_27 = arith.constant dense<0.000000e+00> : vector<16x8xf32>
    %99 = vector.multi_reduction <add>, %98, %cst_27 [2] : vector<16x8x8xf32> to vector<16x8xf32>
    %100 = vector.shape_cast %99 : vector<16x8xf32> to vector<16x8x1xf32>
    %101 = vector.broadcast %100 : vector<16x8x1xf32> to vector<16x8x8xf32>
    %102 = arith.divf %98, %101 : vector<16x8x8xf32>
    "tpu.trace_start"() <{level = 10 : i32, message = "bqk,bkd->bqd"}> : () -> ()
    %cst_28 = arith.constant dense<0.000000e+00> : vector<16x8x16xf32>
    %103 = tpu.matmul %102, %91, %cst_28 {dimension_numbers = #tpu.dot_dimension_numbers<[2], [1], [1], [2], [0, 0, 0, 1, 1, 2], [0], [0]>} : vector<16x8x8xf32>, vector<16x8x16xf32>, vector<16x8x16xf32> -> vector<16x8x16xf32>
    "tpu.trace_stop"() : () -> ()
    %104 = vector.extract_strided_slice %103 {offsets = [0, 0, 0], sizes = [2, 8, 16], strides = [1, 1, 1]} : vector<16x8x16xf32> to vector<2x8x16xf32>
    %105 = vector.shape_cast %104 : vector<2x8x16xf32> to vector<16x16xf32>
    %106 = vector.extract_strided_slice %103 {offsets = [2, 0, 0], sizes = [2, 8, 16], strides = [1, 1, 1]} : vector<16x8x16xf32> to vector<2x8x16xf32>
    %107 = vector.shape_cast %106 : vector<2x8x16xf32> to vector<16x16xf32>
    %108 = vector.extract_strided_slice %103 {offsets = [4, 0, 0], sizes = [2, 8, 16], strides = [1, 1, 1]} : vector<16x8x16xf32> to vector<2x8x16xf32>
    %109 = vector.shape_cast %108 : vector<2x8x16xf32> to vector<16x16xf32>
    %110 = vector.extract_strided_slice %103 {offsets = [6, 0, 0], sizes = [2, 8, 16], strides = [1, 1, 1]} : vector<16x8x16xf32> to vector<2x8x16xf32>
    %111 = vector.shape_cast %110 : vector<2x8x16xf32> to vector<16x16xf32>
    %112 = vector.extract_strided_slice %103 {offsets = [8, 0, 0], sizes = [2, 8, 16], strides = [1, 1, 1]} : vector<16x8x16xf32> to vector<2x8x16xf32>
    %113 = vector.shape_cast %112 : vector<2x8x16xf32> to vector<16x16xf32>
    %114 = vector.extract_strided_slice %103 {offsets = [10, 0, 0], sizes = [2, 8, 16], strides = [1, 1, 1]} : vector<16x8x16xf32> to vector<2x8x16xf32>
    %115 = vector.shape_cast %114 : vector<2x8x16xf32> to vector<16x16xf32>
    %116 = vector.extract_strided_slice %103 {offsets = [12, 0, 0], sizes = [2, 8, 16], strides = [1, 1, 1]} : vector<16x8x16xf32> to vector<2x8x16xf32>
    %117 = vector.shape_cast %116 : vector<2x8x16xf32> to vector<16x16xf32>
    %118 = vector.extract_strided_slice %103 {offsets = [14, 0, 0], sizes = [2, 8, 16], strides = [1, 1, 1]} : vector<16x8x16xf32> to vector<2x8x16xf32>
    %119 = vector.shape_cast %118 : vector<2x8x16xf32> to vector<16x16xf32>
    %120 = tpu.concatenate %105, %107, %109, %111, %113, %115, %117, %119 in 1 : vector<16x16xf32>, vector<16x16xf32>, vector<16x16xf32>, vector<16x16xf32>, vector<16x16xf32>, vector<16x16xf32>, vector<16x16xf32>, vector<16x16xf32> -> vector<16x128xf32>
    %121 = arith.truncf %120 : vector<16x128xf32> to vector<16x128xbf16>
    %c0_29 = arith.constant 0 : index
    %c0_30 = arith.constant 0 : index
    %c0_31 = arith.constant 0 : index
    %122 = vector.load %arg8[%c0_29, %c0_30, %c0_31] : memref<4x128x128xbf16, #tpu.memory_space<vmem>>, vector<1x128x128xbf16>
    %123 = vector.shape_cast %122 : vector<1x128x128xbf16> to vector<128x128xbf16>
    %cst_32 = arith.constant dense<0.000000e+00> : vector<16x128xf32>
    %124 = tpu.matmul %121, %123, %cst_32 {dimension_numbers = #tpu.dot_dimension_numbers<[1], [0], [0], [1], [0, 0, 1, 1], [], []>} : vector<16x128xbf16>, vector<128x128xbf16>, vector<16x128xf32> -> vector<16x128xf32>
    %c0_33 = arith.constant 0 : index
    %c0_34 = arith.constant 0 : index
    %c0_35 = arith.constant 0 : index
    %125 = vector.load %arg9[%c0_33, %c0_34, %c0_35] : memref<4x1x128xf32, #tpu.memory_space<vmem>>, vector<1x1x128xf32>
    %126 = vector.shape_cast %125 : vector<1x1x128xf32> to vector<1x128xf32>
    %127 = vector.broadcast %126 : vector<1x128xf32> to vector<16x128xf32>
    %128 = arith.addf %124, %127 : vector<16x128xf32>
    %129 = arith.addf %128, %13 : vector<16x128xf32>
    %c0_36 = arith.constant 0 : index
    %c0_37 = arith.constant 0 : index
    %c0_38 = arith.constant 0 : index
    %130 = vector.load %arg10[%c0_36, %c0_37, %c0_38] : memref<4x1x128xf32, #tpu.memory_space<vmem>>, vector<1x1x128xf32>
    %131 = vector.shape_cast %130 : vector<1x1x128xf32> to vector<1x128xf32>
    %c0_39 = arith.constant 0 : index
    %c0_40 = arith.constant 0 : index
    %c0_41 = arith.constant 0 : index
    %132 = vector.load %arg11[%c0_39, %c0_40, %c0_41] : memref<4x1x128xf32, #tpu.memory_space<vmem>>, vector<1x1x128xf32>
    %133 = vector.shape_cast %132 : vector<1x1x128xf32> to vector<1x128xf32>
    %cst_42 = arith.constant dense<0.000000e+00> : vector<16xf32>
    %134 = vector.multi_reduction <add>, %129, %cst_42 [1] : vector<16x128xf32> to vector<16xf32>
    %135 = vector.shape_cast %134 : vector<16xf32> to vector<16x1xf32>
    %cst_43 = arith.constant 1.280000e+02 : f32
    %136 = vector.broadcast %cst_43 : f32 to vector<16x1xf32>
    %137 = arith.divf %135, %136 : vector<16x1xf32>
    %138 = arith.mulf %129, %129 : vector<16x128xf32>
    %cst_44 = arith.constant dense<0.000000e+00> : vector<16xf32>
    %139 = vector.multi_reduction <add>, %138, %cst_44 [1] : vector<16x128xf32> to vector<16xf32>
    %140 = vector.shape_cast %139 : vector<16xf32> to vector<16x1xf32>
    %cst_45 = arith.constant 1.280000e+02 : f32
    %141 = vector.broadcast %cst_45 : f32 to vector<16x1xf32>
    %142 = arith.divf %140, %141 : vector<16x1xf32>
    %143 = arith.mulf %137, %137 : vector<16x1xf32>
    %144 = arith.subf %142, %143 : vector<16x1xf32>
    %145 = vector.broadcast %137 : vector<16x1xf32> to vector<16x128xf32>
    %146 = arith.subf %129, %145 : vector<16x128xf32>
    %cst_46 = arith.constant 9.99999996E-13 : f32
    %147 = vector.broadcast %cst_46 : f32 to vector<16x1xf32>
    %148 = arith.addf %144, %147 : vector<16x1xf32>
    %149 = math.rsqrt %148 : vector<16x1xf32>
    %150 = vector.broadcast %149 : vector<16x1xf32> to vector<16x128xf32>
    %151 = arith.mulf %146, %150 : vector<16x128xf32>
    %152 = vector.broadcast %131 : vector<1x128xf32> to vector<16x128xf32>
    %153 = arith.mulf %151, %152 : vector<16x128xf32>
    %154 = vector.broadcast %133 : vector<1x128xf32> to vector<16x128xf32>
    %155 = arith.addf %153, %154 : vector<16x128xf32>
    %156 = arith.truncf %155 : vector<16x128xf32> to vector<16x128xbf16>
    %c0_47 = arith.constant 0 : index
    %c0_48 = arith.constant 0 : index
    %c0_49 = arith.constant 0 : index
    %157 = vector.load %arg12[%c0_47, %c0_48, %c0_49] : memref<4x128x512xbf16, #tpu.memory_space<vmem>>, vector<1x128x512xbf16>
    %158 = vector.shape_cast %157 : vector<1x128x512xbf16> to vector<128x512xbf16>
    %cst_50 = arith.constant dense<0.000000e+00> : vector<16x512xf32>
    %159 = tpu.matmul %156, %158, %cst_50 {dimension_numbers = #tpu.dot_dimension_numbers<[1], [0], [0], [1], [0, 0, 1, 1], [], []>} : vector<16x128xbf16>, vector<128x512xbf16>, vector<16x512xf32> -> vector<16x512xf32>
    %c0_51 = arith.constant 0 : index
    %c0_52 = arith.constant 0 : index
    %c0_53 = arith.constant 0 : index
    %160 = vector.load %arg13[%c0_51, %c0_52, %c0_53] : memref<4x1x512xf32, #tpu.memory_space<vmem>>, vector<1x1x512xf32>
    %161 = vector.shape_cast %160 : vector<1x1x512xf32> to vector<1x512xf32>
    %162 = vector.broadcast %161 : vector<1x512xf32> to vector<16x512xf32>
    %163 = arith.addf %159, %162 : vector<16x512xf32>
    %cst_54 = arith.constant 5.000000e-01 : f32
    %164 = vector.broadcast %cst_54 : f32 to vector<16x512xf32>
    %165 = arith.mulf %164, %163 : vector<16x512xf32>
    %cst_55 = arith.constant 0.707106769 : f32
    %166 = vector.broadcast %cst_55 : f32 to vector<16x512xf32>
    %167 = arith.mulf %163, %166 : vector<16x512xf32>
    %168 = math.erf %167 : vector<16x512xf32>
    %cst_56 = arith.constant 1.000000e+00 : f32
    %169 = vector.broadcast %cst_56 : f32 to vector<16x512xf32>
    %170 = arith.addf %169, %168 : vector<16x512xf32>
    %171 = arith.mulf %165, %170 : vector<16x512xf32>
    %172 = arith.truncf %171 : vector<16x512xf32> to vector<16x512xbf16>
    %c0_57 = arith.constant 0 : index
    %c0_58 = arith.constant 0 : index
    %c0_59 = arith.constant 0 : index
    %173 = vector.load %arg14[%c0_57, %c0_58, %c0_59] : memref<4x512x128xbf16, #tpu.memory_space<vmem>>, vector<1x512x128xbf16>
    %174 = vector.shape_cast %173 : vector<1x512x128xbf16> to vector<512x128xbf16>
    %cst_60 = arith.constant dense<0.000000e+00> : vector<16x128xf32>
    %175 = tpu.matmul %172, %174, %cst_60 {dimension_numbers = #tpu.dot_dimension_numbers<[1], [0], [0], [1], [0, 0, 1, 1], [], []>} : vector<16x512xbf16>, vector<512x128xbf16>, vector<16x128xf32> -> vector<16x128xf32>
    %c0_61 = arith.constant 0 : index
    %c0_62 = arith.constant 0 : index
    %c0_63 = arith.constant 0 : index
    %176 = vector.load %arg15[%c0_61, %c0_62, %c0_63] : memref<4x1x128xf32, #tpu.memory_space<vmem>>, vector<1x1x128xf32>
    %177 = vector.shape_cast %176 : vector<1x1x128xf32> to vector<1x128xf32>
    %178 = vector.broadcast %177 : vector<1x128xf32> to vector<16x128xf32>
    %179 = arith.addf %175, %178 : vector<16x128xf32>
    %180 = arith.addf %179, %155 : vector<16x128xf32>
    %c0_64 = arith.constant 0 : index
    %c0_65 = arith.constant 0 : index
    %c0_66 = arith.constant 0 : index
    %181 = vector.load %arg16[%c0_64, %c0_65, %c0_66] : memref<4x1x128xf32, #tpu.memory_space<vmem>>, vector<1x1x128xf32>
    %182 = vector.shape_cast %181 : vector<1x1x128xf32> to vector<1x128xf32>
    %c0_67 = arith.constant 0 : index
    %c0_68 = arith.constant 0 : index
    %c0_69 = arith.constant 0 : index
    %183 = vector.load %arg17[%c0_67, %c0_68, %c0_69] : memref<4x1x128xf32, #tpu.memory_space<vmem>>, vector<1x1x128xf32>
    %184 = vector.shape_cast %183 : vector<1x1x128xf32> to vector<1x128xf32>
    %cst_70 = arith.constant dense<0.000000e+00> : vector<16xf32>
    %185 = vector.multi_reduction <add>, %180, %cst_70 [1] : vector<16x128xf32> to vector<16xf32>
    %186 = vector.shape_cast %185 : vector<16xf32> to vector<16x1xf32>
    %cst_71 = arith.constant 1.280000e+02 : f32
    %187 = vector.broadcast %cst_71 : f32 to vector<16x1xf32>
    %188 = arith.divf %186, %187 : vector<16x1xf32>
    %189 = arith.mulf %180, %180 : vector<16x128xf32>
    %cst_72 = arith.constant dense<0.000000e+00> : vector<16xf32>
    %190 = vector.multi_reduction <add>, %189, %cst_72 [1] : vector<16x128xf32> to vector<16xf32>
    %191 = vector.shape_cast %190 : vector<16xf32> to vector<16x1xf32>
    %cst_73 = arith.constant 1.280000e+02 : f32
    %192 = vector.broadcast %cst_73 : f32 to vector<16x1xf32>
    %193 = arith.divf %191, %192 : vector<16x1xf32>
    %194 = arith.mulf %188, %188 : vector<16x1xf32>
    %195 = arith.subf %193, %194 : vector<16x1xf32>
    %196 = vector.broadcast %188 : vector<16x1xf32> to vector<16x128xf32>
    %197 = arith.subf %180, %196 : vector<16x128xf32>
    %cst_74 = arith.constant 9.99999996E-13 : f32
    %198 = vector.broadcast %cst_74 : f32 to vector<16x1xf32>
    %199 = arith.addf %195, %198 : vector<16x1xf32>
    %200 = math.rsqrt %199 : vector<16x1xf32>
    %201 = vector.broadcast %200 : vector<16x1xf32> to vector<16x128xf32>
    %202 = arith.mulf %197, %201 : vector<16x128xf32>
    %203 = vector.broadcast %182 : vector<1x128xf32> to vector<16x128xf32>
    %204 = arith.mulf %202, %203 : vector<16x128xf32>
    %205 = vector.broadcast %184 : vector<1x128xf32> to vector<16x128xf32>
    %206 = arith.addf %204, %205 : vector<16x128xf32>
    %207 = arith.truncf %206 : vector<16x128xf32> to vector<16x128xbf16>
    %c1 = arith.constant 1 : index
    %c0_75 = arith.constant 0 : index
    %c0_76 = arith.constant 0 : index
    %208 = vector.load %arg6[%c1, %c0_75, %c0_76] : memref<4x128x384xbf16, #tpu.memory_space<vmem>>, vector<1x128x384xbf16>
    %209 = vector.shape_cast %208 : vector<1x128x384xbf16> to vector<128x384xbf16>
    %cst_77 = arith.constant dense<0.000000e+00> : vector<16x384xf32>
    %210 = tpu.matmul %207, %209, %cst_77 {dimension_numbers = #tpu.dot_dimension_numbers<[1], [0], [0], [1], [0, 0, 1, 1], [], []>} : vector<16x128xbf16>, vector<128x384xbf16>, vector<16x384xf32> -> vector<16x384xf32>
    %c1_78 = arith.constant 1 : index
    %c0_79 = arith.constant 0 : index
    %c0_80 = arith.constant 0 : index
    %211 = vector.load %arg7[%c1_78, %c0_79, %c0_80] : memref<4x1x384xf32, #tpu.memory_space<vmem>>, vector<1x1x384xf32>
    %212 = vector.shape_cast %211 : vector<1x1x384xf32> to vector<1x384xf32>
    %213 = vector.broadcast %212 : vector<1x384xf32> to vector<16x384xf32>
    %214 = arith.addf %210, %213 : vector<16x384xf32>
    %215 = vector.extract_strided_slice %214 {offsets = [0, 0], sizes = [16, 128], strides = [1, 1]} : vector<16x384xf32> to vector<16x128xf32>
    %cst_81 = arith.constant 2.500000e-01 : f32
    %216 = vector.broadcast %cst_81 : f32 to vector<16x128xf32>
    %217 = arith.mulf %215, %216 : vector<16x128xf32>
    %218 = vector.extract_strided_slice %214 {offsets = [0, 128], sizes = [16, 128], strides = [1, 1]} : vector<16x384xf32> to vector<16x128xf32>
    %219 = vector.extract_strided_slice %214 {offsets = [0, 256], sizes = [16, 128], strides = [1, 1]} : vector<16x384xf32> to vector<16x128xf32>
    %220 = vector.extract_strided_slice %217 {offsets = [0, 0], sizes = [16, 16], strides = [1, 1]} : vector<16x128xf32> to vector<16x16xf32>
    %221 = vector.shape_cast %220 : vector<16x16xf32> to vector<1x2x8x16xf32>
    %222 = vector.extract_strided_slice %217 {offsets = [0, 16], sizes = [16, 16], strides = [1, 1]} : vector<16x128xf32> to vector<16x16xf32>
    %223 = vector.shape_cast %222 : vector<16x16xf32> to vector<1x2x8x16xf32>
    %224 = vector.extract_strided_slice %217 {offsets = [0, 32], sizes = [16, 16], strides = [1, 1]} : vector<16x128xf32> to vector<16x16xf32>
    %225 = vector.shape_cast %224 : vector<16x16xf32> to vector<1x2x8x16xf32>
    %226 = vector.extract_strided_slice %217 {offsets = [0, 48], sizes = [16, 16], strides = [1, 1]} : vector<16x128xf32> to vector<16x16xf32>
    %227 = vector.shape_cast %226 : vector<16x16xf32> to vector<1x2x8x16xf32>
    %228 = vector.extract_strided_slice %217 {offsets = [0, 64], sizes = [16, 16], strides = [1, 1]} : vector<16x128xf32> to vector<16x16xf32>
    %229 = vector.shape_cast %228 : vector<16x16xf32> to vector<1x2x8x16xf32>
    %230 = vector.extract_strided_slice %217 {offsets = [0, 80], sizes = [16, 16], strides = [1, 1]} : vector<16x128xf32> to vector<16x16xf32>
    %231 = vector.shape_cast %230 : vector<16x16xf32> to vector<1x2x8x16xf32>
    %232 = vector.extract_strided_slice %217 {offsets = [0, 96], sizes = [16, 16], strides = [1, 1]} : vector<16x128xf32> to vector<16x16xf32>
    %233 = vector.shape_cast %232 : vector<16x16xf32> to vector<1x2x8x16xf32>
    %234 = vector.extract_strided_slice %217 {offsets = [0, 112], sizes = [16, 16], strides = [1, 1]} : vector<16x128xf32> to vector<16x16xf32>
    %235 = vector.shape_cast %234 : vector<16x16xf32> to vector<1x2x8x16xf32>
    %236 = tpu.concatenate %221, %223, %225, %227, %229, %231, %233, %235 in 0 : vector<1x2x8x16xf32>, vector<1x2x8x16xf32>, vector<1x2x8x16xf32>, vector<1x2x8x16xf32>, vector<1x2x8x16xf32>, vector<1x2x8x16xf32>, vector<1x2x8x16xf32>, vector<1x2x8x16xf32> -> vector<8x2x8x16xf32>
    %237 = vector.shape_cast %236 : vector<8x2x8x16xf32> to vector<16x8x16xf32>
    %238 = vector.extract_strided_slice %218 {offsets = [0, 0], sizes = [16, 16], strides = [1, 1]} : vector<16x128xf32> to vector<16x16xf32>
    %239 = vector.shape_cast %238 : vector<16x16xf32> to vector<1x2x8x16xf32>
    %240 = vector.extract_strided_slice %218 {offsets = [0, 16], sizes = [16, 16], strides = [1, 1]} : vector<16x128xf32> to vector<16x16xf32>
    %241 = vector.shape_cast %240 : vector<16x16xf32> to vector<1x2x8x16xf32>
    %242 = vector.extract_strided_slice %218 {offsets = [0, 32], sizes = [16, 16], strides = [1, 1]} : vector<16x128xf32> to vector<16x16xf32>
    %243 = vector.shape_cast %242 : vector<16x16xf32> to vector<1x2x8x16xf32>
    %244 = vector.extract_strided_slice %218 {offsets = [0, 48], sizes = [16, 16], strides = [1, 1]} : vector<16x128xf32> to vector<16x16xf32>
    %245 = vector.shape_cast %244 : vector<16x16xf32> to vector<1x2x8x16xf32>
    %246 = vector.extract_strided_slice %218 {offsets = [0, 64], sizes = [16, 16], strides = [1, 1]} : vector<16x128xf32> to vector<16x16xf32>
    %247 = vector.shape_cast %246 : vector<16x16xf32> to vector<1x2x8x16xf32>
    %248 = vector.extract_strided_slice %218 {offsets = [0, 80], sizes = [16, 16], strides = [1, 1]} : vector<16x128xf32> to vector<16x16xf32>
    %249 = vector.shape_cast %248 : vector<16x16xf32> to vector<1x2x8x16xf32>
    %250 = vector.extract_strided_slice %218 {offsets = [0, 96], sizes = [16, 16], strides = [1, 1]} : vector<16x128xf32> to vector<16x16xf32>
    %251 = vector.shape_cast %250 : vector<16x16xf32> to vector<1x2x8x16xf32>
    %252 = vector.extract_strided_slice %218 {offsets = [0, 112], sizes = [16, 16], strides = [1, 1]} : vector<16x128xf32> to vector<16x16xf32>
    %253 = vector.shape_cast %252 : vector<16x16xf32> to vector<1x2x8x16xf32>
    %254 = tpu.concatenate %239, %241, %243, %245, %247, %249, %251, %253 in 0 : vector<1x2x8x16xf32>, vector<1x2x8x16xf32>, vector<1x2x8x16xf32>, vector<1x2x8x16xf32>, vector<1x2x8x16xf32>, vector<1x2x8x16xf32>, vector<1x2x8x16xf32>, vector<1x2x8x16xf32> -> vector<8x2x8x16xf32>
    %255 = vector.shape_cast %254 : vector<8x2x8x16xf32> to vector<16x8x16xf32>
    %256 = vector.extract_strided_slice %219 {offsets = [0, 0], sizes = [16, 16], strides = [1, 1]} : vector<16x128xf32> to vector<16x16xf32>
    %257 = vector.shape_cast %256 : vector<16x16xf32> to vector<1x2x8x16xf32>
    %258 = vector.extract_strided_slice %219 {offsets = [0, 16], sizes = [16, 16], strides = [1, 1]} : vector<16x128xf32> to vector<16x16xf32>
    %259 = vector.shape_cast %258 : vector<16x16xf32> to vector<1x2x8x16xf32>
    %260 = vector.extract_strided_slice %219 {offsets = [0, 32], sizes = [16, 16], strides = [1, 1]} : vector<16x128xf32> to vector<16x16xf32>
    %261 = vector.shape_cast %260 : vector<16x16xf32> to vector<1x2x8x16xf32>
    %262 = vector.extract_strided_slice %219 {offsets = [0, 48], sizes = [16, 16], strides = [1, 1]} : vector<16x128xf32> to vector<16x16xf32>
    %263 = vector.shape_cast %262 : vector<16x16xf32> to vector<1x2x8x16xf32>
    %264 = vector.extract_strided_slice %219 {offsets = [0, 64], sizes = [16, 16], strides = [1, 1]} : vector<16x128xf32> to vector<16x16xf32>
    %265 = vector.shape_cast %264 : vector<16x16xf32> to vector<1x2x8x16xf32>
    %266 = vector.extract_strided_slice %219 {offsets = [0, 80], sizes = [16, 16], strides = [1, 1]} : vector<16x128xf32> to vector<16x16xf32>
    %267 = vector.shape_cast %266 : vector<16x16xf32> to vector<1x2x8x16xf32>
    %268 = vector.extract_strided_slice %219 {offsets = [0, 96], sizes = [16, 16], strides = [1, 1]} : vector<16x128xf32> to vector<16x16xf32>
    %269 = vector.shape_cast %268 : vector<16x16xf32> to vector<1x2x8x16xf32>
    %270 = vector.extract_strided_slice %219 {offsets = [0, 112], sizes = [16, 16], strides = [1, 1]} : vector<16x128xf32> to vector<16x16xf32>
    %271 = vector.shape_cast %270 : vector<16x16xf32> to vector<1x2x8x16xf32>
    %272 = tpu.concatenate %257, %259, %261, %263, %265, %267, %269, %271 in 0 : vector<1x2x8x16xf32>, vector<1x2x8x16xf32>, vector<1x2x8x16xf32>, vector<1x2x8x16xf32>, vector<1x2x8x16xf32>, vector<1x2x8x16xf32>, vector<1x2x8x16xf32>, vector<1x2x8x16xf32> -> vector<8x2x8x16xf32>
    %273 = vector.shape_cast %272 : vector<8x2x8x16xf32> to vector<16x8x16xf32>
    "tpu.trace_start"() <{level = 10 : i32, message = "bqd,bkd->bqk"}> : () -> ()
    %cst_82 = arith.constant dense<0.000000e+00> : vector<16x8x8xf32>
    %274 = tpu.matmul %237, %255, %cst_82 {dimension_numbers = #tpu.dot_dimension_numbers<[2], [2], [1], [1], [0, 0, 0, 1, 1, 1], [0], [0]>} : vector<16x8x16xf32>, vector<16x8x16xf32>, vector<16x8x8xf32> -> vector<16x8x8xf32>
    "tpu.trace_stop"() : () -> ()
    %275 = arith.addf %274, %24 : vector<16x8x8xf32>
    %cst_83 = arith.constant dense<0xFF800000> : vector<16x8xf32>
    %276 = vector.multi_reduction <maximumf>, %275, %cst_83 [2] : vector<16x8x8xf32> to vector<16x8xf32>
    %277 = vector.shape_cast %276 : vector<16x8xf32> to vector<16x8x1xf32>
    %278 = vector.broadcast %277 : vector<16x8x1xf32> to vector<16x8x8xf32>
    %279 = arith.subf %275, %278 : vector<16x8x8xf32>
    %280 = math.exp %279 : vector<16x8x8xf32>
    %cst_84 = arith.constant dense<0.000000e+00> : vector<16x8xf32>
    %281 = vector.multi_reduction <add>, %280, %cst_84 [2] : vector<16x8x8xf32> to vector<16x8xf32>
    %282 = vector.shape_cast %281 : vector<16x8xf32> to vector<16x8x1xf32>
    %283 = vector.broadcast %282 : vector<16x8x1xf32> to vector<16x8x8xf32>
    %284 = arith.divf %280, %283 : vector<16x8x8xf32>
    "tpu.trace_start"() <{level = 10 : i32, message = "bqk,bkd->bqd"}> : () -> ()
    %cst_85 = arith.constant dense<0.000000e+00> : vector<16x8x16xf32>
    %285 = tpu.matmul %284, %273, %cst_85 {dimension_numbers = #tpu.dot_dimension_numbers<[2], [1], [1], [2], [0, 0, 0, 1, 1, 2], [0], [0]>} : vector<16x8x8xf32>, vector<16x8x16xf32>, vector<16x8x16xf32> -> vector<16x8x16xf32>
    "tpu.trace_stop"() : () -> ()
    %286 = vector.extract_strided_slice %285 {offsets = [0, 0, 0], sizes = [2, 8, 16], strides = [1, 1, 1]} : vector<16x8x16xf32> to vector<2x8x16xf32>
    %287 = vector.shape_cast %286 : vector<2x8x16xf32> to vector<16x16xf32>
    %288 = vector.extract_strided_slice %285 {offsets = [2, 0, 0], sizes = [2, 8, 16], strides = [1, 1, 1]} : vector<16x8x16xf32> to vector<2x8x16xf32>
    %289 = vector.shape_cast %288 : vector<2x8x16xf32> to vector<16x16xf32>
    %290 = vector.extract_strided_slice %285 {offsets = [4, 0, 0], sizes = [2, 8, 16], strides = [1, 1, 1]} : vector<16x8x16xf32> to vector<2x8x16xf32>
    %291 = vector.shape_cast %290 : vector<2x8x16xf32> to vector<16x16xf32>
    %292 = vector.extract_strided_slice %285 {offsets = [6, 0, 0], sizes = [2, 8, 16], strides = [1, 1, 1]} : vector<16x8x16xf32> to vector<2x8x16xf32>
    %293 = vector.shape_cast %292 : vector<2x8x16xf32> to vector<16x16xf32>
    %294 = vector.extract_strided_slice %285 {offsets = [8, 0, 0], sizes = [2, 8, 16], strides = [1, 1, 1]} : vector<16x8x16xf32> to vector<2x8x16xf32>
    %295 = vector.shape_cast %294 : vector<2x8x16xf32> to vector<16x16xf32>
    %296 = vector.extract_strided_slice %285 {offsets = [10, 0, 0], sizes = [2, 8, 16], strides = [1, 1, 1]} : vector<16x8x16xf32> to vector<2x8x16xf32>
    %297 = vector.shape_cast %296 : vector<2x8x16xf32> to vector<16x16xf32>
    %298 = vector.extract_strided_slice %285 {offsets = [12, 0, 0], sizes = [2, 8, 16], strides = [1, 1, 1]} : vector<16x8x16xf32> to vector<2x8x16xf32>
    %299 = vector.shape_cast %298 : vector<2x8x16xf32> to vector<16x16xf32>
    %300 = vector.extract_strided_slice %285 {offsets = [14, 0, 0], sizes = [2, 8, 16], strides = [1, 1, 1]} : vector<16x8x16xf32> to vector<2x8x16xf32>
    %301 = vector.shape_cast %300 : vector<2x8x16xf32> to vector<16x16xf32>
    %302 = tpu.concatenate %287, %289, %291, %293, %295, %297, %299, %301 in 1 : vector<16x16xf32>, vector<16x16xf32>, vector<16x16xf32>, vector<16x16xf32>, vector<16x16xf32>, vector<16x16xf32>, vector<16x16xf32>, vector<16x16xf32> -> vector<16x128xf32>
    %303 = arith.truncf %302 : vector<16x128xf32> to vector<16x128xbf16>
    %c1_86 = arith.constant 1 : index
    %c0_87 = arith.constant 0 : index
    %c0_88 = arith.constant 0 : index
    %304 = vector.load %arg8[%c1_86, %c0_87, %c0_88] : memref<4x128x128xbf16, #tpu.memory_space<vmem>>, vector<1x128x128xbf16>
    %305 = vector.shape_cast %304 : vector<1x128x128xbf16> to vector<128x128xbf16>
    %cst_89 = arith.constant dense<0.000000e+00> : vector<16x128xf32>
    %306 = tpu.matmul %303, %305, %cst_89 {dimension_numbers = #tpu.dot_dimension_numbers<[1], [0], [0], [1], [0, 0, 1, 1], [], []>} : vector<16x128xbf16>, vector<128x128xbf16>, vector<16x128xf32> -> vector<16x128xf32>
    %c1_90 = arith.constant 1 : index
    %c0_91 = arith.constant 0 : index
    %c0_92 = arith.constant 0 : index
    %307 = vector.load %arg9[%c1_90, %c0_91, %c0_92] : memref<4x1x128xf32, #tpu.memory_space<vmem>>, vector<1x1x128xf32>
    %308 = vector.shape_cast %307 : vector<1x1x128xf32> to vector<1x128xf32>
    %309 = vector.broadcast %308 : vector<1x128xf32> to vector<16x128xf32>
    %310 = arith.addf %306, %309 : vector<16x128xf32>
    %311 = arith.addf %310, %206 : vector<16x128xf32>
    %c1_93 = arith.constant 1 : index
    %c0_94 = arith.constant 0 : index
    %c0_95 = arith.constant 0 : index
    %312 = vector.load %arg10[%c1_93, %c0_94, %c0_95] : memref<4x1x128xf32, #tpu.memory_space<vmem>>, vector<1x1x128xf32>
    %313 = vector.shape_cast %312 : vector<1x1x128xf32> to vector<1x128xf32>
    %c1_96 = arith.constant 1 : index
    %c0_97 = arith.constant 0 : index
    %c0_98 = arith.constant 0 : index
    %314 = vector.load %arg11[%c1_96, %c0_97, %c0_98] : memref<4x1x128xf32, #tpu.memory_space<vmem>>, vector<1x1x128xf32>
    %315 = vector.shape_cast %314 : vector<1x1x128xf32> to vector<1x128xf32>
    %cst_99 = arith.constant dense<0.000000e+00> : vector<16xf32>
    %316 = vector.multi_reduction <add>, %311, %cst_99 [1] : vector<16x128xf32> to vector<16xf32>
    %317 = vector.shape_cast %316 : vector<16xf32> to vector<16x1xf32>
    %cst_100 = arith.constant 1.280000e+02 : f32
    %318 = vector.broadcast %cst_100 : f32 to vector<16x1xf32>
    %319 = arith.divf %317, %318 : vector<16x1xf32>
    %320 = arith.mulf %311, %311 : vector<16x128xf32>
    %cst_101 = arith.constant dense<0.000000e+00> : vector<16xf32>
    %321 = vector.multi_reduction <add>, %320, %cst_101 [1] : vector<16x128xf32> to vector<16xf32>
    %322 = vector.shape_cast %321 : vector<16xf32> to vector<16x1xf32>
    %cst_102 = arith.constant 1.280000e+02 : f32
    %323 = vector.broadcast %cst_102 : f32 to vector<16x1xf32>
    %324 = arith.divf %322, %323 : vector<16x1xf32>
    %325 = arith.mulf %319, %319 : vector<16x1xf32>
    %326 = arith.subf %324, %325 : vector<16x1xf32>
    %327 = vector.broadcast %319 : vector<16x1xf32> to vector<16x128xf32>
    %328 = arith.subf %311, %327 : vector<16x128xf32>
    %cst_103 = arith.constant 9.99999996E-13 : f32
    %329 = vector.broadcast %cst_103 : f32 to vector<16x1xf32>
    %330 = arith.addf %326, %329 : vector<16x1xf32>
    %331 = math.rsqrt %330 : vector<16x1xf32>
    %332 = vector.broadcast %331 : vector<16x1xf32> to vector<16x128xf32>
    %333 = arith.mulf %328, %332 : vector<16x128xf32>
    %334 = vector.broadcast %313 : vector<1x128xf32> to vector<16x128xf32>
    %335 = arith.mulf %333, %334 : vector<16x128xf32>
    %336 = vector.broadcast %315 : vector<1x128xf32> to vector<16x128xf32>
    %337 = arith.addf %335, %336 : vector<16x128xf32>
    %338 = arith.truncf %337 : vector<16x128xf32> to vector<16x128xbf16>
    %c1_104 = arith.constant 1 : index
    %c0_105 = arith.constant 0 : index
    %c0_106 = arith.constant 0 : index
    %339 = vector.load %arg12[%c1_104, %c0_105, %c0_106] : memref<4x128x512xbf16, #tpu.memory_space<vmem>>, vector<1x128x512xbf16>
    %340 = vector.shape_cast %339 : vector<1x128x512xbf16> to vector<128x512xbf16>
    %cst_107 = arith.constant dense<0.000000e+00> : vector<16x512xf32>
    %341 = tpu.matmul %338, %340, %cst_107 {dimension_numbers = #tpu.dot_dimension_numbers<[1], [0], [0], [1], [0, 0, 1, 1], [], []>} : vector<16x128xbf16>, vector<128x512xbf16>, vector<16x512xf32> -> vector<16x512xf32>
    %c1_108 = arith.constant 1 : index
    %c0_109 = arith.constant 0 : index
    %c0_110 = arith.constant 0 : index
    %342 = vector.load %arg13[%c1_108, %c0_109, %c0_110] : memref<4x1x512xf32, #tpu.memory_space<vmem>>, vector<1x1x512xf32>
    %343 = vector.shape_cast %342 : vector<1x1x512xf32> to vector<1x512xf32>
    %344 = vector.broadcast %343 : vector<1x512xf32> to vector<16x512xf32>
    %345 = arith.addf %341, %344 : vector<16x512xf32>
    %cst_111 = arith.constant 5.000000e-01 : f32
    %346 = vector.broadcast %cst_111 : f32 to vector<16x512xf32>
    %347 = arith.mulf %346, %345 : vector<16x512xf32>
    %cst_112 = arith.constant 0.707106769 : f32
    %348 = vector.broadcast %cst_112 : f32 to vector<16x512xf32>
    %349 = arith.mulf %345, %348 : vector<16x512xf32>
    %350 = math.erf %349 : vector<16x512xf32>
    %cst_113 = arith.constant 1.000000e+00 : f32
    %351 = vector.broadcast %cst_113 : f32 to vector<16x512xf32>
    %352 = arith.addf %351, %350 : vector<16x512xf32>
    %353 = arith.mulf %347, %352 : vector<16x512xf32>
    %354 = arith.truncf %353 : vector<16x512xf32> to vector<16x512xbf16>
    %c1_114 = arith.constant 1 : index
    %c0_115 = arith.constant 0 : index
    %c0_116 = arith.constant 0 : index
    %355 = vector.load %arg14[%c1_114, %c0_115, %c0_116] : memref<4x512x128xbf16, #tpu.memory_space<vmem>>, vector<1x512x128xbf16>
    %356 = vector.shape_cast %355 : vector<1x512x128xbf16> to vector<512x128xbf16>
    %cst_117 = arith.constant dense<0.000000e+00> : vector<16x128xf32>
    %357 = tpu.matmul %354, %356, %cst_117 {dimension_numbers = #tpu.dot_dimension_numbers<[1], [0], [0], [1], [0, 0, 1, 1], [], []>} : vector<16x512xbf16>, vector<512x128xbf16>, vector<16x128xf32> -> vector<16x128xf32>
    %c1_118 = arith.constant 1 : index
    %c0_119 = arith.constant 0 : index
    %c0_120 = arith.constant 0 : index
    %358 = vector.load %arg15[%c1_118, %c0_119, %c0_120] : memref<4x1x128xf32, #tpu.memory_space<vmem>>, vector<1x1x128xf32>
    %359 = vector.shape_cast %358 : vector<1x1x128xf32> to vector<1x128xf32>
    %360 = vector.broadcast %359 : vector<1x128xf32> to vector<16x128xf32>
    %361 = arith.addf %357, %360 : vector<16x128xf32>
    %362 = arith.addf %361, %337 : vector<16x128xf32>
    %c1_121 = arith.constant 1 : index
    %c0_122 = arith.constant 0 : index
    %c0_123 = arith.constant 0 : index
    %363 = vector.load %arg16[%c1_121, %c0_122, %c0_123] : memref<4x1x128xf32, #tpu.memory_space<vmem>>, vector<1x1x128xf32>
    %364 = vector.shape_cast %363 : vector<1x1x128xf32> to vector<1x128xf32>
    %c1_124 = arith.constant 1 : index
    %c0_125 = arith.constant 0 : index
    %c0_126 = arith.constant 0 : index
    %365 = vector.load %arg17[%c1_124, %c0_125, %c0_126] : memref<4x1x128xf32, #tpu.memory_space<vmem>>, vector<1x1x128xf32>
    %366 = vector.shape_cast %365 : vector<1x1x128xf32> to vector<1x128xf32>
    %cst_127 = arith.constant dense<0.000000e+00> : vector<16xf32>
    %367 = vector.multi_reduction <add>, %362, %cst_127 [1] : vector<16x128xf32> to vector<16xf32>
    %368 = vector.shape_cast %367 : vector<16xf32> to vector<16x1xf32>
    %cst_128 = arith.constant 1.280000e+02 : f32
    %369 = vector.broadcast %cst_128 : f32 to vector<16x1xf32>
    %370 = arith.divf %368, %369 : vector<16x1xf32>
    %371 = arith.mulf %362, %362 : vector<16x128xf32>
    %cst_129 = arith.constant dense<0.000000e+00> : vector<16xf32>
    %372 = vector.multi_reduction <add>, %371, %cst_129 [1] : vector<16x128xf32> to vector<16xf32>
    %373 = vector.shape_cast %372 : vector<16xf32> to vector<16x1xf32>
    %cst_130 = arith.constant 1.280000e+02 : f32
    %374 = vector.broadcast %cst_130 : f32 to vector<16x1xf32>
    %375 = arith.divf %373, %374 : vector<16x1xf32>
    %376 = arith.mulf %370, %370 : vector<16x1xf32>
    %377 = arith.subf %375, %376 : vector<16x1xf32>
    %378 = vector.broadcast %370 : vector<16x1xf32> to vector<16x128xf32>
    %379 = arith.subf %362, %378 : vector<16x128xf32>
    %cst_131 = arith.constant 9.99999996E-13 : f32
    %380 = vector.broadcast %cst_131 : f32 to vector<16x1xf32>
    %381 = arith.addf %377, %380 : vector<16x1xf32>
    %382 = math.rsqrt %381 : vector<16x1xf32>
    %383 = vector.broadcast %382 : vector<16x1xf32> to vector<16x128xf32>
    %384 = arith.mulf %379, %383 : vector<16x128xf32>
    %385 = vector.broadcast %364 : vector<1x128xf32> to vector<16x128xf32>
    %386 = arith.mulf %384, %385 : vector<16x128xf32>
    %387 = vector.broadcast %366 : vector<1x128xf32> to vector<16x128xf32>
    %388 = arith.addf %386, %387 : vector<16x128xf32>
    %389 = arith.truncf %388 : vector<16x128xf32> to vector<16x128xbf16>
    %c2 = arith.constant 2 : index
    %c0_132 = arith.constant 0 : index
    %c0_133 = arith.constant 0 : index
    %390 = vector.load %arg6[%c2, %c0_132, %c0_133] : memref<4x128x384xbf16, #tpu.memory_space<vmem>>, vector<1x128x384xbf16>
    %391 = vector.shape_cast %390 : vector<1x128x384xbf16> to vector<128x384xbf16>
    %cst_134 = arith.constant dense<0.000000e+00> : vector<16x384xf32>
    %392 = tpu.matmul %389, %391, %cst_134 {dimension_numbers = #tpu.dot_dimension_numbers<[1], [0], [0], [1], [0, 0, 1, 1], [], []>} : vector<16x128xbf16>, vector<128x384xbf16>, vector<16x384xf32> -> vector<16x384xf32>
    %c2_135 = arith.constant 2 : index
    %c0_136 = arith.constant 0 : index
    %c0_137 = arith.constant 0 : index
    %393 = vector.load %arg7[%c2_135, %c0_136, %c0_137] : memref<4x1x384xf32, #tpu.memory_space<vmem>>, vector<1x1x384xf32>
    %394 = vector.shape_cast %393 : vector<1x1x384xf32> to vector<1x384xf32>
    %395 = vector.broadcast %394 : vector<1x384xf32> to vector<16x384xf32>
    %396 = arith.addf %392, %395 : vector<16x384xf32>
    %397 = vector.extract_strided_slice %396 {offsets = [0, 0], sizes = [16, 128], strides = [1, 1]} : vector<16x384xf32> to vector<16x128xf32>
    %cst_138 = arith.constant 2.500000e-01 : f32
    %398 = vector.broadcast %cst_138 : f32 to vector<16x128xf32>
    %399 = arith.mulf %397, %398 : vector<16x128xf32>
    %400 = vector.extract_strided_slice %396 {offsets = [0, 128], sizes = [16, 128], strides = [1, 1]} : vector<16x384xf32> to vector<16x128xf32>
    %401 = vector.extract_strided_slice %396 {offsets = [0, 256], sizes = [16, 128], strides = [1, 1]} : vector<16x384xf32> to vector<16x128xf32>
    %402 = vector.extract_strided_slice %399 {offsets = [0, 0], sizes = [16, 16], strides = [1, 1]} : vector<16x128xf32> to vector<16x16xf32>
    %403 = vector.shape_cast %402 : vector<16x16xf32> to vector<1x2x8x16xf32>
    %404 = vector.extract_strided_slice %399 {offsets = [0, 16], sizes = [16, 16], strides = [1, 1]} : vector<16x128xf32> to vector<16x16xf32>
    %405 = vector.shape_cast %404 : vector<16x16xf32> to vector<1x2x8x16xf32>
    %406 = vector.extract_strided_slice %399 {offsets = [0, 32], sizes = [16, 16], strides = [1, 1]} : vector<16x128xf32> to vector<16x16xf32>
    %407 = vector.shape_cast %406 : vector<16x16xf32> to vector<1x2x8x16xf32>
    %408 = vector.extract_strided_slice %399 {offsets = [0, 48], sizes = [16, 16], strides = [1, 1]} : vector<16x128xf32> to vector<16x16xf32>
    %409 = vector.shape_cast %408 : vector<16x16xf32> to vector<1x2x8x16xf32>
    %410 = vector.extract_strided_slice %399 {offsets = [0, 64], sizes = [16, 16], strides = [1, 1]} : vector<16x128xf32> to vector<16x16xf32>
    %411 = vector.shape_cast %410 : vector<16x16xf32> to vector<1x2x8x16xf32>
    %412 = vector.extract_strided_slice %399 {offsets = [0, 80], sizes = [16, 16], strides = [1, 1]} : vector<16x128xf32> to vector<16x16xf32>
    %413 = vector.shape_cast %412 : vector<16x16xf32> to vector<1x2x8x16xf32>
    %414 = vector.extract_strided_slice %399 {offsets = [0, 96], sizes = [16, 16], strides = [1, 1]} : vector<16x128xf32> to vector<16x16xf32>
    %415 = vector.shape_cast %414 : vector<16x16xf32> to vector<1x2x8x16xf32>
    %416 = vector.extract_strided_slice %399 {offsets = [0, 112], sizes = [16, 16], strides = [1, 1]} : vector<16x128xf32> to vector<16x16xf32>
    %417 = vector.shape_cast %416 : vector<16x16xf32> to vector<1x2x8x16xf32>
    %418 = tpu.concatenate %403, %405, %407, %409, %411, %413, %415, %417 in 0 : vector<1x2x8x16xf32>, vector<1x2x8x16xf32>, vector<1x2x8x16xf32>, vector<1x2x8x16xf32>, vector<1x2x8x16xf32>, vector<1x2x8x16xf32>, vector<1x2x8x16xf32>, vector<1x2x8x16xf32> -> vector<8x2x8x16xf32>
    %419 = vector.shape_cast %418 : vector<8x2x8x16xf32> to vector<16x8x16xf32>
    %420 = vector.extract_strided_slice %400 {offsets = [0, 0], sizes = [16, 16], strides = [1, 1]} : vector<16x128xf32> to vector<16x16xf32>
    %421 = vector.shape_cast %420 : vector<16x16xf32> to vector<1x2x8x16xf32>
    %422 = vector.extract_strided_slice %400 {offsets = [0, 16], sizes = [16, 16], strides = [1, 1]} : vector<16x128xf32> to vector<16x16xf32>
    %423 = vector.shape_cast %422 : vector<16x16xf32> to vector<1x2x8x16xf32>
    %424 = vector.extract_strided_slice %400 {offsets = [0, 32], sizes = [16, 16], strides = [1, 1]} : vector<16x128xf32> to vector<16x16xf32>
    %425 = vector.shape_cast %424 : vector<16x16xf32> to vector<1x2x8x16xf32>
    %426 = vector.extract_strided_slice %400 {offsets = [0, 48], sizes = [16, 16], strides = [1, 1]} : vector<16x128xf32> to vector<16x16xf32>
    %427 = vector.shape_cast %426 : vector<16x16xf32> to vector<1x2x8x16xf32>
    %428 = vector.extract_strided_slice %400 {offsets = [0, 64], sizes = [16, 16], strides = [1, 1]} : vector<16x128xf32> to vector<16x16xf32>
    %429 = vector.shape_cast %428 : vector<16x16xf32> to vector<1x2x8x16xf32>
    %430 = vector.extract_strided_slice %400 {offsets = [0, 80], sizes = [16, 16], strides = [1, 1]} : vector<16x128xf32> to vector<16x16xf32>
    %431 = vector.shape_cast %430 : vector<16x16xf32> to vector<1x2x8x16xf32>
    %432 = vector.extract_strided_slice %400 {offsets = [0, 96], sizes = [16, 16], strides = [1, 1]} : vector<16x128xf32> to vector<16x16xf32>
    %433 = vector.shape_cast %432 : vector<16x16xf32> to vector<1x2x8x16xf32>
    %434 = vector.extract_strided_slice %400 {offsets = [0, 112], sizes = [16, 16], strides = [1, 1]} : vector<16x128xf32> to vector<16x16xf32>
    %435 = vector.shape_cast %434 : vector<16x16xf32> to vector<1x2x8x16xf32>
    %436 = tpu.concatenate %421, %423, %425, %427, %429, %431, %433, %435 in 0 : vector<1x2x8x16xf32>, vector<1x2x8x16xf32>, vector<1x2x8x16xf32>, vector<1x2x8x16xf32>, vector<1x2x8x16xf32>, vector<1x2x8x16xf32>, vector<1x2x8x16xf32>, vector<1x2x8x16xf32> -> vector<8x2x8x16xf32>
    %437 = vector.shape_cast %436 : vector<8x2x8x16xf32> to vector<16x8x16xf32>
    %438 = vector.extract_strided_slice %401 {offsets = [0, 0], sizes = [16, 16], strides = [1, 1]} : vector<16x128xf32> to vector<16x16xf32>
    %439 = vector.shape_cast %438 : vector<16x16xf32> to vector<1x2x8x16xf32>
    %440 = vector.extract_strided_slice %401 {offsets = [0, 16], sizes = [16, 16], strides = [1, 1]} : vector<16x128xf32> to vector<16x16xf32>
    %441 = vector.shape_cast %440 : vector<16x16xf32> to vector<1x2x8x16xf32>
    %442 = vector.extract_strided_slice %401 {offsets = [0, 32], sizes = [16, 16], strides = [1, 1]} : vector<16x128xf32> to vector<16x16xf32>
    %443 = vector.shape_cast %442 : vector<16x16xf32> to vector<1x2x8x16xf32>
    %444 = vector.extract_strided_slice %401 {offsets = [0, 48], sizes = [16, 16], strides = [1, 1]} : vector<16x128xf32> to vector<16x16xf32>
    %445 = vector.shape_cast %444 : vector<16x16xf32> to vector<1x2x8x16xf32>
    %446 = vector.extract_strided_slice %401 {offsets = [0, 64], sizes = [16, 16], strides = [1, 1]} : vector<16x128xf32> to vector<16x16xf32>
    %447 = vector.shape_cast %446 : vector<16x16xf32> to vector<1x2x8x16xf32>
    %448 = vector.extract_strided_slice %401 {offsets = [0, 80], sizes = [16, 16], strides = [1, 1]} : vector<16x128xf32> to vector<16x16xf32>
    %449 = vector.shape_cast %448 : vector<16x16xf32> to vector<1x2x8x16xf32>
    %450 = vector.extract_strided_slice %401 {offsets = [0, 96], sizes = [16, 16], strides = [1, 1]} : vector<16x128xf32> to vector<16x16xf32>
    %451 = vector.shape_cast %450 : vector<16x16xf32> to vector<1x2x8x16xf32>
    %452 = vector.extract_strided_slice %401 {offsets = [0, 112], sizes = [16, 16], strides = [1, 1]} : vector<16x128xf32> to vector<16x16xf32>
    %453 = vector.shape_cast %452 : vector<16x16xf32> to vector<1x2x8x16xf32>
    %454 = tpu.concatenate %439, %441, %443, %445, %447, %449, %451, %453 in 0 : vector<1x2x8x16xf32>, vector<1x2x8x16xf32>, vector<1x2x8x16xf32>, vector<1x2x8x16xf32>, vector<1x2x8x16xf32>, vector<1x2x8x16xf32>, vector<1x2x8x16xf32>, vector<1x2x8x16xf32> -> vector<8x2x8x16xf32>
    %455 = vector.shape_cast %454 : vector<8x2x8x16xf32> to vector<16x8x16xf32>
    "tpu.trace_start"() <{level = 10 : i32, message = "bqd,bkd->bqk"}> : () -> ()
    %cst_139 = arith.constant dense<0.000000e+00> : vector<16x8x8xf32>
    %456 = tpu.matmul %419, %437, %cst_139 {dimension_numbers = #tpu.dot_dimension_numbers<[2], [2], [1], [1], [0, 0, 0, 1, 1, 1], [0], [0]>} : vector<16x8x16xf32>, vector<16x8x16xf32>, vector<16x8x8xf32> -> vector<16x8x8xf32>
    "tpu.trace_stop"() : () -> ()
    %457 = arith.addf %456, %24 : vector<16x8x8xf32>
    %cst_140 = arith.constant dense<0xFF800000> : vector<16x8xf32>
    %458 = vector.multi_reduction <maximumf>, %457, %cst_140 [2] : vector<16x8x8xf32> to vector<16x8xf32>
    %459 = vector.shape_cast %458 : vector<16x8xf32> to vector<16x8x1xf32>
    %460 = vector.broadcast %459 : vector<16x8x1xf32> to vector<16x8x8xf32>
    %461 = arith.subf %457, %460 : vector<16x8x8xf32>
    %462 = math.exp %461 : vector<16x8x8xf32>
    %cst_141 = arith.constant dense<0.000000e+00> : vector<16x8xf32>
    %463 = vector.multi_reduction <add>, %462, %cst_141 [2] : vector<16x8x8xf32> to vector<16x8xf32>
    %464 = vector.shape_cast %463 : vector<16x8xf32> to vector<16x8x1xf32>
    %465 = vector.broadcast %464 : vector<16x8x1xf32> to vector<16x8x8xf32>
    %466 = arith.divf %462, %465 : vector<16x8x8xf32>
    "tpu.trace_start"() <{level = 10 : i32, message = "bqk,bkd->bqd"}> : () -> ()
    %cst_142 = arith.constant dense<0.000000e+00> : vector<16x8x16xf32>
    %467 = tpu.matmul %466, %455, %cst_142 {dimension_numbers = #tpu.dot_dimension_numbers<[2], [1], [1], [2], [0, 0, 0, 1, 1, 2], [0], [0]>} : vector<16x8x8xf32>, vector<16x8x16xf32>, vector<16x8x16xf32> -> vector<16x8x16xf32>
    "tpu.trace_stop"() : () -> ()
    %468 = vector.extract_strided_slice %467 {offsets = [0, 0, 0], sizes = [2, 8, 16], strides = [1, 1, 1]} : vector<16x8x16xf32> to vector<2x8x16xf32>
    %469 = vector.shape_cast %468 : vector<2x8x16xf32> to vector<16x16xf32>
    %470 = vector.extract_strided_slice %467 {offsets = [2, 0, 0], sizes = [2, 8, 16], strides = [1, 1, 1]} : vector<16x8x16xf32> to vector<2x8x16xf32>
    %471 = vector.shape_cast %470 : vector<2x8x16xf32> to vector<16x16xf32>
    %472 = vector.extract_strided_slice %467 {offsets = [4, 0, 0], sizes = [2, 8, 16], strides = [1, 1, 1]} : vector<16x8x16xf32> to vector<2x8x16xf32>
    %473 = vector.shape_cast %472 : vector<2x8x16xf32> to vector<16x16xf32>
    %474 = vector.extract_strided_slice %467 {offsets = [6, 0, 0], sizes = [2, 8, 16], strides = [1, 1, 1]} : vector<16x8x16xf32> to vector<2x8x16xf32>
    %475 = vector.shape_cast %474 : vector<2x8x16xf32> to vector<16x16xf32>
    %476 = vector.extract_strided_slice %467 {offsets = [8, 0, 0], sizes = [2, 8, 16], strides = [1, 1, 1]} : vector<16x8x16xf32> to vector<2x8x16xf32>
    %477 = vector.shape_cast %476 : vector<2x8x16xf32> to vector<16x16xf32>
    %478 = vector.extract_strided_slice %467 {offsets = [10, 0, 0], sizes = [2, 8, 16], strides = [1, 1, 1]} : vector<16x8x16xf32> to vector<2x8x16xf32>
    %479 = vector.shape_cast %478 : vector<2x8x16xf32> to vector<16x16xf32>
    %480 = vector.extract_strided_slice %467 {offsets = [12, 0, 0], sizes = [2, 8, 16], strides = [1, 1, 1]} : vector<16x8x16xf32> to vector<2x8x16xf32>
    %481 = vector.shape_cast %480 : vector<2x8x16xf32> to vector<16x16xf32>
    %482 = vector.extract_strided_slice %467 {offsets = [14, 0, 0], sizes = [2, 8, 16], strides = [1, 1, 1]} : vector<16x8x16xf32> to vector<2x8x16xf32>
    %483 = vector.shape_cast %482 : vector<2x8x16xf32> to vector<16x16xf32>
    %484 = tpu.concatenate %469, %471, %473, %475, %477, %479, %481, %483 in 1 : vector<16x16xf32>, vector<16x16xf32>, vector<16x16xf32>, vector<16x16xf32>, vector<16x16xf32>, vector<16x16xf32>, vector<16x16xf32>, vector<16x16xf32> -> vector<16x128xf32>
    %485 = arith.truncf %484 : vector<16x128xf32> to vector<16x128xbf16>
    %c2_143 = arith.constant 2 : index
    %c0_144 = arith.constant 0 : index
    %c0_145 = arith.constant 0 : index
    %486 = vector.load %arg8[%c2_143, %c0_144, %c0_145] : memref<4x128x128xbf16, #tpu.memory_space<vmem>>, vector<1x128x128xbf16>
    %487 = vector.shape_cast %486 : vector<1x128x128xbf16> to vector<128x128xbf16>
    %cst_146 = arith.constant dense<0.000000e+00> : vector<16x128xf32>
    %488 = tpu.matmul %485, %487, %cst_146 {dimension_numbers = #tpu.dot_dimension_numbers<[1], [0], [0], [1], [0, 0, 1, 1], [], []>} : vector<16x128xbf16>, vector<128x128xbf16>, vector<16x128xf32> -> vector<16x128xf32>
    %c2_147 = arith.constant 2 : index
    %c0_148 = arith.constant 0 : index
    %c0_149 = arith.constant 0 : index
    %489 = vector.load %arg9[%c2_147, %c0_148, %c0_149] : memref<4x1x128xf32, #tpu.memory_space<vmem>>, vector<1x1x128xf32>
    %490 = vector.shape_cast %489 : vector<1x1x128xf32> to vector<1x128xf32>
    %491 = vector.broadcast %490 : vector<1x128xf32> to vector<16x128xf32>
    %492 = arith.addf %488, %491 : vector<16x128xf32>
    %493 = arith.addf %492, %388 : vector<16x128xf32>
    %c2_150 = arith.constant 2 : index
    %c0_151 = arith.constant 0 : index
    %c0_152 = arith.constant 0 : index
    %494 = vector.load %arg10[%c2_150, %c0_151, %c0_152] : memref<4x1x128xf32, #tpu.memory_space<vmem>>, vector<1x1x128xf32>
    %495 = vector.shape_cast %494 : vector<1x1x128xf32> to vector<1x128xf32>
    %c2_153 = arith.constant 2 : index
    %c0_154 = arith.constant 0 : index
    %c0_155 = arith.constant 0 : index
    %496 = vector.load %arg11[%c2_153, %c0_154, %c0_155] : memref<4x1x128xf32, #tpu.memory_space<vmem>>, vector<1x1x128xf32>
    %497 = vector.shape_cast %496 : vector<1x1x128xf32> to vector<1x128xf32>
    %cst_156 = arith.constant dense<0.000000e+00> : vector<16xf32>
    %498 = vector.multi_reduction <add>, %493, %cst_156 [1] : vector<16x128xf32> to vector<16xf32>
    %499 = vector.shape_cast %498 : vector<16xf32> to vector<16x1xf32>
    %cst_157 = arith.constant 1.280000e+02 : f32
    %500 = vector.broadcast %cst_157 : f32 to vector<16x1xf32>
    %501 = arith.divf %499, %500 : vector<16x1xf32>
    %502 = arith.mulf %493, %493 : vector<16x128xf32>
    %cst_158 = arith.constant dense<0.000000e+00> : vector<16xf32>
    %503 = vector.multi_reduction <add>, %502, %cst_158 [1] : vector<16x128xf32> to vector<16xf32>
    %504 = vector.shape_cast %503 : vector<16xf32> to vector<16x1xf32>
    %cst_159 = arith.constant 1.280000e+02 : f32
    %505 = vector.broadcast %cst_159 : f32 to vector<16x1xf32>
    %506 = arith.divf %504, %505 : vector<16x1xf32>
    %507 = arith.mulf %501, %501 : vector<16x1xf32>
    %508 = arith.subf %506, %507 : vector<16x1xf32>
    %509 = vector.broadcast %501 : vector<16x1xf32> to vector<16x128xf32>
    %510 = arith.subf %493, %509 : vector<16x128xf32>
    %cst_160 = arith.constant 9.99999996E-13 : f32
    %511 = vector.broadcast %cst_160 : f32 to vector<16x1xf32>
    %512 = arith.addf %508, %511 : vector<16x1xf32>
    %513 = math.rsqrt %512 : vector<16x1xf32>
    %514 = vector.broadcast %513 : vector<16x1xf32> to vector<16x128xf32>
    %515 = arith.mulf %510, %514 : vector<16x128xf32>
    %516 = vector.broadcast %495 : vector<1x128xf32> to vector<16x128xf32>
    %517 = arith.mulf %515, %516 : vector<16x128xf32>
    %518 = vector.broadcast %497 : vector<1x128xf32> to vector<16x128xf32>
    %519 = arith.addf %517, %518 : vector<16x128xf32>
    %520 = arith.truncf %519 : vector<16x128xf32> to vector<16x128xbf16>
    %c2_161 = arith.constant 2 : index
    %c0_162 = arith.constant 0 : index
    %c0_163 = arith.constant 0 : index
    %521 = vector.load %arg12[%c2_161, %c0_162, %c0_163] : memref<4x128x512xbf16, #tpu.memory_space<vmem>>, vector<1x128x512xbf16>
    %522 = vector.shape_cast %521 : vector<1x128x512xbf16> to vector<128x512xbf16>
    %cst_164 = arith.constant dense<0.000000e+00> : vector<16x512xf32>
    %523 = tpu.matmul %520, %522, %cst_164 {dimension_numbers = #tpu.dot_dimension_numbers<[1], [0], [0], [1], [0, 0, 1, 1], [], []>} : vector<16x128xbf16>, vector<128x512xbf16>, vector<16x512xf32> -> vector<16x512xf32>
    %c2_165 = arith.constant 2 : index
    %c0_166 = arith.constant 0 : index
    %c0_167 = arith.constant 0 : index
    %524 = vector.load %arg13[%c2_165, %c0_166, %c0_167] : memref<4x1x512xf32, #tpu.memory_space<vmem>>, vector<1x1x512xf32>
    %525 = vector.shape_cast %524 : vector<1x1x512xf32> to vector<1x512xf32>
    %526 = vector.broadcast %525 : vector<1x512xf32> to vector<16x512xf32>
    %527 = arith.addf %523, %526 : vector<16x512xf32>
    %cst_168 = arith.constant 5.000000e-01 : f32
    %528 = vector.broadcast %cst_168 : f32 to vector<16x512xf32>
    %529 = arith.mulf %528, %527 : vector<16x512xf32>
    %cst_169 = arith.constant 0.707106769 : f32
    %530 = vector.broadcast %cst_169 : f32 to vector<16x512xf32>
    %531 = arith.mulf %527, %530 : vector<16x512xf32>
    %532 = math.erf %531 : vector<16x512xf32>
    %cst_170 = arith.constant 1.000000e+00 : f32
    %533 = vector.broadcast %cst_170 : f32 to vector<16x512xf32>
    %534 = arith.addf %533, %532 : vector<16x512xf32>
    %535 = arith.mulf %529, %534 : vector<16x512xf32>
    %536 = arith.truncf %535 : vector<16x512xf32> to vector<16x512xbf16>
    %c2_171 = arith.constant 2 : index
    %c0_172 = arith.constant 0 : index
    %c0_173 = arith.constant 0 : index
    %537 = vector.load %arg14[%c2_171, %c0_172, %c0_173] : memref<4x512x128xbf16, #tpu.memory_space<vmem>>, vector<1x512x128xbf16>
    %538 = vector.shape_cast %537 : vector<1x512x128xbf16> to vector<512x128xbf16>
    %cst_174 = arith.constant dense<0.000000e+00> : vector<16x128xf32>
    %539 = tpu.matmul %536, %538, %cst_174 {dimension_numbers = #tpu.dot_dimension_numbers<[1], [0], [0], [1], [0, 0, 1, 1], [], []>} : vector<16x512xbf16>, vector<512x128xbf16>, vector<16x128xf32> -> vector<16x128xf32>
    %c2_175 = arith.constant 2 : index
    %c0_176 = arith.constant 0 : index
    %c0_177 = arith.constant 0 : index
    %540 = vector.load %arg15[%c2_175, %c0_176, %c0_177] : memref<4x1x128xf32, #tpu.memory_space<vmem>>, vector<1x1x128xf32>
    %541 = vector.shape_cast %540 : vector<1x1x128xf32> to vector<1x128xf32>
    %542 = vector.broadcast %541 : vector<1x128xf32> to vector<16x128xf32>
    %543 = arith.addf %539, %542 : vector<16x128xf32>
    %544 = arith.addf %543, %519 : vector<16x128xf32>
    %c2_178 = arith.constant 2 : index
    %c0_179 = arith.constant 0 : index
    %c0_180 = arith.constant 0 : index
    %545 = vector.load %arg16[%c2_178, %c0_179, %c0_180] : memref<4x1x128xf32, #tpu.memory_space<vmem>>, vector<1x1x128xf32>
    %546 = vector.shape_cast %545 : vector<1x1x128xf32> to vector<1x128xf32>
    %c2_181 = arith.constant 2 : index
    %c0_182 = arith.constant 0 : index
    %c0_183 = arith.constant 0 : index
    %547 = vector.load %arg17[%c2_181, %c0_182, %c0_183] : memref<4x1x128xf32, #tpu.memory_space<vmem>>, vector<1x1x128xf32>
    %548 = vector.shape_cast %547 : vector<1x1x128xf32> to vector<1x128xf32>
    %cst_184 = arith.constant dense<0.000000e+00> : vector<16xf32>
    %549 = vector.multi_reduction <add>, %544, %cst_184 [1] : vector<16x128xf32> to vector<16xf32>
    %550 = vector.shape_cast %549 : vector<16xf32> to vector<16x1xf32>
    %cst_185 = arith.constant 1.280000e+02 : f32
    %551 = vector.broadcast %cst_185 : f32 to vector<16x1xf32>
    %552 = arith.divf %550, %551 : vector<16x1xf32>
    %553 = arith.mulf %544, %544 : vector<16x128xf32>
    %cst_186 = arith.constant dense<0.000000e+00> : vector<16xf32>
    %554 = vector.multi_reduction <add>, %553, %cst_186 [1] : vector<16x128xf32> to vector<16xf32>
    %555 = vector.shape_cast %554 : vector<16xf32> to vector<16x1xf32>
    %cst_187 = arith.constant 1.280000e+02 : f32
    %556 = vector.broadcast %cst_187 : f32 to vector<16x1xf32>
    %557 = arith.divf %555, %556 : vector<16x1xf32>
    %558 = arith.mulf %552, %552 : vector<16x1xf32>
    %559 = arith.subf %557, %558 : vector<16x1xf32>
    %560 = vector.broadcast %552 : vector<16x1xf32> to vector<16x128xf32>
    %561 = arith.subf %544, %560 : vector<16x128xf32>
    %cst_188 = arith.constant 9.99999996E-13 : f32
    %562 = vector.broadcast %cst_188 : f32 to vector<16x1xf32>
    %563 = arith.addf %559, %562 : vector<16x1xf32>
    %564 = math.rsqrt %563 : vector<16x1xf32>
    %565 = vector.broadcast %564 : vector<16x1xf32> to vector<16x128xf32>
    %566 = arith.mulf %561, %565 : vector<16x128xf32>
    %567 = vector.broadcast %546 : vector<1x128xf32> to vector<16x128xf32>
    %568 = arith.mulf %566, %567 : vector<16x128xf32>
    %569 = vector.broadcast %548 : vector<1x128xf32> to vector<16x128xf32>
    %570 = arith.addf %568, %569 : vector<16x128xf32>
    %571 = arith.truncf %570 : vector<16x128xf32> to vector<16x128xbf16>
    %c3 = arith.constant 3 : index
    %c0_189 = arith.constant 0 : index
    %c0_190 = arith.constant 0 : index
    %572 = vector.load %arg6[%c3, %c0_189, %c0_190] : memref<4x128x384xbf16, #tpu.memory_space<vmem>>, vector<1x128x384xbf16>
    %573 = vector.shape_cast %572 : vector<1x128x384xbf16> to vector<128x384xbf16>
    %cst_191 = arith.constant dense<0.000000e+00> : vector<16x384xf32>
    %574 = tpu.matmul %571, %573, %cst_191 {dimension_numbers = #tpu.dot_dimension_numbers<[1], [0], [0], [1], [0, 0, 1, 1], [], []>} : vector<16x128xbf16>, vector<128x384xbf16>, vector<16x384xf32> -> vector<16x384xf32>
    %c3_192 = arith.constant 3 : index
    %c0_193 = arith.constant 0 : index
    %c0_194 = arith.constant 0 : index
    %575 = vector.load %arg7[%c3_192, %c0_193, %c0_194] : memref<4x1x384xf32, #tpu.memory_space<vmem>>, vector<1x1x384xf32>
    %576 = vector.shape_cast %575 : vector<1x1x384xf32> to vector<1x384xf32>
    %577 = vector.broadcast %576 : vector<1x384xf32> to vector<16x384xf32>
    %578 = arith.addf %574, %577 : vector<16x384xf32>
    %579 = vector.extract_strided_slice %578 {offsets = [0, 0], sizes = [16, 128], strides = [1, 1]} : vector<16x384xf32> to vector<16x128xf32>
    %cst_195 = arith.constant 2.500000e-01 : f32
    %580 = vector.broadcast %cst_195 : f32 to vector<16x128xf32>
    %581 = arith.mulf %579, %580 : vector<16x128xf32>
    %582 = vector.extract_strided_slice %578 {offsets = [0, 128], sizes = [16, 128], strides = [1, 1]} : vector<16x384xf32> to vector<16x128xf32>
    %583 = vector.extract_strided_slice %578 {offsets = [0, 256], sizes = [16, 128], strides = [1, 1]} : vector<16x384xf32> to vector<16x128xf32>
    %584 = vector.extract_strided_slice %581 {offsets = [0, 0], sizes = [16, 16], strides = [1, 1]} : vector<16x128xf32> to vector<16x16xf32>
    %585 = vector.shape_cast %584 : vector<16x16xf32> to vector<1x2x8x16xf32>
    %586 = vector.extract_strided_slice %581 {offsets = [0, 16], sizes = [16, 16], strides = [1, 1]} : vector<16x128xf32> to vector<16x16xf32>
    %587 = vector.shape_cast %586 : vector<16x16xf32> to vector<1x2x8x16xf32>
    %588 = vector.extract_strided_slice %581 {offsets = [0, 32], sizes = [16, 16], strides = [1, 1]} : vector<16x128xf32> to vector<16x16xf32>
    %589 = vector.shape_cast %588 : vector<16x16xf32> to vector<1x2x8x16xf32>
    %590 = vector.extract_strided_slice %581 {offsets = [0, 48], sizes = [16, 16], strides = [1, 1]} : vector<16x128xf32> to vector<16x16xf32>
    %591 = vector.shape_cast %590 : vector<16x16xf32> to vector<1x2x8x16xf32>
    %592 = vector.extract_strided_slice %581 {offsets = [0, 64], sizes = [16, 16], strides = [1, 1]} : vector<16x128xf32> to vector<16x16xf32>
    %593 = vector.shape_cast %592 : vector<16x16xf32> to vector<1x2x8x16xf32>
    %594 = vector.extract_strided_slice %581 {offsets = [0, 80], sizes = [16, 16], strides = [1, 1]} : vector<16x128xf32> to vector<16x16xf32>
    %595 = vector.shape_cast %594 : vector<16x16xf32> to vector<1x2x8x16xf32>
    %596 = vector.extract_strided_slice %581 {offsets = [0, 96], sizes = [16, 16], strides = [1, 1]} : vector<16x128xf32> to vector<16x16xf32>
    %597 = vector.shape_cast %596 : vector<16x16xf32> to vector<1x2x8x16xf32>
    %598 = vector.extract_strided_slice %581 {offsets = [0, 112], sizes = [16, 16], strides = [1, 1]} : vector<16x128xf32> to vector<16x16xf32>
    %599 = vector.shape_cast %598 : vector<16x16xf32> to vector<1x2x8x16xf32>
    %600 = tpu.concatenate %585, %587, %589, %591, %593, %595, %597, %599 in 0 : vector<1x2x8x16xf32>, vector<1x2x8x16xf32>, vector<1x2x8x16xf32>, vector<1x2x8x16xf32>, vector<1x2x8x16xf32>, vector<1x2x8x16xf32>, vector<1x2x8x16xf32>, vector<1x2x8x16xf32> -> vector<8x2x8x16xf32>
    %601 = vector.shape_cast %600 : vector<8x2x8x16xf32> to vector<16x8x16xf32>
    %602 = vector.extract_strided_slice %582 {offsets = [0, 0], sizes = [16, 16], strides = [1, 1]} : vector<16x128xf32> to vector<16x16xf32>
    %603 = vector.shape_cast %602 : vector<16x16xf32> to vector<1x2x8x16xf32>
    %604 = vector.extract_strided_slice %582 {offsets = [0, 16], sizes = [16, 16], strides = [1, 1]} : vector<16x128xf32> to vector<16x16xf32>
    %605 = vector.shape_cast %604 : vector<16x16xf32> to vector<1x2x8x16xf32>
    %606 = vector.extract_strided_slice %582 {offsets = [0, 32], sizes = [16, 16], strides = [1, 1]} : vector<16x128xf32> to vector<16x16xf32>
    %607 = vector.shape_cast %606 : vector<16x16xf32> to vector<1x2x8x16xf32>
    %608 = vector.extract_strided_slice %582 {offsets = [0, 48], sizes = [16, 16], strides = [1, 1]} : vector<16x128xf32> to vector<16x16xf32>
    %609 = vector.shape_cast %608 : vector<16x16xf32> to vector<1x2x8x16xf32>
    %610 = vector.extract_strided_slice %582 {offsets = [0, 64], sizes = [16, 16], strides = [1, 1]} : vector<16x128xf32> to vector<16x16xf32>
    %611 = vector.shape_cast %610 : vector<16x16xf32> to vector<1x2x8x16xf32>
    %612 = vector.extract_strided_slice %582 {offsets = [0, 80], sizes = [16, 16], strides = [1, 1]} : vector<16x128xf32> to vector<16x16xf32>
    %613 = vector.shape_cast %612 : vector<16x16xf32> to vector<1x2x8x16xf32>
    %614 = vector.extract_strided_slice %582 {offsets = [0, 96], sizes = [16, 16], strides = [1, 1]} : vector<16x128xf32> to vector<16x16xf32>
    %615 = vector.shape_cast %614 : vector<16x16xf32> to vector<1x2x8x16xf32>
    %616 = vector.extract_strided_slice %582 {offsets = [0, 112], sizes = [16, 16], strides = [1, 1]} : vector<16x128xf32> to vector<16x16xf32>
    %617 = vector.shape_cast %616 : vector<16x16xf32> to vector<1x2x8x16xf32>
    %618 = tpu.concatenate %603, %605, %607, %609, %611, %613, %615, %617 in 0 : vector<1x2x8x16xf32>, vector<1x2x8x16xf32>, vector<1x2x8x16xf32>, vector<1x2x8x16xf32>, vector<1x2x8x16xf32>, vector<1x2x8x16xf32>, vector<1x2x8x16xf32>, vector<1x2x8x16xf32> -> vector<8x2x8x16xf32>
    %619 = vector.shape_cast %618 : vector<8x2x8x16xf32> to vector<16x8x16xf32>
    %620 = vector.extract_strided_slice %583 {offsets = [0, 0], sizes = [16, 16], strides = [1, 1]} : vector<16x128xf32> to vector<16x16xf32>
    %621 = vector.shape_cast %620 : vector<16x16xf32> to vector<1x2x8x16xf32>
    %622 = vector.extract_strided_slice %583 {offsets = [0, 16], sizes = [16, 16], strides = [1, 1]} : vector<16x128xf32> to vector<16x16xf32>
    %623 = vector.shape_cast %622 : vector<16x16xf32> to vector<1x2x8x16xf32>
    %624 = vector.extract_strided_slice %583 {offsets = [0, 32], sizes = [16, 16], strides = [1, 1]} : vector<16x128xf32> to vector<16x16xf32>
    %625 = vector.shape_cast %624 : vector<16x16xf32> to vector<1x2x8x16xf32>
    %626 = vector.extract_strided_slice %583 {offsets = [0, 48], sizes = [16, 16], strides = [1, 1]} : vector<16x128xf32> to vector<16x16xf32>
    %627 = vector.shape_cast %626 : vector<16x16xf32> to vector<1x2x8x16xf32>
    %628 = vector.extract_strided_slice %583 {offsets = [0, 64], sizes = [16, 16], strides = [1, 1]} : vector<16x128xf32> to vector<16x16xf32>
    %629 = vector.shape_cast %628 : vector<16x16xf32> to vector<1x2x8x16xf32>
    %630 = vector.extract_strided_slice %583 {offsets = [0, 80], sizes = [16, 16], strides = [1, 1]} : vector<16x128xf32> to vector<16x16xf32>
    %631 = vector.shape_cast %630 : vector<16x16xf32> to vector<1x2x8x16xf32>
    %632 = vector.extract_strided_slice %583 {offsets = [0, 96], sizes = [16, 16], strides = [1, 1]} : vector<16x128xf32> to vector<16x16xf32>
    %633 = vector.shape_cast %632 : vector<16x16xf32> to vector<1x2x8x16xf32>
    %634 = vector.extract_strided_slice %583 {offsets = [0, 112], sizes = [16, 16], strides = [1, 1]} : vector<16x128xf32> to vector<16x16xf32>
    %635 = vector.shape_cast %634 : vector<16x16xf32> to vector<1x2x8x16xf32>
    %636 = tpu.concatenate %621, %623, %625, %627, %629, %631, %633, %635 in 0 : vector<1x2x8x16xf32>, vector<1x2x8x16xf32>, vector<1x2x8x16xf32>, vector<1x2x8x16xf32>, vector<1x2x8x16xf32>, vector<1x2x8x16xf32>, vector<1x2x8x16xf32>, vector<1x2x8x16xf32> -> vector<8x2x8x16xf32>
    %637 = vector.shape_cast %636 : vector<8x2x8x16xf32> to vector<16x8x16xf32>
    "tpu.trace_start"() <{level = 10 : i32, message = "bqd,bkd->bqk"}> : () -> ()
    %cst_196 = arith.constant dense<0.000000e+00> : vector<16x8x8xf32>
    %638 = tpu.matmul %601, %619, %cst_196 {dimension_numbers = #tpu.dot_dimension_numbers<[2], [2], [1], [1], [0, 0, 0, 1, 1, 1], [0], [0]>} : vector<16x8x16xf32>, vector<16x8x16xf32>, vector<16x8x8xf32> -> vector<16x8x8xf32>
    "tpu.trace_stop"() : () -> ()
    %639 = arith.addf %638, %24 : vector<16x8x8xf32>
    %cst_197 = arith.constant dense<0xFF800000> : vector<16x8xf32>
    %640 = vector.multi_reduction <maximumf>, %639, %cst_197 [2] : vector<16x8x8xf32> to vector<16x8xf32>
    %641 = vector.shape_cast %640 : vector<16x8xf32> to vector<16x8x1xf32>
    %642 = vector.broadcast %641 : vector<16x8x1xf32> to vector<16x8x8xf32>
    %643 = arith.subf %639, %642 : vector<16x8x8xf32>
    %644 = math.exp %643 : vector<16x8x8xf32>
    %cst_198 = arith.constant dense<0.000000e+00> : vector<16x8xf32>
    %645 = vector.multi_reduction <add>, %644, %cst_198 [2] : vector<16x8x8xf32> to vector<16x8xf32>
    %646 = vector.shape_cast %645 : vector<16x8xf32> to vector<16x8x1xf32>
    %647 = vector.broadcast %646 : vector<16x8x1xf32> to vector<16x8x8xf32>
    %648 = arith.divf %644, %647 : vector<16x8x8xf32>
    "tpu.trace_start"() <{level = 10 : i32, message = "bqk,bkd->bqd"}> : () -> ()
    %cst_199 = arith.constant dense<0.000000e+00> : vector<16x8x16xf32>
    %649 = tpu.matmul %648, %637, %cst_199 {dimension_numbers = #tpu.dot_dimension_numbers<[2], [1], [1], [2], [0, 0, 0, 1, 1, 2], [0], [0]>} : vector<16x8x8xf32>, vector<16x8x16xf32>, vector<16x8x16xf32> -> vector<16x8x16xf32>
    "tpu.trace_stop"() : () -> ()
    %650 = vector.extract_strided_slice %649 {offsets = [0, 0, 0], sizes = [2, 8, 16], strides = [1, 1, 1]} : vector<16x8x16xf32> to vector<2x8x16xf32>
    %651 = vector.shape_cast %650 : vector<2x8x16xf32> to vector<16x16xf32>
    %652 = vector.extract_strided_slice %649 {offsets = [2, 0, 0], sizes = [2, 8, 16], strides = [1, 1, 1]} : vector<16x8x16xf32> to vector<2x8x16xf32>
    %653 = vector.shape_cast %652 : vector<2x8x16xf32> to vector<16x16xf32>
    %654 = vector.extract_strided_slice %649 {offsets = [4, 0, 0], sizes = [2, 8, 16], strides = [1, 1, 1]} : vector<16x8x16xf32> to vector<2x8x16xf32>
    %655 = vector.shape_cast %654 : vector<2x8x16xf32> to vector<16x16xf32>
    %656 = vector.extract_strided_slice %649 {offsets = [6, 0, 0], sizes = [2, 8, 16], strides = [1, 1, 1]} : vector<16x8x16xf32> to vector<2x8x16xf32>
    %657 = vector.shape_cast %656 : vector<2x8x16xf32> to vector<16x16xf32>
    %658 = vector.extract_strided_slice %649 {offsets = [8, 0, 0], sizes = [2, 8, 16], strides = [1, 1, 1]} : vector<16x8x16xf32> to vector<2x8x16xf32>
    %659 = vector.shape_cast %658 : vector<2x8x16xf32> to vector<16x16xf32>
    %660 = vector.extract_strided_slice %649 {offsets = [10, 0, 0], sizes = [2, 8, 16], strides = [1, 1, 1]} : vector<16x8x16xf32> to vector<2x8x16xf32>
    %661 = vector.shape_cast %660 : vector<2x8x16xf32> to vector<16x16xf32>
    %662 = vector.extract_strided_slice %649 {offsets = [12, 0, 0], sizes = [2, 8, 16], strides = [1, 1, 1]} : vector<16x8x16xf32> to vector<2x8x16xf32>
    %663 = vector.shape_cast %662 : vector<2x8x16xf32> to vector<16x16xf32>
    %664 = vector.extract_strided_slice %649 {offsets = [14, 0, 0], sizes = [2, 8, 16], strides = [1, 1, 1]} : vector<16x8x16xf32> to vector<2x8x16xf32>
    %665 = vector.shape_cast %664 : vector<2x8x16xf32> to vector<16x16xf32>
    %666 = tpu.concatenate %651, %653, %655, %657, %659, %661, %663, %665 in 1 : vector<16x16xf32>, vector<16x16xf32>, vector<16x16xf32>, vector<16x16xf32>, vector<16x16xf32>, vector<16x16xf32>, vector<16x16xf32>, vector<16x16xf32> -> vector<16x128xf32>
    %667 = arith.truncf %666 : vector<16x128xf32> to vector<16x128xbf16>
    %c3_200 = arith.constant 3 : index
    %c0_201 = arith.constant 0 : index
    %c0_202 = arith.constant 0 : index
    %668 = vector.load %arg8[%c3_200, %c0_201, %c0_202] : memref<4x128x128xbf16, #tpu.memory_space<vmem>>, vector<1x128x128xbf16>
    %669 = vector.shape_cast %668 : vector<1x128x128xbf16> to vector<128x128xbf16>
    %cst_203 = arith.constant dense<0.000000e+00> : vector<16x128xf32>
    %670 = tpu.matmul %667, %669, %cst_203 {dimension_numbers = #tpu.dot_dimension_numbers<[1], [0], [0], [1], [0, 0, 1, 1], [], []>} : vector<16x128xbf16>, vector<128x128xbf16>, vector<16x128xf32> -> vector<16x128xf32>
    %c3_204 = arith.constant 3 : index
    %c0_205 = arith.constant 0 : index
    %c0_206 = arith.constant 0 : index
    %671 = vector.load %arg9[%c3_204, %c0_205, %c0_206] : memref<4x1x128xf32, #tpu.memory_space<vmem>>, vector<1x1x128xf32>
    %672 = vector.shape_cast %671 : vector<1x1x128xf32> to vector<1x128xf32>
    %673 = vector.broadcast %672 : vector<1x128xf32> to vector<16x128xf32>
    %674 = arith.addf %670, %673 : vector<16x128xf32>
    %675 = arith.addf %674, %570 : vector<16x128xf32>
    %c3_207 = arith.constant 3 : index
    %c0_208 = arith.constant 0 : index
    %c0_209 = arith.constant 0 : index
    %676 = vector.load %arg10[%c3_207, %c0_208, %c0_209] : memref<4x1x128xf32, #tpu.memory_space<vmem>>, vector<1x1x128xf32>
    %677 = vector.shape_cast %676 : vector<1x1x128xf32> to vector<1x128xf32>
    %c3_210 = arith.constant 3 : index
    %c0_211 = arith.constant 0 : index
    %c0_212 = arith.constant 0 : index
    %678 = vector.load %arg11[%c3_210, %c0_211, %c0_212] : memref<4x1x128xf32, #tpu.memory_space<vmem>>, vector<1x1x128xf32>
    %679 = vector.shape_cast %678 : vector<1x1x128xf32> to vector<1x128xf32>
    %cst_213 = arith.constant dense<0.000000e+00> : vector<16xf32>
    %680 = vector.multi_reduction <add>, %675, %cst_213 [1] : vector<16x128xf32> to vector<16xf32>
    %681 = vector.shape_cast %680 : vector<16xf32> to vector<16x1xf32>
    %cst_214 = arith.constant 1.280000e+02 : f32
    %682 = vector.broadcast %cst_214 : f32 to vector<16x1xf32>
    %683 = arith.divf %681, %682 : vector<16x1xf32>
    %684 = arith.mulf %675, %675 : vector<16x128xf32>
    %cst_215 = arith.constant dense<0.000000e+00> : vector<16xf32>
    %685 = vector.multi_reduction <add>, %684, %cst_215 [1] : vector<16x128xf32> to vector<16xf32>
    %686 = vector.shape_cast %685 : vector<16xf32> to vector<16x1xf32>
    %cst_216 = arith.constant 1.280000e+02 : f32
    %687 = vector.broadcast %cst_216 : f32 to vector<16x1xf32>
    %688 = arith.divf %686, %687 : vector<16x1xf32>
    %689 = arith.mulf %683, %683 : vector<16x1xf32>
    %690 = arith.subf %688, %689 : vector<16x1xf32>
    %691 = vector.broadcast %683 : vector<16x1xf32> to vector<16x128xf32>
    %692 = arith.subf %675, %691 : vector<16x128xf32>
    %cst_217 = arith.constant 9.99999996E-13 : f32
    %693 = vector.broadcast %cst_217 : f32 to vector<16x1xf32>
    %694 = arith.addf %690, %693 : vector<16x1xf32>
    %695 = math.rsqrt %694 : vector<16x1xf32>
    %696 = vector.broadcast %695 : vector<16x1xf32> to vector<16x128xf32>
    %697 = arith.mulf %692, %696 : vector<16x128xf32>
    %698 = vector.broadcast %677 : vector<1x128xf32> to vector<16x128xf32>
    %699 = arith.mulf %697, %698 : vector<16x128xf32>
    %700 = vector.broadcast %679 : vector<1x128xf32> to vector<16x128xf32>
    %701 = arith.addf %699, %700 : vector<16x128xf32>
    %702 = arith.truncf %701 : vector<16x128xf32> to vector<16x128xbf16>
    %c3_218 = arith.constant 3 : index
    %c0_219 = arith.constant 0 : index
    %c0_220 = arith.constant 0 : index
    %703 = vector.load %arg12[%c3_218, %c0_219, %c0_220] : memref<4x128x512xbf16, #tpu.memory_space<vmem>>, vector<1x128x512xbf16>
    %704 = vector.shape_cast %703 : vector<1x128x512xbf16> to vector<128x512xbf16>
    %cst_221 = arith.constant dense<0.000000e+00> : vector<16x512xf32>
    %705 = tpu.matmul %702, %704, %cst_221 {dimension_numbers = #tpu.dot_dimension_numbers<[1], [0], [0], [1], [0, 0, 1, 1], [], []>} : vector<16x128xbf16>, vector<128x512xbf16>, vector<16x512xf32> -> vector<16x512xf32>
    %c3_222 = arith.constant 3 : index
    %c0_223 = arith.constant 0 : index
    %c0_224 = arith.constant 0 : index
    %706 = vector.load %arg13[%c3_222, %c0_223, %c0_224] : memref<4x1x512xf32, #tpu.memory_space<vmem>>, vector<1x1x512xf32>
    %707 = vector.shape_cast %706 : vector<1x1x512xf32> to vector<1x512xf32>
    %708 = vector.broadcast %707 : vector<1x512xf32> to vector<16x512xf32>
    %709 = arith.addf %705, %708 : vector<16x512xf32>
    %cst_225 = arith.constant 5.000000e-01 : f32
    %710 = vector.broadcast %cst_225 : f32 to vector<16x512xf32>
    %711 = arith.mulf %710, %709 : vector<16x512xf32>
    %cst_226 = arith.constant 0.707106769 : f32
    %712 = vector.broadcast %cst_226 : f32 to vector<16x512xf32>
    %713 = arith.mulf %709, %712 : vector<16x512xf32>
    %714 = math.erf %713 : vector<16x512xf32>
    %cst_227 = arith.constant 1.000000e+00 : f32
    %715 = vector.broadcast %cst_227 : f32 to vector<16x512xf32>
    %716 = arith.addf %715, %714 : vector<16x512xf32>
    %717 = arith.mulf %711, %716 : vector<16x512xf32>
    %718 = arith.truncf %717 : vector<16x512xf32> to vector<16x512xbf16>
    %c3_228 = arith.constant 3 : index
    %c0_229 = arith.constant 0 : index
    %c0_230 = arith.constant 0 : index
    %719 = vector.load %arg14[%c3_228, %c0_229, %c0_230] : memref<4x512x128xbf16, #tpu.memory_space<vmem>>, vector<1x512x128xbf16>
    %720 = vector.shape_cast %719 : vector<1x512x128xbf16> to vector<512x128xbf16>
    %cst_231 = arith.constant dense<0.000000e+00> : vector<16x128xf32>
    %721 = tpu.matmul %718, %720, %cst_231 {dimension_numbers = #tpu.dot_dimension_numbers<[1], [0], [0], [1], [0, 0, 1, 1], [], []>} : vector<16x512xbf16>, vector<512x128xbf16>, vector<16x128xf32> -> vector<16x128xf32>
    %c3_232 = arith.constant 3 : index
    %c0_233 = arith.constant 0 : index
    %c0_234 = arith.constant 0 : index
    %722 = vector.load %arg15[%c3_232, %c0_233, %c0_234] : memref<4x1x128xf32, #tpu.memory_space<vmem>>, vector<1x1x128xf32>
    %723 = vector.shape_cast %722 : vector<1x1x128xf32> to vector<1x128xf32>
    %724 = vector.broadcast %723 : vector<1x128xf32> to vector<16x128xf32>
    %725 = arith.addf %721, %724 : vector<16x128xf32>
    %726 = arith.addf %725, %701 : vector<16x128xf32>
    %c3_235 = arith.constant 3 : index
    %c0_236 = arith.constant 0 : index
    %c0_237 = arith.constant 0 : index
    %727 = vector.load %arg16[%c3_235, %c0_236, %c0_237] : memref<4x1x128xf32, #tpu.memory_space<vmem>>, vector<1x1x128xf32>
    %728 = vector.shape_cast %727 : vector<1x1x128xf32> to vector<1x128xf32>
    %c3_238 = arith.constant 3 : index
    %c0_239 = arith.constant 0 : index
    %c0_240 = arith.constant 0 : index
    %729 = vector.load %arg17[%c3_238, %c0_239, %c0_240] : memref<4x1x128xf32, #tpu.memory_space<vmem>>, vector<1x1x128xf32>
    %730 = vector.shape_cast %729 : vector<1x1x128xf32> to vector<1x128xf32>
    %cst_241 = arith.constant dense<0.000000e+00> : vector<16xf32>
    %731 = vector.multi_reduction <add>, %726, %cst_241 [1] : vector<16x128xf32> to vector<16xf32>
    %732 = vector.shape_cast %731 : vector<16xf32> to vector<16x1xf32>
    %cst_242 = arith.constant 1.280000e+02 : f32
    %733 = vector.broadcast %cst_242 : f32 to vector<16x1xf32>
    %734 = arith.divf %732, %733 : vector<16x1xf32>
    %735 = arith.mulf %726, %726 : vector<16x128xf32>
    %cst_243 = arith.constant dense<0.000000e+00> : vector<16xf32>
    %736 = vector.multi_reduction <add>, %735, %cst_243 [1] : vector<16x128xf32> to vector<16xf32>
    %737 = vector.shape_cast %736 : vector<16xf32> to vector<16x1xf32>
    %cst_244 = arith.constant 1.280000e+02 : f32
    %738 = vector.broadcast %cst_244 : f32 to vector<16x1xf32>
    %739 = arith.divf %737, %738 : vector<16x1xf32>
    %740 = arith.mulf %734, %734 : vector<16x1xf32>
    %741 = arith.subf %739, %740 : vector<16x1xf32>
    %742 = vector.broadcast %734 : vector<16x1xf32> to vector<16x128xf32>
    %743 = arith.subf %726, %742 : vector<16x128xf32>
    %cst_245 = arith.constant 9.99999996E-13 : f32
    %744 = vector.broadcast %cst_245 : f32 to vector<16x1xf32>
    %745 = arith.addf %741, %744 : vector<16x1xf32>
    %746 = math.rsqrt %745 : vector<16x1xf32>
    %747 = vector.broadcast %746 : vector<16x1xf32> to vector<16x128xf32>
    %748 = arith.mulf %743, %747 : vector<16x128xf32>
    %749 = vector.broadcast %728 : vector<1x128xf32> to vector<16x128xf32>
    %750 = arith.mulf %748, %749 : vector<16x128xf32>
    %751 = vector.broadcast %730 : vector<1x128xf32> to vector<16x128xf32>
    %752 = arith.addf %750, %751 : vector<16x128xf32>
    %753 = arith.truncf %752 : vector<16x128xf32> to vector<16x128xbf16>
    %c0_246 = arith.constant 0 : index
    %c0_247 = arith.constant 0 : index
    %754 = vector.load %arg18[%c0_246, %c0_247] : memref<128x256xbf16, #tpu.memory_space<vmem>>, vector<128x256xbf16>
    %cst_248 = arith.constant dense<0.000000e+00> : vector<16x256xf32>
    %755 = tpu.matmul %753, %754, %cst_248 {dimension_numbers = #tpu.dot_dimension_numbers<[1], [0], [0], [1], [0, 0, 1, 1], [], []>} : vector<16x128xbf16>, vector<128x256xbf16>, vector<16x256xf32> -> vector<16x256xf32>
    %c0_249 = arith.constant 0 : index
    %c0_250 = arith.constant 0 : index
    %756 = vector.load %arg19[%c0_249, %c0_250] : memref<1x256xf32, #tpu.memory_space<vmem>>, vector<1x256xf32>
    %757 = vector.broadcast %756 : vector<1x256xf32> to vector<16x256xf32>
    %758 = arith.addf %755, %757 : vector<16x256xf32>
    %759 = vector.shape_cast %758 : vector<16x256xf32> to vector<2x8x256xf32>
    %c0_251 = arith.constant 0 : index
    %c0_252 = arith.constant 0 : index
    %c0_253 = arith.constant 0 : index
    %760 = vector.load %arg20[%c0_251, %c0_252, %c0_253] : memref<2x8x256xf32, #tpu.memory_space<vmem>>, vector<2x8x256xf32>
    tpu.vector_store %arg20[%c0_251, %c0_252, %c0_253], %759 {strides = array<i32>} : memref<2x8x256xf32, #tpu.memory_space<vmem>>, vector<2x8x256xf32>,
    return
  }
}

</mosaic_0001>

<bundles_post_ra>
// kernel: rating_generator_forward.1
= control target key start
LH: loop header
LB: loop body
LE: loop exit
PB: predicated region body
PF: predicated region fallthrough
CT: control target
= control target key end

     0   :  { %s22021_s0 = inlined_call_operand.vmem [shape: f32[2,8,256], index: 0, kind: input, shape index: {}]   ;;  %s22022_s1 = inlined_call_operand.vmem [shape: f32[2,8,8], index: 1, kind: input, shape index: {}]   ;;  %s22023_s2 = inlined_call_operand.vmem [shape: f32[2,1,8], index: 2, kind: input, shape index: {}]   ;;  %s22024_s3 = inlined_call_operand.hbm [shape: bf16[256,128], index: 3, kind: input, shape index: {}]   ;;  %s22025_s4 = inlined_call_operand.hbm [shape: bf16[8,128], index: 4, kind: input, shape index: {}]   ;;  %s22026_s5 = inlined_call_operand.hbm [shape: f32[1,128], index: 5, kind: input, shape index: {}]   ;;  %s22027_s6 = inlined_call_operand.hbm [shape: bf16[4,128,384], index: 6, kind: input, shape index: {}]   ;;  %s22028_s7 = inlined_call_operand.vmem [shape: f32[4,1,384], index: 7, kind: input, shape index: {}]   ;;  %s22029_s8 = inlined_call_operand.hbm [shape: bf16[4,128,128], index: 8, kind: input, shape index: {}]   ;;  %s22030_s9 = inlined_call_operand.hbm [shape: f32[4,1,128], index: 9, kind: input, shape index: {}]   ;;  %s22031_s10 = inlined_call_operand.vmem [shape: f32[4,1,128], index: 10, kind: input, shape index: {}]   ;;  %s22032_s11 = inlined_call_operand.hbm [shape: f32[4,1,128], index: 11, kind: input, shape index: {}]   ;;  %s22033_s12 = inlined_call_operand.hbm [shape: bf16[4,128,512], index: 12, kind: input, shape index: {}]   ;;  %s22034_s13 = inlined_call_operand.hbm [shape: f32[4,1,512], index: 13, kind: input, shape index: {}]   ;;  %s22035_s14 = inlined_call_operand.hbm [shape: bf16[4,512,128], index: 14, kind: input, shape index: {}]   ;;  %s22036_s15 = inlined_call_operand.hbm [shape: f32[4,1,128], index: 15, kind: input, shape index: {}]   ;;  %s22037_s16 = inlined_call_operand.hbm [shape: f32[4,1,128], index: 16, kind: input, shape index: {}]   ;;  %s22038_s17 = inlined_call_operand.hbm [shape: f32[4,1,128], index: 17, kind: input, shape index: {}]   ;;  %s22039_s18 = inlined_call_operand.hbm [shape: bf16[128,256], index: 18, kind: input, shape index: {}]   ;;  %s22040_s19 = inlined_call_operand.hbm [shape: f32[1,256], index: 19, kind: input, shape index: {}]   ;;  %s22041_s20 = inlined_call_operand.hbm [shape: f32[2,8,256], index: 20, kind: output, shape index: {}]  }
   0x1   :  { %22050 = sst [smem:[#allocation36_spill]] %s22021_s0 }
   0x2   :  { %22051 = sst [smem:[#allocation37_spill]] %s22022_s1 }
   0x3   :  { %22052 = sst [smem:[#allocation38_spill]] %s22023_s2 }
   0x4   :  { %22053 = sst [smem:[#allocation39_spill]] %s22024_s3 }
   0x5   :  { %22054 = sst [smem:[#allocation40_spill]] %s22025_s4 }
   0x6   :  { %25 = vsyncpa [#allocation3], 0 }
   0x7   :  { %26 = vsyncpa [#allocation6], 0 }
   0x8   :  { %27 = vsyncpa [#allocation9], 0 }
   0x9   :  { %28 = vsyncpa [#allocation12], 0 }
   0xa   :  { %29 = vsyncpa [#allocation15], 0 }
   0xb   :  { %30 = vsyncpa [#allocation18], 0 }
   0xc   :  { %31 = vsyncpa [#allocation21], 0 }
   0xd   :  { %32 = vsyncpa [#allocation24], 0 }
   0xe   :  { %33 = vsyncpa [#allocation4], 0  ;;  %s19576_s1 = smov [#allocation5]   ;;  %s19577_s23 = smov [#allocation8]  }
   0xf   :  { %s58_s22 = sshll.u32 %s19576_s1, 4  ;;  %s77_s24 = sshll.u32 %s19577_s23, 4  ;;  %s59_s22 = int_to_ptr.vmem [resolvable:$true] %s58_s22  ;;  %s19714_s24 = int_to_ptr.vmem [resolvable:$true] %s77_s24 }
  0x10   :  { %s22055_s3 = sld [smem:[#allocation40_spill]] }
  0x16   :  { %s19206_s26 = scalar_lea.hbm %s22055_s3, 64 }
  0x17   :  { %p19207_p0 = scmp.ne.s32.totalorder %s22055_s3, %s19206_s26  ;;  %p19210_p1 = scmp.lt.u32.totalorder %s19206_s26, %s22055_s3 }
  0x19   :  { %p19212_p2 = pnand %p19210_p1, %p19207_p0 }
  0x1b   :  { %19215 = shalt.err (!%p19212_p2)
}
  0x1c   :  { %s19216_s30 = scalar_lea.vmem %s59_s22, 64  ;;  %p19221_p4 = scmp.lt.s32.totalorder %s59_s22, %s59_s22 }
  0x1d   :  { %p19217_p3 = scmp.ne.s32.totalorder %s59_s22, %s19216_s30  ;;  %p19222_p5 = scmp.lt.s32.totalorder %s19216_s30, %s19216_s30 }
  0x1f   :  { %p19223_p6 = por %p19222_p5, %p19221_p4 }
  0x21   :  { %p19224_p7 = pnand %p19223_p6, %p19217_p3 }
  0x23   :  { %19227 = shalt.err (!%p19224_p7)
}
  0x24   :  { %61 = dma.hbm_to_vmem [thread:$0]  %s22055_s3, 64, %s59_s22, [#allocation6]  }
  0x25   :  { %s19228_s2 = scalar_lea.hbm %s22027_s6, 12288 }
  0x26   :  { %p19229_p8 = scmp.ne.s32.totalorder %s22027_s6, %s19228_s2  ;;  %p19232_p9 = scmp.lt.u32.totalorder %s19228_s2, %s22027_s6 }
  0x28   :  { %p19234_p10 = pnand %p19232_p9, %p19229_p8 }
  0x2a   :  { %19237 = shalt.err (!%p19234_p10)
}
  0x2b   :  { %s19238_s4 = scalar_lea.vmem %s19714_s24, 12288  ;;  %p19243_p12 = scmp.lt.s32.totalorder %s19714_s24, %s19714_s24 }
  0x2c   :  { %p19239_p11 = scmp.ne.s32.totalorder %s19714_s24, %s19238_s4  ;;  %p19244_p13 = scmp.lt.s32.totalorder %s19238_s4, %s19238_s4 }
  0x2e   :  { %p19245_p0 = por %p19244_p13, %p19243_p12 }
  0x30   :  { %p19246_p1 = pnand %p19245_p0, %p19239_p11 }
  0x32   :  { %19249 = shalt.err (!%p19246_p1)
}
  0x33   :  { %s19578_s22 = smov 192   ;;  %s19579_s3 = smov 12  }
  0x34   :  { %83 = dma.hbm_to_vmem [thread:$0]  %s22027_s6, 12288, %s19714_s24, [#allocation9], %s19578_s22, %s19578_s22, %s19579_s3  }
  0x35   :  { %s19580_s0 = smov [#allocation11]   ;;  %s19250_s2 = scalar_lea.hbm %s22030_s9, 64 }
  0x36   :  { %s103_s21 = sshll.u32 %s19580_s0, 4  ;;  %p19251_p2 = scmp.ne.s32.totalorder %s22030_s9, %s19250_s2  ;;  %s104_s21 = int_to_ptr.vmem [resolvable:$true] %s103_s21 }
  0x37   :  { %p19254_p3 = scmp.lt.u32.totalorder %s19250_s2, %s22030_s9 }
  0x39   :  { %p19256_p4 = pnand %p19254_p3, %p19251_p2 }
  0x3b   :  { %19259 = shalt.err (!%p19256_p4)
}
  0x3c   :  { %s19260_s4 = scalar_lea.vmem %s104_s21, 64  ;;  %p19265_p6 = scmp.lt.s32.totalorder %s104_s21, %s104_s21 }
  0x3d   :  { %p19261_p5 = scmp.ne.s32.totalorder %s104_s21, %s19260_s4  ;;  %p19266_p7 = scmp.lt.s32.totalorder %s19260_s4, %s19260_s4 }
  0x3f   :  { %p19267_p8 = por %p19266_p7, %p19265_p6 }
  0x41   :  { %p19268_p9 = pnand %p19267_p8, %p19261_p5 }
  0x43   :  { %19271 = shalt.err (!%p19268_p9)
}
  0x44   :  { %s22048_s6 = smov 16   ;;  %s19582_s24 = smov 1  }
  0x45   :  { %109 = dma.hbm_to_vmem [thread:$0]  %s22030_s9, 64, %s104_s21, [#allocation12], %s22048_s6, %s22048_s6, %s19582_s24  }
  0x46   :  { %s19583_s29 = smov [#allocation14]   ;;  %s19272_s23 = scalar_lea.hbm %s22033_s12, 16384 }
  0x47   :  { %s129_s30 = sshll.u32 %s19583_s29, 4  ;;  %p19273_p10 = scmp.ne.s32.totalorder %s22033_s12, %s19272_s23  ;;  %s130_s30 = int_to_ptr.vmem [resolvable:$true] %s129_s30 }
  0x48   :  { %p19276_p11 = scmp.lt.u32.totalorder %s19272_s23, %s22033_s12 }
  0x4a   :  { %p19278_p12 = pnand %p19276_p11, %p19273_p10 }
  0x4c   :  { %19281 = shalt.err (!%p19278_p12)
}
  0x4d   :  { %s19282_s28 = scalar_lea.vmem %s130_s30, 16384  ;;  %p19287_p0 = scmp.lt.s32.totalorder %s130_s30, %s130_s30 }
  0x4e   :  { %p19283_p13 = scmp.ne.s32.totalorder %s130_s30, %s19282_s28  ;;  %p19288_p1 = scmp.lt.s32.totalorder %s19282_s28, %s19282_s28 }
  0x50   :  { %p19289_p2 = por %p19288_p1, %p19287_p0 }
  0x52   :  { %p19290_p3 = pnand %p19289_p2, %p19283_p13 }
  0x54   :  { %19293 = shalt.err (!%p19290_p3)
}
  0x55   :  { %s22047_s9 = smov 256   ;;  %s19585_s22 = smov [#allocation17]  }
  0x56   :  { %135 = dma.hbm_to_vmem [thread:$0]  %s22033_s12, 16384, %s130_s30, [#allocation15], %s22047_s9, %s22047_s9, %s22048_s6  }
  0x57   :  { %s153_s3 = sshll.u32 %s19585_s22, 4  ;;  %s19586_s29 = smov [#allocation20]   ;;  %s154_s3 = int_to_ptr.vmem [resolvable:$true] %s153_s3 }
  0x58   :  { %s177_s0 = sshll.u32 %s19586_s29, 4  ;;  %s19294_s2 = scalar_lea.hbm %s22035_s14, 16384  ;;  %s178_s0 = int_to_ptr.vmem [resolvable:$true] %s177_s0 }
  0x59   :  { %p19295_p4 = scmp.ne.s32.totalorder %s22035_s14, %s19294_s2  ;;  %p19298_p5 = scmp.lt.u32.totalorder %s19294_s2, %s22035_s14 }
  0x5b   :  { %p19300_p6 = pnand %p19298_p5, %p19295_p4 }
  0x5d   :  { %19303 = shalt.err (!%p19300_p6)
}
  0x5e   :  { %s19304_s12 = scalar_lea.vmem %s154_s3, 16384  ;;  %p19309_p8 = scmp.lt.s32.totalorder %s154_s3, %s154_s3 }
  0x5f   :  { %p19305_p7 = scmp.ne.s32.totalorder %s154_s3, %s19304_s12  ;;  %p19310_p9 = scmp.lt.s32.totalorder %s19304_s12, %s19304_s12 }
  0x61   :  { %p19311_p10 = por %p19310_p9, %p19309_p8 }
  0x63   :  { %p19312_p11 = pnand %p19311_p10, %p19305_p7 }
  0x65   :  { %19315 = shalt.err (!%p19312_p11)
}
  0x66   :  { %s19587_s30 = smov 64   ;;  %s19588_s21 = smov 4  }
  0x67   :  { %159 = dma.hbm_to_vmem [thread:$0]  %s22035_s14, 16384, %s154_s3, [#allocation18], %s19587_s30, %s19587_s30, %s19588_s21  }
  0x68   :  { %s19316_s23 = scalar_lea.hbm %s22037_s16, 64 }
  0x69   :  { %p19317_p12 = scmp.ne.s32.totalorder %s22037_s16, %s19316_s23  ;;  %p19320_p13 = scmp.lt.u32.totalorder %s19316_s23, %s22037_s16 }
  0x6b   :  { %p19322_p0 = pnand %p19320_p13, %p19317_p12 }
  0x6d   :  { %19325 = shalt.err (!%p19322_p0)
}
  0x6e   :  { %s19326_s28 = scalar_lea.vmem %s178_s0, 64  ;;  %p19331_p2 = scmp.lt.s32.totalorder %s178_s0, %s178_s0 }
  0x6f   :  { %p19327_p1 = scmp.ne.s32.totalorder %s178_s0, %s19326_s28  ;;  %p19332_p3 = scmp.lt.s32.totalorder %s19326_s28, %s19326_s28 }
  0x71   :  { %p19333_p4 = por %p19332_p3, %p19331_p2 }
  0x73   :  { %p19334_p5 = pnand %p19333_p4, %p19327_p1 }
  0x75   :  { %19337 = shalt.err (!%p19334_p5)
}
  0x76   :  { %183 = dma.hbm_to_vmem [thread:$0]  %s22037_s16, 64, %s178_s0, [#allocation21], %s22048_s6, %s22048_s6, %s19582_s24  }
  0x77   :  { %s19589_s12 = smov [#allocation23]   ;;  %s19338_s1 = scalar_lea.hbm %s22039_s18, 2048 }
  0x78   :  { %s201_s4 = sshll.u32 %s19589_s12, 4  ;;  %p19339_p6 = scmp.ne.s32.totalorder %s22039_s18, %s19338_s1  ;;  %s202_s4 = int_to_ptr.vmem [resolvable:$true] %s201_s4 }
  0x79   :  { %p19342_p7 = scmp.lt.u32.totalorder %s19338_s1, %s22039_s18 }
  0x7b   :  { %p19344_p8 = pnand %p19342_p7, %p19339_p6 }
  0x7d   :  { %19347 = shalt.err (!%p19344_p8)
}
  0x7e   :  { %s19348_s26 = scalar_lea.vmem %s202_s4, 2048  ;;  %p19353_p10 = scmp.lt.s32.totalorder %s202_s4, %s202_s4 }
  0x7f   :  { %p19349_p9 = scmp.ne.s32.totalorder %s202_s4, %s19348_s26  ;;  %p19354_p11 = scmp.lt.s32.totalorder %s19348_s26, %s19348_s26 }
  0x81   :  { %p19355_p12 = por %p19354_p11, %p19353_p10 }
  0x83   :  { %p19356_p13 = pnand %p19355_p12, %p19349_p9 }
  0x85   :  { %19359 = shalt.err (!%p19356_p13)
}
  0x86   :  { %s19590_s16 = smov 128   ;;  %s19591_s0 = smov 8  }
  0x87   :  { %207 = dma.hbm_to_vmem [thread:$0]  %s22039_s18, 2048, %s202_s4, [#allocation24], %s19590_s16, %s19590_s16, %s19591_s0  }
  0x88   :  { %s19592_s3 = smov [#allocation2]   ;;  %s19593_s22 = smov [#allocation7]  }
  0x89   :  { %s45_s12 = sshll.u32 %s19592_s3, 4  ;;  %s68_s29 = sshll.u32 %s19593_s22, 4  ;;  %s46_s12 = int_to_ptr.vmem [resolvable:$true] %s45_s12  ;;  %s69_s29 = int_to_ptr.vmem [resolvable:$true] %s68_s29 }
  0x8a   :  { %s22056_s2 = sld [smem:[#allocation39_spill]] }
  0x90   :  { %s19360_s25 = scalar_lea.hbm %s22056_s2, 2048 }
  0x91   :  { %p19361_p0 = scmp.ne.s32.totalorder %s22056_s2, %s19360_s25  ;;  %p19364_p1 = scmp.lt.u32.totalorder %s19360_s25, %s22056_s2 }
  0x93   :  { %p19366_p2 = pnand %p19364_p1, %p19361_p0 }
  0x95   :  { %19369 = shalt.err (!%p19366_p2)
}
  0x96   :  { %s19370_s18 = scalar_lea.vmem %s46_s12, 2048  ;;  %p19375_p4 = scmp.lt.s32.totalorder %s46_s12, %s46_s12 }
  0x97   :  { %p19371_p3 = scmp.ne.s32.totalorder %s46_s12, %s19370_s18  ;;  %p19376_p5 = scmp.lt.s32.totalorder %s19370_s18, %s19370_s18 }
  0x99   :  { %p19377_p6 = por %p19376_p5, %p19375_p4 }
  0x9b   :  { %p19378_p7 = pnand %p19377_p6, %p19371_p3 }
  0x9d   :  { %19381 = shalt.err (!%p19378_p7)
}
  0x9e   :  { %51 = dma.hbm_to_vmem [thread:$0]  %s22056_s2, 2048, %s46_s12, [#allocation3], %s19587_s30, %s19587_s30, %s19588_s21  }
  0x9f   :  { %s19382_s6 = scalar_lea.hbm %s22026_s5, 16 }
  0xa0   :  { %p19383_p8 = scmp.ne.s32.totalorder %s22026_s5, %s19382_s6  ;;  %p19386_p9 = scmp.lt.u32.totalorder %s19382_s6, %s22026_s5 }
  0xa2   :  { %p19388_p10 = pnand %p19386_p9, %p19383_p8 }
  0xa4   :  { %19391 = shalt.err (!%p19388_p10)
}
  0xa5   :  { %s19392_s1 = scalar_lea.vmem %s69_s29, 16  ;;  %s19396_s23 = scalar_lea.vmem %s69_s29, 32 }
  0xa6   :  { %p19393_p11 = scmp.ne.s32.totalorder %s69_s29, %s19392_s1  ;;  %p19397_p12 = scmp.lt.s32.totalorder %s69_s29, %s69_s29 }
  0xa7   :  { %p19398_p13 = scmp.lt.s32.totalorder %s19396_s23, %s19392_s1 }
  0xa9   :  { %p19399_p0 = por %p19398_p13, %p19397_p12 }
  0xab   :  { %p19400_p1 = pnand %p19399_p0, %p19393_p11 }
  0xad   :  { %19403 = shalt.err (!%p19400_p1)
}
  0xae   :  { %71 = dma.hbm_to_vmem [thread:$0]  %s22026_s5, 16, %s69_s29, [#allocation6]  }
  0xaf   :  { %s19594_s25 = smov [#allocation10]   ;;  %s19595_s26 = smov [#allocation13]  }
  0xb0   :  { %s91_s27 = sshll.u32 %s19594_s25, 4  ;;  %s117_s18 = sshll.u32 %s19595_s26, 4  ;;  %s92_s27 = int_to_ptr.vmem [resolvable:$true] %s91_s27  ;;  %s19844_s18 = int_to_ptr.vmem [resolvable:$true] %s117_s18 }
  0xb1   :  { %s19404_s0 = scalar_lea.hbm %s22029_s8, 4096 }
  0xb2   :  { %p19405_p2 = scmp.ne.s32.totalorder %s22029_s8, %s19404_s0  ;;  %p19408_p3 = scmp.lt.u32.totalorder %s19404_s0, %s22029_s8 }
  0xb4   :  { %p19410_p4 = pnand %p19408_p3, %p19405_p2 }
  0xb6   :  { %19413 = shalt.err (!%p19410_p4)
}
  0xb7   :  { %s19414_s5 = scalar_lea.vmem %s92_s27, 4096  ;;  %p19419_p6 = scmp.lt.s32.totalorder %s92_s27, %s92_s27 }
  0xb8   :  { %p19415_p5 = scmp.ne.s32.totalorder %s92_s27, %s19414_s5  ;;  %p19420_p7 = scmp.lt.s32.totalorder %s19414_s5, %s19414_s5 }
  0xba   :  { %p19421_p8 = por %p19420_p7, %p19419_p6 }
  0xbc   :  { %p19422_p9 = pnand %p19421_p8, %p19415_p5 }
  0xbe   :  { %19425 = shalt.err (!%p19422_p9)
}
  0xbf   :  { %97 = dma.hbm_to_vmem [thread:$0]  %s22029_s8, 4096, %s92_s27, [#allocation9], %s19587_s30, %s19587_s30, %s19588_s21  }
  0xc0   :  { %s19426_s23 = scalar_lea.hbm %s22032_s11, 64 }
  0xc1   :  { %p19427_p10 = scmp.ne.s32.totalorder %s22032_s11, %s19426_s23  ;;  %p19430_p11 = scmp.lt.u32.totalorder %s19426_s23, %s22032_s11 }
  0xc3   :  { %p19432_p12 = pnand %p19430_p11, %p19427_p10 }
  0xc5   :  { %19435 = shalt.err (!%p19432_p12)
}
  0xc6   :  { %s19436_s4 = scalar_lea.vmem %s19844_s18, 64  ;;  %p19441_p0 = scmp.lt.s32.totalorder %s19844_s18, %s19844_s18 }
  0xc7   :  { %p19437_p13 = scmp.ne.s32.totalorder %s19844_s18, %s19436_s4  ;;  %p19442_p1 = scmp.lt.s32.totalorder %s19436_s4, %s19436_s4 }
  0xc9   :  { %p19443_p2 = por %p19442_p1, %p19441_p0 }
  0xcb   :  { %p19444_p3 = pnand %p19443_p2, %p19437_p13 }
  0xcd   :  { %19447 = shalt.err (!%p19444_p3)
}
  0xce   :  { %s22057_s8 = smov 16   ;;  %s19596_s0 = smov [#allocation16]  }
  0xcf   :  { %123 = dma.hbm_to_vmem [thread:$0]  %s22032_s11, 64, %s19844_s18, [#allocation12], %s22057_s8, %s22057_s8, %s19582_s24  }
  0xd0   :  { %s141_s28 = sshll.u32 %s19596_s0, 4  ;;  %s19597_s6 = smov [#allocation19]   ;;  %s142_s28 = int_to_ptr.vmem [resolvable:$true] %s141_s28 }
  0xd1   :  { %s165_s9 = sshll.u32 %s19597_s6, 4  ;;  %s19448_s29 = scalar_lea.hbm %s22034_s13, 256  ;;  %s19881_s9 = int_to_ptr.vmem [resolvable:$true] %s165_s9 }
  0xd2   :  { %p19449_p4 = scmp.ne.s32.totalorder %s22034_s13, %s19448_s29  ;;  %p19452_p5 = scmp.lt.u32.totalorder %s19448_s29, %s22034_s13 }
  0xd4   :  { %p19454_p6 = pnand %p19452_p5, %p19449_p4 }
  0xd6   :  { %19457 = shalt.err (!%p19454_p6)
}
  0xd7   :  { %s19458_s11 = scalar_lea.vmem %s142_s28, 256  ;;  %p19463_p8 = scmp.lt.s32.totalorder %s142_s28, %s142_s28 }
  0xd8   :  { %p19459_p7 = scmp.ne.s32.totalorder %s142_s28, %s19458_s11  ;;  %p19464_p9 = scmp.lt.s32.totalorder %s19458_s11, %s19458_s11 }
  0xda   :  { %p19465_p10 = por %p19464_p9, %p19463_p8 }
  0xdc   :  { %p19466_p11 = pnand %p19465_p10, %p19459_p7 }
  0xde   :  { %19469 = shalt.err (!%p19466_p11)
}
  0xdf   :  { %147 = dma.hbm_to_vmem [thread:$0]  %s22034_s13, 256, %s142_s28, [#allocation15], %s19587_s30, %s19587_s30, %s19588_s21  }
  0xe0   :  { %s19470_s26 = scalar_lea.hbm %s22036_s15, 64 }
  0xe1   :  { %p19471_p12 = scmp.ne.s32.totalorder %s22036_s15, %s19470_s26  ;;  %p19474_p13 = scmp.lt.u32.totalorder %s19470_s26, %s22036_s15 }
  0xe3   :  { %p19476_p0 = pnand %p19474_p13, %p19471_p12 }
  0xe5   :  { %19479 = shalt.err (!%p19476_p0)
}
  0xe6   :  { %s19480_s6 = scalar_lea.vmem %s19881_s9, 64  ;;  %p19485_p2 = scmp.lt.s32.totalorder %s19881_s9, %s19881_s9 }
  0xe7   :  { %p19481_p1 = scmp.ne.s32.totalorder %s19881_s9, %s19480_s6  ;;  %p19486_p3 = scmp.lt.s32.totalorder %s19480_s6, %s19480_s6 }
  0xe9   :  { %p19487_p4 = por %p19486_p3, %p19485_p2 }
  0xeb   :  { %p19488_p5 = pnand %p19487_p4, %p19481_p1 }
  0xed   :  { %19491 = shalt.err (!%p19488_p5)
}
  0xee   :  { %171 = dma.hbm_to_vmem [thread:$0]  %s22036_s15, 64, %s19881_s9, [#allocation18], %s22057_s8, %s22057_s8, %s19582_s24  }
  0xef   :  { %s19598_s28 = smov [#allocation22]   ;;  %s19599_s5 = smov [#allocation25]  }
  0xf0   :  { %s189_s14 = sshll.u32 %s19598_s28, 4  ;;  %s214_s29 = sshll.u32 %s19599_s5, 4  ;;  %s190_s14 = int_to_ptr.vmem [resolvable:$true] %s189_s14  ;;  %s215_s29 = int_to_ptr.vmem [resolvable:$true] %s214_s29 }
  0xf1   :  { %s19492_s1 = scalar_lea.hbm %s22038_s17, 64 }
  0xf2   :  { %p19493_p6 = scmp.ne.s32.totalorder %s22038_s17, %s19492_s1  ;;  %p19496_p7 = scmp.lt.u32.totalorder %s19492_s1, %s22038_s17 }
  0xf4   :  { %p19498_p8 = pnand %p19496_p7, %p19493_p6 }
  0xf6   :  { %19501 = shalt.err (!%p19498_p8)
}
  0xf7   :  { %s19502_s15 = scalar_lea.vmem %s190_s14, 64  ;;  %p19507_p10 = scmp.lt.s32.totalorder %s190_s14, %s190_s14 }
  0xf8   :  { %p19503_p9 = scmp.ne.s32.totalorder %s190_s14, %s19502_s15  ;;  %p19508_p11 = scmp.lt.s32.totalorder %s19502_s15, %s19502_s15 }
  0xfa   :  { %p19509_p12 = por %p19508_p11, %p19507_p10 }
  0xfc   :  { %p19510_p13 = pnand %p19509_p12, %p19503_p9 }
  0xfe   :  { %19513 = shalt.err (!%p19510_p13)
}
  0xff   :  { %195 = dma.hbm_to_vmem [thread:$0]  %s22038_s17, 64, %s190_s14, [#allocation21], %s22057_s8, %s22057_s8, %s19582_s24  }
 0x100   :  { %s19514_s4 = scalar_lea.hbm %s22040_s19, 32 }
 0x101   :  { %p19515_p0 = scmp.ne.s32.totalorder %s22040_s19, %s19514_s4  ;;  %p19518_p1 = scmp.lt.u32.totalorder %s19514_s4, %s22040_s19 }
 0x103   :  { %p19520_p2 = pnand %p19518_p1, %p19515_p0 }
 0x105   :  { %19523 = shalt.err (!%p19520_p2)
}
 0x106   :  { %s19524_s13 = scalar_lea.vmem %s215_s29, 32  ;;  %p19529_p4 = scmp.lt.s32.totalorder %s215_s29, %s215_s29 }
 0x107   :  { %p19525_p3 = scmp.ne.s32.totalorder %s215_s29, %s19524_s13  ;;  %p19530_p5 = scmp.lt.s32.totalorder %s19524_s13, %s19524_s13 }
 0x109   :  { %p19531_p6 = por %p19530_p5, %p19529_p4 }
 0x10b   :  { %p19532_p7 = pnand %p19531_p6, %p19525_p3 }
 0x10d   :  { %19535 = shalt.err (!%p19532_p7)
}
 0x10e   :  { %217 = dma.hbm_to_vmem [thread:$0]  %s22040_s19, 32, %s215_s29, [#allocation24]  }
 0x10f   :  { %19558 = dma.done.wait [#allocation3], 2048  }
 0x110   :  { %19559 = vsyncadd [#allocation3], 4294965248 }
 0x111   :  { %19560 = dma.done.wait [#allocation6], 80  }
 0x112   :  { %19561 = vsyncadd [#allocation6], 4294967216 }
 0x113   :  { %19562 = dma.done.wait [#allocation9], 16384  }
 0x114   :  { %19563 = vsyncadd [#allocation9], 4294950912 }
 0x115   :  { %19564 = dma.done.wait [#allocation12], 128  }
 0x116   :  { %19565 = vsyncadd [#allocation12], 4294967168 }
 0x117   :  { %19566 = dma.done.wait [#allocation15], 16640  }
 0x118   :  { %19567 = vsyncadd [#allocation15], 4294950656 }
 0x119   :  { %19568 = dma.done.wait [#allocation18], 16448  }
 0x11a   :  { %19569 = vsyncadd [#allocation18], 4294950848 }
 0x11b   :  { %19570 = dma.done.wait [#allocation21], 128  }
 0x11c   :  { %19571 = vsyncadd [#allocation21], 4294967168 }
 0x11d   :  { %19572 = dma.done.wait [#allocation24], 2080  }
 0x11e   :  { %19573 = vsyncadd [#allocation24], 4294965216  ;;  %v19600_v0 = vmov 0.0   ;;  %vm19601_vm0 = vmmov 0   ;;  %v18334_v1 = vld [vmem:[#allocation2 + $0x40] sm:$0xff]   ;;  %v18336_v3 = vld [vmem:[#allocation2 + $0x48] sm:$0xff]  }
 0x11f   :  { %17355 = vmatprep.subr.bf16.mxu0 %v19600_v0  ;;  %17357 = vmatprep.mubr.msk.bf16.mxu0 %vm19601_vm0, %v19600_v0  ;;  %v18335_v2 = vld [vmem:[#allocation2] sm:$0xff]   ;;  %v18337_v4 = vld [vmem:[#allocation2 + $0x8] sm:$0xff]   ;;  %v18338_v5 = vld [vmem:[#allocation2 + $0x50] sm:$0xff]   ;;  %vm310_vm1 = vcmask 1043456   ;;  %s22058_s28 = sld [smem:[#allocation36_spill]]  ;;  %s22059_s22 = sld [smem:[#allocation37_spill]] }
 0x120   :  { %16829 = vmatprep.subr.bf16.mxu1 %v18334_v1  ;;  %v18339_v6 = vld [vmem:[#allocation2 + $0x10] sm:$0xff]   ;;  %v18340_v7 = vld [vmem:[#allocation2 + $0x58] sm:$0xff]   ;;  %v18342_v9 = vld [vmem:[#allocation2 + $0x60] sm:$0xff]   ;;  %vm306_vm2 = vcmask 64512   ;;  %v19602_v52 = vmov 0   ;;  %vm887_vm3 = vcmask 130048  }
 0x121   :  { %16830 = vmatpush3.bf16.msra.mxu1 %v18335_v2  ;;  %v18341_v8 = vld [vmem:[#allocation2 + $0x18] sm:$0xff]   ;;  %v18343_v10 = vld [vmem:[#allocation2 + $0x20] sm:$0xff]   ;;  %v18344_v12 = vld [vmem:[#allocation2 + $0x68] sm:$0xff]   ;;  %s19603_s25 = smov 112   ;;  %s19604_s26 = smov 96   ;;  %vm3474_vm4 = vcmask 261120  }
 0x122   :  { %16831 = vmatprep.subr.bf16.mxu1 %v18336_v3  ;;  %v305_v11 = vld [vmem:[#allocation5] sm:$0xf]  ;;  %v18345_v19 = vld [vmem:[#allocation2 + $0x28] sm:$0xff]   ;;  %v18346_v23 = vld [vmem:[#allocation2 + $0x70] sm:$0xff]   ;;  %s19605_s4 = smov 80   ;;  %s19606_s27 = smov 48  }
 0x123   :  { %v312_v13 = vsel %vm310_vm1, %v305_v11, 0  ;;  %v18350_v21 = vld [vmem:[#allocation8] ss:$12 sps:$4 sm:$0xff]   ;;  %v18352_v22 = vld [vmem:[#allocation8 + $0x4] ss:$12 sps:$4 sm:$0xff]   ;;  %s19607_s16 = smov 32  }
 0x124   :  { %17356 = vmatpush3.bf16.msra.mxu0 %v312_v13  ;;  %v18347_v24 = vld [vmem:[#allocation2 + $0x30] sm:$0xff]   ;;  %v18354_v26 = vld [vmem:[#allocation8 + $0x18] ss:$12 sps:$4 sm:$0xff]   ;;  %v18360_v28 = vld [vmem:[#allocation8 + $0x34] ss:$12 sps:$4 sm:$0xff]   ;;  %s22060_s13 = sld [smem:[#allocation38_spill]] }
 0x125   :  { %16832 = vmatpush3.bf16.msra.mxu1 %v18337_v4  ;;  %v265_v14 = vld [vmem:[%s22058_s28 + $0x8] sm:$0xff]  ;;  %v267_v15 = vld [vmem:[%s22058_s28 + $0x18] sm:$0xff]  ;;  %v270_v17 = vld [vmem:[%s22059_s22] sm:$0xff]  ;;  %697 = vmatprep.subr.bf16.mxu0 %v18352_v22  ;;  %vm3477_vm5 = vcmask 392192   ;;  %vm3480_vm6 = vcmask 523264   ;;  %vm3483_vm7 = vcmask 654336  }
 0x126   :  { %16833 = vmatprep.subr.bf16.mxu1 %v18338_v5  ;;  %v269_v16 = vpack.c.bf16 %v267_v15, %v265_v14  ;;  %v271_v18 = vld [vmem:[%s22059_s22 + $0x8] sm:$0xff]  ;;  %v18348_v27 = vld [vmem:[#allocation2 + $0x78] sm:$0xff]   ;;  %v264_v30 = vld [vmem:[%s22058_s28] sm:$0xff]  ;;  %vm3486_vm8 = vcmask 785408   ;;  %vm3489_vm9 = vcmask 916480  }
 0x127   :  { %v272_v20 = vpack.c.bf16 %v271_v18, %v270_v17  ;;  %v18356_v25 = vld [vmem:[#allocation8 + $0x1c] ss:$12 sps:$4 sm:$0xff]   ;;  %v18349_v29 = vld [vmem:[#allocation2 + $0x38] sm:$0xff]   ;;  %v18366_v38 = vld [vmem:[#allocation8 + $0x60] ss:$12 sps:$4 sm:$0xff]  }
 0x128   :  { %483 = vmatprep.mubr.bf16.mxu1 %v269_v16  ;;  %v266_v31 = vld [vmem:[%s22058_s28 + $0x10] sm:$0xff]  ;;  %v18361_v40 = vld [vmem:[#allocation8 + $0x38] ss:$12 sps:$4 sm:$0xff]   ;;  %v18376_v46 = vld [vmem:[#allocation8 + $0x94] ss:$12 sps:$4 sm:$0xff]  }
 0x129   :  { %16834 = vmatpush3.bf16.msra.mxu1 %v18339_v6  ;;  %17358 = vmatmul.mubr.msk.bf16.vlgmr.msra.gmra.mrb[0].mxu0 %vm306_vm2, %v272_v20  ;;  %v18358_v32 = vld [vmem:[#allocation8 + $0x30] ss:$12 sps:$4 sm:$0xff]   ;;  %v18364_v33 = vld [vmem:[#allocation8 + $0x4c] ss:$12 sps:$4 sm:$0xff]   ;;  %v18362_v34 = vld [vmem:[#allocation8 + $0x48] ss:$12 sps:$4 sm:$0xff]   ;;  %v268_v37 = vpack.c.bf16 %v266_v31, %v264_v30  ;;  %v509_v6 = vlaneseq }
 0x12a   :  { %16835 = vmatprep.subr.bf16.mxu1 %v18340_v7  ;;  %698 = vmatpush1.bf16.msra.mxu0 %v18350_v21  ;;  %v18353_v35 = vld [vmem:[#allocation8 + $0x8] ss:$12 sps:$4 sm:$0xff]   ;;  %v18368_v36 = vld [vmem:[#allocation8 + $0x64] ss:$12 sps:$4 sm:$0xff]   ;;  %v18357_v39 = vld [vmem:[#allocation8 + $0x20] ss:$12 sps:$4 sm:$0xff]  }
 0x12b   :  { %699 = vmatprep.subr.bf16.mxu0 %v18356_v25  ;;  %v18365_v41 = vld [vmem:[#allocation8 + $0x50] ss:$12 sps:$4 sm:$0xff]   ;;  %v18369_v42 = vld [vmem:[#allocation8 + $0x68] ss:$12 sps:$4 sm:$0xff]   ;;  %v18370_v44 = vld [vmem:[#allocation8 + $0x78] ss:$12 sps:$4 sm:$0xff]   ;;  %729 = vmatprep.mubr.bf16.mxu0 %v19602_v52 }
 0x12c   :  { %v18372_v43 = vld [vmem:[#allocation8 + $0x7c] ss:$12 sps:$4 sm:$0xff]   ;;  %v18373_v45 = vld [vmem:[#allocation8 + $0x80] ss:$12 sps:$4 sm:$0xff]   ;;  %v18377_v48 = vld [vmem:[#allocation8 + $0x98] ss:$12 sps:$4 sm:$0xff]  }
 0x12d   :  { %16836 = vmatpush3.bf16.msra.mxu1 %v18341_v8  ;;  %v18374_v47 = vld [vmem:[#allocation8 + $0x90] ss:$12 sps:$4 sm:$0xff]   ;;  %v18380_v49 = vld [vmem:[#allocation8 + $0xac] ss:$12 sps:$4 sm:$0xff]   ;;  %v18378_v50 = vld [vmem:[#allocation8 + $0xa8] ss:$12 sps:$4 sm:$0xff]  }
 0x12e   :  { %16837 = vmatprep.subr.bf16.mxu1 %v18342_v9  ;;  %700 = vmatpush1.bf16.msra.mxu0 %v18354_v26  ;;  %v18381_v51 = vld [vmem:[#allocation8 + $0xb0] ss:$12 sps:$4 sm:$0xff]   ;;  %v19990_v7 = vshrl.u32 %v509_v6, 7 }
 0x12f   :  { %701 = vmatprep.subr.bf16.mxu0 %v18360_v28  ;;  %v16204_v1 = vld [vmem:[#allocation7] ss:$0 sm:$0xff]  ;;  %v552_v9 = vld [vmem:[%s22028_s7] sm:$0x7] }
 0x130   :  { %v19993_v8 = vsub.s32 0, %v19990_v7 }
 0x131   :  { %16838 = vmatpush3.bf16.msra.mxu1 %v18343_v10  ;;  %v19999_v10 = vsub.s32 1, %v19990_v7 }
 0x132   :  { %16839 = vmatprep.subr.bf16.mxu1 %v18344_v12  ;;  %702 = vmatpush1.bf16.msra.mxu0 %v18358_v32  ;;  %v557_v11 = vrot.slane %v552_v9, %v19993_v8 }
 0x133   :  { %703 = vmatprep.subr.bf16.mxu0 %v18364_v33  ;;  %v561_v12 = vrot.slane %v552_v9, %v19999_v10 }
 0x135   :  { %16840 = vmatpush3.bf16.msra.mxu1 %v18345_v19 }
 0x136   :  { %16841 = vmatprep.subr.bf16.mxu1 %v18346_v23  ;;  %704 = vmatpush1.bf16.msra.mxu0 %v18362_v34 }
 0x137   :  { %705 = vmatprep.subr.bf16.mxu0 %v18368_v36 }
 0x139   :  { %16842 = vmatpush3.bf16.msra.mxu1 %v18347_v24 }
 0x13a   :  { %16843 = vmatprep.subr.bf16.mxu1 %v18348_v27  ;;  %706 = vmatpush1.bf16.msra.mxu0 %v18366_v38  ;;  %v20038_v27 = vsub.s32 2, %v19990_v7 }
 0x13b   :  { %707 = vmatprep.subr.bf16.mxu0 %v18372_v43 }
 0x13c   :  { %v565_v28 = vrot.slane %v552_v9, %v20038_v27 }
 0x13d   :  { %16844 = vmatpush3.bf16.msra.mxu1 %v18349_v29 }
 0x13e   :  { %17361 = vmatprep.subr.bf16.mxu1 %v19600_v0  ;;  %708 = vmatpush1.bf16.msra.mxu0 %v18370_v44 }
 0x13f   :  { %709 = vmatprep.subr.bf16.mxu0 %v18376_v46 }
 0x140   :  { %484 = vmatmul.mubr.bf16.vlgmr.msra.gmra.mrb[0].mxu1 %v268_v37 }
 0x141   :  { %17362 = vmatpush3.bf16.msra.mxu1 %v18353_v35  ;;  %17377 = vmatprep.mubr.msk.bf16.mxu1 %vm19601_vm0, %v19600_v0 }
 0x142   :  { %17363 = vmatprep.subr.bf16.mxu1 %v19600_v0  ;;  %710 = vmatpush1.bf16.msra.mxu0 %v18374_v47 }
 0x143   :  { %711 = vmatprep.subr.bf16.mxu0 %v18380_v49 }
 0x145   :  { %17364 = vmatpush3.bf16.msra.mxu1 %v18357_v39 }
 0x146   :  { %17365 = vmatprep.subr.bf16.mxu1 %v19600_v0  ;;  %712 = vmatpush1.bf16.msra.mxu0 %v18378_v50 }
 0x147   :  { %17381 = vmatprep.subr.mxu0 %v19600_v0 }
 0x149   :  { %17366 = vmatpush3.bf16.msra.mxu1 %v18361_v40 }
 0x14a   :  { %17367 = vmatprep.subr.bf16.mxu1 %v19600_v0 }
 0x14d   :  { %17368 = vmatpush3.bf16.msra.mxu1 %v18365_v41 }
 0x14e   :  { %17369 = vmatprep.subr.bf16.mxu1 %v19600_v0 }
 0x151   :  { %17370 = vmatpush3.bf16.msra.mxu1 %v18369_v42 }
 0x152   :  { %17371 = vmatprep.subr.bf16.mxu1 %v19600_v0 }
 0x155   :  { %17372 = vmatpush3.bf16.msra.mxu1 %v18373_v45 }
 0x156   :  { %17373 = vmatprep.subr.bf16.mxu1 %v19600_v0 }
 0x159   :  { %17374 = vmatpush3.bf16.msra.mxu1 %v18377_v48 }
 0x15a   :  { %17375 = vmatprep.subr.bf16.mxu1 %v19600_v0 }
 0x15d   :  { %17376 = vmatpush3.bf16.msra.mxu1 %v18381_v51 }
 0x15e   :  { %17421 = vmatprep.subr.mxu1 %v19600_v0 }
 0x1fc   :  { %v348_v53 = vpop.f32.mrb[0].mxu0 }
 0x1fd   :  { %v17359_v54 = vpop.f32.mrb[1].mxu0 }
 0x1fe   :  { %v351_v55 = vpop.f32.mrb[2].mxu0 }
 0x1ff   :  { %v17360_v56 = vpop.f32.mrb[3].mxu0 }
 0x213   :  { %v16845_v57 = vpop.f32.mrb[0].mxu1 }
 0x214   :  { %v16846_v58 = vpop.f32.mrb[1].mxu1 }
 0x215   :  { %v16847_v59 = vadd.f32 %v16846_v58, %v16845_v57  ;;  %v16848_v60 = vpop.f32.mrb[2].mxu1 }
 0x216   :  { %v16849_v61 = vpop.f32.mrb[3].mxu1 }
 0x217   :  { %v486_v62 = vadd.f32 %v16847_v59, %v348_v53  ;;  %v16850_v63 = vadd.f32 %v16849_v61, %v16848_v60  ;;  %v501_v60 = vld [vmem:[%s22060_s13] sm:$0x1] }
 0x218   :  { %v503_v61 = vsub.f32 1.0, %v501_v60 }
 0x219   :  { %v489_v2 = vadd.f32 %v16850_v63, %v351_v55  ;;  %v19980_v3 = vadd.f32 %v16204_v1, %v486_v62  ;;  %v502_v62 = vld [vmem:[%s22060_s13 + $0x1] sm:$0x1] }
 0x21a   :  { %v504_v63 = vsub.f32 1.0, %v502_v62 }
 0x21b   :  { %v19982_v4 = vadd.f32 %v16204_v1, %v489_v2  ;;  %v505_v1 = vmul.f32 -3.4028235e+38, %v503_v61 }
 0x21c   :  { %v506_v2 = vmul.f32 -3.4028235e+38, %v504_v63 }
 0x21d   :  { %v519_v5 = vpack.c.bf16 %v19982_v4, %v19980_v3 }
 0x21e   :  { %v20139_v9 = vrot.slane %v506_v2, %v19993_v8 }
 0x21f   :  { %730 = vmatmul.mubr.bf16.vlgmr.msra.gmra.mrb[4].mxu0 %v519_v5  ;;  %17378 = vmatmul.mubr.bf16.vlgmr.msra.gmra.mrb[4].mxu1 %v519_v5  ;;  %v20136_v5 = vrot.slane %v505_v1, %v19993_v8 }
 0x220   :  { %17383 = vmatprep.mubr.msk.f32.mxu0 %vm19601_vm0, %v19600_v0  ;;  %17423 = vmatprep.mubr.msk.f32.mxu1 %vm19601_vm0, %v19600_v0 }
 0x2f2   :  { %v731_v13 = vpop.f32.mrb[4].mxu0  ;;  %v774_v14 = vpop.f32.mrb[4].mxu1 }
 0x2f3   :  { %v732_v15 = vadd.f32 %v731_v13, %v557_v11  ;;  %v733_v16 = vpop.f32.mrb[5].mxu0  ;;  %v17379_v17 = vpop.f32.mrb[5].mxu1  ;;  %v20047_v30 = vadd.f32 %v774_v14, %v565_v28 }
 0x2f4   :  { %v734_v18 = vadd.f32 %v733_v16, %v561_v12  ;;  %v735_v19 = vpop.f32.mrb[6].mxu0  ;;  %v777_v20 = vpop.f32.mrb[6].mxu1 }
 0x2f5   :  { %v781_v21 = vmul.f32 0.25, %v732_v15  ;;  %v737_v22 = vpop.f32.mrb[7].mxu0  ;;  %v17380_v23 = vpop.f32.mrb[7].mxu1  ;;  %v736_v24 = vadd.f32 %v735_v19, %v557_v11  ;;  %v20045_v29 = vadd.f32 %v777_v20, %v565_v28 }
 0x2f6   :  { %815 = vrot.lane.b32.xlu0 %v734_v18, %s19603_s25  ;;  %17382 = vmatpush3.xpose.msk.msra.mxu0 %vm887_vm3, %v734_v18  ;;  %v738_v25 = vadd.f32 %v737_v22, %v561_v12 }
 0x2f7   :  { %789 = vrot.lane.b32.xlu1 %v781_v21, %s19604_s26  ;;  %17386 = vmatprep.subr.mxu0 %v19600_v0  ;;  %v782_v26 = vmul.f32 0.25, %v736_v24 }
 0x2f9   :  { %17384 = vmatmul.mubr.msk.f32.vlgmr.msra.gmra.mrb[8].mxu0 %vm887_vm3, %v781_v21 }
 0x2fa   :  { %819 = vrot.lane.b32.xlu0 %v734_v18, %s19604_s26  ;;  %17387 = vmatpush3.xpose.msk.msra.mxu0 %vm887_vm3, %v738_v25 }
 0x2fb   :  { %793 = vrot.lane.b32.xlu1 %v781_v21, %s19605_s4  ;;  %17388 = vmatprep.mubr.msk.f32.mxu0 %vm19601_vm0, %v19600_v0 }
 0x2fc   :  { %17391 = vmatprep.subr.mxu0 %v19600_v0 }
 0x2fd   :  { %17389 = vmatmul.mubr.msk.f32.vlgmr.msra.gmra.mrb[10].mxu0 %vm887_vm3, %v782_v26 }
 0x2fe   :  { %823 = vrot.lane.b32.xlu0 %v734_v18, %s19605_s4  ;;  %17393 = vmatprep.mubr.msk.f32.mxu0 %vm19601_vm0, %v19600_v0 }
 0x2ff   :  { %817 = vrot.lane.b32.xlu1 %v738_v25, %s19603_s25 }
 0x302   :  { %827 = vrot.lane.b32.xlu0 %v734_v18, %s19587_s30 }
 0x303   :  { %829 = vrot.lane.b32.xlu1 %v738_v25, %s19587_s30 }
 0x306   :  { %785 = vrot.lane.b32.xlu0 %v781_v21, %s19603_s25 }
 0x307   :  { %833 = vrot.lane.b32.xlu1 %v738_v25, %s19606_s27 }
 0x30a   :  { %797 = vrot.lane.b32.xlu0 %v781_v21, %s19587_s30 }
 0x30b   :  { %787 = vrot.lane.b32.xlu1 %v782_v26, %s19603_s25 }
 0x30e   :  { %821 = vrot.lane.b32.xlu0 %v738_v25, %s19604_s26 }
 0x30f   :  { %837 = vrot.lane.b32.xlu1 %v738_v25, %s19607_s16 }
 0x312   :  { %831 = vrot.lane.b32.xlu0 %v734_v18, %s19606_s27 }
 0x313   :  { %791 = vrot.lane.b32.xlu1 %v782_v26, %s19604_s26 }
 0x316   :  { %825 = vrot.lane.b32.xlu0 %v738_v25, %s19605_s4 }
 0x317   :  { %841 = vrot.lane.b32.xlu1 %v738_v25, %s22057_s8 }
 0x31a   :  { %801 = vrot.lane.b32.xlu0 %v781_v21, %s19606_s27 }
 0x31b   :  { %795 = vrot.lane.b32.xlu1 %v782_v26, %s19605_s4 }
 0x31e   :  { %835 = vrot.lane.b32.xlu0 %v734_v18, %s19607_s16 }
 0x31f   :  { %799 = vrot.lane.b32.xlu1 %v782_v26, %s19587_s30 }
 0x322   :  { %805 = vrot.lane.b32.xlu0 %v781_v21, %s19607_s16 }
 0x323   :  { %803 = vrot.lane.b32.xlu1 %v782_v26, %s19606_s27 }
 0x326   :  { %839 = vrot.lane.b32.xlu0 %v734_v18, %s22057_s8 }
 0x327   :  { %807 = vrot.lane.b32.xlu1 %v782_v26, %s19607_s16 }
 0x32a   :  { %809 = vrot.lane.b32.xlu0 %v781_v21, %s22057_s8 }
 0x32b   :  { %811 = vrot.lane.b32.xlu1 %v782_v26, %s22057_s8 }
 0x32e   :  { %847 = vrot.lane.b32.xlu0 %v20045_v29, %s19603_s25 }
 0x32f   :  { %845 = vrot.lane.b32.xlu1 %v20047_v30, %s19603_s25 }
 0x333   :  { %851 = vrot.lane.b32.xlu1 %v20047_v30, %s19604_s26 }
 0x368   :  { %v816_v31 = vpop.permute.xlu0 %815 }
 0x369   :  { %v790_v32 = vpop.permute.xlu1 %789  ;;  %17392 = vmatpush3.xpose.msk.msra.mxu0 %vm887_vm3, %v816_v31 }
 0x36a   :  { %17396 = vmatprep.subr.mxu0 %v19600_v0 }
 0x36c   :  { %v820_v33 = vpop.permute.xlu0 %819 }
 0x36d   :  { %v794_v34 = vpop.permute.xlu1 %793 }
 0x370   :  { %v824_v35 = vpop.permute.xlu0 %823 }
 0x371   :  { %v818_v36 = vpop.permute.xlu1 %817 }
 0x374   :  { %v828_v37 = vpop.permute.xlu0 %827 }
 0x375   :  { %17422 = vmatpush3.xpose.msk.msra.mxu1 %vm887_vm3, %v828_v37  ;;  %v830_v38 = vpop.permute.xlu1 %829 }
 0x376   :  { %17431 = vmatprep.subr.mxu1 %v19600_v0 }
 0x378   :  { %v786_v39 = vpop.permute.xlu0 %785 }
 0x379   :  { %v834_v40 = vpop.permute.xlu1 %833  ;;  %17394 = vmatmul.mubr.msk.f32.vlgmr.msra.gmra.mrb[12].mxu0 %vm887_vm3, %v786_v39 }
 0x37a   :  { %17397 = vmatpush3.xpose.msk.msra.mxu0 %vm887_vm3, %v818_v36  ;;  %17398 = vmatprep.mubr.msk.f32.mxu0 %vm19601_vm0, %v19600_v0 }
 0x37b   :  { %17401 = vmatprep.subr.mxu0 %v19600_v0 }
 0x37c   :  { %v798_v41 = vpop.permute.xlu0 %797 }
 0x37d   :  { %v788_v42 = vpop.permute.xlu1 %787  ;;  %17424 = vmatmul.mubr.msk.f32.vlgmr.msra.gmra.mrb[8].mxu1 %vm887_vm3, %v798_v41 }
 0x37e   :  { %17399 = vmatmul.mubr.msk.f32.vlgmr.msra.gmra.mrb[14].mxu0 %vm887_vm3, %v788_v42  ;;  %17433 = vmatprep.mubr.msk.f32.mxu1 %vm19601_vm0, %v19600_v0 }
 0x37f   :  { %17402 = vmatpush3.xpose.msk.msra.mxu0 %vm887_vm3, %v820_v33  ;;  %17403 = vmatprep.mubr.msk.f32.mxu0 %vm19601_vm0, %v19600_v0 }
 0x380   :  { %v822_v43 = vpop.permute.xlu0 %821  ;;  %17406 = vmatprep.subr.mxu0 %v19600_v0 }
 0x381   :  { %v838_v44 = vpop.permute.xlu1 %837 }
 0x382   :  { %17404 = vmatmul.mubr.msk.f32.vlgmr.msra.gmra.mrb[16].mxu0 %vm887_vm3, %v790_v32 }
 0x383   :  { %17407 = vmatpush3.xpose.msk.msra.mxu0 %vm887_vm3, %v822_v43  ;;  %17408 = vmatprep.mubr.msk.f32.mxu0 %vm19601_vm0, %v19600_v0 }
 0x384   :  { %v832_v45 = vpop.permute.xlu0 %831  ;;  %17411 = vmatprep.subr.mxu0 %v19600_v0 }
 0x385   :  { %v792_v46 = vpop.permute.xlu1 %791  ;;  %17432 = vmatpush3.xpose.msk.msra.mxu1 %vm887_vm3, %v832_v45 }
 0x386   :  { %17409 = vmatmul.mubr.msk.f32.vlgmr.msra.gmra.mrb[18].mxu0 %vm887_vm3, %v792_v46  ;;  %17441 = vmatprep.subr.mxu1 %v19600_v0 }
 0x387   :  { %17412 = vmatpush3.xpose.msk.msra.mxu0 %vm887_vm3, %v824_v35  ;;  %17413 = vmatprep.mubr.msk.f32.mxu0 %vm19601_vm0, %v19600_v0 }
 0x388   :  { %v826_v47 = vpop.permute.xlu0 %825  ;;  %17416 = vmatprep.subr.mxu0 %v19600_v0 }
 0x389   :  { %v842_v48 = vpop.permute.xlu1 %841 }
 0x38a   :  { %17414 = vmatmul.mubr.msk.f32.vlgmr.msra.gmra.mrb[20].mxu0 %vm887_vm3, %v794_v34 }
 0x38b   :  { %17417 = vmatpush3.xpose.msk.msra.mxu0 %vm887_vm3, %v826_v47  ;;  %17418 = vmatprep.mubr.msk.f32.mxu0 %vm19601_vm0, %v19600_v0 }
 0x38c   :  { %v802_v49 = vpop.permute.xlu0 %801  ;;  %17426 = vmatprep.subr.mxu0 %v19600_v0 }
 0x38d   :  { %v796_v50 = vpop.permute.xlu1 %795  ;;  %17434 = vmatmul.mubr.msk.f32.vlgmr.msra.gmra.mrb[10].mxu1 %vm887_vm3, %v802_v49 }
 0x38e   :  { %17419 = vmatmul.mubr.msk.f32.vlgmr.msra.gmra.mrb[22].mxu0 %vm887_vm3, %v796_v50  ;;  %17443 = vmatprep.mubr.msk.f32.mxu1 %vm19601_vm0, %v19600_v0 }
 0x38f   :  { %17427 = vmatpush3.xpose.msk.msra.mxu0 %vm887_vm3, %v830_v38  ;;  %17428 = vmatprep.mubr.msk.f32.mxu0 %vm19601_vm0, %v19600_v0 }
 0x390   :  { %v836_v51 = vpop.permute.xlu0 %835  ;;  %17436 = vmatprep.subr.mxu0 %v19600_v0 }
 0x391   :  { %v800_v53 = vpop.permute.xlu1 %799  ;;  %17442 = vmatpush3.xpose.msk.msra.mxu1 %vm887_vm3, %v836_v51 }
 0x392   :  { %17429 = vmatmul.mubr.msk.f32.vlgmr.msra.gmra.mrb[24].mxu0 %vm887_vm3, %v800_v53  ;;  %17451 = vmatprep.subr.mxu1 %v19600_v0 }
 0x393   :  { %17437 = vmatpush3.xpose.msk.msra.mxu0 %vm887_vm3, %v834_v40  ;;  %17438 = vmatprep.mubr.msk.f32.mxu0 %vm19601_vm0, %v19600_v0 }
 0x394   :  { %v806_v54 = vpop.permute.xlu0 %805  ;;  %17446 = vmatprep.subr.mxu0 %v19600_v0 }
 0x395   :  { %v804_v55 = vpop.permute.xlu1 %803  ;;  %17444 = vmatmul.mubr.msk.f32.vlgmr.msra.gmra.mrb[12].mxu1 %vm887_vm3, %v806_v54 }
 0x396   :  { %17439 = vmatmul.mubr.msk.f32.vlgmr.msra.gmra.mrb[26].mxu0 %vm887_vm3, %v804_v55  ;;  %17453 = vmatprep.mubr.msk.f32.mxu1 %vm19601_vm0, %v19600_v0 }
 0x397   :  { %17447 = vmatpush3.xpose.msk.msra.mxu0 %vm887_vm3, %v838_v44  ;;  %17448 = vmatprep.mubr.msk.f32.mxu0 %vm19601_vm0, %v19600_v0 }
 0x398   :  { %v840_v56 = vpop.permute.xlu0 %839  ;;  %17456 = vmatprep.subr.mxu0 %v19600_v0 }
 0x399   :  { %v808_v57 = vpop.permute.xlu1 %807  ;;  %17452 = vmatpush3.xpose.msk.msra.mxu1 %vm887_vm3, %v840_v56 }
 0x39a   :  { %17449 = vmatmul.mubr.msk.f32.vlgmr.msra.gmra.mrb[28].mxu0 %vm887_vm3, %v808_v57  ;;  %17461 = vmatprep.subr.mxu1 %v19600_v0 }
 0x39b   :  { %17457 = vmatpush3.xpose.msk.msra.mxu0 %vm887_vm3, %v842_v48  ;;  %17458 = vmatprep.mubr.msk.f32.mxu0 %vm19601_vm0, %v19600_v0 }
 0x39c   :  { %v810_v58 = vpop.permute.xlu0 %809  ;;  %17466 = vmatprep.subr.mxu0 %v19600_v0 }
 0x39d   :  { %v812_v59 = vpop.permute.xlu1 %811  ;;  %17454 = vmatmul.mubr.msk.f32.vlgmr.msra.gmra.mrb[14].mxu1 %vm887_vm3, %v810_v58 }
 0x39e   :  { %17462 = vmatpush3.msra.mxu1 %v20047_v30  ;;  %17459 = vmatmul.mubr.msk.f32.vlgmr.msra.gmra.mrb[30].mxu0 %vm887_vm3, %v812_v59 }
 0x39f   :  { %17467 = vmatpush3.msra.mxu0 %v20045_v29  ;;  %17463 = vmatprep.mubr.msk.f32.mxu1 %vm19601_vm0, %v19600_v0 }
 0x3a0   :  { %17471 = vmatprep.subr.mxu1 %v19600_v0  ;;  %17468 = vmatprep.mubr.msk.f32.mxu0 %vm19601_vm0, %v19600_v0 }
 0x3a1   :  { %17476 = vmatprep.subr.mxu0 %v19600_v0 }
 0x3cc   :  { %v958_v6 = vpop.f32.mrb[8].mxu0 }
 0x3cd   :  { %v20142_v11 = vadd.f32 %v958_v6, %v20136_v5  ;;  %v17385_v12 = vpop.f32.mrb[9].mxu0 }
 0x3cf   :  { %v2072_v13 = vsel %vm306_vm2, %v20142_v11, -inf }
 0x3d0   :  { %2073 = vmax.xlane.f32.xlu0 %v2072_v13  ;;  %v1032_v14 = vpop.f32.mrb[10].mxu0 }
 0x3d1   :  { %v20147_v15 = vadd.f32 %v1032_v14, %v20139_v9  ;;  %v17390_v16 = vpop.f32.mrb[11].mxu0 }
 0x3d3   :  { %v2075_v17 = vsel %vm306_vm2, %v20147_v15, -inf }
 0x3d4   :  { %2076 = vmax.xlane.f32.xlu1 %v2075_v17  ;;  %v20214_v17 = vpop.permute.xlu0 %847 }
 0x44c   :  { %v1106_v18 = vpop.f32.mrb[12].mxu0 }
 0x44d   :  { %v20152_v19 = vadd.f32 %v1106_v18, %v20136_v5  ;;  %v17395_v20 = vpop.f32.mrb[13].mxu0 }
 0x44f   :  { %v2078_v21 = vsel %vm306_vm2, %v20152_v19, -inf }
 0x450   :  { %v1550_v22 = vpop.f32.mrb[8].mxu1  ;;  %2079 = vmax.xlane.f32.xlu0 %v2078_v21 }
 0x451   :  { %v20157_v23 = vadd.f32 %v1550_v22, %v20136_v5  ;;  %v1180_v24 = vpop.f32.mrb[14].mxu0  ;;  %v17425_v25 = vpop.f32.mrb[9].mxu1 }
 0x452   :  { %v20160_v26 = vadd.f32 %v1180_v24, %v20139_v9  ;;  %v17400_v28 = vpop.f32.mrb[15].mxu0 }
 0x453   :  { %v2096_v31 = vsel %vm306_vm2, %v20157_v23, -inf }
 0x454   :  { %2097 = vmax.xlane.f32.xlu1 %v2096_v31  ;;  %v2081_v32 = vsel %vm306_vm2, %v20160_v26, -inf }
 0x455   :  { %2082 = vmax.xlane.f32.xlu0 %v2081_v32  ;;  %v1254_v33 = vpop.f32.mrb[16].mxu0 }
 0x456   :  { %v17405_v34 = vpop.f32.mrb[17].mxu0  ;;  %v20175_v45 = vadd.f32 %v1254_v33, %v20136_v5 }
 0x458   :  { %v2084_v50 = vsel %vm306_vm2, %v20175_v45, -inf }
 0x459   :  { %v1328_v35 = vpop.f32.mrb[18].mxu0 }
 0x45a   :  { %v20167_v36 = vadd.f32 %v1328_v35, %v20139_v9  ;;  %v17410_v37 = vpop.f32.mrb[19].mxu0 }
 0x45c   :  { %v2087_v38 = vsel %vm306_vm2, %v20167_v36, -inf }
 0x45d   :  { %2088 = vmax.xlane.f32.xlu0 %v2087_v38  ;;  %v1402_v39 = vpop.f32.mrb[20].mxu0  ;;  %v2074_v21 = vpop.xlane.xlu0 %2073 }
 0x45e   :  { %v17415_v40 = vpop.f32.mrb[21].mxu0  ;;  %v20190_v2 = vadd.f32 %v1402_v39, %v20136_v5  ;;  %v2120_v25 = vsub.f32 %v20142_v11, %v2074_v21  ;;  %v20238_v11 = vpop.permute.xlu1 %845 }
 0x460   :  { %v1698_v41 = vpop.f32.mrb[10].mxu1  ;;  %v2090_v12 = vsel %vm306_vm2, %v20190_v2, -inf  ;;  %v2136_v32 = vmul.f32 1.442695, %v2120_v25 }
 0x461   :  { %v20172_v42 = vadd.f32 %v1698_v41, %v20136_v5  ;;  %v17435_v43 = vpop.f32.mrb[11].mxu1  ;;  %v1476_v44 = vpop.f32.mrb[22].mxu0 }
 0x462   :  { %v17420_v46 = vpop.f32.mrb[23].mxu0  ;;  %v20205_v13 = vadd.f32 %v1476_v44, %v20139_v9  ;;  %18854 = vpow2.f32 %v2136_v32  ;;  %v20242_v37 = vpop.permute.xlu1 %851 }
 0x463   :  { %v2102_v47 = vsel %vm306_vm2, %v20172_v42, -inf }
 0x464   :  { %2103 = vmax.xlane.f32.xlu1 %v2102_v47  ;;  %v2093_v16 = vsel %vm306_vm2, %v20205_v13, -inf }
 0x465   :  { %v1624_v48 = vpop.f32.mrb[24].mxu0 }
 0x466   :  { %v17430_v49 = vpop.f32.mrb[25].mxu0  ;;  %v20210_v14 = vadd.f32 %v1624_v48, %v20139_v9  ;;  %v2077_v38 = vpop.xlane.xlu1 %2076 }
 0x467   :  { %v2121_v39 = vsub.f32 %v20147_v15, %v2077_v38 }
 0x468   :  { %v1846_v51 = vpop.f32.mrb[12].mxu1  ;;  %2085 = vmax.xlane.f32.xlu1 %v2084_v50  ;;  %v2099_v20 = vsel %vm306_vm2, %v20210_v14, -inf }
 0x469   :  { %v20182_v53 = vadd.f32 %v1846_v51, %v20136_v5  ;;  %v1772_v54 = vpop.f32.mrb[26].mxu0  ;;  %v17445_v55 = vpop.f32.mrb[13].mxu1  ;;  %v2138_v40 = vmul.f32 1.442695, %v2121_v39 }
 0x46a   :  { %v17440_v56 = vpop.f32.mrb[27].mxu0  ;;  %v20217_v18 = vadd.f32 %v1772_v54, %v20139_v9 }
 0x46b   :  { %v2108_v57 = vsel %vm306_vm2, %v20182_v53, -inf  ;;  %18856 = vpow2.f32 %v2138_v40 }
 0x46c   :  { %2109 = vmax.xlane.f32.xlu1 %v2108_v57  ;;  %v2105_v24 = vsel %vm306_vm2, %v20217_v18, -inf  ;;  %v20234_v34 = vpop.eup %18854 }
 0x46d   :  { %v1920_v58 = vpop.f32.mrb[28].mxu0  ;;  %v2168_v35 = vsel %vm306_vm2, %v20234_v34, 0.0 }
 0x46e   :  { %v17450_v59 = vpop.f32.mrb[29].mxu0  ;;  %v20222_v22 = vadd.f32 %v1920_v58, %v20139_v9 }
 0x470   :  { %v1994_v60 = vpop.f32.mrb[14].mxu1  ;;  %v2111_v31 = vsel %vm306_vm2, %v20222_v22, -inf }
 0x471   :  { %v20187_v61 = vadd.f32 %v1994_v60, %v20136_v5  ;;  %v17455_v62 = vpop.f32.mrb[15].mxu1  ;;  %v2068_v63 = vpop.f32.mrb[30].mxu0 }
 0x472   :  { %v17460_v1 = vpop.f32.mrb[31].mxu0  ;;  %v20228_v28 = vadd.f32 %v2068_v63, %v20139_v9 }
 0x473   :  { %857 = vrot.lane.b32.xlu0 %v20047_v30, %s19605_s4  ;;  %v2114_v6 = vsel %vm306_vm2, %v20187_v61, -inf }
 0x474   :  { %2115 = vmax.xlane.f32.xlu1 %v2114_v6  ;;  %v2117_v33 = vsel %vm306_vm2, %v20228_v28, -inf }
 0x475   :  { %v20245_v41 = vpop.eup %18856 }
 0x476   :  { %v2171_v43 = vsel %vm306_vm2, %v20245_v41, 0.0 }
 0x477   :  { %863 = vrot.lane.b32.xlu0 %v20047_v30, %s19587_s30 }
 0x478   :  { %2091 = vmax.xlane.f32.xlu1 %v2090_v12 }
 0x489   :  { %853 = vrot.lane.b32.xlu1 %v20045_v29, %s19604_s26 }
 0x48d   :  { %859 = vrot.lane.b32.xlu1 %v20045_v29, %s19605_s4 }
 0x491   :  { %865 = vrot.lane.b32.xlu1 %v20045_v29, %s19587_s30 }
 0x496   :  { %2094 = vmax.xlane.f32.xlu0 %v2093_v16 }
 0x49a   :  { %2100 = vmax.xlane.f32.xlu0 %v2099_v20 }
 0x49e   :  { %2106 = vmax.xlane.f32.xlu0 %v2105_v24 }
 0x4a2   :  { %2112 = vmax.xlane.f32.xlu0 %v2111_v31 }
 0x4a6   :  { %2118 = vmax.xlane.f32.xlu0 %v2117_v33 }
 0x4b5   :  { %2169 = vadd.xlane.f32.xlu1 %v2168_v35 }
 0x4bc   :  { %869 = vrot.lane.b32.xlu0 %v20047_v30, %s19606_s27 }
 0x4db   :  { %2172 = vadd.xlane.f32.xlu0 %v2171_v43 }
 0x4dd   :  { %v2080_v44 = vpop.xlane.xlu0 %2079 }
 0x4de   :  { %v2122_v46 = vsub.f32 %v20152_v19, %v2080_v44 }
 0x4e0   :  { %v2140_v47 = vmul.f32 1.442695, %v2122_v46 }
 0x4e1   :  { %v2098_v48 = vpop.xlane.xlu1 %2097 }
 0x4e2   :  { %18858 = vpow2.f32 %v2140_v47  ;;  %v2128_v49 = vsub.f32 %v20157_v23, %v2098_v48  ;;  %v2083_v50 = vpop.xlane.xlu0 %2082 }
 0x4e3   :  { %v2123_v51 = vsub.f32 %v20160_v26, %v2083_v50 }
 0x4e4   :  { %v2152_v15 = vmul.f32 1.442695, %v2128_v49 }
 0x4e5   :  { %v2142_v54 = vmul.f32 1.442695, %v2123_v51 }
 0x4e6   :  { %18860 = vpow2.f32 %v2152_v15 }
 0x4e7   :  { %18862 = vpow2.f32 %v2142_v54 }
 0x4ea   :  { %v2089_v55 = vpop.xlane.xlu0 %2088 }
 0x4eb   :  { %v2125_v56 = vsub.f32 %v20167_v36, %v2089_v55 }
 0x4ec   :  { %v20253_v57 = vpop.eup %18858 }
 0x4ed   :  { %v2146_v58 = vmul.f32 1.442695, %v2125_v56  ;;  %v2174_v19 = vsel %vm306_vm2, %v20253_v57, 0.0 }
 0x4ee   :  { %2175 = vadd.xlane.f32.xlu1 %v2174_v19  ;;  %v20296_v48 = vpop.permute.xlu0 %857 }
 0x4ef   :  { %18864 = vpow2.f32 %v2146_v58 }
 0x4f0   :  { %v20257_v59 = vpop.eup %18860 }
 0x4f1   :  { %v20259_v23 = vpop.eup %18862  ;;  %v2104_v26 = vpop.xlane.xlu1 %2103  ;;  %v2192_v60 = vsel %vm306_vm2, %v20257_v59, 0.0 }
 0x4f2   :  { %v2130_v62 = vsub.f32 %v20172_v42, %v2104_v26  ;;  %2193 = vadd.xlane.f32.xlu1 %v2192_v60  ;;  %v2177_v36 = vsel %vm306_vm2, %v20259_v23, 0.0  ;;  %v20298_v49 = vpop.permute.xlu0 %863 }
 0x4f3   :  { %2178 = vadd.xlane.f32.xlu0 %v2177_v36 }
 0x4f4   :  { %v2156_v63 = vmul.f32 1.442695, %v2130_v62 }
 0x4f5   :  { %v2086_v1 = vpop.xlane.xlu1 %2085 }
 0x4f6   :  { %18866 = vpow2.f32 %v2156_v63  ;;  %v2124_v6 = vsub.f32 %v20175_v45, %v2086_v1 }
 0x4f8   :  { %v2144_v12 = vmul.f32 1.442695, %v2124_v6 }
 0x4f9   :  { %v20267_v16 = vpop.eup %18864  ;;  %v2110_v20 = vpop.xlane.xlu1 %2109 }
 0x4fa   :  { %18868 = vpow2.f32 %v2144_v12  ;;  %v2132_v21 = vsub.f32 %v20182_v53, %v2110_v20  ;;  %v2183_v42 = vsel %vm306_vm2, %v20267_v16, 0.0 }
 0x4fb   :  { %2184 = vadd.xlane.f32.xlu0 %v2183_v42 }
 0x4fc   :  { %v2160_v24 = vmul.f32 1.442695, %v2132_v21 }
 0x4fe   :  { %18870 = vpow2.f32 %v2160_v24 }
 0x500   :  { %v20272_v25 = vpop.eup %18866 }
 0x501   :  { %v2116_v31 = vpop.xlane.xlu1 %2115  ;;  %v2198_v32 = vsel %vm306_vm2, %v20272_v25, 0.0 }
 0x502   :  { %v2134_v45 = vsub.f32 %v20187_v61, %v2116_v31  ;;  %2199 = vadd.xlane.f32.xlu1 %v2198_v32 }
 0x504   :  { %v20277_v33 = vpop.eup %18868  ;;  %v2164_v35 = vmul.f32 1.442695, %v2134_v45 }
 0x505   :  { %v2092_v38 = vpop.xlane.xlu1 %2091  ;;  %v2180_v53 = vsel %vm306_vm2, %v20277_v33, 0.0 }
 0x506   :  { %18872 = vpow2.f32 %v2164_v35  ;;  %v2126_v39 = vsub.f32 %v20190_v2, %v2092_v38  ;;  %2181 = vadd.xlane.f32.xlu1 %v2180_v53 }
 0x508   :  { %v20282_v40 = vpop.eup %18870  ;;  %v2148_v43 = vmul.f32 1.442695, %v2126_v39 }
 0x509   :  { %v2204_v44 = vsel %vm306_vm2, %v20282_v40, 0.0  ;;  %v854_v36 = vpop.permute.xlu1 %853 }
 0x50a   :  { %18874 = vpow2.f32 %v2148_v43  ;;  %2205 = vadd.xlane.f32.xlu1 %v2204_v44 }
 0x50d   :  { %v860_v20 = vpop.permute.xlu1 %859 }
 0x510   :  { %v20286_v61 = vpop.eup %18872 }
 0x511   :  { %875 = vrot.lane.b32.xlu0 %v20047_v30, %s19607_s16  ;;  %v2210_v46 = vsel %vm306_vm2, %v20286_v61, 0.0  ;;  %v20325_v24 = vpop.permute.xlu1 %865 }
 0x512   :  { %2211 = vadd.xlane.f32.xlu1 %v2210_v46 }
 0x514   :  { %v20292_v47 = vpop.eup %18874 }
 0x515   :  { %v2186_v2 = vsel %vm306_vm2, %v20292_v47, 0.0 }
 0x516   :  { %2187 = vadd.xlane.f32.xlu1 %v2186_v2 }
 0x523   :  { %v2095_v50 = vpop.xlane.xlu0 %2094 }
 0x524   :  { %v2127_v51 = vsub.f32 %v20205_v13, %v2095_v50 }
 0x526   :  { %v2150_v15 = vmul.f32 1.442695, %v2127_v51 }
 0x527   :  { %871 = vrot.lane.b32.xlu1 %v20045_v29, %s19606_s27  ;;  %v2101_v54 = vpop.xlane.xlu0 %2100 }
 0x528   :  { %18876 = vpow2.f32 %v2150_v15  ;;  %v2129_v55 = vsub.f32 %v20210_v14, %v2101_v54 }
 0x52a   :  { %v2154_v56 = vmul.f32 1.442695, %v2129_v55 }
 0x52b   :  { %877 = vrot.lane.b32.xlu1 %v20045_v29, %s19607_s16  ;;  %v2107_v58 = vpop.xlane.xlu0 %2106 }
 0x52c   :  { %18878 = vpow2.f32 %v2154_v56  ;;  %v2131_v19 = vsub.f32 %v20217_v18, %v2107_v58 }
 0x52e   :  { %v2158_v26 = vmul.f32 1.442695, %v2131_v19 }
 0x52f   :  { %883 = vrot.lane.b32.xlu1 %v20045_v29, %s22057_s8  ;;  %v2113_v13 = vpop.xlane.xlu0 %2112 }
 0x530   :  { %18880 = vpow2.f32 %v2158_v26  ;;  %v2133_v60 = vsub.f32 %v20222_v22, %v2113_v13 }
 0x532   :  { %v20310_v62 = vpop.eup %18876  ;;  %v2162_v14 = vmul.f32 1.442695, %v2133_v60 }
 0x533   :  { %v2119_v63 = vpop.xlane.xlu0 %2118  ;;  %v2189_v1 = vsel %vm306_vm2, %v20310_v62, 0.0 }
 0x534   :  { %18882 = vpow2.f32 %v2162_v14  ;;  %v2135_v6 = vsub.f32 %v20228_v28, %v2119_v63  ;;  %2190 = vadd.xlane.f32.xlu0 %v2189_v1 }
 0x536   :  { %v20315_v18 = vpop.eup %18878  ;;  %v2166_v12 = vmul.f32 1.442695, %v2135_v6 }
 0x537   :  { %v2195_v29 = vsel %vm306_vm2, %v20315_v18, 0.0  ;;  %v870_v53 = vpop.permute.xlu0 %869 }
 0x538   :  { %18884 = vpow2.f32 %v2166_v12  ;;  %2196 = vadd.xlane.f32.xlu0 %v2195_v29 }
 0x53a   :  { %v20319_v22 = vpop.eup %18880 }
 0x53b   :  { %v2201_v21 = vsel %vm306_vm2, %v20319_v22, 0.0 }
 0x53c   :  { %2202 = vadd.xlane.f32.xlu0 %v2201_v21 }
 0x53e   :  { %v20323_v42 = vpop.eup %18882 }
 0x53f   :  { %v2207_v28 = vsel %vm306_vm2, %v20323_v42, 0.0 }
 0x540   :  { %2208 = vadd.xlane.f32.xlu0 %v2207_v28 }
 0x542   :  { %v20329_v31 = vpop.eup %18884  ;;  %v2170_v32 = vpop.xlane.xlu1 %2169 }
 0x543   :  { %18886 = vrcp.f32 %v2170_v32  ;;  %v2213_v45 = vsel %vm306_vm2, %v20329_v31, 0.0 }
 0x544   :  { %2214 = vadd.xlane.f32.xlu0 %v2213_v45 }
 0x54d   :  { %v18887_v35 = vpop.eup %18886 }
 0x54e   :  { %v2217_v38 = vmul.f32 %v18887_v35, %v20234_v34 }
 0x550   :  { %17464 = vmatmul.mubr.msk.f32.vlgmr.msra.gmra.mrb[16].mxu1 %vm306_vm2, %v2217_v38 }
 0x551   :  { %17472 = vmatpush3.msra.mxu1 %v20238_v11  ;;  %17473 = vmatprep.mubr.msk.f32.mxu1 %vm19601_vm0, %v19600_v0 }
 0x552   :  { %17481 = vmatprep.subr.mxu1 %v19600_v0 }
 0x55a   :  { %881 = vrot.lane.b32.xlu0 %v20047_v30, %s22057_s8 }
 0x568   :  { %v2173_v39 = vpop.xlane.xlu0 %2172 }
 0x569   :  { %18888 = vrcp.f32 %v2173_v39 }
 0x573   :  { %v18889_v43 = vpop.eup %18888 }
 0x574   :  { %v2219_v44 = vmul.f32 %v18889_v43, %v20245_v41 }
 0x576   :  { %17469 = vmatmul.mubr.msk.f32.vlgmr.msra.gmra.mrb[32].mxu0 %vm306_vm2, %v2219_v44 }
 0x577   :  { %17477 = vmatpush3.msra.mxu0 %v20214_v17  ;;  %17478 = vmatprep.mubr.msk.f32.mxu0 %vm19601_vm0, %v19600_v0 }
 0x578   :  { %17486 = vmatprep.subr.mxu0 %v19600_v0 }
 0x57b   :  { %v2176_v34 = vpop.xlane.xlu1 %2175 }
 0x57c   :  { %18890 = vrcp.f32 %v2176_v34 }
 0x57f   :  { %v2194_v41 = vpop.xlane.xlu1 %2193 }
 0x580   :  { %v2179_v11 = vpop.xlane.xlu0 %2178 }
 0x581   :  { %18892 = vrcp.f32 %v2179_v11 }
 0x586   :  { %v18891_v30 = vpop.eup %18890 }
 0x587   :  { %v2221_v46 = vmul.f32 %v18891_v30, %v20253_v57 }
 0x588   :  { %v2185_v2 = vpop.xlane.xlu0 %2184 }
 0x589   :  { %18894 = vrcp.f32 %v2185_v2  ;;  %17474 = vmatmul.mubr.msk.f32.vlgmr.msra.gmra.mrb[18].mxu1 %vm306_vm2, %v2221_v46 }
 0x58a   :  { %17482 = vmatpush3.msra.mxu1 %v20242_v37  ;;  %17483 = vmatprep.mubr.msk.f32.mxu1 %vm19601_vm0, %v19600_v0 }
 0x58b   :  { %v18893_v17 = vpop.eup %18892  ;;  %17491 = vmatprep.subr.mxu1 %v19600_v0 }
 0x58c   :  { %v2223_v50 = vmul.f32 %v18893_v17, %v20259_v23  ;;  %v18383_v17 = vld [vmem:[#allocation10 + $0x8] sm:$0xff]  }
 0x58e   :  { %17479 = vmatmul.mubr.msk.f32.vlgmr.msra.gmra.mrb[34].mxu0 %vm306_vm2, %v2223_v50 }
 0x58f   :  { %17487 = vmatpush3.msra.mxu0 %v854_v36  ;;  %v2200_v51 = vpop.xlane.xlu1 %2199  ;;  %17488 = vmatprep.mubr.msk.f32.mxu0 %vm19601_vm0, %v19600_v0 }
 0x590   :  { %17496 = vmatprep.subr.mxu0 %v19600_v0 }
 0x593   :  { %v18895_v57 = vpop.eup %18894  ;;  %v2182_v37 = vpop.xlane.xlu1 %2181 }
 0x594   :  { %18896 = vrcp.f32 %v2182_v37  ;;  %v2227_v15 = vmul.f32 %v18895_v57, %v20267_v16 }
 0x596   :  { %17489 = vmatmul.mubr.msk.f32.vlgmr.msra.gmra.mrb[36].mxu0 %vm306_vm2, %v2227_v15 }
 0x597   :  { %17497 = vmatpush3.msra.mxu0 %v860_v20  ;;  %17498 = vmatprep.mubr.msk.f32.mxu0 %vm19601_vm0, %v19600_v0  ;;  %v2206_v23 = vpop.xlane.xlu1 %2205 }
 0x598   :  { %17506 = vmatprep.subr.mxu0 %v19600_v0 }
 0x59e   :  { %v18897_v54 = vpop.eup %18896 }
 0x59f   :  { %v2212_v55 = vpop.xlane.xlu1 %2211  ;;  %v2225_v56 = vmul.f32 %v18897_v54, %v20277_v33 }
 0x5a1   :  { %17484 = vmatmul.mubr.msk.f32.vlgmr.msra.gmra.mrb[20].mxu1 %vm306_vm2, %v2225_v56 }
 0x5a2   :  { %17492 = vmatpush3.msra.mxu1 %v20296_v48  ;;  %17493 = vmatprep.mubr.msk.f32.mxu1 %vm19601_vm0, %v19600_v0 }
 0x5a3   :  { %v2188_v16 = vpop.xlane.xlu1 %2187  ;;  %17501 = vmatprep.subr.mxu1 %v19600_v0 }
 0x5a4   :  { %18898 = vrcp.f32 %v2188_v16 }
 0x5a5   :  { %18900 = vrcp.f32 %v2194_v41  ;;  %v18384_v41 = vld [vmem:[#allocation10 + $0x10] sm:$0xff]  }
 0x5a6   :  { %18902 = vrcp.f32 %v2200_v51 }
 0x5a7   :  { %18904 = vrcp.f32 %v2206_v23 }
 0x5ae   :  { %v18899_v58 = vpop.eup %18898 }
 0x5af   :  { %v2229_v19 = vmul.f32 %v18899_v58, %v20292_v47  ;;  %v18901_v26 = vpop.eup %18900 }
 0x5b0   :  { %v2233_v33 = vmul.f32 %v18901_v26, %v20257_v59  ;;  %v18903_v48 = vpop.eup %18902  ;;  %v18386_v26 = vld [vmem:[#allocation10 + $0x20] sm:$0xff]  }
 0x5b1   :  { %17494 = vmatmul.mubr.msk.f32.vlgmr.msra.gmra.mrb[22].mxu1 %vm306_vm2, %v2229_v19  ;;  %v2237_v47 = vmul.f32 %v18903_v48, %v20272_v25  ;;  %v18905_v13 = vpop.eup %18904  ;;  %v18385_v19 = vld [vmem:[#allocation10 + $0x18] sm:$0xff]  }
 0x5b2   :  { %17502 = vmatpush3.msra.mxu1 %v20298_v49  ;;  %17503 = vmatprep.mubr.msk.f32.mxu1 %vm19601_vm0, %v19600_v0  ;;  %v876_v49 = vpop.permute.xlu0 %875  ;;  %v2241_v59 = vmul.f32 %v18905_v13, %v20282_v40  ;;  %v872_v40 = vpop.permute.xlu1 %871 }
 0x5b3   :  { %17511 = vmatprep.subr.mxu1 %v19600_v0 }
 0x5b5   :  { %17504 = vmatmul.mubr.msk.f32.vlgmr.msra.gmra.mrb[24].mxu1 %vm306_vm2, %v2233_v33  ;;  %v18387_v33 = vld [vmem:[#allocation10 + $0x28] sm:$0xff]  }
 0x5b6   :  { %17512 = vmatpush3.msra.mxu1 %v870_v53  ;;  %17513 = vmatprep.mubr.msk.f32.mxu1 %vm19601_vm0, %v19600_v0  ;;  %v878_v21 = vpop.permute.xlu1 %877 }
 0x5b7   :  { %17521 = vmatprep.subr.mxu1 %v19600_v0 }
 0x5b9   :  { %17514 = vmatmul.mubr.msk.f32.vlgmr.msra.gmra.mrb[26].mxu1 %vm306_vm2, %v2237_v47 }
 0x5ba   :  { %17522 = vmatpush3.msra.mxu1 %v876_v49  ;;  %17523 = vmatprep.mubr.msk.f32.mxu1 %vm19601_vm0, %v19600_v0  ;;  %v18388_v49 = vld [vmem:[#allocation10 + $0x30] sm:$0xff]  }
 0x5bb   :  { %17531 = vmatprep.subr.mxu1 %v19600_v0 }
 0x5bd   :  { %17524 = vmatmul.mubr.msk.f32.vlgmr.msra.gmra.mrb[28].mxu1 %vm306_vm2, %v2241_v59 }
 0x5be   :  { %17533 = vmatprep.mubr.msk.f32.mxu1 %vm19601_vm0, %v19600_v0 }
 0x5c1   :  { %v2191_v60 = vpop.xlane.xlu0 %2190 }
 0x5c2   :  { %18906 = vrcp.f32 %v2191_v60 }
 0x5c5   :  { %v2197_v25 = vpop.xlane.xlu0 %2196 }
 0x5c6   :  { %18908 = vrcp.f32 %v2197_v25 }
 0x5c7   :  { %18910 = vrcp.f32 %v2212_v55 }
 0x5c9   :  { %v2203_v36 = vpop.xlane.xlu0 %2202 }
 0x5ca   :  { %18912 = vrcp.f32 %v2203_v36  ;;  %v18389_v36 = vld [vmem:[#allocation10 + $0x38] sm:$0xff]  }
 0x5cc   :  { %v18907_v14 = vpop.eup %18906 }
 0x5cd   :  { %v2209_v63 = vpop.xlane.xlu0 %2208  ;;  %v2231_v1 = vmul.f32 %v18907_v14, %v20310_v62 }
 0x5ce   :  { %18914 = vrcp.f32 %v2209_v63 }
 0x5cf   :  { %17499 = vmatmul.mubr.msk.f32.vlgmr.msra.gmra.mrb[38].mxu0 %vm306_vm2, %v2231_v1 }
 0x5d0   :  { %v18909_v6 = vpop.eup %18908  ;;  %17507 = vmatpush3.msra.mxu0 %v20325_v24  ;;  %17508 = vmatprep.mubr.msk.f32.mxu0 %vm19601_vm0, %v19600_v0 }
 0x5d1   :  { %v2215_v12 = vpop.xlane.xlu0 %2214  ;;  %17516 = vmatprep.subr.mxu0 %v19600_v0  ;;  %v2235_v29 = vmul.f32 %v18909_v6, %v20315_v18  ;;  %v18911_v20 = vpop.eup %18910 }
 0x5d2   :  { %18916 = vrcp.f32 %v2215_v12  ;;  %v2245_v32 = vmul.f32 %v18911_v20, %v20286_v61  ;;  %v884_v61 = vpop.permute.xlu1 %883 }
 0x5d3   :  { %17509 = vmatmul.mubr.msk.f32.vlgmr.msra.gmra.mrb[40].mxu0 %vm306_vm2, %v2235_v29 }
 0x5d4   :  { %v18913_v62 = vpop.eup %18912  ;;  %17517 = vmatpush3.msra.mxu0 %v872_v40  ;;  %17518 = vmatprep.mubr.msk.f32.mxu0 %vm19601_vm0, %v19600_v0 }
 0x5d5   :  { %v882_v28 = vpop.permute.xlu0 %881  ;;  %17526 = vmatprep.subr.mxu0 %v19600_v0  ;;  %v2239_v24 = vmul.f32 %v18913_v62, %v20319_v22 }
 0x5d6   :  { %17532 = vmatpush3.msra.mxu1 %v882_v28 }
 0x5d7   :  { %17519 = vmatmul.mubr.msk.f32.vlgmr.msra.gmra.mrb[42].mxu0 %vm306_vm2, %v2239_v24  ;;  %17534 = vmatmul.mubr.msk.f32.vlgmr.msra.gmra.mrb[30].mxu1 %vm306_vm2, %v2245_v32 }
 0x5d8   :  { %v18915_v18 = vpop.eup %18914  ;;  %17527 = vmatpush3.msra.mxu0 %v878_v21  ;;  %17528 = vmatprep.mubr.msk.f32.mxu0 %vm19601_vm0, %v19600_v0 }
 0x5d9   :  { %17536 = vmatprep.subr.mxu0 %v19600_v0  ;;  %v2243_v45 = vmul.f32 %v18915_v18, %v20323_v42  ;;  %17541 = vmatprep.subr.bf16.mxu1 %v19600_v0 }
 0x5da   :  { %17557 = vmatprep.mubr.msk.bf16.mxu1 %vm19601_vm0, %v19600_v0 }
 0x5db   :  { %17529 = vmatmul.mubr.msk.f32.vlgmr.msra.gmra.mrb[44].mxu0 %vm306_vm2, %v2243_v45 }
 0x5dc   :  { %v18917_v22 = vpop.eup %18916  ;;  %17537 = vmatpush3.msra.mxu0 %v884_v61  ;;  %17538 = vmatprep.mubr.msk.f32.mxu0 %vm19601_vm0, %v19600_v0 }
 0x5dd   :  { %v2247_v35 = vmul.f32 %v18917_v22, %v20329_v31  ;;  %v18382_v31 = vld [vmem:[#allocation10] sm:$0xff]  }
 0x5de   :  { %17542 = vmatpush3.bf16.msra.mxu1 %v18382_v31 }
 0x5df   :  { %17539 = vmatmul.mubr.msk.f32.vlgmr.msra.gmra.mrb[46].mxu0 %vm306_vm2, %v2247_v35  ;;  %17543 = vmatprep.subr.bf16.mxu1 %v19600_v0 }
 0x5e0   :  { %3899 = vmatprep.mubr.bf16.mxu0 %v19602_v52 }
 0x5e2   :  { %17544 = vmatpush3.bf16.msra.mxu1 %v18383_v17 }
 0x5e3   :  { %17545 = vmatprep.subr.bf16.mxu1 %v19600_v0 }
 0x5e6   :  { %17546 = vmatpush3.bf16.msra.mxu1 %v18384_v41 }
 0x5e7   :  { %17547 = vmatprep.subr.bf16.mxu1 %v19600_v0 }
 0x5ea   :  { %17548 = vmatpush3.bf16.msra.mxu1 %v18385_v19 }
 0x5eb   :  { %17549 = vmatprep.subr.bf16.mxu1 %v19600_v0 }
 0x5ee   :  { %17550 = vmatpush3.bf16.msra.mxu1 %v18386_v26 }
 0x5ef   :  { %17551 = vmatprep.subr.bf16.mxu1 %v19600_v0 }
 0x5f2   :  { %17552 = vmatpush3.bf16.msra.mxu1 %v18387_v33 }
 0x5f3   :  { %17553 = vmatprep.subr.bf16.mxu1 %v19600_v0 }
 0x5f6   :  { %17554 = vmatpush3.bf16.msra.mxu1 %v18388_v49  ;;  %v18393_v49 = vld [vmem:[#allocation14 + $0x8] ss:$16 sps:$4 sm:$0xff]  }
 0x5f7   :  { %17555 = vmatprep.subr.bf16.mxu1 %v19600_v0 }
 0x5fa   :  { %17556 = vmatpush3.bf16.msra.mxu1 %v18389_v36 }
 0x623   :  { %v20417_v42 = vpop.f32.mrb[16].mxu1 }
 0x624   :  { %v17465_v38 = vpop.f32.mrb[17].mxu1 }
 0x649   :  { %v20419_v53 = vpop.f32.mrb[32].mxu0 }
 0x64a   :  { %v17470_v39 = vpop.f32.mrb[33].mxu0 }
 0x65c   :  { %v2463_v43 = vpop.f32.mrb[18].mxu1 }
 0x65d   :  { %v17475_v44 = vpop.f32.mrb[19].mxu1 }
 0x661   :  { %v2536_v34 = vpop.f32.mrb[34].mxu0 }
 0x662   :  { %v18194_v11 = vpack.i.bf16 %v2536_v34, %v2463_v43  ;;  %v17480_v30 = vpop.f32.mrb[35].mxu0 }
 0x664   :  { %18195 = vrot.lane.b32.xlu0 %v18194_v11, %s22057_s8 }
 0x669   :  { %v2682_v46 = vpop.f32.mrb[36].mxu0 }
 0x66a   :  { %v17490_v2 = vpop.f32.mrb[37].mxu0 }
 0x674   :  { %v2609_v50 = vpop.f32.mrb[20].mxu1 }
 0x675   :  { %v18199_v51 = vpack.i.bf16 %v2682_v46, %v2609_v50  ;;  %v17485_v57 = vpop.f32.mrb[21].mxu1 }
 0x677   :  { %18200 = vrot.lane.b32.xlu1 %v18199_v51, %s19607_s16 }
 0x684   :  { %v2755_v37 = vpop.f32.mrb[22].mxu1 }
 0x685   :  { %v17495_v15 = vpop.f32.mrb[23].mxu1 }
 0x688   :  { %v2901_v23 = vpop.f32.mrb[24].mxu1 }
 0x689   :  { %v17505_v54 = vpop.f32.mrb[25].mxu1 }
 0x68c   :  { %v3047_v55 = vpop.f32.mrb[26].mxu1 }
 0x68d   :  { %v17515_v56 = vpop.f32.mrb[27].mxu1 }
 0x690   :  { %v3193_v16 = vpop.f32.mrb[28].mxu1 }
 0x691   :  { %v17525_v58 = vpop.f32.mrb[29].mxu1 }
 0x6a2   :  { %v2828_v48 = vpop.f32.mrb[38].mxu0 }
 0x6a3   :  { %v18204_v47 = vpack.i.bf16 %v2828_v48, %v2755_v37  ;;  %v17500_v13 = vpop.f32.mrb[39].mxu0 }
 0x6a4   :  { %v18392_v13 = vld [vmem:[#allocation14 + $0x4] ss:$16 sps:$4 sm:$0xff]  }
 0x6a5   :  { %18205 = vrot.lane.b32.xlu0 %v18204_v47, %s19606_s27  ;;  %v18390_v47 = vld [vmem:[#allocation14] ss:$16 sps:$4 sm:$0xff]   ;;  %3867 = vmatprep.subr.bf16.mxu0 %v18392_v13 }
 0x6a6   :  { %v2974_v59 = vpop.f32.mrb[40].mxu0  ;;  %3868 = vmatpush1.bf16.msra.mxu0 %v18390_v47 }
 0x6a7   :  { %v18209_v60 = vpack.i.bf16 %v2974_v59, %v2901_v23  ;;  %v17510_v25 = vpop.f32.mrb[41].mxu0  ;;  %v18395_v59 = vld [vmem:[#allocation14 + $0xc] ss:$16 sps:$4 sm:$0xff]  }
 0x6a8   :  { %3910 = vmatprep.subr.bf16.mxu1 %v18395_v59 }
 0x6a9   :  { %18210 = vrot.lane.b32.xlu1 %v18209_v60, %s19587_s30  ;;  %v16277_v60 = vld [vmem:[#allocation11] ss:$0 sm:$0xff] }
 0x6aa   :  { %v3120_v14 = vpop.f32.mrb[42].mxu0  ;;  %v3339_v63 = vpop.f32.mrb[30].mxu1 }
 0x6ab   :  { %v18214_v1 = vpack.i.bf16 %v3120_v14, %v3047_v55  ;;  %v17520_v40 = vpop.f32.mrb[43].mxu0  ;;  %v17535_v6 = vpop.f32.mrb[31].mxu1 }
 0x6ad   :  { %18215 = vrot.lane.b32.xlu0 %v18214_v1, %s19605_s4 }
 0x6ae   :  { %v3266_v12 = vpop.f32.mrb[44].mxu0 }
 0x6af   :  { %v18219_v29 = vpack.i.bf16 %v3266_v12, %v3193_v16  ;;  %v17530_v20 = vpop.f32.mrb[45].mxu0 }
 0x6b1   :  { %18220 = vrot.lane.b32.xlu1 %v18219_v29, %s19604_s26 }
 0x6b2   :  { %v3412_v62 = vpop.f32.mrb[46].mxu0 }
 0x6b3   :  { %v18224_v21 = vpack.i.bf16 %v3412_v62, %v3339_v63  ;;  %v17540_v28 = vpop.f32.mrb[47].mxu0  ;;  %v18398_v62 = vld [vmem:[#allocation14 + $0x24] ss:$16 sps:$4 sm:$0xff]  }
 0x6b4   :  { %v18399_v28 = vld [vmem:[#allocation14 + $0x28] ss:$16 sps:$4 sm:$0xff]   ;;  %3869 = vmatprep.subr.bf16.mxu0 %v18398_v62 }
 0x6b5   :  { %18225 = vrot.lane.b32.xlu0 %v18224_v21, %s19603_s25  ;;  %v18396_v21 = vld [vmem:[#allocation14 + $0x20] ss:$16 sps:$4 sm:$0xff]  }
 0x6b6   :  { %3870 = vmatpush1.bf16.msra.mxu0 %v18396_v21  ;;  %v18440_v21 = vld [vmem:[#allocation17] sm:$0xff]  }
 0x6d6   :  { %v18196_v24 = vpop.permute.xlu0 %18195 }
 0x6d7   :  { %v18198_v61 = vunpack.i.h.bf16 %v18196_v24  ;;  %v18197_v22 = vunpack.i.l.bf16 %v18196_v24  ;;  %v18407_v24 = vld [vmem:[#allocation14 + $0x4c] ss:$16 sps:$4 sm:$0xff]  }
 0x6d9   :  { %v3473_v46 = vsel %vm887_vm3, %v20419_v53, %v18198_v61  ;;  %v3472_v2 = vsel %vm887_vm3, %v20417_v42, %v18197_v22  ;;  %v18413_v61 = vld [vmem:[#allocation14 + $0x6c] ss:$16 sps:$4 sm:$0xff]   ;;  %v18408_v22 = vld [vmem:[#allocation14 + $0x60] ss:$16 sps:$4 sm:$0xff]  }
 0x6e9   :  { %v18201_v32 = vpop.permute.xlu1 %18200 }
 0x6ea   :  { %v18203_v35 = vunpack.i.h.bf16 %v18201_v32  ;;  %v18202_v38 = vunpack.i.l.bf16 %v18201_v32  ;;  %v18402_v32 = vld [vmem:[#allocation14 + $0x40] ss:$16 sps:$4 sm:$0xff]  }
 0x6ec   :  { %v3476_v41 = vsel %vm3474_vm4, %v3473_v46, %v18203_v35  ;;  %v3475_v50 = vsel %vm3474_vm4, %v3472_v2, %v18202_v38  ;;  %v18411_v35 = vld [vmem:[#allocation14 + $0x68] ss:$16 sps:$4 sm:$0xff]   ;;  %v18416_v38 = vld [vmem:[#allocation14 + $0x84] ss:$16 sps:$4 sm:$0xff]  }
 0x6ed   :  { %v18423_v46 = vld [vmem:[#allocation14 + $0xa8] ss:$16 sps:$4 sm:$0xff]   ;;  %v18428_v2 = vld [vmem:[#allocation14 + $0xc4] ss:$16 sps:$4 sm:$0xff]  }
 0x717   :  { %v18206_v18 = vpop.permute.xlu0 %18205 }
 0x718   :  { %v18208_v43 = vunpack.i.h.bf16 %v18206_v18  ;;  %v18207_v44 = vunpack.i.l.bf16 %v18206_v18  ;;  %v18405_v18 = vld [vmem:[#allocation14 + $0x48] ss:$16 sps:$4 sm:$0xff]  }
 0x71a   :  { %v3479_v37 = vsel %vm3477_vm5, %v3476_v41, %v18208_v43  ;;  %v3478_v15 = vsel %vm3477_vm5, %v3475_v50, %v18207_v44  ;;  %v18417_v43 = vld [vmem:[#allocation14 + $0x88] ss:$16 sps:$4 sm:$0xff]   ;;  %v18419_v44 = vld [vmem:[#allocation14 + $0x8c] ss:$16 sps:$4 sm:$0xff]   ;;  %v18434_v50 = vld [vmem:[#allocation14 + $0xe4] ss:$16 sps:$4 sm:$0xff]  }
 0x71b   :  { %v18211_v45 = vpop.permute.xlu1 %18210  ;;  %v18429_v41 = vld [vmem:[#allocation14 + $0xc8] ss:$16 sps:$4 sm:$0xff]  }
 0x71c   :  { %v18213_v34 = vunpack.i.h.bf16 %v18211_v45  ;;  %v18212_v11 = vunpack.i.l.bf16 %v18211_v45  ;;  %v18410_v45 = vld [vmem:[#allocation14 + $0x64] ss:$16 sps:$4 sm:$0xff]  }
 0x71e   :  { %v3482_v23 = vsel %vm3480_vm6, %v3479_v37, %v18213_v34  ;;  %v3481_v53 = vsel %vm3480_vm6, %v3478_v15, %v18212_v11  ;;  %v18422_v34 = vld [vmem:[#allocation14 + $0xa4] ss:$16 sps:$4 sm:$0xff]   ;;  %v18425_v11 = vld [vmem:[#allocation14 + $0xac] ss:$16 sps:$4 sm:$0xff]   ;;  %v18435_v37 = vld [vmem:[#allocation14 + $0xe8] ss:$16 sps:$4 sm:$0xff]  }
 0x71f   :  { %v18216_v39 = vpop.permute.xlu0 %18215  ;;  %v18438_v15 = vld [vmem:[#allocation17 + $0x40] sm:$0xff]  }
 0x720   :  { %v18218_v31 = vunpack.i.h.bf16 %v18216_v39  ;;  %v18217_v17 = vunpack.i.l.bf16 %v18216_v39  ;;  %v18414_v39 = vld [vmem:[#allocation14 + $0x80] ss:$16 sps:$4 sm:$0xff]  }
 0x722   :  { %v3485_v42 = vsel %vm3483_vm7, %v3482_v23, %v18218_v31  ;;  %v3484_v55 = vsel %vm3483_vm7, %v3481_v53, %v18217_v17  ;;  %v18431_v31 = vld [vmem:[#allocation14 + $0xcc] ss:$16 sps:$4 sm:$0xff]   ;;  %v18426_v17 = vld [vmem:[#allocation14 + $0xc0] ss:$16 sps:$4 sm:$0xff]  }
 0x723   :  { %v18221_v30 = vpop.permute.xlu1 %18220  ;;  %v18439_v23 = vld [vmem:[#allocation17 + $0xc0] sm:$0xff]  }
 0x724   :  { %v18223_v51 = vunpack.i.h.bf16 %v18221_v30  ;;  %v18222_v57 = vunpack.i.l.bf16 %v18221_v30  ;;  %v18420_v30 = vld [vmem:[#allocation14 + $0xa0] ss:$16 sps:$4 sm:$0xff]  }
 0x726   :  { %v3488_v58 = vsel %vm3486_vm8, %v3485_v42, %v18223_v51  ;;  %v3487_v19 = vsel %vm3486_vm8, %v3484_v55, %v18222_v57  ;;  %v18437_v51 = vld [vmem:[#allocation14 + $0xec] ss:$16 sps:$4 sm:$0xff]   ;;  %v18432_v57 = vld [vmem:[#allocation14 + $0xe0] ss:$16 sps:$4 sm:$0xff]  }
 0x727   :  { %v18226_v54 = vpop.permute.xlu0 %18225 }
 0x728   :  { %v18228_v56 = vunpack.i.h.bf16 %v18226_v54  ;;  %v18227_v16 = vunpack.i.l.bf16 %v18226_v54 }
 0x72a   :  { %v3491_v26 = vsel %vm3489_vm9, %v3488_v58, %v18228_v56  ;;  %v3490_v33 = vsel %vm3489_vm9, %v3487_v19, %v18227_v16 }
 0x72b   :  { %v3492_v48 = vpack.c.bf16 %v3491_v26, %v3490_v33 }
 0x72d   :  { %17558 = vmatmul.mubr.bf16.vlgmr.msra.gmra.mrb[32].mxu1 %v3492_v48 }
 0x72e   :  { %3942 = vmatprep.mubr.bf16.mxu1 %v19602_v52  ;;  %3911 = vmatpush1.bf16.msra.mxu1 %v18393_v49 }
 0x800   :  { %v3598_v25 = vpop.f32.mrb[32].mxu1 }
 0x801   :  { %v3599_v36 = vadd.f32 %v16277_v60, %v3598_v25  ;;  %v17559_v14 = vpop.f32.mrb[33].mxu1  ;;  %v16286_v25 = vld [vmem:[%s22031_s10] ss:$0 sm:$0xff] }
 0x802   :  { %v3601_v63 = vpop.f32.mrb[34].mxu1 }
 0x803   :  { %v20453_v1 = vadd.f32 %v3599_v36, %v19980_v3  ;;  %v3602_v40 = vadd.f32 %v16277_v60, %v3601_v63  ;;  %v17560_v6 = vpop.f32.mrb[35].mxu1  ;;  %v18401_v3 = vld [vmem:[#allocation14 + $0x2c] ss:$16 sps:$4 sm:$0xff]  }
 0x804   :  { %3912 = vmatprep.subr.bf16.mxu1 %v18401_v3 }
 0x805   :  { %v20456_v12 = vadd.f32 %v3602_v40, %v19982_v4  ;;  %3609 = vadd.xlane.f32.xlu1 %v20453_v1  ;;  %v3616_v20 = vmul.f32 %v20453_v1, %v20453_v1  ;;  %3913 = vmatpush1.bf16.msra.mxu1 %v18399_v28  ;;  %v18404_v4 = vld [vmem:[#allocation14 + $0x44] ss:$16 sps:$4 sm:$0xff]  }
 0x806   :  { %3871 = vmatprep.subr.bf16.mxu0 %v18404_v4  ;;  %3914 = vmatprep.subr.bf16.mxu1 %v18407_v24  ;;  %v18441_v28 = vld [vmem:[#allocation17 + $0x80] sm:$0xff]   ;;  %v18442_v4 = vld [vmem:[#allocation17 + $0x48] sm:$0xff]  }
 0x807   :  { %3611 = vadd.xlane.f32.xlu0 %v20456_v12  ;;  %v3617_v29 = vmul.f32 %v20456_v12, %v20456_v12  ;;  %3872 = vmatpush1.bf16.msra.mxu0 %v18402_v32  ;;  %v18443_v24 = vld [vmem:[#allocation17 + $0xc8] sm:$0xff]  }
 0x808   :  { %3873 = vmatprep.subr.bf16.mxu0 %v18410_v45  ;;  %v18445_v32 = vld [vmem:[#allocation17 + $0x88] sm:$0xff]   ;;  %v18447_v45 = vld [vmem:[#allocation17 + $0xd0] sm:$0xff]  }
 0x809   :  { %3620 = vadd.xlane.f32.xlu1 %v3617_v29  ;;  %3915 = vmatpush1.bf16.msra.mxu1 %v18405_v18  ;;  %v16287_v29 = vld [vmem:[#allocation13] ss:$0 sm:$0xff]  ;;  %v18446_v18 = vld [vmem:[#allocation17 + $0x50] sm:$0xff]  }
 0x80a   :  { %3916 = vmatprep.subr.bf16.mxu1 %v18413_v61  ;;  %v18448_v61 = vld [vmem:[#allocation17 + $0x10] sm:$0xff]  }
 0x80b   :  { %3618 = vadd.xlane.f32.xlu0 %v3616_v20  ;;  %3874 = vmatpush1.bf16.msra.mxu0 %v18408_v22  ;;  %v18449_v22 = vld [vmem:[#allocation17 + $0x90] sm:$0xff]  }
 0x80c   :  { %3875 = vmatprep.subr.bf16.mxu0 %v18416_v38  ;;  %v18451_v38 = vld [vmem:[#allocation17 + $0xd8] sm:$0xff]  }
 0x80d   :  { %3917 = vmatpush1.bf16.msra.mxu1 %v18411_v35  ;;  %v18450_v35 = vld [vmem:[#allocation17 + $0x58] sm:$0xff]  }
 0x80e   :  { %3918 = vmatprep.subr.bf16.mxu1 %v18419_v44  ;;  %v18454_v44 = vld [vmem:[#allocation17 + $0x60] sm:$0xff]  }
 0x80f   :  { %3876 = vmatpush1.bf16.msra.mxu0 %v18414_v39  ;;  %v18452_v39 = vld [vmem:[#allocation17 + $0x18] sm:$0xff]  }
 0x810   :  { %3877 = vmatprep.subr.bf16.mxu0 %v18422_v34  ;;  %v18455_v34 = vld [vmem:[#allocation17 + $0xe0] sm:$0xff]  }
 0x811   :  { %3919 = vmatpush1.bf16.msra.mxu1 %v18417_v43  ;;  %v18453_v43 = vld [vmem:[#allocation17 + $0x98] sm:$0xff]  }
 0x812   :  { %3920 = vmatprep.subr.bf16.mxu1 %v18425_v11  ;;  %v18456_v11 = vld [vmem:[#allocation17 + $0x20] sm:$0xff]  }
 0x813   :  { %3878 = vmatpush1.bf16.msra.mxu0 %v18420_v30  ;;  %v18457_v30 = vld [vmem:[#allocation17 + $0xa0] sm:$0xff]  }
 0x814   :  { %3879 = vmatprep.subr.bf16.mxu0 %v18428_v2  ;;  %v18459_v2 = vld [vmem:[#allocation17 + $0xe8] sm:$0xff]  }
 0x815   :  { %3921 = vmatpush1.bf16.msra.mxu1 %v18423_v46  ;;  %v18458_v46 = vld [vmem:[#allocation17 + $0x68] sm:$0xff]  }
 0x816   :  { %3922 = vmatprep.subr.bf16.mxu1 %v18431_v31  ;;  %v18460_v31 = vld [vmem:[#allocation17 + $0x28] sm:$0xff]  }
 0x817   :  { %3880 = vmatpush1.bf16.msra.mxu0 %v18426_v17  ;;  %v18461_v17 = vld [vmem:[#allocation17 + $0xa8] sm:$0xff]  }
 0x818   :  { %3881 = vmatprep.subr.bf16.mxu0 %v18434_v50  ;;  %v18463_v50 = vld [vmem:[#allocation17 + $0xf0] sm:$0xff]  }
 0x819   :  { %3923 = vmatpush1.bf16.msra.mxu1 %v18429_v41  ;;  %v18462_v41 = vld [vmem:[#allocation17 + $0x70] sm:$0xff]  }
 0x81a   :  { %3924 = vmatprep.subr.bf16.mxu1 %v18437_v51  ;;  %v18464_v51 = vld [vmem:[#allocation17 + $0x30] sm:$0xff]  }
 0x81b   :  { %3882 = vmatpush1.bf16.msra.mxu0 %v18432_v57  ;;  %v18465_v57 = vld [vmem:[#allocation17 + $0xb0] sm:$0xff]  }
 0x81c   :  { %16933 = vmatprep.subr.bf16.mxu0 %v18438_v15  ;;  %v18467_v15 = vld [vmem:[#allocation17 + $0xf8] sm:$0xff]  }
 0x81d   :  { %3925 = vmatpush1.bf16.msra.mxu1 %v18435_v37  ;;  %v18466_v37 = vld [vmem:[#allocation17 + $0x78] sm:$0xff]  }
 0x81e   :  { %16955 = vmatprep.subr.bf16.mxu1 %v18439_v23  ;;  %v18468_v23 = vld [vmem:[#allocation17 + $0x38] sm:$0xff]  }
 0x892   :  { %v3610_v53 = vpop.xlane.xlu1 %3609 }
 0x893   :  { %v3614_v42 = vmul.f32 0.0078125, %v3610_v53  ;;  %v18469_v53 = vld [vmem:[#allocation17 + $0xb8] sm:$0xff]  }
 0x894   :  { %v3612_v54 = vpop.xlane.xlu0 %3611 }
 0x895   :  { %v3615_v55 = vmul.f32 0.0078125, %v3612_v54  ;;  %v3624_v26 = vmul.f32 %v3614_v42, %v3614_v42  ;;  %v3628_v36 = vsub.f32 %v20453_v1, %v3614_v42  ;;  %v18444_v1 = vld [vmem:[#allocation17 + $0x8] sm:$0xff]   ;;  %v3685_v54 = vld [vmem:[#allocation16] sm:$0xf]  ;;  %v20477_v42 = vsub.s32 3, %v19990_v7 }
 0x896   :  { %v3621_v56 = vpop.xlane.xlu1 %3620 }
 0x897   :  { %v3625_v16 = vmul.f32 %v3615_v55, %v3615_v55  ;;  %v3623_v58 = vmul.f32 0.0078125, %v3621_v56  ;;  %v3629_v59 = vsub.f32 %v20456_v12, %v3615_v55  ;;  %v3690_v55 = vrot.slane %v3685_v54, %v19993_v8 }
 0x898   :  { %v3619_v19 = vpop.xlane.xlu0 %3618  ;;  %v3698_v56 = vrot.slane %v3685_v54, %v20038_v27 }
 0x899   :  { %v3627_v33 = vsub.f32 %v3623_v58, %v3625_v16  ;;  %v3622_v48 = vmul.f32 0.0078125, %v3619_v19  ;;  %v3694_v16 = vrot.slane %v3685_v54, %v19999_v10  ;;  %v3702_v58 = vrot.slane %v3685_v54, %v20477_v42 }
 0x89b   :  { %v3631_v47 = vadd.f32 1e-12, %v3627_v33  ;;  %v3626_v13 = vsub.f32 %v3622_v48, %v3624_v26 }
 0x89d   :  { %18918 = vrsqrt.f32 %v3631_v47  ;;  %v3630_v49 = vadd.f32 1e-12, %v3626_v13 }
 0x89f   :  { %18920 = vrsqrt.f32 %v3630_v49 }
 0x8a7   :  { %v18919_v60 = vpop.eup %18918 }
 0x8a8   :  { %v3635_v14 = vmul.f32 %v18919_v60, %v3629_v59 }
 0x8a9   :  { %v18921_v63 = vpop.eup %18920 }
 0x8aa   :  { %v3634_v40 = vmul.f32 %v18921_v63, %v3628_v36  ;;  %v3643_v6 = vmul.f32 %v16286_v25, %v3635_v14 }
 0x8ac   :  { %v3642_v20 = vmul.f32 %v16286_v25, %v3634_v40  ;;  %v20471_v3 = vadd.f32 %v16287_v29, %v3643_v6 }
 0x8ae   :  { %v20469_v62 = vadd.f32 %v16287_v29, %v3642_v20 }
 0x8b0   :  { %v3652_v12 = vpack.c.bf16 %v20471_v3, %v20469_v62 }
 0x8b2   :  { %3900 = vmatmul.mubr.bf16.vlgmr.msra.gmra.mrb[48].mxu0 %v3652_v12  ;;  %3943 = vmatmul.mubr.bf16.vlgmr.msra.gmra.mrb[36].mxu1 %v3652_v12 }
 0x8b3   :  { %16934 = vmatpush3.bf16.msra.mxu0 %v18440_v21  ;;  %16956 = vmatpush3.bf16.msra.mxu1 %v18441_v28 }
 0x8b4   :  { %16935 = vmatprep.subr.bf16.mxu0 %v18442_v4  ;;  %16957 = vmatprep.subr.bf16.mxu1 %v18443_v24 }
 0x8b7   :  { %16936 = vmatpush3.bf16.msra.mxu0 %v18444_v1  ;;  %16958 = vmatpush3.bf16.msra.mxu1 %v18445_v32 }
 0x8b8   :  { %16937 = vmatprep.subr.bf16.mxu0 %v18446_v18  ;;  %16959 = vmatprep.subr.bf16.mxu1 %v18447_v45 }
 0x8bb   :  { %16938 = vmatpush3.bf16.msra.mxu0 %v18448_v61  ;;  %16960 = vmatpush3.bf16.msra.mxu1 %v18449_v22 }
 0x8bc   :  { %16939 = vmatprep.subr.bf16.mxu0 %v18450_v35  ;;  %16961 = vmatprep.subr.bf16.mxu1 %v18451_v38 }
 0x8bf   :  { %16940 = vmatpush3.bf16.msra.mxu0 %v18452_v39  ;;  %16962 = vmatpush3.bf16.msra.mxu1 %v18453_v43 }
 0x8c0   :  { %16941 = vmatprep.subr.bf16.mxu0 %v18454_v44  ;;  %16963 = vmatprep.subr.bf16.mxu1 %v18455_v34 }
 0x8c3   :  { %16942 = vmatpush3.bf16.msra.mxu0 %v18456_v11  ;;  %16964 = vmatpush3.bf16.msra.mxu1 %v18457_v30 }
 0x8c4   :  { %16943 = vmatprep.subr.bf16.mxu0 %v18458_v46  ;;  %16965 = vmatprep.subr.bf16.mxu1 %v18459_v2 }
 0x8c7   :  { %16944 = vmatpush3.bf16.msra.mxu0 %v18460_v31  ;;  %16966 = vmatpush3.bf16.msra.mxu1 %v18461_v17 }
 0x8c8   :  { %16945 = vmatprep.subr.bf16.mxu0 %v18462_v41  ;;  %16967 = vmatprep.subr.bf16.mxu1 %v18463_v50 }
 0x8cb   :  { %16946 = vmatpush3.bf16.msra.mxu0 %v18464_v51  ;;  %16968 = vmatpush3.bf16.msra.mxu1 %v18465_v57 }
 0x8cc   :  { %16947 = vmatprep.subr.bf16.mxu0 %v18466_v37  ;;  %16969 = vmatprep.subr.bf16.mxu1 %v18467_v15 }
 0x8cf   :  { %16948 = vmatpush3.bf16.msra.mxu0 %v18468_v23  ;;  %16970 = vmatpush3.bf16.msra.mxu1 %v18469_v53 }
 0x8d0   :  { %17561 = vmatprep.subr.bf16.mxu1 %v19600_v0 }
 0x985   :  { %v3901_v19 = vpop.f32.mrb[48].mxu0  ;;  %v3944_v26 = vpop.f32.mrb[36].mxu1 }
 0x986   :  { %v3902_v33 = vadd.f32 %v3901_v19, %v3690_v55  ;;  %v3945_v48 = vadd.f32 %v3944_v26, %v3698_v56  ;;  %v3903_v47 = vpop.f32.mrb[49].mxu0  ;;  %v3946_v13 = vpop.f32.mrb[37].mxu1 }
 0x987   :  { %v3904_v49 = vadd.f32 %v3903_v47, %v3694_v16  ;;  %v3947_v59 = vadd.f32 %v3946_v13, %v3702_v58  ;;  %v3905_v60 = vpop.f32.mrb[50].mxu0  ;;  %v3948_v25 = vpop.f32.mrb[38].mxu1 }
 0x988   :  { %v3961_v7 = vmul.f32 0.70710677, %v3902_v33  ;;  %v3963_v36 = vmul.f32 0.70710677, %v3945_v48  ;;  %v3906_v40 = vadd.f32 %v3905_v60, %v3690_v55  ;;  %v3949_v6 = vadd.f32 %v3948_v25, %v3698_v56  ;;  %v3907_v29 = vpop.f32.mrb[51].mxu0  ;;  %v3950_v20 = vpop.f32.mrb[39].mxu1 }
 0x989   :  { %v3962_v14 = vmul.f32 0.70710677, %v3904_v49  ;;  %v3964_v63 = vmul.f32 0.70710677, %v3947_v59  ;;  %v3908_v21 = vadd.f32 %v3907_v29, %v3694_v16  ;;  %v3951_v28 = vadd.f32 %v3950_v20, %v3702_v58 }
 0x98a   :  { %18922 = verf.f32 %v3961_v7  ;;  %v3965_v12 = vmul.f32 0.70710677, %v3906_v40  ;;  %v3967_v4 = vmul.f32 0.70710677, %v3949_v6  ;;  %v3953_v38 = vmul.f32 0.5, %v3902_v33 }
 0x98b   :  { %18924 = verf.f32 %v3963_v36  ;;  %v3966_v24 = vmul.f32 0.70710677, %v3908_v21  ;;  %v3968_v1 = vmul.f32 0.70710677, %v3951_v28  ;;  %v3955_v39 = vmul.f32 0.5, %v3945_v48 }
 0x98c   :  { %18926 = verf.f32 %v3962_v14  ;;  %v3954_v34 = vmul.f32 0.5, %v3904_v49  ;;  %v3957_v30 = vmul.f32 0.5, %v3906_v40  ;;  %v3956_v31 = vmul.f32 0.5, %v3947_v59  ;;  %v18470_v49 = vld [vmem:[#allocation8 + $0xc0] ss:$12 sps:$4 sm:$0xff]  }
 0x98d   :  { %18928 = verf.f32 %v3964_v63  ;;  %v3959_v41 = vmul.f32 0.5, %v3949_v6  ;;  %v3958_v15 = vmul.f32 0.5, %v3908_v21  ;;  %v3960_v55 = vmul.f32 0.5, %v3951_v28  ;;  %v18472_v59 = vld [vmem:[#allocation8 + $0xc4] ss:$12 sps:$4 sm:$0xff]  }
 0x98e   :  { %18930 = verf.f32 %v3965_v12  ;;  %4568 = vmatprep.subr.bf16.mxu0 %v18472_v59  ;;  %v16320_v7 = vld [vmem:[#allocation19] ss:$0 sm:$0xff] }
 0x98f   :  { %18932 = verf.f32 %v3967_v4 }
 0x990   :  { %18934 = verf.f32 %v3966_v24 }
 0x991   :  { %18936 = verf.f32 %v3968_v1 }
 0x994   :  { %v18923_v32 = vpop.eup %18922 }
 0x995   :  { %v18925_v18 = vpop.eup %18924  ;;  %v3977_v22 = vadd.f32 1.0, %v18923_v32 }
 0x996   :  { %v18927_v45 = vpop.eup %18926  ;;  %v3979_v43 = vadd.f32 1.0, %v18925_v18 }
 0x997   :  { %v18929_v61 = vpop.eup %18928  ;;  %v3978_v11 = vadd.f32 1.0, %v18927_v45  ;;  %v3985_v57 = vmul.f32 %v3977_v22, %v3953_v38  ;;  %v18476_v38 = vld [vmem:[#allocation8 + $0xdc] ss:$12 sps:$4 sm:$0xff]  }
 0x998   :  { %v18931_v35 = vpop.eup %18930  ;;  %v3980_v17 = vadd.f32 1.0, %v18929_v61  ;;  %v3987_v53 = vmul.f32 %v3979_v43, %v3955_v39  ;;  %v18477_v39 = vld [vmem:[#allocation8 + $0xe0] ss:$12 sps:$4 sm:$0xff]   ;;  %v18478_v43 = vld [vmem:[#allocation8 + $0xf0] ss:$12 sps:$4 sm:$0xff]  }
 0x999   :  { %v18933_v44 = vpop.eup %18932  ;;  %v3981_v46 = vadd.f32 1.0, %v18931_v35  ;;  %v3986_v16 = vmul.f32 %v3978_v11, %v3954_v34  ;;  %v18473_v35 = vld [vmem:[#allocation8 + $0xc8] ss:$12 sps:$4 sm:$0xff]   ;;  %v18484_v34 = vld [vmem:[#allocation8 + $0x10c] ss:$12 sps:$4 sm:$0xff]  }
 0x99a   :  { %v18935_v2 = vpop.eup %18934  ;;  %v3983_v50 = vadd.f32 1.0, %v18933_v44  ;;  %v3988_v26 = vmul.f32 %v3980_v17, %v3956_v31  ;;  %v18481_v44 = vld [vmem:[#allocation8 + $0xf8] ss:$12 sps:$4 sm:$0xff]   ;;  %v18482_v11 = vld [vmem:[#allocation8 + $0x108] ss:$12 sps:$4 sm:$0xff]  }
 0x99b   :  { %v18937_v51 = vpop.eup %18936  ;;  %v3989_v37 = vmul.f32 %v3981_v46, %v3957_v30  ;;  %v3982_v23 = vadd.f32 1.0, %v18935_v2  ;;  %v18485_v30 = vld [vmem:[#allocation8 + $0x110] ss:$12 sps:$4 sm:$0xff]   ;;  %v18486_v2 = vld [vmem:[#allocation8 + $0x120] ss:$12 sps:$4 sm:$0xff]  }
 0x99c   :  { %v3991_v54 = vmul.f32 %v3983_v50, %v3959_v41  ;;  %v3984_v56 = vadd.f32 1.0, %v18937_v51  ;;  %v18488_v46 = vld [vmem:[#allocation8 + $0x124] ss:$12 sps:$4 sm:$0xff]   ;;  %v18489_v31 = vld [vmem:[#allocation8 + $0x128] ss:$12 sps:$4 sm:$0xff]  }
 0x99d   :  { %v3993_v58 = vpack.c.bf16 %v3989_v37, %v3985_v57  ;;  %v3990_v19 = vmul.f32 %v3982_v23, %v3958_v15  ;;  %v18492_v17 = vld [vmem:[#allocation8 + $0x13c] ss:$12 sps:$4 sm:$0xff]   ;;  %v18490_v41 = vld [vmem:[#allocation8 + $0x138] ss:$12 sps:$4 sm:$0xff]   ;;  %v18493_v50 = vld [vmem:[#allocation8 + $0x140] ss:$12 sps:$4 sm:$0xff]  }
 0x99e   :  { %v3995_v33 = vpack.c.bf16 %v3991_v54, %v3987_v53  ;;  %v3992_v48 = vmul.f32 %v3984_v56, %v3960_v55  ;;  %v18496_v51 = vld [vmem:[#allocation8 + $0x154] ss:$12 sps:$4 sm:$0xff]   ;;  %v18494_v57 = vld [vmem:[#allocation8 + $0x150] ss:$12 sps:$4 sm:$0xff]   ;;  %v18497_v37 = vld [vmem:[#allocation8 + $0x158] ss:$12 sps:$4 sm:$0xff]  }
 0x99f   :  { %v3994_v47 = vpack.c.bf16 %v3990_v19, %v3986_v16  ;;  %v18500_v15 = vld [vmem:[#allocation8 + $0x16c] ss:$12 sps:$4 sm:$0xff]   ;;  %v18498_v23 = vld [vmem:[#allocation8 + $0x168] ss:$12 sps:$4 sm:$0xff]   ;;  %v18501_v53 = vld [vmem:[#allocation8 + $0x170] ss:$12 sps:$4 sm:$0xff]  }
 0x9a0   :  { %v3996_v13 = vpack.c.bf16 %v3992_v48, %v3988_v26 }
 0x9a1   :  { %4292 = vmatprep.mubr.bf16.mxu0 %v3994_v47 }
 0x9a2   :  { %4333 = vmatprep.mubr.bf16.mxu1 %v3996_v13  ;;  %4293 = vmatmul.mubr.bf16.vlgmr.msra.gmra.mrb[52].mxu0 %v3993_v58 }
 0x9a3   :  { %4334 = vmatmul.mubr.bf16.vlgmr.msra.gmra.mrb[40].mxu1 %v3995_v33  ;;  %4600 = vmatprep.mubr.bf16.mxu0 %v19602_v52 }
 0x9a4   :  { %17577 = vmatprep.mubr.msk.bf16.mxu1 %vm19601_vm0, %v19600_v0  ;;  %4569 = vmatpush1.bf16.msra.mxu0 %v18470_v49 }
 0x9a5   :  { %17562 = vmatpush3.bf16.msra.mxu1 %v18473_v35  ;;  %4570 = vmatprep.subr.bf16.mxu0 %v18476_v38 }
 0x9a6   :  { %17563 = vmatprep.subr.bf16.mxu1 %v19600_v0 }
 0x9a9   :  { %17564 = vmatpush3.bf16.msra.mxu1 %v18477_v39 }
 0x9aa   :  { %17565 = vmatprep.subr.bf16.mxu1 %v19600_v0 }
 0x9ad   :  { %17566 = vmatpush3.bf16.msra.mxu1 %v18481_v44 }
 0x9ae   :  { %17567 = vmatprep.subr.bf16.mxu1 %v19600_v0 }
 0x9b1   :  { %17568 = vmatpush3.bf16.msra.mxu1 %v18485_v30 }
 0x9b2   :  { %17569 = vmatprep.subr.bf16.mxu1 %v19600_v0 }
 0x9b5   :  { %17570 = vmatpush3.bf16.msra.mxu1 %v18489_v31 }
 0x9b6   :  { %17571 = vmatprep.subr.bf16.mxu1 %v19600_v0 }
 0x9b9   :  { %17572 = vmatpush3.bf16.msra.mxu1 %v18493_v50 }
 0x9ba   :  { %17573 = vmatprep.subr.bf16.mxu1 %v19600_v0 }
 0x9bd   :  { %17574 = vmatpush3.bf16.msra.mxu1 %v18497_v37 }
 0x9be   :  { %17575 = vmatprep.subr.bf16.mxu1 %v19600_v0 }
 0x9c1   :  { %17576 = vmatpush3.bf16.msra.mxu1 %v18501_v53 }
 0x9c2   :  { %17621 = vmatprep.subr.mxu1 %v19600_v0 }
 0xa75   :  { %v16949_v60 = vpop.f32.mrb[52].mxu0 }
 0xa76   :  { %v16971_v25 = vpop.f32.mrb[40].mxu1  ;;  %v16950_v36 = vpop.f32.mrb[53].mxu0 }
 0xa77   :  { %v16951_v14 = vadd.f32 %v16950_v36, %v16949_v60  ;;  %v16972_v63 = vpop.f32.mrb[41].mxu1  ;;  %v16952_v40 = vpop.f32.mrb[54].mxu0  ;;  %v16353_v36 = vld [vmem:[#allocation20] ss:$0 sm:$0xff] }
 0xa78   :  { %v16973_v6 = vadd.f32 %v16972_v63, %v16971_v25  ;;  %v16974_v29 = vpop.f32.mrb[42].mxu1  ;;  %v16953_v20 = vpop.f32.mrb[55].mxu0 }
 0xa79   :  { %v4295_v21 = vadd.f32 %v16951_v14, %v16320_v7  ;;  %v16954_v28 = vadd.f32 %v16953_v20, %v16952_v40  ;;  %v16975_v12 = vpop.f32.mrb[43].mxu1  ;;  %v16354_v20 = vld [vmem:[#allocation22] ss:$0 sm:$0xff] }
 0xa7a   :  { %v16976_v4 = vadd.f32 %v16975_v12, %v16974_v29 }
 0xa7b   :  { %v4336_v24 = vadd.f32 %v16973_v6, %v4295_v21  ;;  %v4298_v1 = vadd.f32 %v16954_v28, %v16320_v7 }
 0xa7d   :  { %v4339_v32 = vadd.f32 %v16976_v4, %v4298_v1  ;;  %v20487_v18 = vadd.f32 %v4336_v24, %v20469_v62  ;;  %v18474_v62 = vld [vmem:[#allocation8 + $0xd8] ss:$12 sps:$4 sm:$0xff]   ;;  %v20522_v24 = vld [vmem:[%s22028_s7 + $0x3] sm:$0x7] }
 0xa7e   :  { %4571 = vmatpush1.bf16.msra.mxu0 %v18474_v62  ;;  %v4428_v1 = vrot.slane %v20522_v24, %v19993_v8 }
 0xa7f   :  { %4346 = vadd.xlane.f32.xlu0 %v20487_v18  ;;  %v20491_v45 = vadd.f32 %v4339_v32, %v20471_v3  ;;  %v4352_v61 = vmul.f32 %v20487_v18, %v20487_v18  ;;  %v18480_v3 = vld [vmem:[#allocation8 + $0xf4] ss:$12 sps:$4 sm:$0xff]   ;;  %v4432_v32 = vrot.slane %v20522_v24, %v19999_v10 }
 0xa80   :  { %4572 = vmatprep.subr.bf16.mxu0 %v18480_v3 }
 0xa81   :  { %4348 = vadd.xlane.f32.xlu1 %v20491_v45  ;;  %v4353_v22 = vmul.f32 %v20491_v45, %v20491_v45 }
 0xa82   :  { %4573 = vmatpush1.bf16.msra.mxu0 %v18478_v43 }
 0xa83   :  { %4354 = vadd.xlane.f32.xlu0 %v4352_v61  ;;  %4574 = vmatprep.subr.bf16.mxu0 %v18484_v34 }
 0xa85   :  { %4356 = vadd.xlane.f32.xlu1 %v4353_v22 }
 0xa86   :  { %4575 = vmatpush1.bf16.msra.mxu0 %v18482_v11 }
 0xa87   :  { %4576 = vmatprep.subr.bf16.mxu0 %v18488_v46 }
 0xa8a   :  { %4577 = vmatpush1.bf16.msra.mxu0 %v18486_v2 }
 0xa8b   :  { %4578 = vmatprep.subr.bf16.mxu0 %v18492_v17 }
 0xa8e   :  { %4579 = vmatpush1.bf16.msra.mxu0 %v18490_v41 }
 0xa8f   :  { %4580 = vmatprep.subr.bf16.mxu0 %v18496_v51 }
 0xa92   :  { %4581 = vmatpush1.bf16.msra.mxu0 %v18494_v57 }
 0xa93   :  { %4582 = vmatprep.subr.bf16.mxu0 %v18500_v15 }
 0xa96   :  { %4583 = vmatpush1.bf16.msra.mxu0 %v18498_v23 }
 0xa97   :  { %17581 = vmatprep.subr.mxu0 %v19600_v0 }
 0xb0c   :  { %v4347_v54 = vpop.xlane.xlu0 %4346 }
 0xb0d   :  { %v4350_v55 = vmul.f32 0.0078125, %v4347_v54 }
 0xb0e   :  { %v4349_v56 = vpop.xlane.xlu1 %4348 }
 0xb0f   :  { %v4351_v16 = vmul.f32 0.0078125, %v4349_v56  ;;  %v4360_v19 = vmul.f32 %v4350_v55, %v4350_v55  ;;  %v4364_v25 = vsub.f32 %v20487_v18, %v4350_v55 }
 0xb10   :  { %v4355_v58 = vpop.xlane.xlu0 %4354 }
 0xb11   :  { %v4358_v26 = vmul.f32 0.0078125, %v4355_v58  ;;  %v4361_v48 = vmul.f32 %v4351_v16, %v4351_v16  ;;  %v4365_v14 = vsub.f32 %v20491_v45, %v4351_v16 }
 0xb12   :  { %v4357_v33 = vpop.xlane.xlu1 %4356 }
 0xb13   :  { %v4362_v47 = vsub.f32 %v4358_v26, %v4360_v19  ;;  %v4359_v13 = vmul.f32 0.0078125, %v4357_v33 }
 0xb15   :  { %v4366_v49 = vadd.f32 1e-12, %v4362_v47  ;;  %v4363_v59 = vsub.f32 %v4359_v13, %v4361_v48 }
 0xb17   :  { %18938 = vrsqrt.f32 %v4366_v49  ;;  %v4367_v60 = vadd.f32 1e-12, %v4363_v59  ;;  %v4436_v59 = vrot.slane %v20522_v24, %v20038_v27 }
 0xb19   :  { %18940 = vrsqrt.f32 %v4367_v60 }
 0xb21   :  { %v18939_v7 = vpop.eup %18938 }
 0xb22   :  { %v4370_v63 = vmul.f32 %v18939_v7, %v4364_v25 }
 0xb23   :  { %v18941_v40 = vpop.eup %18940 }
 0xb24   :  { %v4371_v6 = vmul.f32 %v18941_v40, %v4365_v14  ;;  %v4378_v29 = vmul.f32 %v16353_v36, %v4370_v63 }
 0xb26   :  { %v4379_v21 = vmul.f32 %v16353_v36, %v4371_v6  ;;  %v20509_v28 = vadd.f32 %v16354_v20, %v4378_v29 }
 0xb28   :  { %v20511_v12 = vadd.f32 %v16354_v20, %v4379_v21 }
 0xb2a   :  { %v4388_v4 = vpack.c.bf16 %v20511_v12, %v20509_v28 }
 0xb2c   :  { %4601 = vmatmul.mubr.bf16.vlgmr.msra.gmra.mrb[56].mxu0 %v4388_v4  ;;  %17578 = vmatmul.mubr.bf16.vlgmr.msra.gmra.mrb[44].mxu1 %v4388_v4 }
 0xb2d   :  { %17583 = vmatprep.mubr.msk.f32.mxu0 %vm19601_vm0, %v19600_v0  ;;  %17623 = vmatprep.mubr.msk.f32.mxu1 %vm19601_vm0, %v19600_v0 }
 0xbff   :  { %v4602_v18 = vpop.f32.mrb[56].mxu0  ;;  %v20528_v45 = vpop.f32.mrb[44].mxu1 }
 0xc00   :  { %v4604_v61 = vpop.f32.mrb[57].mxu0  ;;  %v17579_v22 = vpop.f32.mrb[45].mxu1  ;;  %v4603_v35 = vadd.f32 %v4602_v18, %v4428_v1  ;;  %v20636_v7 = vadd.f32 %v20528_v45, %v4436_v59 }
 0xc01   :  { %v4605_v38 = vadd.f32 %v4604_v61, %v4432_v32  ;;  %v4606_v62 = vpop.f32.mrb[58].mxu0  ;;  %v20530_v39 = vpop.f32.mrb[46].mxu1 }
 0xc02   :  { %v4608_v3 = vpop.f32.mrb[59].mxu0  ;;  %v17580_v43 = vpop.f32.mrb[47].mxu1  ;;  %v4652_v44 = vmul.f32 0.25, %v4603_v35  ;;  %v4607_v34 = vadd.f32 %v4606_v62, %v4428_v1  ;;  %v20640_v14 = vadd.f32 %v20530_v39, %v4436_v59 }
 0xc03   :  { %4690 = vrot.lane.b32.xlu1 %v4605_v38, %s19604_s26  ;;  %4686 = vrot.lane.b32.xlu0 %v4605_v38, %s19603_s25  ;;  %v4609_v11 = vadd.f32 %v4608_v3, %v4432_v32 }
 0xc04   :  { %17582 = vmatpush3.xpose.msk.msra.mxu0 %vm887_vm3, %v4605_v38  ;;  %v4653_v30 = vmul.f32 0.25, %v4607_v34 }
 0xc05   :  { %17586 = vmatprep.subr.mxu0 %v19600_v0 }
 0xc07   :  { %17584 = vmatmul.mubr.msk.f32.vlgmr.msra.gmra.mrb[60].mxu0 %vm887_vm3, %v4652_v44  ;;  %4694 = vrot.lane.b32.xlu1 %v4605_v38, %s19605_s4 }
 0xc08   :  { %4660 = vrot.lane.b32.xlu0 %v4652_v44, %s19604_s26  ;;  %17587 = vmatpush3.xpose.msk.msra.mxu0 %vm887_vm3, %v4609_v11 }
 0xc09   :  { %17588 = vmatprep.mubr.msk.f32.mxu0 %vm19601_vm0, %v19600_v0  ;;  %17591 = vmatprep.subr.mxu0 %v19600_v0 }
 0xc0b   :  { %17589 = vmatmul.mubr.msk.f32.vlgmr.msra.gmra.mrb[62].mxu0 %vm887_vm3, %v4653_v30  ;;  %4698 = vrot.lane.b32.xlu1 %v4605_v38, %s19587_s30 }
 0xc0c   :  { %4664 = vrot.lane.b32.xlu0 %v4652_v44, %s19605_s4  ;;  %17593 = vmatprep.mubr.msk.f32.mxu0 %vm19601_vm0, %v19600_v0 }
 0xc0f   :  { %4656 = vrot.lane.b32.xlu1 %v4652_v44, %s19603_s25 }
 0xc10   :  { %4700 = vrot.lane.b32.xlu0 %v4609_v11, %s19587_s30 }
 0xc13   :  { %4688 = vrot.lane.b32.xlu1 %v4609_v11, %s19603_s25 }
 0xc14   :  { %4704 = vrot.lane.b32.xlu0 %v4609_v11, %s19606_s27 }
 0xc17   :  { %4668 = vrot.lane.b32.xlu1 %v4652_v44, %s19587_s30 }
 0xc18   :  { %4658 = vrot.lane.b32.xlu0 %v4653_v30, %s19603_s25 }
 0xc1b   :  { %4692 = vrot.lane.b32.xlu1 %v4609_v11, %s19604_s26 }
 0xc1c   :  { %4708 = vrot.lane.b32.xlu0 %v4609_v11, %s19607_s16 }
 0xc1f   :  { %4702 = vrot.lane.b32.xlu1 %v4605_v38, %s19606_s27 }
 0xc20   :  { %4662 = vrot.lane.b32.xlu0 %v4653_v30, %s19604_s26 }
 0xc23   :  { %4696 = vrot.lane.b32.xlu1 %v4609_v11, %s19605_s4 }
 0xc24   :  { %4712 = vrot.lane.b32.xlu0 %v4609_v11, %s22057_s8 }
 0xc27   :  { %4672 = vrot.lane.b32.xlu1 %v4652_v44, %s19606_s27 }
 0xc28   :  { %4666 = vrot.lane.b32.xlu0 %v4653_v30, %s19605_s4 }
 0xc2b   :  { %4706 = vrot.lane.b32.xlu1 %v4605_v38, %s19607_s16 }
 0xc2c   :  { %4670 = vrot.lane.b32.xlu0 %v4653_v30, %s19587_s30 }
 0xc2f   :  { %4676 = vrot.lane.b32.xlu1 %v4652_v44, %s19607_s16 }
 0xc30   :  { %4674 = vrot.lane.b32.xlu0 %v4653_v30, %s19606_s27 }
 0xc33   :  { %4710 = vrot.lane.b32.xlu1 %v4605_v38, %s22057_s8 }
 0xc34   :  { %4678 = vrot.lane.b32.xlu0 %v4653_v30, %s19607_s16 }
 0xc37   :  { %4680 = vrot.lane.b32.xlu1 %v4652_v44, %s22057_s8 }
 0xc38   :  { %4682 = vrot.lane.b32.xlu0 %v4653_v30, %s22057_s8 }
 0xc75   :  { %v4691_v46 = vpop.permute.xlu1 %4690  ;;  %v4687_v2 = vpop.permute.xlu0 %4686 }
 0xc76   :  { %17592 = vmatpush3.xpose.msk.msra.mxu0 %vm887_vm3, %v4687_v2 }
 0xc77   :  { %17596 = vmatprep.subr.mxu0 %v19600_v0 }
 0xc79   :  { %v4695_v31 = vpop.permute.xlu1 %4694 }
 0xc7a   :  { %v4661_v17 = vpop.permute.xlu0 %4660 }
 0xc7d   :  { %v4699_v41 = vpop.permute.xlu1 %4698 }
 0xc7e   :  { %v4665_v50 = vpop.permute.xlu0 %4664  ;;  %17622 = vmatpush3.xpose.msk.msra.mxu1 %vm887_vm3, %v4699_v41 }
 0xc7f   :  { %17631 = vmatprep.subr.mxu1 %v19600_v0 }
 0xc81   :  { %v4657_v51 = vpop.permute.xlu1 %4656 }
 0xc82   :  { %v4701_v57 = vpop.permute.xlu0 %4700  ;;  %17594 = vmatmul.mubr.msk.f32.vlgmr.msra.gmra.mrb[64].mxu0 %vm887_vm3, %v4657_v51 }
 0xc83   :  { %17598 = vmatprep.mubr.msk.f32.mxu0 %vm19601_vm0, %v19600_v0 }
 0xc85   :  { %v4689_v37 = vpop.permute.xlu1 %4688 }
 0xc86   :  { %v4705_v15 = vpop.permute.xlu0 %4704  ;;  %17597 = vmatpush3.xpose.msk.msra.mxu0 %vm887_vm3, %v4689_v37 }
 0xc87   :  { %17601 = vmatprep.subr.mxu0 %v19600_v0 }
 0xc89   :  { %v4669_v23 = vpop.permute.xlu1 %4668 }
 0xc8a   :  { %v4659_v53 = vpop.permute.xlu0 %4658  ;;  %17624 = vmatmul.mubr.msk.f32.vlgmr.msra.gmra.mrb[48].mxu1 %vm887_vm3, %v4669_v23 }
 0xc8b   :  { %17599 = vmatmul.mubr.msk.f32.vlgmr.msra.gmra.mrb[66].mxu0 %vm887_vm3, %v4659_v53  ;;  %17633 = vmatprep.mubr.msk.f32.mxu1 %vm19601_vm0, %v19600_v0 }
 0xc8c   :  { %17602 = vmatpush3.xpose.msk.msra.mxu0 %vm887_vm3, %v4691_v46  ;;  %17603 = vmatprep.mubr.msk.f32.mxu0 %vm19601_vm0, %v19600_v0 }
 0xc8d   :  { %v4693_v54 = vpop.permute.xlu1 %4692  ;;  %17606 = vmatprep.subr.mxu0 %v19600_v0 }
 0xc8e   :  { %v4709_v55 = vpop.permute.xlu0 %4708 }
 0xc8f   :  { %17604 = vmatmul.mubr.msk.f32.vlgmr.msra.gmra.mrb[68].mxu0 %vm887_vm3, %v4661_v17 }
 0xc90   :  { %17607 = vmatpush3.xpose.msk.msra.mxu0 %vm887_vm3, %v4693_v54  ;;  %17608 = vmatprep.mubr.msk.f32.mxu0 %vm19601_vm0, %v19600_v0 }
 0xc91   :  { %v4703_v56 = vpop.permute.xlu1 %4702  ;;  %17611 = vmatprep.subr.mxu0 %v19600_v0 }
 0xc92   :  { %v4663_v16 = vpop.permute.xlu0 %4662  ;;  %17632 = vmatpush3.xpose.msk.msra.mxu1 %vm887_vm3, %v4703_v56 }
 0xc93   :  { %17609 = vmatmul.mubr.msk.f32.vlgmr.msra.gmra.mrb[70].mxu0 %vm887_vm3, %v4663_v16  ;;  %17641 = vmatprep.subr.mxu1 %v19600_v0 }
 0xc94   :  { %17612 = vmatpush3.xpose.msk.msra.mxu0 %vm887_vm3, %v4695_v31  ;;  %17613 = vmatprep.mubr.msk.f32.mxu0 %vm19601_vm0, %v19600_v0 }
 0xc95   :  { %v4697_v58 = vpop.permute.xlu1 %4696  ;;  %17616 = vmatprep.subr.mxu0 %v19600_v0 }
 0xc96   :  { %v4713_v19 = vpop.permute.xlu0 %4712 }
 0xc97   :  { %17614 = vmatmul.mubr.msk.f32.vlgmr.msra.gmra.mrb[72].mxu0 %vm887_vm3, %v4665_v50 }
 0xc98   :  { %17617 = vmatpush3.xpose.msk.msra.mxu0 %vm887_vm3, %v4697_v58  ;;  %17618 = vmatprep.mubr.msk.f32.mxu0 %vm19601_vm0, %v19600_v0 }
 0xc99   :  { %v4673_v26 = vpop.permute.xlu1 %4672  ;;  %17626 = vmatprep.subr.mxu0 %v19600_v0 }
 0xc9a   :  { %v4667_v33 = vpop.permute.xlu0 %4666  ;;  %17634 = vmatmul.mubr.msk.f32.vlgmr.msra.gmra.mrb[50].mxu1 %vm887_vm3, %v4673_v26 }
 0xc9b   :  { %17619 = vmatmul.mubr.msk.f32.vlgmr.msra.gmra.mrb[74].mxu0 %vm887_vm3, %v4667_v33  ;;  %17643 = vmatprep.mubr.msk.f32.mxu1 %vm19601_vm0, %v19600_v0 }
 0xc9c   :  { %17627 = vmatpush3.xpose.msk.msra.mxu0 %vm887_vm3, %v4701_v57  ;;  %17628 = vmatprep.mubr.msk.f32.mxu0 %vm19601_vm0, %v19600_v0 }
 0xc9d   :  { %v4707_v48 = vpop.permute.xlu1 %4706  ;;  %17636 = vmatprep.subr.mxu0 %v19600_v0 }
 0xc9e   :  { %v4671_v47 = vpop.permute.xlu0 %4670  ;;  %17642 = vmatpush3.xpose.msk.msra.mxu1 %vm887_vm3, %v4707_v48 }
 0xc9f   :  { %17629 = vmatmul.mubr.msk.f32.vlgmr.msra.gmra.mrb[76].mxu0 %vm887_vm3, %v4671_v47  ;;  %17651 = vmatprep.subr.mxu1 %v19600_v0 }
 0xca0   :  { %17637 = vmatpush3.xpose.msk.msra.mxu0 %vm887_vm3, %v4705_v15  ;;  %17638 = vmatprep.mubr.msk.f32.mxu0 %vm19601_vm0, %v19600_v0 }
 0xca1   :  { %v4677_v13 = vpop.permute.xlu1 %4676  ;;  %17646 = vmatprep.subr.mxu0 %v19600_v0 }
 0xca2   :  { %v4675_v49 = vpop.permute.xlu0 %4674  ;;  %17644 = vmatmul.mubr.msk.f32.vlgmr.msra.gmra.mrb[52].mxu1 %vm887_vm3, %v4677_v13 }
 0xca3   :  { %17639 = vmatmul.mubr.msk.f32.vlgmr.msra.gmra.mrb[78].mxu0 %vm887_vm3, %v4675_v49  ;;  %17653 = vmatprep.mubr.msk.f32.mxu1 %vm19601_vm0, %v19600_v0 }
 0xca4   :  { %17647 = vmatpush3.xpose.msk.msra.mxu0 %vm887_vm3, %v4709_v55  ;;  %17648 = vmatprep.mubr.msk.f32.mxu0 %vm19601_vm0, %v19600_v0 }
 0xca5   :  { %v4711_v60 = vpop.permute.xlu1 %4710  ;;  %17656 = vmatprep.subr.mxu0 %v19600_v0 }
 0xca6   :  { %v4679_v25 = vpop.permute.xlu0 %4678  ;;  %17652 = vmatpush3.xpose.msk.msra.mxu1 %vm887_vm3, %v4711_v60 }
 0xca7   :  { %17649 = vmatmul.mubr.msk.f32.vlgmr.msra.gmra.mrb[80].mxu0 %vm887_vm3, %v4679_v25  ;;  %17661 = vmatprep.subr.mxu1 %v19600_v0 }
 0xca8   :  { %17657 = vmatpush3.xpose.msk.msra.mxu0 %vm887_vm3, %v4713_v19  ;;  %17658 = vmatprep.mubr.msk.f32.mxu0 %vm19601_vm0, %v19600_v0 }
 0xca9   :  { %v4681_v36 = vpop.permute.xlu1 %4680  ;;  %17666 = vmatprep.subr.mxu0 %v19600_v0 }
 0xcaa   :  { %v4683_v63 = vpop.permute.xlu0 %4682  ;;  %17654 = vmatmul.mubr.msk.f32.vlgmr.msra.gmra.mrb[54].mxu1 %vm887_vm3, %v4681_v36 }
 0xcab   :  { %17659 = vmatmul.mubr.msk.f32.vlgmr.msra.gmra.mrb[82].mxu0 %vm887_vm3, %v4683_v63  ;;  %17662 = vmatpush3.msra.mxu1 %v20636_v7 }
 0xcac   :  { %17667 = vmatpush3.msra.mxu0 %v20640_v14  ;;  %17668 = vmatprep.mubr.msk.f32.mxu0 %vm19601_vm0, %v19600_v0 }
 0xcad   :  { %17676 = vmatprep.subr.mxu0 %v19600_v0  ;;  %17663 = vmatprep.mubr.msk.f32.mxu1 %vm19601_vm0, %v19600_v0 }
 0xcae   :  { %17671 = vmatprep.subr.mxu1 %v19600_v0 }
 0xcda   :  { %v4828_v40 = vpop.f32.mrb[60].mxu0 }
 0xcdb   :  { %v20653_v6 = vadd.f32 %v4828_v40, %v20136_v5  ;;  %v17585_v29 = vpop.f32.mrb[61].mxu0 }
 0xcdd   :  { %v5942_v20 = vsel %vm306_vm2, %v20653_v6, -inf }
 0xcde   :  { %5943 = vmax.xlane.f32.xlu1 %v5942_v20  ;;  %v4902_v21 = vpop.f32.mrb[62].mxu0 }
 0xcdf   :  { %v20658_v4 = vadd.f32 %v4902_v21, %v20139_v9  ;;  %v17590_v24 = vpop.f32.mrb[63].mxu0 }
 0xce1   :  { %v5945_v1 = vsel %vm306_vm2, %v20658_v4, -inf }
 0xce2   :  { %5946 = vmax.xlane.f32.xlu0 %v5945_v1 }
 0xd55   :  { %v4976_v32 = vpop.f32.mrb[64].mxu0 }
 0xd56   :  { %v20663_v18 = vadd.f32 %v4976_v32, %v20136_v5  ;;  %v17595_v45 = vpop.f32.mrb[65].mxu0 }
 0xd58   :  { %v5948_v61 = vsel %vm306_vm2, %v20663_v18, -inf }
 0xd59   :  { %5949 = vmax.xlane.f32.xlu0 %v5948_v61 }
 0xd5d   :  { %v5420_v22 = vpop.f32.mrb[48].mxu1 }
 0xd5e   :  { %v5050_v35 = vpop.f32.mrb[66].mxu0  ;;  %v20668_v38 = vadd.f32 %v5420_v22, %v20136_v5  ;;  %v17625_v62 = vpop.f32.mrb[49].mxu1 }
 0xd5f   :  { %v20671_v39 = vadd.f32 %v5050_v35, %v20139_v9  ;;  %v17600_v3 = vpop.f32.mrb[67].mxu0 }
 0xd60   :  { %v5966_v43 = vsel %vm306_vm2, %v20668_v38, -inf }
 0xd61   :  { %5967 = vmax.xlane.f32.xlu0 %v5966_v43  ;;  %v5951_v44 = vsel %vm306_vm2, %v20671_v39, -inf }
 0xd62   :  { %5952 = vmax.xlane.f32.xlu1 %v5951_v44  ;;  %v5124_v34 = vpop.f32.mrb[68].mxu0 }
 0xd63   :  { %v17605_v11 = vpop.f32.mrb[69].mxu0  ;;  %v20686_v23 = vadd.f32 %v5124_v34, %v20136_v5 }
 0xd65   :  { %v5954_v56 = vsel %vm306_vm2, %v20686_v23, -inf }
 0xd66   :  { %v5198_v30 = vpop.f32.mrb[70].mxu0 }
 0xd67   :  { %v20678_v46 = vadd.f32 %v5198_v30, %v20139_v9  ;;  %v17610_v2 = vpop.f32.mrb[71].mxu0 }
 0xd69   :  { %v5957_v31 = vsel %vm306_vm2, %v20678_v46, -inf }
 0xd6a   :  { %5958 = vmax.xlane.f32.xlu1 %v5957_v31  ;;  %v5272_v17 = vpop.f32.mrb[72].mxu0 }
 0xd6b   :  { %v17615_v41 = vpop.f32.mrb[73].mxu0  ;;  %v20705_v63 = vadd.f32 %v5272_v17, %v20136_v5  ;;  %v5944_v24 = vpop.xlane.xlu1 %5943 }
 0xd6c   :  { %v5990_v61 = vsub.f32 %v20653_v6, %v5944_v24 }
 0xd6d   :  { %v5568_v50 = vpop.f32.mrb[50].mxu1  ;;  %v5960_v29 = vsel %vm306_vm2, %v20705_v63, -inf }
 0xd6e   :  { %v5346_v51 = vpop.f32.mrb[74].mxu0  ;;  %v20683_v57 = vadd.f32 %v5568_v50, %v20136_v5  ;;  %v17635_v37 = vpop.f32.mrb[51].mxu1  ;;  %v6006_v3 = vmul.f32 1.442695, %v5990_v61 }
 0xd6f   :  { %v17620_v15 = vpop.f32.mrb[75].mxu0  ;;  %v20722_v20 = vadd.f32 %v5346_v51, %v20139_v9  ;;  %v5947_v21 = vpop.xlane.xlu0 %5946 }
 0xd70   :  { %v5972_v53 = vsel %vm306_vm2, %v20683_v57, -inf  ;;  %v5991_v1 = vsub.f32 %v20658_v4, %v5947_v21 }
 0xd71   :  { %5973 = vmax.xlane.f32.xlu0 %v5972_v53  ;;  %v5963_v45 = vsel %vm306_vm2, %v20722_v20, -inf }
 0xd72   :  { %v5494_v54 = vpop.f32.mrb[76].mxu0  ;;  %v6008_v22 = vmul.f32 1.442695, %v5991_v1 }
 0xd73   :  { %v17630_v55 = vpop.f32.mrb[77].mxu0  ;;  %v20726_v32 = vadd.f32 %v5494_v54, %v20139_v9 }
 0xd74   :  { %18942 = vpow2.f32 %v6008_v22 }
 0xd75   :  { %v5716_v16 = vpop.f32.mrb[52].mxu1  ;;  %5955 = vmax.xlane.f32.xlu0 %v5954_v56  ;;  %v5969_v62 = vsel %vm306_vm2, %v20726_v32, -inf  ;;  %18944 = vpow2.f32 %v6006_v3 }
 0xd76   :  { %v20693_v58 = vadd.f32 %v5716_v16, %v20136_v5  ;;  %v5642_v19 = vpop.f32.mrb[78].mxu0  ;;  %v17645_v26 = vpop.f32.mrb[53].mxu1 }
 0xd77   :  { %v17640_v33 = vpop.f32.mrb[79].mxu0  ;;  %v20732_v35 = vadd.f32 %v5642_v19, %v20139_v9 }
 0xd78   :  { %v5978_v48 = vsel %vm306_vm2, %v20693_v58, -inf }
 0xd79   :  { %5979 = vmax.xlane.f32.xlu0 %v5978_v48  ;;  %v5975_v43 = vsel %vm306_vm2, %v20732_v35, -inf }
 0xd7a   :  { %v5790_v47 = vpop.f32.mrb[80].mxu0 }
 0xd7b   :  { %4718 = vrot.lane.b32.xlu1 %v20640_v14, %s19603_s25  ;;  %v17650_v13 = vpop.f32.mrb[81].mxu0  ;;  %v20737_v4 = vadd.f32 %v5790_v47, %v20139_v9 }
 0xd7d   :  { %v5864_v49 = vpop.f32.mrb[54].mxu1  ;;  %v5981_v44 = vsel %vm306_vm2, %v20737_v4, -inf }
 0xd7e   :  { %v20700_v59 = vadd.f32 %v5864_v49, %v20136_v5  ;;  %v5938_v60 = vpop.f32.mrb[82].mxu0  ;;  %v17655_v25 = vpop.f32.mrb[55].mxu1 }
 0xd7f   :  { %4722 = vrot.lane.b32.xlu1 %v20636_v7, %s19604_s26  ;;  %v17660_v36 = vpop.f32.mrb[83].mxu0  ;;  %v20742_v6 = vadd.f32 %v5938_v60, %v20139_v9  ;;  %v20748_v11 = vpop.eup %18942 }
 0xd80   :  { %v5984_v40 = vsel %vm306_vm2, %v20700_v59, -inf  ;;  %v20750_v30 = vpop.eup %18944  ;;  %v6041_v2 = vsel %vm306_vm2, %v20748_v11, 0.0 }
 0xd81   :  { %5985 = vmax.xlane.f32.xlu0 %v5984_v40  ;;  %v5987_v34 = vsel %vm306_vm2, %v20742_v6, -inf  ;;  %v6038_v31 = vsel %vm306_vm2, %v20750_v30, 0.0 }
 0xd83   :  { %4728 = vrot.lane.b32.xlu1 %v20636_v7, %s19605_s4 }
 0xd85   :  { %5961 = vmax.xlane.f32.xlu0 %v5960_v29 }
 0xd87   :  { %4734 = vrot.lane.b32.xlu1 %v20636_v7, %s19587_s30 }
 0xd9b   :  { %4716 = vrot.lane.b32.xlu0 %v20636_v7, %s19603_s25 }
 0xd9f   :  { %4724 = vrot.lane.b32.xlu0 %v20640_v14, %s19604_s26 }
 0xda3   :  { %4730 = vrot.lane.b32.xlu0 %v20640_v14, %s19605_s4 }
 0xdab   :  { %5964 = vmax.xlane.f32.xlu1 %v5963_v45 }
 0xdaf   :  { %5970 = vmax.xlane.f32.xlu1 %v5969_v62 }
 0xdb3   :  { %5976 = vmax.xlane.f32.xlu1 %v5975_v43 }
 0xdb7   :  { %5982 = vmax.xlane.f32.xlu1 %v5981_v44 }
 0xdbb   :  { %5988 = vmax.xlane.f32.xlu1 %v5987_v34 }
 0xdbf   :  { %6042 = vadd.xlane.f32.xlu1 %v6041_v2 }
 0xdc2   :  { %6039 = vadd.xlane.f32.xlu0 %v6038_v31 }
 0xde6   :  { %v5950_v17 = vpop.xlane.xlu0 %5949 }
 0xde7   :  { %v5992_v41 = vsub.f32 %v20663_v18, %v5950_v17 }
 0xde9   :  { %v6010_v50 = vmul.f32 1.442695, %v5992_v41 }
 0xdeb   :  { %18946 = vpow2.f32 %v6010_v50 }
 0xdee   :  { %v5968_v51 = vpop.xlane.xlu0 %5967 }
 0xdef   :  { %v5998_v37 = vsub.f32 %v20668_v38, %v5968_v51  ;;  %v5953_v15 = vpop.xlane.xlu1 %5952 }
 0xdf0   :  { %v5993_v53 = vsub.f32 %v20671_v39, %v5953_v15 }
 0xdf1   :  { %v6022_v54 = vmul.f32 1.442695, %v5998_v37 }
 0xdf2   :  { %v6012_v55 = vmul.f32 1.442695, %v5993_v53 }
 0xdf3   :  { %18948 = vpow2.f32 %v6022_v54 }
 0xdf4   :  { %18950 = vpow2.f32 %v6012_v55 }
 0xdf5   :  { %v20759_v56 = vpop.eup %18946 }
 0xdf6   :  { %v6044_v16 = vsel %vm306_vm2, %v20759_v56, 0.0 }
 0xdf7   :  { %v5959_v19 = vpop.xlane.xlu1 %5958  ;;  %6045 = vadd.xlane.f32.xlu0 %v6044_v16 }
 0xdf8   :  { %v5995_v18 = vsub.f32 %v20678_v46, %v5959_v19 }
 0xdfa   :  { %v6016_v26 = vmul.f32 1.442695, %v5995_v18 }
 0xdfb   :  { %v4719_v31 = vpop.permute.xlu1 %4718 }
 0xdfc   :  { %18952 = vpow2.f32 %v6016_v26 }
 0xdfd   :  { %v20764_v33 = vpop.eup %18948 }
 0xdfe   :  { %v20766_v38 = vpop.eup %18950  ;;  %v5974_v39 = vpop.xlane.xlu0 %5973  ;;  %v6062_v48 = vsel %vm306_vm2, %v20764_v33, 0.0 }
 0xdff   :  { %v6000_v47 = vsub.f32 %v20683_v57, %v5974_v39  ;;  %6063 = vadd.xlane.f32.xlu0 %v6062_v48  ;;  %v6047_v13 = vsel %vm306_vm2, %v20766_v38, 0.0  ;;  %v20805_v41 = vpop.permute.xlu1 %4722 }
 0xe00   :  { %6048 = vadd.xlane.f32.xlu1 %v6047_v13 }
 0xe01   :  { %v6026_v49 = vmul.f32 1.442695, %v6000_v47 }
 0xe02   :  { %v5956_v60 = vpop.xlane.xlu0 %5955 }
 0xe03   :  { %18954 = vpow2.f32 %v6026_v49  ;;  %v5994_v46 = vsub.f32 %v20686_v23, %v5956_v60  ;;  %v20807_v50 = vpop.permute.xlu1 %4728 }
 0xe05   :  { %v6014_v25 = vmul.f32 1.442695, %v5994_v46 }
 0xe06   :  { %v20774_v36 = vpop.eup %18952  ;;  %v5980_v40 = vpop.xlane.xlu0 %5979 }
 0xe07   :  { %18956 = vpow2.f32 %v6014_v25  ;;  %v6002_v29 = vsub.f32 %v20693_v58, %v5980_v40  ;;  %v6053_v57 = vsel %vm306_vm2, %v20774_v36, 0.0  ;;  %v20809_v51 = vpop.permute.xlu1 %4734 }
 0xe08   :  { %6054 = vadd.xlane.f32.xlu1 %v6053_v57 }
 0xe09   :  { %v6030_v21 = vmul.f32 1.442695, %v6002_v29 }
 0xe0b   :  { %18958 = vpow2.f32 %v6030_v21 }
 0xe0d   :  { %v20779_v24 = vpop.eup %18954 }
 0xe0e   :  { %v5986_v1 = vpop.xlane.xlu0 %5985  ;;  %v6068_v45 = vsel %vm306_vm2, %v20779_v24, 0.0 }
 0xe0f   :  { %v6004_v23 = vsub.f32 %v20700_v59, %v5986_v1  ;;  %6069 = vadd.xlane.f32.xlu0 %v6068_v45 }
 0xe11   :  { %v20784_v61 = vpop.eup %18956  ;;  %v6034_v22 = vmul.f32 1.442695, %v6004_v23 }
 0xe12   :  { %v5962_v62 = vpop.xlane.xlu0 %5961  ;;  %v6050_v58 = vsel %vm306_vm2, %v20784_v61, 0.0 }
 0xe13   :  { %18960 = vpow2.f32 %v6034_v22  ;;  %v5996_v3 = vsub.f32 %v20705_v63, %v5962_v62  ;;  %6051 = vadd.xlane.f32.xlu0 %v6050_v58 }
 0xe15   :  { %v20789_v43 = vpop.eup %18958  ;;  %v6018_v44 = vmul.f32 1.442695, %v5996_v3 }
 0xe16   :  { %v6074_v34 = vsel %vm306_vm2, %v20789_v43, 0.0  ;;  %v4717_v16 = vpop.permute.xlu0 %4716 }
 0xe17   :  { %18962 = vpow2.f32 %v6018_v44  ;;  %6075 = vadd.xlane.f32.xlu0 %v6074_v34 }
 0xe19   :  { %4740 = vrot.lane.b32.xlu1 %v20636_v7, %s19606_s27 }
 0xe1a   :  { %v4725_v48 = vpop.permute.xlu0 %4724 }
 0xe1d   :  { %v20795_v59 = vpop.eup %18960  ;;  %4746 = vrot.lane.b32.xlu1 %v20636_v7, %s19607_s16 }
 0xe1e   :  { %v6080_v63 = vsel %vm306_vm2, %v20795_v59, 0.0  ;;  %v4731_v25 = vpop.permute.xlu0 %4730 }
 0xe1f   :  { %6081 = vadd.xlane.f32.xlu0 %v6080_v63 }
 0xe21   :  { %v20801_v2 = vpop.eup %18962 }
 0xe22   :  { %v6056_v17 = vsel %vm306_vm2, %v20801_v2, 0.0 }
 0xe23   :  { %6057 = vadd.xlane.f32.xlu0 %v6056_v17 }
 0xe38   :  { %v5965_v37 = vpop.xlane.xlu1 %5964 }
 0xe39   :  { %v5997_v15 = vsub.f32 %v20722_v20, %v5965_v37  ;;  %4736 = vrot.lane.b32.xlu0 %v20640_v14, %s19587_s30 }
 0xe3b   :  { %v6020_v53 = vmul.f32 1.442695, %v5997_v15 }
 0xe3c   :  { %v5971_v54 = vpop.xlane.xlu1 %5970 }
 0xe3d   :  { %18964 = vpow2.f32 %v6020_v53  ;;  %v5999_v55 = vsub.f32 %v20726_v32, %v5971_v54  ;;  %4742 = vrot.lane.b32.xlu0 %v20640_v14, %s19606_s27 }
 0xe3f   :  { %v6024_v19 = vmul.f32 1.442695, %v5999_v55 }
 0xe40   :  { %v5977_v18 = vpop.xlane.xlu1 %5976 }
 0xe41   :  { %18966 = vpow2.f32 %v6024_v19  ;;  %v6001_v26 = vsub.f32 %v20732_v35, %v5977_v18  ;;  %4748 = vrot.lane.b32.xlu0 %v20640_v14, %s19607_s16 }
 0xe43   :  { %v6028_v20 = vmul.f32 1.442695, %v6001_v26 }
 0xe44   :  { %v5983_v39 = vpop.xlane.xlu1 %5982 }
 0xe45   :  { %18968 = vpow2.f32 %v6028_v20  ;;  %v6003_v47 = vsub.f32 %v20737_v4, %v5983_v39  ;;  %4754 = vrot.lane.b32.xlu0 %v20640_v14, %s22057_s8 }
 0xe47   :  { %v20823_v32 = vpop.eup %18964  ;;  %v6032_v13 = vmul.f32 1.442695, %v6003_v47 }
 0xe48   :  { %v5989_v49 = vpop.xlane.xlu1 %5988  ;;  %v6059_v60 = vsel %vm306_vm2, %v20823_v32, 0.0 }
 0xe49   :  { %18970 = vpow2.f32 %v6032_v13  ;;  %v6005_v35 = vsub.f32 %v20742_v6, %v5989_v49  ;;  %6060 = vadd.xlane.f32.xlu1 %v6059_v60 }
 0xe4b   :  { %v20828_v46 = vpop.eup %18966  ;;  %v6036_v40 = vmul.f32 1.442695, %v6005_v35 }
 0xe4c   :  { %v6043_v29 = vpop.xlane.xlu1 %6042  ;;  %v6065_v4 = vsel %vm306_vm2, %v20828_v46, 0.0 }
 0xe4d   :  { %18972 = vpow2.f32 %v6036_v40  ;;  %6066 = vadd.xlane.f32.xlu1 %v6065_v4 }
 0xe4e   :  { %18974 = vrcp.f32 %v6043_v29 }
 0xe4f   :  { %v20832_v14 = vpop.eup %18968  ;;  %v6040_v57 = vpop.xlane.xlu0 %6039 }
 0xe50   :  { %18976 = vrcp.f32 %v6040_v57  ;;  %v6071_v21 = vsel %vm306_vm2, %v20832_v14, 0.0 }
 0xe51   :  { %6072 = vadd.xlane.f32.xlu1 %v6071_v21 }
 0xe53   :  { %v20836_v6 = vpop.eup %18970 }
 0xe54   :  { %v6077_v1 = vsel %vm306_vm2, %v20836_v6, 0.0 }
 0xe55   :  { %6078 = vadd.xlane.f32.xlu1 %v6077_v1 }
 0xe57   :  { %v20840_v45 = vpop.eup %18972 }
 0xe58   :  { %v18975_v23 = vpop.eup %18974  ;;  %v6083_v22 = vsel %vm306_vm2, %v20840_v45, 0.0 }
 0xe59   :  { %6084 = vadd.xlane.f32.xlu1 %v6083_v22  ;;  %v6089_v62 = vmul.f32 %v18975_v23, %v20748_v11 }
 0xe5a   :  { %v18977_v58 = vpop.eup %18976 }
 0xe5b   :  { %17669 = vmatmul.mubr.msk.f32.vlgmr.msra.gmra.mrb[84].mxu0 %vm306_vm2, %v6089_v62  ;;  %v6087_v3 = vmul.f32 %v18977_v58, %v20750_v30 }
 0xe5c   :  { %17677 = vmatpush3.msra.mxu0 %v4719_v31  ;;  %17678 = vmatprep.mubr.msk.f32.mxu0 %vm19601_vm0, %v19600_v0 }
 0xe5d   :  { %17664 = vmatmul.mubr.msk.f32.vlgmr.msra.gmra.mrb[56].mxu1 %vm306_vm2, %v6087_v3  ;;  %17686 = vmatprep.subr.mxu0 %v19600_v0 }
 0xe5e   :  { %17672 = vmatpush3.msra.mxu1 %v4717_v16  ;;  %17673 = vmatprep.mubr.msk.f32.mxu1 %vm19601_vm0, %v19600_v0 }
 0xe5f   :  { %17681 = vmatprep.subr.mxu1 %v19600_v0 }
 0xe6a   :  { %4752 = vrot.lane.b32.xlu1 %v20636_v7, %s22057_s8 }
 0xe84   :  { %v6046_v11 = vpop.xlane.xlu0 %6045 }
 0xe85   :  { %18978 = vrcp.f32 %v6046_v11 }
 0xe8c   :  { %v6064_v7 = vpop.xlane.xlu0 %6063 }
 0xe8d   :  { %v6049_v30 = vpop.xlane.xlu1 %6048 }
 0xe8e   :  { %18980 = vrcp.f32 %v6049_v30 }
 0xe8f   :  { %v18979_v44 = vpop.eup %18978 }
 0xe90   :  { %v6091_v34 = vmul.f32 %v18979_v44, %v20759_v56 }
 0xe92   :  { %17674 = vmatmul.mubr.msk.f32.vlgmr.msra.gmra.mrb[58].mxu1 %vm306_vm2, %v6091_v34 }
 0xe93   :  { %17682 = vmatpush3.msra.mxu1 %v20805_v41  ;;  %17683 = vmatprep.mubr.msk.f32.mxu1 %vm19601_vm0, %v19600_v0 }
 0xe94   :  { %17691 = vmatprep.subr.mxu1 %v19600_v0 }
 0xe95   :  { %v6055_v63 = vpop.xlane.xlu1 %6054 }
 0xe96   :  { %18982 = vrcp.f32 %v6055_v63 }
 0xe98   :  { %v18981_v31 = vpop.eup %18980 }
 0xe99   :  { %v6093_v17 = vmul.f32 %v18981_v31, %v20766_v38 }
 0xe9b   :  { %17679 = vmatmul.mubr.msk.f32.vlgmr.msra.gmra.mrb[86].mxu0 %vm306_vm2, %v6093_v17  ;;  %v18503_v17 = vld [vmem:[#allocation10 + $0x48] sm:$0xff]  }
 0xe9c   :  { %17687 = vmatpush3.msra.mxu0 %v4725_v48  ;;  %v6070_v37 = vpop.xlane.xlu0 %6069  ;;  %17688 = vmatprep.mubr.msk.f32.mxu0 %vm19601_vm0, %v19600_v0 }
 0xe9d   :  { %17696 = vmatprep.subr.mxu0 %v19600_v0 }
 0xea0   :  { %v18983_v56 = vpop.eup %18982  ;;  %v6052_v41 = vpop.xlane.xlu0 %6051 }
 0xea1   :  { %18984 = vrcp.f32 %v6052_v41  ;;  %v6097_v15 = vmul.f32 %v18983_v56, %v20774_v36 }
 0xea3   :  { %17689 = vmatmul.mubr.msk.f32.vlgmr.msra.gmra.mrb[88].mxu0 %vm306_vm2, %v6097_v15 }
 0xea4   :  { %17697 = vmatpush3.msra.mxu0 %v4731_v25  ;;  %17698 = vmatprep.mubr.msk.f32.mxu0 %vm19601_vm0, %v19600_v0  ;;  %v6076_v38 = vpop.xlane.xlu0 %6075 }
 0xea5   :  { %17706 = vmatprep.subr.mxu0 %v19600_v0 }
 0xeab   :  { %v18985_v53 = vpop.eup %18984 }
 0xeac   :  { %v6082_v54 = vpop.xlane.xlu0 %6081  ;;  %v6095_v55 = vmul.f32 %v18985_v53, %v20784_v61  ;;  %v4741_v61 = vpop.permute.xlu1 %4740 }
 0xeae   :  { %17684 = vmatmul.mubr.msk.f32.vlgmr.msra.gmra.mrb[60].mxu1 %vm306_vm2, %v6095_v55 }
 0xeaf   :  { %17692 = vmatpush3.msra.mxu1 %v20807_v50  ;;  %17693 = vmatprep.mubr.msk.f32.mxu1 %vm19601_vm0, %v19600_v0 }
 0xeb0   :  { %v6058_v36 = vpop.xlane.xlu0 %6057  ;;  %17701 = vmatprep.subr.mxu1 %v19600_v0  ;;  %v4747_v20 = vpop.permute.xlu1 %4746 }
 0xeb1   :  { %18986 = vrcp.f32 %v6058_v36 }
 0xeb2   :  { %18988 = vrcp.f32 %v6064_v7 }
 0xeb3   :  { %18990 = vrcp.f32 %v6070_v37  ;;  %v18504_v37 = vld [vmem:[#allocation10 + $0x50] sm:$0xff]  }
 0xeb4   :  { %18992 = vrcp.f32 %v6076_v38  ;;  %v4737_v48 = vpop.permute.xlu0 %4736 }
 0xebb   :  { %v18987_v16 = vpop.eup %18986 }
 0xebc   :  { %v6099_v19 = vmul.f32 %v18987_v16, %v20801_v2  ;;  %v18989_v18 = vpop.eup %18988 }
 0xebd   :  { %v6103_v50 = vmul.f32 %v18989_v18, %v20764_v33  ;;  %v18991_v26 = vpop.eup %18990 }
 0xebe   :  { %17694 = vmatmul.mubr.msk.f32.vlgmr.msra.gmra.mrb[62].mxu1 %vm306_vm2, %v6099_v19  ;;  %v6107_v2 = vmul.f32 %v18991_v26, %v20779_v24 }
 0xebf   :  { %17702 = vmatpush3.msra.mxu1 %v20809_v51  ;;  %17703 = vmatprep.mubr.msk.f32.mxu1 %vm19601_vm0, %v19600_v0  ;;  %v18993_v51 = vpop.eup %18992 }
 0xec0   :  { %17711 = vmatprep.subr.mxu1 %v19600_v0  ;;  %v6111_v33 = vmul.f32 %v18993_v51, %v20789_v43  ;;  %v4743_v43 = vpop.permute.xlu0 %4742 }
 0xec2   :  { %17704 = vmatmul.mubr.msk.f32.vlgmr.msra.gmra.mrb[64].mxu1 %vm306_vm2, %v6103_v50  ;;  %v18506_v50 = vld [vmem:[#allocation10 + $0x60] sm:$0xff]  }
 0xec3   :  { %17712 = vmatpush3.msra.mxu1 %v4741_v61  ;;  %17713 = vmatprep.mubr.msk.f32.mxu1 %vm19601_vm0, %v19600_v0  ;;  %v18505_v61 = vld [vmem:[#allocation10 + $0x58] sm:$0xff]  }
 0xec4   :  { %17721 = vmatprep.subr.mxu1 %v19600_v0 }
 0xec6   :  { %17714 = vmatmul.mubr.msk.f32.vlgmr.msra.gmra.mrb[66].mxu1 %vm306_vm2, %v6107_v2  ;;  %v18507_v2 = vld [vmem:[#allocation10 + $0x68] sm:$0xff]  }
 0xec7   :  { %17722 = vmatpush3.msra.mxu1 %v4747_v20  ;;  %17723 = vmatprep.mubr.msk.f32.mxu1 %vm19601_vm0, %v19600_v0 }
 0xec8   :  { %17731 = vmatprep.subr.mxu1 %v19600_v0 }
 0xeca   :  { %17724 = vmatmul.mubr.msk.f32.vlgmr.msra.gmra.mrb[68].mxu1 %vm306_vm2, %v6111_v33 }
 0xecb   :  { %17733 = vmatprep.mubr.msk.f32.mxu1 %vm19601_vm0, %v19600_v0 }
 0xed6   :  { %v6061_v39 = vpop.xlane.xlu1 %6060 }
 0xed7   :  { %18994 = vrcp.f32 %v6061_v39  ;;  %v18508_v39 = vld [vmem:[#allocation10 + $0x70] sm:$0xff]  }
 0xeda   :  { %v6067_v24 = vpop.xlane.xlu1 %6066 }
 0xedb   :  { %18996 = vrcp.f32 %v6067_v24 }
 0xedc   :  { %18998 = vrcp.f32 %v6082_v54 }
 0xede   :  { %v6073_v47 = vpop.xlane.xlu1 %6072 }
 0xedf   :  { %19000 = vrcp.f32 %v6073_v47 }
 0xee1   :  { %v18995_v13 = vpop.eup %18994 }
 0xee2   :  { %v6079_v49 = vpop.xlane.xlu1 %6078  ;;  %v6101_v60 = vmul.f32 %v18995_v13, %v20823_v32  ;;  %v4749_v32 = vpop.permute.xlu0 %4748 }
 0xee3   :  { %19002 = vrcp.f32 %v6079_v49  ;;  %v18509_v49 = vld [vmem:[#allocation10 + $0x78] sm:$0xff]  }
 0xee4   :  { %17699 = vmatmul.mubr.msk.f32.vlgmr.msra.gmra.mrb[90].mxu0 %vm306_vm2, %v6101_v60 }
 0xee5   :  { %v18997_v35 = vpop.eup %18996  ;;  %17707 = vmatpush3.msra.mxu0 %v4737_v48  ;;  %17708 = vmatprep.mubr.msk.f32.mxu0 %vm19601_vm0, %v19600_v0 }
 0xee6   :  { %v6085_v25 = vpop.xlane.xlu1 %6084  ;;  %17716 = vmatprep.subr.mxu0 %v19600_v0  ;;  %v6105_v40 = vmul.f32 %v18997_v35, %v20828_v46  ;;  %v18999_v29 = vpop.eup %18998 }
 0xee7   :  { %19004 = vrcp.f32 %v6085_v25  ;;  %v6115_v1 = vmul.f32 %v18999_v29, %v20795_v59  ;;  %v4755_v59 = vpop.permute.xlu0 %4754 }
 0xee8   :  { %17709 = vmatmul.mubr.msk.f32.vlgmr.msra.gmra.mrb[92].mxu0 %vm306_vm2, %v6105_v40 }
 0xee9   :  { %v19001_v4 = vpop.eup %19000  ;;  %17717 = vmatpush3.msra.mxu0 %v4743_v43  ;;  %17718 = vmatprep.mubr.msk.f32.mxu0 %vm19601_vm0, %v19600_v0 }
 0xeea   :  { %v4753_v57 = vpop.permute.xlu1 %4752  ;;  %17726 = vmatprep.subr.mxu0 %v19600_v0  ;;  %v6109_v21 = vmul.f32 %v19001_v4, %v20832_v14 }
 0xeeb   :  { %17732 = vmatpush3.msra.mxu1 %v4753_v57 }
 0xeec   :  { %17719 = vmatmul.mubr.msk.f32.vlgmr.msra.gmra.mrb[94].mxu0 %vm306_vm2, %v6109_v21  ;;  %17734 = vmatmul.mubr.msk.f32.vlgmr.msra.gmra.mrb[70].mxu1 %vm306_vm2, %v6115_v1 }
 0xeed   :  { %v19003_v46 = vpop.eup %19002  ;;  %17727 = vmatpush3.msra.mxu0 %v4749_v32  ;;  %17728 = vmatprep.mubr.msk.f32.mxu0 %vm19601_vm0, %v19600_v0 }
 0xeee   :  { %17736 = vmatprep.subr.mxu0 %v19600_v0  ;;  %v6113_v23 = vmul.f32 %v19003_v46, %v20836_v6  ;;  %17741 = vmatprep.subr.bf16.mxu1 %v19600_v0 }
 0xeef   :  { %17757 = vmatprep.mubr.msk.bf16.mxu1 %vm19601_vm0, %v19600_v0 }
 0xef0   :  { %17729 = vmatmul.mubr.msk.f32.vlgmr.msra.gmra.mrb[96].mxu0 %vm306_vm2, %v6113_v23 }
 0xef1   :  { %v19005_v14 = vpop.eup %19004  ;;  %17737 = vmatpush3.msra.mxu0 %v4755_v59  ;;  %17738 = vmatprep.mubr.msk.f32.mxu0 %vm19601_vm0, %v19600_v0 }
 0xef2   :  { %v6117_v22 = vmul.f32 %v19005_v14, %v20840_v45  ;;  %v18502_v45 = vld [vmem:[#allocation10 + $0x40] sm:$0xff]  }
 0xef3   :  { %17742 = vmatpush3.bf16.msra.mxu1 %v18502_v45 }
 0xef4   :  { %17739 = vmatmul.mubr.msk.f32.vlgmr.msra.gmra.mrb[98].mxu0 %vm306_vm2, %v6117_v22  ;;  %17743 = vmatprep.subr.bf16.mxu1 %v19600_v0 }
 0xef5   :  { %7768 = vmatprep.mubr.bf16.mxu0 %v19602_v52 }
 0xef7   :  { %17744 = vmatpush3.bf16.msra.mxu1 %v18503_v17 }
 0xef8   :  { %17745 = vmatprep.subr.bf16.mxu1 %v19600_v0 }
 0xefb   :  { %17746 = vmatpush3.bf16.msra.mxu1 %v18504_v37 }
 0xefc   :  { %17747 = vmatprep.subr.bf16.mxu1 %v19600_v0 }
 0xeff   :  { %17748 = vmatpush3.bf16.msra.mxu1 %v18505_v61 }
 0xf00   :  { %17749 = vmatprep.subr.bf16.mxu1 %v19600_v0 }
 0xf03   :  { %17750 = vmatpush3.bf16.msra.mxu1 %v18506_v50 }
 0xf04   :  { %17751 = vmatprep.subr.bf16.mxu1 %v19600_v0 }
 0xf07   :  { %17752 = vmatpush3.bf16.msra.mxu1 %v18507_v2 }
 0xf08   :  { %17753 = vmatprep.subr.bf16.mxu1 %v19600_v0 }
 0xf0b   :  { %17754 = vmatpush3.bf16.msra.mxu1 %v18508_v39 }
 0xf0c   :  { %17755 = vmatprep.subr.bf16.mxu1 %v19600_v0 }
 0xf0f   :  { %17756 = vmatpush3.bf16.msra.mxu1 %v18509_v49 }
 0xf2e   :  { %v20925_v6 = vpop.f32.mrb[84].mxu0 }
 0xf2f   :  { %v17670_v62 = vpop.f32.mrb[85].mxu0 }
 0xf30   :  { %v20927_v58 = vpop.f32.mrb[56].mxu1 }
 0xf31   :  { %v17665_v3 = vpop.f32.mrb[57].mxu1 }
 0xf65   :  { %v6333_v11 = vpop.f32.mrb[58].mxu1 }
 0xf66   :  { %v17675_v30 = vpop.f32.mrb[59].mxu1 }
 0xf6e   :  { %v6406_v44 = vpop.f32.mrb[86].mxu0 }
 0xf6f   :  { %v18229_v34 = vpack.i.bf16 %v6406_v44, %v6333_v11  ;;  %v17680_v63 = vpop.f32.mrb[87].mxu0 }
 0xf71   :  { %18230 = vrot.lane.b32.xlu1 %v18229_v34, %s22057_s8 }
 0xf76   :  { %v6552_v31 = vpop.f32.mrb[88].mxu0 }
 0xf77   :  { %v17690_v7 = vpop.f32.mrb[89].mxu0 }
 0xf81   :  { %v6479_v56 = vpop.f32.mrb[60].mxu1 }
 0xf82   :  { %v18234_v41 = vpack.i.bf16 %v6552_v31, %v6479_v56  ;;  %v17685_v15 = vpop.f32.mrb[61].mxu1 }
 0xf84   :  { %18235 = vrot.lane.b32.xlu0 %v18234_v41, %s19607_s16 }
 0xf91   :  { %v6625_v38 = vpop.f32.mrb[62].mxu1 }
 0xf92   :  { %v17695_v53 = vpop.f32.mrb[63].mxu1 }
 0xf95   :  { %v6771_v54 = vpop.f32.mrb[64].mxu1 }
 0xf96   :  { %v17705_v55 = vpop.f32.mrb[65].mxu1 }
 0xf99   :  { %v6917_v36 = vpop.f32.mrb[66].mxu1 }
 0xf9a   :  { %v17715_v16 = vpop.f32.mrb[67].mxu1 }
 0xf9d   :  { %v7063_v19 = vpop.f32.mrb[68].mxu1 }
 0xf9e   :  { %v17725_v18 = vpop.f32.mrb[69].mxu1 }
 0xfb7   :  { %v6698_v26 = vpop.f32.mrb[90].mxu0 }
 0xfb8   :  { %v18239_v51 = vpack.i.bf16 %v6698_v26, %v6625_v38  ;;  %v17700_v20 = vpop.f32.mrb[91].mxu0 }
 0xfba   :  { %18240 = vrot.lane.b32.xlu1 %v18239_v51, %s19606_s27  ;;  %v16428_v51 = vld [vmem:[#allocation11 + $0x1] ss:$0 sm:$0xff] }
 0xfbb   :  { %v6844_v33 = vpop.f32.mrb[92].mxu0 }
 0xfbc   :  { %v18244_v24 = vpack.i.bf16 %v6844_v33, %v6771_v54  ;;  %v17710_v48 = vpop.f32.mrb[93].mxu0 }
 0xfbe   :  { %18245 = vrot.lane.b32.xlu0 %v18244_v24, %s19587_s30 }
 0xfbf   :  { %v6990_v47 = vpop.f32.mrb[94].mxu0  ;;  %v7209_v13 = vpop.f32.mrb[70].mxu1 }
 0xfc0   :  { %v18249_v60 = vpack.i.bf16 %v6990_v47, %v6917_v36  ;;  %v17720_v43 = vpop.f32.mrb[95].mxu0  ;;  %v17735_v35 = vpop.f32.mrb[71].mxu1 }
 0xfc1   :  { %v18512_v35 = vld [vmem:[#allocation14 + $0x104] ss:$16 sps:$4 sm:$0xff]  }
 0xfc2   :  { %18250 = vrot.lane.b32.xlu1 %v18249_v60, %s19605_s4  ;;  %7736 = vmatprep.subr.bf16.mxu0 %v18512_v35 }
 0xfc3   :  { %v7136_v25 = vpop.f32.mrb[96].mxu0 }
 0xfc4   :  { %v18254_v40 = vpack.i.bf16 %v7136_v25, %v7063_v19  ;;  %v17730_v29 = vpop.f32.mrb[97].mxu0  ;;  %v18510_v25 = vld [vmem:[#allocation14 + $0x100] ss:$16 sps:$4 sm:$0xff]  }
 0xfc5   :  { %7737 = vmatpush1.bf16.msra.mxu0 %v18510_v25  ;;  %v18521_v29 = vld [vmem:[#allocation14 + $0x12c] ss:$16 sps:$4 sm:$0xff]  }
 0xfc6   :  { %18255 = vrot.lane.b32.xlu0 %v18254_v40, %s19604_s26  ;;  %v18513_v40 = vld [vmem:[#allocation14 + $0x108] ss:$16 sps:$4 sm:$0xff]   ;;  %v16439_v25 = vld [vmem:[#allocation13 + $0x1] ss:$0 sm:$0xff] }
 0xfc7   :  { %v7282_v4 = vpop.f32.mrb[98].mxu0 }
 0xfc8   :  { %v18259_v32 = vpack.i.bf16 %v7282_v4, %v7209_v13  ;;  %v17740_v57 = vpop.f32.mrb[99].mxu0  ;;  %v18516_v4 = vld [vmem:[#allocation14 + $0x120] ss:$16 sps:$4 sm:$0xff]  }
 0xfc9   :  { %v18524_v57 = vld [vmem:[#allocation14 + $0x144] ss:$16 sps:$4 sm:$0xff]  }
 0xfca   :  { %18260 = vrot.lane.b32.xlu1 %v18259_v32, %s19603_s25  ;;  %v18519_v32 = vld [vmem:[#allocation14 + $0x128] ss:$16 sps:$4 sm:$0xff]  }
 0xfe3   :  { %v18231_v21 = vpop.permute.xlu1 %18230 }
 0xfe4   :  { %v18233_v59 = vunpack.i.h.bf16 %v18231_v21  ;;  %v18232_v14 = vunpack.i.l.bf16 %v18231_v21  ;;  %v18527_v21 = vld [vmem:[#allocation14 + $0x14c] ss:$16 sps:$4 sm:$0xff]  }
 0xfe6   :  { %v7343_v31 = vsel %vm887_vm3, %v20925_v6, %v18233_v59  ;;  %v7342_v7 = vsel %vm887_vm3, %v20927_v58, %v18232_v14  ;;  %v18533_v59 = vld [vmem:[#allocation14 + $0x16c] ss:$16 sps:$4 sm:$0xff]   ;;  %v18528_v14 = vld [vmem:[#allocation14 + $0x160] ss:$16 sps:$4 sm:$0xff]  }
 0xff6   :  { %v18236_v1 = vpop.permute.xlu0 %18235 }
 0xff7   :  { %v18238_v22 = vunpack.i.h.bf16 %v18236_v1  ;;  %v18237_v62 = vunpack.i.l.bf16 %v18236_v1  ;;  %v18522_v1 = vld [vmem:[#allocation14 + $0x140] ss:$16 sps:$4 sm:$0xff]  }
 0xff9   :  { %v7345_v37 = vsel %vm3474_vm4, %v7343_v31, %v18238_v22  ;;  %v7344_v56 = vsel %vm3474_vm4, %v7342_v7, %v18237_v62  ;;  %v18531_v22 = vld [vmem:[#allocation14 + $0x168] ss:$16 sps:$4 sm:$0xff]   ;;  %v18536_v62 = vld [vmem:[#allocation14 + $0x184] ss:$16 sps:$4 sm:$0xff]  }
 0xffa   :  { %v18543_v31 = vld [vmem:[#allocation14 + $0x1a8] ss:$16 sps:$4 sm:$0xff]   ;;  %v18548_v7 = vld [vmem:[#allocation14 + $0x1c4] ss:$16 sps:$4 sm:$0xff]  }
0x102c   :  { %v18241_v46 = vpop.permute.xlu1 %18240 }
0x102d   :  { %v18243_v11 = vunpack.i.h.bf16 %v18241_v46  ;;  %v18242_v30 = vunpack.i.l.bf16 %v18241_v46  ;;  %v18525_v46 = vld [vmem:[#allocation14 + $0x148] ss:$16 sps:$4 sm:$0xff]  }
0x102f   :  { %v7347_v38 = vsel %vm3477_vm5, %v7345_v37, %v18243_v11  ;;  %v7346_v53 = vsel %vm3477_vm5, %v7344_v56, %v18242_v30  ;;  %v18534_v11 = vld [vmem:[#allocation14 + $0x180] ss:$16 sps:$4 sm:$0xff]   ;;  %v18537_v30 = vld [vmem:[#allocation14 + $0x188] ss:$16 sps:$4 sm:$0xff]   ;;  %v18554_v56 = vld [vmem:[#allocation14 + $0x1e4] ss:$16 sps:$4 sm:$0xff]  }
0x1030   :  { %v18246_v23 = vpop.permute.xlu0 %18245  ;;  %v18549_v37 = vld [vmem:[#allocation14 + $0x1c8] ss:$16 sps:$4 sm:$0xff]  }
0x1031   :  { %v18248_v44 = vunpack.i.h.bf16 %v18246_v23  ;;  %v18247_v34 = vunpack.i.l.bf16 %v18246_v23  ;;  %v18530_v23 = vld [vmem:[#allocation14 + $0x164] ss:$16 sps:$4 sm:$0xff]  }
0x1033   :  { %v7349_v54 = vsel %vm3480_vm6, %v7347_v38, %v18248_v44  ;;  %v7348_v55 = vsel %vm3480_vm6, %v7346_v53, %v18247_v34  ;;  %v18542_v44 = vld [vmem:[#allocation14 + $0x1a4] ss:$16 sps:$4 sm:$0xff]   ;;  %v18545_v34 = vld [vmem:[#allocation14 + $0x1ac] ss:$16 sps:$4 sm:$0xff]   ;;  %v18555_v38 = vld [vmem:[#allocation14 + $0x1e8] ss:$16 sps:$4 sm:$0xff]  }
0x1034   :  { %v18251_v3 = vpop.permute.xlu1 %18250  ;;  %v18558_v53 = vld [vmem:[#allocation17 + $0x140] sm:$0xff]  }
0x1035   :  { %v18253_v45 = vunpack.i.h.bf16 %v18251_v3  ;;  %v18252_v17 = vunpack.i.l.bf16 %v18251_v3  ;;  %v18539_v3 = vld [vmem:[#allocation14 + $0x18c] ss:$16 sps:$4 sm:$0xff]  }
0x1037   :  { %v7351_v36 = vsel %vm3483_vm7, %v7349_v54, %v18253_v45  ;;  %v7350_v58 = vsel %vm3483_vm7, %v7348_v55, %v18252_v17  ;;  %v18551_v45 = vld [vmem:[#allocation14 + $0x1cc] ss:$16 sps:$4 sm:$0xff]   ;;  %v18546_v17 = vld [vmem:[#allocation14 + $0x1c0] ss:$16 sps:$4 sm:$0xff]  }
0x1038   :  { %v18256_v63 = vpop.permute.xlu0 %18255  ;;  %v18559_v54 = vld [vmem:[#allocation17 + $0x1c0] sm:$0xff]  }
0x1039   :  { %v18258_v41 = vunpack.i.h.bf16 %v18256_v63  ;;  %v18257_v15 = vunpack.i.l.bf16 %v18256_v63  ;;  %v18540_v63 = vld [vmem:[#allocation14 + $0x1a0] ss:$16 sps:$4 sm:$0xff]  }
0x103b   :  { %v7353_v18 = vsel %vm3486_vm8, %v7351_v36, %v18258_v41  ;;  %v7352_v61 = vsel %vm3486_vm8, %v7350_v58, %v18257_v15  ;;  %v18557_v41 = vld [vmem:[#allocation14 + $0x1ec] ss:$16 sps:$4 sm:$0xff]   ;;  %v18552_v15 = vld [vmem:[#allocation14 + $0x1e0] ss:$16 sps:$4 sm:$0xff]  }
0x103c   :  { %v18261_v6 = vpop.permute.xlu1 %18260 }
0x103d   :  { %v18263_v16 = vunpack.i.h.bf16 %v18261_v6  ;;  %v18262_v19 = vunpack.i.l.bf16 %v18261_v6 }
0x103f   :  { %v7355_v50 = vsel %vm3489_vm9, %v7353_v18, %v18263_v16  ;;  %v7354_v26 = vsel %vm3489_vm9, %v7352_v61, %v18262_v19 }
0x1040   :  { %v7356_v2 = vpack.c.bf16 %v7355_v50, %v7354_v26 }
0x1042   :  { %17758 = vmatmul.mubr.bf16.vlgmr.msra.gmra.mrb[72].mxu1 %v7356_v2 }
0x1043   :  { %7811 = vmatprep.mubr.bf16.mxu1 %v19602_v52 }
0x1115   :  { %v7464_v20 = vpop.f32.mrb[72].mxu1 }
0x1116   :  { %v7465_v33 = vadd.f32 %v16428_v51, %v7464_v20  ;;  %v17759_v39 = vpop.f32.mrb[73].mxu1 }
0x1117   :  { %v7467_v24 = vpop.f32.mrb[74].mxu1 }
0x1118   :  { %v20961_v48 = vadd.f32 %v7465_v33, %v20509_v28  ;;  %v7468_v47 = vadd.f32 %v16428_v51, %v7467_v24  ;;  %v17760_v13 = vpop.f32.mrb[75].mxu1  ;;  %v18515_v28 = vld [vmem:[#allocation14 + $0x10c] ss:$16 sps:$4 sm:$0xff]  }
0x1119   :  { %7779 = vmatprep.subr.bf16.mxu1 %v18515_v28  ;;  %v16438_v13 = vld [vmem:[%s22031_s10 + $0x1] ss:$0 sm:$0xff] }
0x111a   :  { %v20964_v49 = vadd.f32 %v7468_v47, %v20511_v12  ;;  %7477 = vadd.xlane.f32.xlu0 %v20961_v48  ;;  %v7483_v60 = vmul.f32 %v20961_v48, %v20961_v48  ;;  %7780 = vmatpush1.bf16.msra.mxu1 %v18513_v40  ;;  %v18518_v12 = vld [vmem:[#allocation14 + $0x124] ss:$16 sps:$4 sm:$0xff]  }
0x111b   :  { %7738 = vmatprep.subr.bf16.mxu0 %v18518_v12  ;;  %7781 = vmatprep.subr.bf16.mxu1 %v18521_v29 }
0x111c   :  { %7479 = vadd.xlane.f32.xlu1 %v20964_v49  ;;  %v7484_v43 = vmul.f32 %v20964_v49, %v20964_v49  ;;  %7739 = vmatpush1.bf16.msra.mxu0 %v18516_v4  ;;  %v18560_v4 = vld [vmem:[#allocation17 + $0x100] sm:$0xff]  }
0x111d   :  { %7740 = vmatprep.subr.bf16.mxu0 %v18524_v57  ;;  %v18562_v57 = vld [vmem:[#allocation17 + $0x148] sm:$0xff]  }
0x111e   :  { %7485 = vadd.xlane.f32.xlu0 %v7483_v60  ;;  %7782 = vmatpush1.bf16.msra.mxu1 %v18519_v32  ;;  %v18561_v32 = vld [vmem:[#allocation17 + $0x180] sm:$0xff]  }
0x111f   :  { %7783 = vmatprep.subr.bf16.mxu1 %v18527_v21  ;;  %v18563_v21 = vld [vmem:[#allocation17 + $0x1c8] sm:$0xff]  }
0x1120   :  { %7741 = vmatpush1.bf16.msra.mxu0 %v18522_v1  ;;  %v18565_v1 = vld [vmem:[#allocation17 + $0x188] sm:$0xff]  }
0x1121   :  { %7742 = vmatprep.subr.bf16.mxu0 %v18530_v23  ;;  %v18567_v23 = vld [vmem:[#allocation17 + $0x1d0] sm:$0xff]  }
0x1122   :  { %7487 = vadd.xlane.f32.xlu0 %v7484_v43  ;;  %7784 = vmatpush1.bf16.msra.mxu1 %v18525_v46  ;;  %v18566_v46 = vld [vmem:[#allocation17 + $0x150] sm:$0xff]  }
0x1123   :  { %7785 = vmatprep.subr.bf16.mxu1 %v18533_v59  ;;  %v18568_v59 = vld [vmem:[#allocation17 + $0x110] sm:$0xff]  }
0x1124   :  { %7743 = vmatpush1.bf16.msra.mxu0 %v18528_v14  ;;  %v18569_v14 = vld [vmem:[#allocation17 + $0x190] sm:$0xff]  }
0x1125   :  { %7744 = vmatprep.subr.bf16.mxu0 %v18536_v62  ;;  %v18571_v62 = vld [vmem:[#allocation17 + $0x1d8] sm:$0xff]  }
0x1126   :  { %7786 = vmatpush1.bf16.msra.mxu1 %v18531_v22  ;;  %v18570_v22 = vld [vmem:[#allocation17 + $0x158] sm:$0xff]  }
0x1127   :  { %7787 = vmatprep.subr.bf16.mxu1 %v18539_v3  ;;  %v18572_v3 = vld [vmem:[#allocation17 + $0x118] sm:$0xff]  }
0x1128   :  { %7745 = vmatpush1.bf16.msra.mxu0 %v18534_v11  ;;  %v18573_v11 = vld [vmem:[#allocation17 + $0x198] sm:$0xff]  }
0x1129   :  { %7746 = vmatprep.subr.bf16.mxu0 %v18542_v44  ;;  %v18575_v44 = vld [vmem:[#allocation17 + $0x1e0] sm:$0xff]  }
0x112a   :  { %7788 = vmatpush1.bf16.msra.mxu1 %v18537_v30  ;;  %v18574_v30 = vld [vmem:[#allocation17 + $0x160] sm:$0xff]  }
0x112b   :  { %7789 = vmatprep.subr.bf16.mxu1 %v18545_v34  ;;  %v18576_v34 = vld [vmem:[#allocation17 + $0x120] sm:$0xff]  }
0x112c   :  { %7747 = vmatpush1.bf16.msra.mxu0 %v18540_v63  ;;  %v18577_v63 = vld [vmem:[#allocation17 + $0x1a0] sm:$0xff]  }
0x112d   :  { %7748 = vmatprep.subr.bf16.mxu0 %v18548_v7  ;;  %v18579_v7 = vld [vmem:[#allocation17 + $0x1e8] sm:$0xff]  }
0x112e   :  { %7790 = vmatpush1.bf16.msra.mxu1 %v18543_v31  ;;  %v18578_v31 = vld [vmem:[#allocation17 + $0x168] sm:$0xff]  }
0x112f   :  { %7791 = vmatprep.subr.bf16.mxu1 %v18551_v45  ;;  %v18580_v45 = vld [vmem:[#allocation17 + $0x128] sm:$0xff]  }
0x1130   :  { %7749 = vmatpush1.bf16.msra.mxu0 %v18546_v17  ;;  %v18581_v17 = vld [vmem:[#allocation17 + $0x1a8] sm:$0xff]  }
0x1131   :  { %7750 = vmatprep.subr.bf16.mxu0 %v18554_v56  ;;  %v18583_v56 = vld [vmem:[#allocation17 + $0x1f0] sm:$0xff]  }
0x1132   :  { %7792 = vmatpush1.bf16.msra.mxu1 %v18549_v37  ;;  %v18582_v37 = vld [vmem:[#allocation17 + $0x170] sm:$0xff]  }
0x1133   :  { %7793 = vmatprep.subr.bf16.mxu1 %v18557_v41  ;;  %v18584_v41 = vld [vmem:[#allocation17 + $0x130] sm:$0xff]  }
0x1134   :  { %7751 = vmatpush1.bf16.msra.mxu0 %v18552_v15  ;;  %v18585_v15 = vld [vmem:[#allocation17 + $0x1b0] sm:$0xff]  }
0x1135   :  { %17059 = vmatprep.subr.bf16.mxu0 %v18558_v53  ;;  %v18587_v53 = vld [vmem:[#allocation17 + $0x1f8] sm:$0xff]  }
0x1136   :  { %7794 = vmatpush1.bf16.msra.mxu1 %v18555_v38  ;;  %v18586_v38 = vld [vmem:[#allocation17 + $0x178] sm:$0xff]  }
0x1137   :  { %17081 = vmatprep.subr.bf16.mxu1 %v18559_v54  ;;  %v18588_v54 = vld [vmem:[#allocation17 + $0x138] sm:$0xff]  }
0x11a7   :  { %v7478_v55 = vpop.xlane.xlu0 %7477 }
0x11a8   :  { %v7481_v6 = vmul.f32 0.0078125, %v7478_v55  ;;  %v18589_v55 = vld [vmem:[#allocation17 + $0x1b8] sm:$0xff]  }
0x11a9   :  { %v7480_v36 = vpop.xlane.xlu1 %7479 }
0x11aa   :  { %v7491_v16 = vmul.f32 %v7481_v6, %v7481_v6  ;;  %v7482_v19 = vmul.f32 0.0078125, %v7480_v36  ;;  %v7495_v39 = vsub.f32 %v20961_v48, %v7481_v6  ;;  %v7554_v6 = vld [vmem:[#allocation16 + $0x4] sm:$0xf] }
0x11ab   :  { %v7486_v58 = vpop.xlane.xlu0 %7485  ;;  %v7559_v36 = vrot.slane %v7554_v6, %v19993_v8 }
0x11ac   :  { %v7489_v18 = vmul.f32 0.0078125, %v7486_v58  ;;  %v7492_v26 = vmul.f32 %v7482_v19, %v7482_v19  ;;  %v7496_v60 = vsub.f32 %v20964_v49, %v7482_v19  ;;  %v18564_v49 = vld [vmem:[#allocation17 + $0x108] sm:$0xff]   ;;  %v7567_v58 = vrot.slane %v7554_v6, %v20038_v27 }
0x11ad   :  { %v7571_v19 = vrot.slane %v7554_v6, %v20477_v42 }
0x11ae   :  { %v7493_v61 = vsub.f32 %v7489_v18, %v7491_v16  ;;  %v7563_v16 = vrot.slane %v7554_v6, %v19999_v10 }
0x11af   :  { %v7488_v50 = vpop.xlane.xlu0 %7487 }
0x11b0   :  { %v7497_v2 = vadd.f32 1e-12, %v7493_v61  ;;  %v7490_v51 = vmul.f32 0.0078125, %v7488_v50 }
0x11b2   :  { %19006 = vrsqrt.f32 %v7497_v2  ;;  %v7494_v20 = vsub.f32 %v7490_v51, %v7492_v26 }
0x11b4   :  { %v7498_v33 = vadd.f32 1e-12, %v7494_v20 }
0x11b6   :  { %19008 = vrsqrt.f32 %v7498_v33 }
0x11bc   :  { %v19007_v24 = vpop.eup %19006 }
0x11bd   :  { %v7501_v47 = vmul.f32 %v19007_v24, %v7495_v39 }
0x11bf   :  { %v7509_v28 = vmul.f32 %v16438_v13, %v7501_v47 }
0x11c0   :  { %v19009_v43 = vpop.eup %19008 }
0x11c1   :  { %v7502_v35 = vmul.f32 %v19009_v43, %v7496_v60  ;;  %v20977_v12 = vadd.f32 %v16439_v25, %v7509_v28 }
0x11c3   :  { %v7510_v40 = vmul.f32 %v16438_v13, %v7502_v35 }
0x11c5   :  { %v20979_v29 = vadd.f32 %v16439_v25, %v7510_v40 }
0x11c7   :  { %v7519_v48 = vpack.c.bf16 %v20979_v29, %v20977_v12 }
0x11c9   :  { %7769 = vmatmul.mubr.bf16.vlgmr.msra.gmra.mrb[100].mxu0 %v7519_v48  ;;  %7812 = vmatmul.mubr.bf16.vlgmr.msra.gmra.mrb[76].mxu1 %v7519_v48 }
0x11ca   :  { %17060 = vmatpush3.bf16.msra.mxu0 %v18560_v4  ;;  %17082 = vmatpush3.bf16.msra.mxu1 %v18561_v32 }
0x11cb   :  { %17061 = vmatprep.subr.bf16.mxu0 %v18562_v57  ;;  %17083 = vmatprep.subr.bf16.mxu1 %v18563_v21 }
0x11ce   :  { %17062 = vmatpush3.bf16.msra.mxu0 %v18564_v49  ;;  %17084 = vmatpush3.bf16.msra.mxu1 %v18565_v1 }
0x11cf   :  { %17063 = vmatprep.subr.bf16.mxu0 %v18566_v46  ;;  %17085 = vmatprep.subr.bf16.mxu1 %v18567_v23 }
0x11d2   :  { %17064 = vmatpush3.bf16.msra.mxu0 %v18568_v59  ;;  %17086 = vmatpush3.bf16.msra.mxu1 %v18569_v14 }
0x11d3   :  { %17065 = vmatprep.subr.bf16.mxu0 %v18570_v22  ;;  %17087 = vmatprep.subr.bf16.mxu1 %v18571_v62 }
0x11d6   :  { %17066 = vmatpush3.bf16.msra.mxu0 %v18572_v3  ;;  %17088 = vmatpush3.bf16.msra.mxu1 %v18573_v11 }
0x11d7   :  { %17067 = vmatprep.subr.bf16.mxu0 %v18574_v30  ;;  %17089 = vmatprep.subr.bf16.mxu1 %v18575_v44 }
0x11da   :  { %17068 = vmatpush3.bf16.msra.mxu0 %v18576_v34  ;;  %17090 = vmatpush3.bf16.msra.mxu1 %v18577_v63 }
0x11db   :  { %17069 = vmatprep.subr.bf16.mxu0 %v18578_v31  ;;  %17091 = vmatprep.subr.bf16.mxu1 %v18579_v7 }
0x11de   :  { %17070 = vmatpush3.bf16.msra.mxu0 %v18580_v45  ;;  %17092 = vmatpush3.bf16.msra.mxu1 %v18581_v17 }
0x11df   :  { %17071 = vmatprep.subr.bf16.mxu0 %v18582_v37  ;;  %17093 = vmatprep.subr.bf16.mxu1 %v18583_v56 }
0x11e2   :  { %17072 = vmatpush3.bf16.msra.mxu0 %v18584_v41  ;;  %17094 = vmatpush3.bf16.msra.mxu1 %v18585_v15 }
0x11e3   :  { %17073 = vmatprep.subr.bf16.mxu0 %v18586_v38  ;;  %17095 = vmatprep.subr.bf16.mxu1 %v18587_v53 }
0x11e6   :  { %17074 = vmatpush3.bf16.msra.mxu0 %v18588_v54  ;;  %17096 = vmatpush3.bf16.msra.mxu1 %v18589_v55 }
0x11e7   :  { %17761 = vmatprep.subr.bf16.mxu1 %v19600_v0 }
0x129c   :  { %v7770_v18 = vpop.f32.mrb[100].mxu0  ;;  %v7813_v61 = vpop.f32.mrb[76].mxu1 }
0x129d   :  { %v7771_v50 = vadd.f32 %v7770_v18, %v7559_v36  ;;  %v7814_v26 = vadd.f32 %v7813_v61, %v7567_v58  ;;  %v7772_v2 = vpop.f32.mrb[101].mxu0  ;;  %v7815_v51 = vpop.f32.mrb[77].mxu1 }
0x129e   :  { %v7773_v20 = vadd.f32 %v7772_v2, %v7563_v16  ;;  %v7816_v33 = vadd.f32 %v7815_v51, %v7571_v19  ;;  %v7774_v39 = vpop.f32.mrb[102].mxu0  ;;  %v7817_v24 = vpop.f32.mrb[78].mxu1 }
0x129f   :  { %v7830_v47 = vmul.f32 0.70710677, %v7771_v50  ;;  %v7832_v13 = vmul.f32 0.70710677, %v7814_v26  ;;  %v7775_v35 = vadd.f32 %v7774_v39, %v7559_v36  ;;  %v7818_v28 = vadd.f32 %v7817_v24, %v7567_v58  ;;  %v7776_v25 = vpop.f32.mrb[103].mxu0  ;;  %v7819_v40 = vpop.f32.mrb[79].mxu1 }
0x12a0   :  { %v7831_v60 = vmul.f32 0.70710677, %v7773_v20  ;;  %v7833_v43 = vmul.f32 0.70710677, %v7816_v33  ;;  %v7777_v4 = vadd.f32 %v7776_v25, %v7563_v16  ;;  %v7820_v32 = vadd.f32 %v7819_v40, %v7571_v19 }
0x12a1   :  { %19010 = verf.f32 %v7830_v47  ;;  %v7834_v48 = vmul.f32 0.70710677, %v7775_v35  ;;  %v7836_v57 = vmul.f32 0.70710677, %v7818_v28  ;;  %v7822_v62 = vmul.f32 0.5, %v7771_v50 }
0x12a2   :  { %19012 = verf.f32 %v7832_v13  ;;  %v7835_v21 = vmul.f32 0.70710677, %v7777_v4  ;;  %v7837_v49 = vmul.f32 0.70710677, %v7820_v32  ;;  %v7824_v3 = vmul.f32 0.5, %v7814_v26 }
0x12a3   :  { %19014 = verf.f32 %v7831_v60  ;;  %v7823_v44 = vmul.f32 0.5, %v7773_v20  ;;  %v7826_v63 = vmul.f32 0.5, %v7775_v35  ;;  %v7825_v45 = vmul.f32 0.5, %v7816_v33  ;;  %v18590_v20 = vld [vmem:[#allocation8 + $0x180] ss:$12 sps:$4 sm:$0xff]  }
0x12a4   :  { %19016 = verf.f32 %v7833_v43  ;;  %v7828_v37 = vmul.f32 0.5, %v7818_v28  ;;  %v7827_v53 = vmul.f32 0.5, %v7777_v4  ;;  %v7829_v36 = vmul.f32 0.5, %v7820_v32  ;;  %v18592_v33 = vld [vmem:[#allocation8 + $0x184] ss:$12 sps:$4 sm:$0xff]  }
0x12a5   :  { %19018 = verf.f32 %v7834_v48  ;;  %8441 = vmatprep.subr.bf16.mxu0 %v18592_v33  ;;  %v16472_v47 = vld [vmem:[#allocation19 + $0x1] ss:$0 sm:$0xff] }
0x12a6   :  { %19020 = verf.f32 %v7836_v57 }
0x12a7   :  { %19022 = verf.f32 %v7835_v21 }
0x12a8   :  { %19024 = verf.f32 %v7837_v49 }
0x12ab   :  { %v19011_v1 = vpop.eup %19010 }
0x12ac   :  { %v19013_v46 = vpop.eup %19012  ;;  %v7846_v14 = vadd.f32 1.0, %v19011_v1 }
0x12ad   :  { %v19015_v23 = vpop.eup %19014  ;;  %v7848_v11 = vadd.f32 1.0, %v19013_v46 }
0x12ae   :  { %v19017_v59 = vpop.eup %19016  ;;  %v7847_v34 = vadd.f32 1.0, %v19015_v23  ;;  %v7854_v15 = vmul.f32 %v7846_v14, %v7822_v62  ;;  %v18596_v62 = vld [vmem:[#allocation8 + $0x19c] ss:$12 sps:$4 sm:$0xff]  }
0x12af   :  { %v19019_v22 = vpop.eup %19018  ;;  %v7849_v17 = vadd.f32 1.0, %v19017_v59  ;;  %v7856_v55 = vmul.f32 %v7848_v11, %v7824_v3  ;;  %v18597_v3 = vld [vmem:[#allocation8 + $0x1a0] ss:$12 sps:$4 sm:$0xff]   ;;  %v18598_v11 = vld [vmem:[#allocation8 + $0x1b0] ss:$12 sps:$4 sm:$0xff]  }
0x12b0   :  { %v19021_v30 = vpop.eup %19020  ;;  %v7850_v31 = vadd.f32 1.0, %v19019_v22  ;;  %v7855_v16 = vmul.f32 %v7847_v34, %v7823_v44  ;;  %v18593_v22 = vld [vmem:[#allocation8 + $0x188] ss:$12 sps:$4 sm:$0xff]   ;;  %v18604_v44 = vld [vmem:[#allocation8 + $0x1cc] ss:$12 sps:$4 sm:$0xff]  }
0x12b1   :  { %v19023_v7 = vpop.eup %19022  ;;  %v7852_v56 = vadd.f32 1.0, %v19021_v30  ;;  %v7857_v61 = vmul.f32 %v7849_v17, %v7825_v45  ;;  %v18601_v30 = vld [vmem:[#allocation8 + $0x1b8] ss:$12 sps:$4 sm:$0xff]   ;;  %v18602_v34 = vld [vmem:[#allocation8 + $0x1c8] ss:$12 sps:$4 sm:$0xff]  }
0x12b2   :  { %v19025_v41 = vpop.eup %19024  ;;  %v7858_v38 = vmul.f32 %v7850_v31, %v7826_v63  ;;  %v7851_v54 = vadd.f32 1.0, %v19023_v7  ;;  %v18605_v63 = vld [vmem:[#allocation8 + $0x1d0] ss:$12 sps:$4 sm:$0xff]   ;;  %v18606_v7 = vld [vmem:[#allocation8 + $0x1e0] ss:$12 sps:$4 sm:$0xff]  }
0x12b3   :  { %v7860_v6 = vmul.f32 %v7852_v56, %v7828_v37  ;;  %v7853_v58 = vadd.f32 1.0, %v19025_v41  ;;  %v18608_v31 = vld [vmem:[#allocation8 + $0x1e4] ss:$12 sps:$4 sm:$0xff]   ;;  %v18609_v45 = vld [vmem:[#allocation8 + $0x1e8] ss:$12 sps:$4 sm:$0xff]  }
0x12b4   :  { %v7862_v19 = vpack.c.bf16 %v7858_v38, %v7854_v15  ;;  %v7859_v18 = vmul.f32 %v7851_v54, %v7827_v53  ;;  %v18612_v17 = vld [vmem:[#allocation8 + $0x1fc] ss:$12 sps:$4 sm:$0xff]   ;;  %v18610_v37 = vld [vmem:[#allocation8 + $0x1f8] ss:$12 sps:$4 sm:$0xff]   ;;  %v18613_v56 = vld [vmem:[#allocation8 + $0x200] ss:$12 sps:$4 sm:$0xff]  }
0x12b5   :  { %v7864_v50 = vpack.c.bf16 %v7860_v6, %v7856_v55  ;;  %v7861_v26 = vmul.f32 %v7853_v58, %v7829_v36  ;;  %v18616_v41 = vld [vmem:[#allocation8 + $0x214] ss:$12 sps:$4 sm:$0xff]   ;;  %v18614_v15 = vld [vmem:[#allocation8 + $0x210] ss:$12 sps:$4 sm:$0xff]   ;;  %v18617_v38 = vld [vmem:[#allocation8 + $0x218] ss:$12 sps:$4 sm:$0xff]  }
0x12b6   :  { %v7863_v2 = vpack.c.bf16 %v7859_v18, %v7855_v16  ;;  %v18620_v53 = vld [vmem:[#allocation8 + $0x22c] ss:$12 sps:$4 sm:$0xff]   ;;  %v18618_v54 = vld [vmem:[#allocation8 + $0x228] ss:$12 sps:$4 sm:$0xff]   ;;  %v18621_v55 = vld [vmem:[#allocation8 + $0x230] ss:$12 sps:$4 sm:$0xff]  }
0x12b7   :  { %v7865_v51 = vpack.c.bf16 %v7861_v26, %v7857_v61 }
0x12b8   :  { %8163 = vmatprep.mubr.bf16.mxu0 %v7863_v2 }
0x12b9   :  { %8204 = vmatprep.mubr.bf16.mxu1 %v7865_v51  ;;  %8164 = vmatmul.mubr.bf16.vlgmr.msra.gmra.mrb[104].mxu0 %v7862_v19 }
0x12ba   :  { %8205 = vmatmul.mubr.bf16.vlgmr.msra.gmra.mrb[80].mxu1 %v7864_v50  ;;  %8473 = vmatprep.mubr.bf16.mxu0 %v19602_v52 }
0x12bb   :  { %17777 = vmatprep.mubr.msk.bf16.mxu1 %vm19601_vm0, %v19600_v0  ;;  %8442 = vmatpush1.bf16.msra.mxu0 %v18590_v20 }
0x12bc   :  { %17762 = vmatpush3.bf16.msra.mxu1 %v18593_v22  ;;  %8443 = vmatprep.subr.bf16.mxu0 %v18596_v62 }
0x12bd   :  { %17763 = vmatprep.subr.bf16.mxu1 %v19600_v0 }
0x12c0   :  { %17764 = vmatpush3.bf16.msra.mxu1 %v18597_v3 }
0x12c1   :  { %17765 = vmatprep.subr.bf16.mxu1 %v19600_v0 }
0x12c4   :  { %17766 = vmatpush3.bf16.msra.mxu1 %v18601_v30 }
0x12c5   :  { %17767 = vmatprep.subr.bf16.mxu1 %v19600_v0 }
0x12c8   :  { %17768 = vmatpush3.bf16.msra.mxu1 %v18605_v63 }
0x12c9   :  { %17769 = vmatprep.subr.bf16.mxu1 %v19600_v0 }
0x12cc   :  { %17770 = vmatpush3.bf16.msra.mxu1 %v18609_v45 }
0x12cd   :  { %17771 = vmatprep.subr.bf16.mxu1 %v19600_v0 }
0x12d0   :  { %17772 = vmatpush3.bf16.msra.mxu1 %v18613_v56 }
0x12d1   :  { %17773 = vmatprep.subr.bf16.mxu1 %v19600_v0 }
0x12d4   :  { %17774 = vmatpush3.bf16.msra.mxu1 %v18617_v38 }
0x12d5   :  { %17775 = vmatprep.subr.bf16.mxu1 %v19600_v0 }
0x12d8   :  { %17776 = vmatpush3.bf16.msra.mxu1 %v18621_v55 }
0x12d9   :  { %17821 = vmatprep.subr.mxu1 %v19600_v0 }
0x138c   :  { %v17075_v39 = vpop.f32.mrb[104].mxu0 }
0x138d   :  { %v17097_v24 = vpop.f32.mrb[80].mxu1  ;;  %v17076_v13 = vpop.f32.mrb[105].mxu0 }
0x138e   :  { %v17077_v60 = vadd.f32 %v17076_v13, %v17075_v39  ;;  %v17098_v43 = vpop.f32.mrb[81].mxu1  ;;  %v17078_v35 = vpop.f32.mrb[106].mxu0  ;;  %v16505_v13 = vld [vmem:[#allocation20 + $0x1] ss:$0 sm:$0xff] }
0x138f   :  { %v17099_v28 = vadd.f32 %v17098_v43, %v17097_v24  ;;  %v17100_v25 = vpop.f32.mrb[82].mxu1  ;;  %v17079_v40 = vpop.f32.mrb[107].mxu0 }
0x1390   :  { %v8166_v4 = vadd.f32 %v17077_v60, %v16472_v47  ;;  %v17080_v32 = vadd.f32 %v17079_v40, %v17078_v35  ;;  %v17101_v48 = vpop.f32.mrb[83].mxu1  ;;  %v16506_v40 = vld [vmem:[#allocation22 + $0x1] ss:$0 sm:$0xff] }
0x1391   :  { %v17102_v57 = vadd.f32 %v17101_v48, %v17100_v25 }
0x1392   :  { %v8207_v21 = vadd.f32 %v17099_v28, %v8166_v4  ;;  %v8169_v49 = vadd.f32 %v17080_v32, %v16472_v47 }
0x1394   :  { %v8210_v1 = vadd.f32 %v17102_v57, %v8169_v49  ;;  %v20992_v46 = vadd.f32 %v8207_v21, %v20977_v12  ;;  %v18594_v12 = vld [vmem:[#allocation8 + $0x198] ss:$12 sps:$4 sm:$0xff]   ;;  %v16507_v21 = vld [vmem:[%s22028_s7 + $0x6] sm:$0x7] }
0x1395   :  { %8444 = vmatpush1.bf16.msra.mxu0 %v18594_v12  ;;  %v8301_v49 = vrot.slane %v16507_v21, %v19993_v8 }
0x1396   :  { %8219 = vadd.xlane.f32.xlu1 %v20992_v46  ;;  %v20996_v23 = vadd.f32 %v8210_v1, %v20979_v29  ;;  %v8225_v59 = vmul.f32 %v20992_v46, %v20992_v46  ;;  %v18600_v29 = vld [vmem:[#allocation8 + $0x1b4] ss:$12 sps:$4 sm:$0xff]   ;;  %v8305_v1 = vrot.slane %v16507_v21, %v19999_v10 }
0x1397   :  { %8445 = vmatprep.subr.bf16.mxu0 %v18600_v29 }
0x1398   :  { %8221 = vadd.xlane.f32.xlu0 %v20996_v23  ;;  %v8226_v14 = vmul.f32 %v20996_v23, %v20996_v23 }
0x1399   :  { %8446 = vmatpush1.bf16.msra.mxu0 %v18598_v11 }
0x139a   :  { %8227 = vadd.xlane.f32.xlu1 %v8225_v59  ;;  %8447 = vmatprep.subr.bf16.mxu0 %v18604_v44 }
0x139c   :  { %8229 = vadd.xlane.f32.xlu0 %v8226_v14 }
0x139d   :  { %8448 = vmatpush1.bf16.msra.mxu0 %v18602_v34 }
0x139e   :  { %8449 = vmatprep.subr.bf16.mxu0 %v18608_v31  ;;  %v8309_v31 = vrot.slane %v16507_v21, %v20038_v27 }
0x13a1   :  { %8450 = vmatpush1.bf16.msra.mxu0 %v18606_v7 }
0x13a2   :  { %8451 = vmatprep.subr.bf16.mxu0 %v18612_v17 }
0x13a5   :  { %8452 = vmatpush1.bf16.msra.mxu0 %v18610_v37 }
0x13a6   :  { %8453 = vmatprep.subr.bf16.mxu0 %v18616_v41 }
0x13a9   :  { %8454 = vmatpush1.bf16.msra.mxu0 %v18614_v15 }
0x13aa   :  { %8455 = vmatprep.subr.bf16.mxu0 %v18620_v53 }
0x13ad   :  { %8456 = vmatpush1.bf16.msra.mxu0 %v18618_v54 }
0x13ae   :  { %17781 = vmatprep.subr.mxu0 %v19600_v0 }
0x1423   :  { %v8220_v6 = vpop.xlane.xlu1 %8219 }
0x1424   :  { %v8223_v36 = vmul.f32 0.0078125, %v8220_v6 }
0x1425   :  { %v8222_v58 = vpop.xlane.xlu0 %8221 }
0x1426   :  { %v8224_v16 = vmul.f32 0.0078125, %v8222_v58  ;;  %v8233_v18 = vmul.f32 %v8223_v36, %v8223_v36  ;;  %v8237_v24 = vsub.f32 %v20992_v46, %v8223_v36 }
0x1427   :  { %v8228_v19 = vpop.xlane.xlu1 %8227 }
0x1428   :  { %v8231_v61 = vmul.f32 0.0078125, %v8228_v19  ;;  %v8234_v26 = vmul.f32 %v8224_v16, %v8224_v16  ;;  %v8238_v60 = vsub.f32 %v20996_v23, %v8224_v16 }
0x1429   :  { %v8230_v50 = vpop.xlane.xlu0 %8229 }
0x142a   :  { %v8235_v2 = vsub.f32 %v8231_v61, %v8233_v18  ;;  %v8232_v51 = vmul.f32 0.0078125, %v8230_v50 }
0x142c   :  { %v8239_v20 = vadd.f32 1e-12, %v8235_v2  ;;  %v8236_v33 = vsub.f32 %v8232_v51, %v8234_v26 }
0x142e   :  { %19026 = vrsqrt.f32 %v8239_v20  ;;  %v8240_v39 = vadd.f32 1e-12, %v8236_v33 }
0x1430   :  { %19028 = vrsqrt.f32 %v8240_v39 }
0x1438   :  { %v19027_v47 = vpop.eup %19026 }
0x1439   :  { %v8243_v43 = vmul.f32 %v19027_v47, %v8237_v24 }
0x143a   :  { %v19029_v35 = vpop.eup %19028 }
0x143b   :  { %v8244_v28 = vmul.f32 %v19029_v35, %v8238_v60  ;;  %v8251_v25 = vmul.f32 %v16505_v13, %v8243_v43 }
0x143d   :  { %v8252_v4 = vmul.f32 %v16505_v13, %v8244_v28  ;;  %v21014_v32 = vadd.f32 %v16506_v40, %v8251_v25 }
0x143f   :  { %v21016_v48 = vadd.f32 %v16506_v40, %v8252_v4 }
0x1441   :  { %v8261_v57 = vpack.c.bf16 %v21016_v48, %v21014_v32 }
0x1443   :  { %8474 = vmatmul.mubr.bf16.vlgmr.msra.gmra.mrb[108].mxu0 %v8261_v57  ;;  %17778 = vmatmul.mubr.bf16.vlgmr.msra.gmra.mrb[84].mxu1 %v8261_v57 }
0x1444   :  { %17783 = vmatprep.mubr.msk.f32.mxu0 %vm19601_vm0, %v19600_v0  ;;  %17823 = vmatprep.mubr.msk.f32.mxu1 %vm19601_vm0, %v19600_v0 }
0x1516   :  { %v8475_v46 = vpop.f32.mrb[108].mxu0  ;;  %v8518_v23 = vpop.f32.mrb[84].mxu1 }
0x1517   :  { %v8477_v59 = vpop.f32.mrb[109].mxu0  ;;  %v17779_v14 = vpop.f32.mrb[85].mxu1  ;;  %v8476_v22 = vadd.f32 %v8475_v46, %v8301_v49  ;;  %v21072_v45 = vadd.f32 %v8518_v23, %v8309_v31 }
0x1518   :  { %v8478_v62 = vadd.f32 %v8477_v59, %v8305_v1  ;;  %v8479_v12 = vpop.f32.mrb[110].mxu0  ;;  %v8521_v3 = vpop.f32.mrb[86].mxu1 }
0x1519   :  { %v8481_v29 = vpop.f32.mrb[111].mxu0  ;;  %v17780_v11 = vpop.f32.mrb[87].mxu1  ;;  %v8525_v30 = vmul.f32 0.25, %v8476_v22  ;;  %v8480_v44 = vadd.f32 %v8479_v12, %v8301_v49  ;;  %v21066_v7 = vadd.f32 %v8521_v3, %v8309_v31 }
0x151a   :  { %8563 = vrot.lane.b32.xlu0 %v8478_v62, %s19604_s26  ;;  %8559 = vrot.lane.b32.xlu1 %v8478_v62, %s19603_s25  ;;  %v8482_v34 = vadd.f32 %v8481_v29, %v8305_v1 }
0x151b   :  { %17782 = vmatpush3.xpose.msk.msra.mxu0 %vm887_vm3, %v8478_v62  ;;  %v8526_v63 = vmul.f32 0.25, %v8480_v44 }
0x151c   :  { %17786 = vmatprep.subr.mxu0 %v19600_v0 }
0x151e   :  { %17784 = vmatmul.mubr.msk.f32.vlgmr.msra.gmra.mrb[112].mxu0 %vm887_vm3, %v8525_v30  ;;  %8567 = vrot.lane.b32.xlu0 %v8478_v62, %s19605_s4 }
0x151f   :  { %8533 = vrot.lane.b32.xlu1 %v8525_v30, %s19604_s26  ;;  %17787 = vmatpush3.xpose.msk.msra.mxu0 %vm887_vm3, %v8482_v34 }
0x1520   :  { %17788 = vmatprep.mubr.msk.f32.mxu0 %vm19601_vm0, %v19600_v0  ;;  %17791 = vmatprep.subr.mxu0 %v19600_v0 }
0x1522   :  { %17789 = vmatmul.mubr.msk.f32.vlgmr.msra.gmra.mrb[114].mxu0 %vm887_vm3, %v8526_v63  ;;  %8571 = vrot.lane.b32.xlu0 %v8478_v62, %s19587_s30 }
0x1523   :  { %8537 = vrot.lane.b32.xlu1 %v8525_v30, %s19605_s4  ;;  %17793 = vmatprep.mubr.msk.f32.mxu0 %vm19601_vm0, %v19600_v0 }
0x1526   :  { %8529 = vrot.lane.b32.xlu0 %v8525_v30, %s19603_s25 }
0x1527   :  { %8561 = vrot.lane.b32.xlu1 %v8482_v34, %s19603_s25 }
0x152a   :  { %8541 = vrot.lane.b32.xlu0 %v8525_v30, %s19587_s30 }
0x152b   :  { %8573 = vrot.lane.b32.xlu1 %v8482_v34, %s19587_s30 }
0x152e   :  { %8565 = vrot.lane.b32.xlu0 %v8482_v34, %s19604_s26 }
0x152f   :  { %8577 = vrot.lane.b32.xlu1 %v8482_v34, %s19606_s27 }
0x1532   :  { %8575 = vrot.lane.b32.xlu0 %v8478_v62, %s19606_s27 }
0x1533   :  { %8531 = vrot.lane.b32.xlu1 %v8526_v63, %s19603_s25 }
0x1536   :  { %8569 = vrot.lane.b32.xlu0 %v8482_v34, %s19605_s4 }
0x1537   :  { %8581 = vrot.lane.b32.xlu1 %v8482_v34, %s19607_s16 }
0x153a   :  { %8545 = vrot.lane.b32.xlu0 %v8525_v30, %s19606_s27 }
0x153b   :  { %8535 = vrot.lane.b32.xlu1 %v8526_v63, %s19604_s26 }
0x153e   :  { %8579 = vrot.lane.b32.xlu0 %v8478_v62, %s19607_s16 }
0x153f   :  { %8585 = vrot.lane.b32.xlu1 %v8482_v34, %s22057_s8 }
0x1542   :  { %8549 = vrot.lane.b32.xlu0 %v8525_v30, %s19607_s16 }
0x1543   :  { %8539 = vrot.lane.b32.xlu1 %v8526_v63, %s19605_s4 }
0x1546   :  { %8583 = vrot.lane.b32.xlu0 %v8478_v62, %s22057_s8 }
0x1547   :  { %8543 = vrot.lane.b32.xlu1 %v8526_v63, %s19587_s30 }
0x154a   :  { %8553 = vrot.lane.b32.xlu0 %v8525_v30, %s22057_s8 }
0x154b   :  { %8547 = vrot.lane.b32.xlu1 %v8526_v63, %s19606_s27 }
0x154e   :  { %8591 = vrot.lane.b32.xlu0 %v21066_v7, %s19603_s25 }
0x154f   :  { %8551 = vrot.lane.b32.xlu1 %v8526_v63, %s19607_s16 }
0x1553   :  { %8555 = vrot.lane.b32.xlu1 %v8526_v63, %s22057_s8 }
0x1557   :  { %8589 = vrot.lane.b32.xlu1 %v21072_v45, %s19603_s25 }
0x155b   :  { %8595 = vrot.lane.b32.xlu1 %v21072_v45, %s19604_s26 }
0x158c   :  { %v8564_v17 = vpop.permute.xlu0 %8563  ;;  %v8560_v37 = vpop.permute.xlu1 %8559 }
0x158d   :  { %17792 = vmatpush3.xpose.msk.msra.mxu0 %vm887_vm3, %v8560_v37 }
0x158e   :  { %17796 = vmatprep.subr.mxu0 %v19600_v0 }
0x1590   :  { %v8568_v56 = vpop.permute.xlu0 %8567 }
0x1591   :  { %v8534_v41 = vpop.permute.xlu1 %8533 }
0x1594   :  { %v8572_v15 = vpop.permute.xlu0 %8571 }
0x1595   :  { %v8538_v38 = vpop.permute.xlu1 %8537  ;;  %17822 = vmatpush3.xpose.msk.msra.mxu1 %vm887_vm3, %v8572_v15 }
0x1596   :  { %17831 = vmatprep.subr.mxu1 %v19600_v0 }
0x1598   :  { %v8530_v53 = vpop.permute.xlu0 %8529 }
0x1599   :  { %v8562_v54 = vpop.permute.xlu1 %8561  ;;  %17794 = vmatmul.mubr.msk.f32.vlgmr.msra.gmra.mrb[116].mxu0 %vm887_vm3, %v8530_v53 }
0x159a   :  { %17797 = vmatpush3.xpose.msk.msra.mxu0 %vm887_vm3, %v8562_v54  ;;  %17798 = vmatprep.mubr.msk.f32.mxu0 %vm19601_vm0, %v19600_v0 }
0x159b   :  { %17801 = vmatprep.subr.mxu0 %v19600_v0 }
0x159c   :  { %v8542_v55 = vpop.permute.xlu0 %8541 }
0x159d   :  { %v8574_v6 = vpop.permute.xlu1 %8573  ;;  %17824 = vmatmul.mubr.msk.f32.vlgmr.msra.gmra.mrb[88].mxu1 %vm887_vm3, %v8542_v55 }
0x159e   :  { %17833 = vmatprep.mubr.msk.f32.mxu1 %vm19601_vm0, %v19600_v0 }
0x15a0   :  { %v8566_v36 = vpop.permute.xlu0 %8565 }
0x15a1   :  { %v8578_v58 = vpop.permute.xlu1 %8577 }
0x15a4   :  { %v8576_v16 = vpop.permute.xlu0 %8575 }
0x15a5   :  { %v8532_v19 = vpop.permute.xlu1 %8531  ;;  %17832 = vmatpush3.xpose.msk.msra.mxu1 %vm887_vm3, %v8576_v16 }
0x15a6   :  { %17799 = vmatmul.mubr.msk.f32.vlgmr.msra.gmra.mrb[118].mxu0 %vm887_vm3, %v8532_v19  ;;  %17841 = vmatprep.subr.mxu1 %v19600_v0 }
0x15a7   :  { %17802 = vmatpush3.xpose.msk.msra.mxu0 %vm887_vm3, %v8564_v17  ;;  %17803 = vmatprep.mubr.msk.f32.mxu0 %vm19601_vm0, %v19600_v0 }
0x15a8   :  { %v8570_v18 = vpop.permute.xlu0 %8569  ;;  %17806 = vmatprep.subr.mxu0 %v19600_v0 }
0x15a9   :  { %v8582_v61 = vpop.permute.xlu1 %8581 }
0x15aa   :  { %17804 = vmatmul.mubr.msk.f32.vlgmr.msra.gmra.mrb[120].mxu0 %vm887_vm3, %v8534_v41 }
0x15ab   :  { %17807 = vmatpush3.xpose.msk.msra.mxu0 %vm887_vm3, %v8566_v36  ;;  %17808 = vmatprep.mubr.msk.f32.mxu0 %vm19601_vm0, %v19600_v0 }
0x15ac   :  { %v8546_v50 = vpop.permute.xlu0 %8545  ;;  %17811 = vmatprep.subr.mxu0 %v19600_v0 }
0x15ad   :  { %v8536_v26 = vpop.permute.xlu1 %8535  ;;  %17834 = vmatmul.mubr.msk.f32.vlgmr.msra.gmra.mrb[90].mxu1 %vm887_vm3, %v8546_v50 }
0x15ae   :  { %17809 = vmatmul.mubr.msk.f32.vlgmr.msra.gmra.mrb[122].mxu0 %vm887_vm3, %v8536_v26  ;;  %17843 = vmatprep.mubr.msk.f32.mxu1 %vm19601_vm0, %v19600_v0 }
0x15af   :  { %17812 = vmatpush3.xpose.msk.msra.mxu0 %vm887_vm3, %v8568_v56  ;;  %17813 = vmatprep.mubr.msk.f32.mxu0 %vm19601_vm0, %v19600_v0 }
0x15b0   :  { %v8580_v2 = vpop.permute.xlu0 %8579  ;;  %17816 = vmatprep.subr.mxu0 %v19600_v0 }
0x15b1   :  { %v8586_v51 = vpop.permute.xlu1 %8585  ;;  %17842 = vmatpush3.xpose.msk.msra.mxu1 %vm887_vm3, %v8580_v2 }
0x15b2   :  { %17814 = vmatmul.mubr.msk.f32.vlgmr.msra.gmra.mrb[124].mxu0 %vm887_vm3, %v8538_v38  ;;  %17851 = vmatprep.subr.mxu1 %v19600_v0 }
0x15b3   :  { %17817 = vmatpush3.xpose.msk.msra.mxu0 %vm887_vm3, %v8570_v18  ;;  %17818 = vmatprep.mubr.msk.f32.mxu0 %vm19601_vm0, %v19600_v0 }
0x15b4   :  { %v8550_v20 = vpop.permute.xlu0 %8549  ;;  %17826 = vmatprep.subr.mxu0 %v19600_v0 }
0x15b5   :  { %v8540_v33 = vpop.permute.xlu1 %8539  ;;  %17844 = vmatmul.mubr.msk.f32.vlgmr.msra.gmra.mrb[92].mxu1 %vm887_vm3, %v8550_v20 }
0x15b6   :  { %17819 = vmatmul.mubr.msk.f32.vlgmr.msra.gmra.mrb[126].mxu0 %vm887_vm3, %v8540_v33  ;;  %17853 = vmatprep.mubr.msk.f32.mxu1 %vm19601_vm0, %v19600_v0 }
0x15b7   :  { %17827 = vmatpush3.xpose.msk.msra.mxu0 %vm887_vm3, %v8574_v6  ;;  %17828 = vmatprep.mubr.msk.f32.mxu0 %vm19601_vm0, %v19600_v0 }
0x15b8   :  { %v8584_v39 = vpop.permute.xlu0 %8583  ;;  %17836 = vmatprep.subr.mxu0 %v19600_v0 }
0x15b9   :  { %v8544_v24 = vpop.permute.xlu1 %8543  ;;  %17852 = vmatpush3.xpose.msk.msra.mxu1 %vm887_vm3, %v8584_v39 }
0x15ba   :  { %17829 = vmatmul.mubr.msk.f32.vlgmr.msra.gmra.mrb[128].mxu0 %vm887_vm3, %v8544_v24  ;;  %17861 = vmatprep.subr.mxu1 %v19600_v0 }
0x15bb   :  { %17837 = vmatpush3.xpose.msk.msra.mxu0 %vm887_vm3, %v8578_v58  ;;  %17838 = vmatprep.mubr.msk.f32.mxu0 %vm19601_vm0, %v19600_v0 }
0x15bc   :  { %v8554_v47 = vpop.permute.xlu0 %8553  ;;  %17846 = vmatprep.subr.mxu0 %v19600_v0 }
0x15bd   :  { %v8548_v13 = vpop.permute.xlu1 %8547  ;;  %17854 = vmatmul.mubr.msk.f32.vlgmr.msra.gmra.mrb[94].mxu1 %vm887_vm3, %v8554_v47 }
0x15be   :  { %17839 = vmatmul.mubr.msk.f32.vlgmr.msra.gmra.mrb[130].mxu0 %vm887_vm3, %v8548_v13  ;;  %17862 = vmatpush3.msra.mxu1 %v21072_v45 }
0x15bf   :  { %17847 = vmatpush3.xpose.msk.msra.mxu0 %vm887_vm3, %v8582_v61  ;;  %17848 = vmatprep.mubr.msk.f32.mxu0 %vm19601_vm0, %v19600_v0 }
0x15c0   :  { %17856 = vmatprep.subr.mxu0 %v19600_v0  ;;  %17863 = vmatprep.mubr.msk.f32.mxu1 %vm19601_vm0, %v19600_v0 }
0x15c1   :  { %v8552_v60 = vpop.permute.xlu1 %8551  ;;  %17871 = vmatprep.subr.mxu1 %v19600_v0 }
0x15c2   :  { %17849 = vmatmul.mubr.msk.f32.vlgmr.msra.gmra.mrb[132].mxu0 %vm887_vm3, %v8552_v60 }
0x15c3   :  { %17857 = vmatpush3.xpose.msk.msra.mxu0 %vm887_vm3, %v8586_v51  ;;  %17858 = vmatprep.mubr.msk.f32.mxu0 %vm19601_vm0, %v19600_v0 }
0x15c4   :  { %17866 = vmatprep.subr.mxu0 %v19600_v0 }
0x15c5   :  { %v8556_v43 = vpop.permute.xlu1 %8555 }
0x15c6   :  { %17859 = vmatmul.mubr.msk.f32.vlgmr.msra.gmra.mrb[134].mxu0 %vm887_vm3, %v8556_v43 }
0x15c7   :  { %17867 = vmatpush3.msra.mxu0 %v21066_v7  ;;  %17868 = vmatprep.mubr.msk.f32.mxu0 %vm19601_vm0, %v19600_v0 }
0x15c8   :  { %17876 = vmatprep.subr.mxu0 %v19600_v0 }
0x15f1   :  { %v8701_v35 = vpop.f32.mrb[112].mxu0 }
0x15f2   :  { %v21153_v28 = vadd.f32 %v8701_v35, %v20136_v5  ;;  %v17785_v25 = vpop.f32.mrb[113].mxu0 }
0x15f4   :  { %v9815_v40 = vsel %vm306_vm2, %v21153_v28, -inf }
0x15f5   :  { %9816 = vmax.xlane.f32.xlu0 %v9815_v40  ;;  %v8775_v4 = vpop.f32.mrb[114].mxu0  ;;  %v21217_v40 = vpop.permute.xlu0 %8591 }
0x15f6   :  { %v21158_v57 = vadd.f32 %v8775_v4, %v20139_v9  ;;  %v17790_v21 = vpop.f32.mrb[115].mxu0 }
0x15f8   :  { %v9818_v49 = vsel %vm306_vm2, %v21158_v57, -inf }
0x15f9   :  { %9819 = vmax.xlane.f32.xlu1 %v9818_v49 }
0x166c   :  { %v8849_v1 = vpop.f32.mrb[116].mxu0 }
0x166d   :  { %v21163_v46 = vadd.f32 %v8849_v1, %v20136_v5  ;;  %v17795_v23 = vpop.f32.mrb[117].mxu0 }
0x166f   :  { %v9821_v59 = vsel %vm306_vm2, %v21163_v46, -inf }
0x1670   :  { %v9293_v14 = vpop.f32.mrb[88].mxu1  ;;  %9822 = vmax.xlane.f32.xlu0 %v9821_v59 }
0x1671   :  { %v21168_v22 = vadd.f32 %v9293_v14, %v20136_v5  ;;  %v17825_v62 = vpop.f32.mrb[89].mxu1 }
0x1673   :  { %v9839_v12 = vsel %vm306_vm2, %v21168_v22, -inf }
0x1674   :  { %9840 = vmax.xlane.f32.xlu1 %v9839_v12 }
0x1679   :  { %v8923_v3 = vpop.f32.mrb[118].mxu0 }
0x167a   :  { %v21173_v29 = vadd.f32 %v8923_v3, %v20139_v9  ;;  %v17800_v11 = vpop.f32.mrb[119].mxu0 }
0x167c   :  { %v9824_v30 = vsel %vm306_vm2, %v21173_v29, -inf }
0x167d   :  { %9825 = vmax.xlane.f32.xlu0 %v9824_v30  ;;  %v8997_v44 = vpop.f32.mrb[120].mxu0 }
0x167e   :  { %v17805_v34 = vpop.f32.mrb[121].mxu0  ;;  %v21184_v15 = vadd.f32 %v8997_v44, %v20136_v5 }
0x1680   :  { %v9441_v63 = vpop.f32.mrb[90].mxu1  ;;  %v9827_v6 = vsel %vm306_vm2, %v21184_v15, -inf }
0x1681   :  { %v9071_v31 = vpop.f32.mrb[122].mxu0  ;;  %v21178_v17 = vadd.f32 %v9441_v63, %v20136_v5  ;;  %v17835_v37 = vpop.f32.mrb[91].mxu1 }
0x1682   :  { %v21181_v56 = vadd.f32 %v9071_v31, %v20139_v9  ;;  %v17810_v41 = vpop.f32.mrb[123].mxu0  ;;  %v9817_v21 = vpop.xlane.xlu0 %9816 }
0x1683   :  { %v9845_v38 = vsel %vm306_vm2, %v21178_v17, -inf  ;;  %v9863_v23 = vsub.f32 %v21153_v28, %v9817_v21  ;;  %v21249_v63 = vpop.permute.xlu1 %8589 }
0x1684   :  { %9846 = vmax.xlane.f32.xlu1 %v9845_v38  ;;  %v9830_v53 = vsel %vm306_vm2, %v21181_v56, -inf }
0x1685   :  { %9831 = vmax.xlane.f32.xlu0 %v9830_v53  ;;  %v9145_v54 = vpop.f32.mrb[124].mxu0  ;;  %v9879_v62 = vmul.f32 1.442695, %v9863_v23 }
0x1686   :  { %v17815_v55 = vpop.f32.mrb[125].mxu0  ;;  %v21201_v24 = vadd.f32 %v9145_v54, %v20136_v5 }
0x1687   :  { %19030 = vpow2.f32 %v9879_v62  ;;  %v21253_v31 = vpop.permute.xlu1 %8595 }
0x1688   :  { %v9589_v36 = vpop.f32.mrb[92].mxu1  ;;  %9828 = vmax.xlane.f32.xlu1 %v9827_v6  ;;  %v9833_v43 = vsel %vm306_vm2, %v21201_v24, -inf }
0x1689   :  { %v21193_v58 = vadd.f32 %v9589_v36, %v20136_v5  ;;  %v9219_v16 = vpop.f32.mrb[126].mxu0  ;;  %v17845_v19 = vpop.f32.mrb[93].mxu1 }
0x168a   :  { %v17820_v18 = vpop.f32.mrb[127].mxu0  ;;  %v21220_v4 = vadd.f32 %v9219_v16, %v20139_v9 }
0x168b   :  { %v9851_v61 = vsel %vm306_vm2, %v21193_v58, -inf  ;;  %v9820_v37 = vpop.xlane.xlu1 %9819 }
0x168c   :  { %9852 = vmax.xlane.f32.xlu1 %v9851_v61  ;;  %v9836_v1 = vsel %vm306_vm2, %v21220_v4, -inf  ;;  %v9864_v41 = vsub.f32 %v21158_v57, %v9820_v37 }
0x168d   :  { %v9367_v50 = vpop.f32.mrb[128].mxu0 }
0x168e   :  { %v17830_v26 = vpop.f32.mrb[129].mxu0  ;;  %v21223_v49 = vadd.f32 %v9367_v50, %v20139_v9  ;;  %v9881_v38 = vmul.f32 1.442695, %v9864_v41 }
0x1690   :  { %v9737_v2 = vpop.f32.mrb[94].mxu1  ;;  %v9842_v14 = vsel %vm306_vm2, %v21223_v49, -inf  ;;  %19032 = vpow2.f32 %v9881_v38 }
0x1691   :  { %v9515_v51 = vpop.f32.mrb[130].mxu0  ;;  %v21198_v20 = vadd.f32 %v9737_v2, %v20136_v5  ;;  %v17855_v33 = vpop.f32.mrb[95].mxu1 }
0x1692   :  { %v17840_v39 = vpop.f32.mrb[131].mxu0  ;;  %v21229_v59 = vadd.f32 %v9515_v51, %v20139_v9  ;;  %v21245_v44 = vpop.eup %19030 }
0x1693   :  { %v9857_v47 = vsel %vm306_vm2, %v21198_v20, -inf  ;;  %v9911_v34 = vsel %vm306_vm2, %v21245_v44, 0.0 }
0x1694   :  { %9858 = vmax.xlane.f32.xlu1 %v9857_v47  ;;  %v9848_v3 = vsel %vm306_vm2, %v21229_v59, -inf }
0x1695   :  { %v9663_v13 = vpop.f32.mrb[132].mxu0 }
0x1696   :  { %v17850_v60 = vpop.f32.mrb[133].mxu0  ;;  %v21234_v12 = vadd.f32 %v9663_v13, %v20139_v9 }
0x1698   :  { %9834 = vmax.xlane.f32.xlu1 %v9833_v43  ;;  %v9854_v28 = vsel %vm306_vm2, %v21234_v12, -inf }
0x1699   :  { %v9811_v35 = vpop.f32.mrb[134].mxu0 }
0x169a   :  { %v17860_v25 = vpop.f32.mrb[135].mxu0  ;;  %v21239_v11 = vadd.f32 %v9811_v35, %v20139_v9  ;;  %v21257_v55 = vpop.eup %19032 }
0x169b   :  { %8601 = vrot.lane.b32.xlu0 %v21072_v45, %s19605_s4  ;;  %v9914_v19 = vsel %vm306_vm2, %v21257_v55, 0.0 }
0x169c   :  { %v9860_v30 = vsel %vm306_vm2, %v21239_v11, -inf }
0x169f   :  { %8607 = vrot.lane.b32.xlu0 %v21072_v45, %s19587_s30 }
0x16a9   :  { %8597 = vrot.lane.b32.xlu1 %v21066_v7, %s19604_s26 }
0x16ad   :  { %8603 = vrot.lane.b32.xlu1 %v21066_v7, %s19605_s4 }
0x16b1   :  { %8609 = vrot.lane.b32.xlu1 %v21066_v7, %s19587_s30 }
0x16be   :  { %9837 = vmax.xlane.f32.xlu0 %v9836_v1 }
0x16c2   :  { %9843 = vmax.xlane.f32.xlu0 %v9842_v14 }
0x16c6   :  { %9849 = vmax.xlane.f32.xlu0 %v9848_v3 }
0x16ca   :  { %9855 = vmax.xlane.f32.xlu0 %v9854_v28 }
0x16ce   :  { %9861 = vmax.xlane.f32.xlu0 %v9860_v30 }
0x16d5   :  { %9912 = vadd.xlane.f32.xlu1 %v9911_v34 }
0x16e4   :  { %8613 = vrot.lane.b32.xlu0 %v21072_v45, %s19606_s27 }
0x16fd   :  { %v9823_v53 = vpop.xlane.xlu0 %9822 }
0x16fe   :  { %v9865_v54 = vsub.f32 %v21163_v46, %v9823_v53 }
0x1700   :  { %v9883_v6 = vmul.f32 1.442695, %v9865_v54 }
0x1701   :  { %v9841_v36 = vpop.xlane.xlu1 %9840 }
0x1702   :  { %19034 = vpow2.f32 %v9883_v6  ;;  %v9871_v16 = vsub.f32 %v21168_v22, %v9841_v36 }
0x1703   :  { %9915 = vadd.xlane.f32.xlu0 %v9914_v19 }
0x1704   :  { %v9895_v18 = vmul.f32 1.442695, %v9871_v16 }
0x1706   :  { %19036 = vpow2.f32 %v9895_v18 }
0x170a   :  { %v9826_v61 = vpop.xlane.xlu0 %9825 }
0x170b   :  { %v9866_v57 = vsub.f32 %v21173_v29, %v9826_v61 }
0x170c   :  { %v21263_v50 = vpop.eup %19034 }
0x170d   :  { %v9885_v26 = vmul.f32 1.442695, %v9866_v57  ;;  %v9917_v46 = vsel %vm306_vm2, %v21263_v50, 0.0 }
0x170e   :  { %9918 = vadd.xlane.f32.xlu1 %v9917_v46 }
0x170f   :  { %19038 = vpow2.f32 %v9885_v26 }
0x1710   :  { %v21267_v2 = vpop.eup %19036 }
0x1711   :  { %v9847_v22 = vpop.xlane.xlu1 %9846  ;;  %v9935_v51 = vsel %vm306_vm2, %v21267_v2, 0.0 }
0x1712   :  { %v9873_v33 = vsub.f32 %v21178_v17, %v9847_v22  ;;  %v9832_v39 = vpop.xlane.xlu0 %9831  ;;  %9936 = vadd.xlane.f32.xlu1 %v9935_v51 }
0x1713   :  { %v9868_v29 = vsub.f32 %v21181_v56, %v9832_v39 }
0x1714   :  { %v9899_v47 = vmul.f32 1.442695, %v9873_v33 }
0x1715   :  { %v9889_v13 = vmul.f32 1.442695, %v9868_v29  ;;  %v9829_v60 = vpop.xlane.xlu1 %9828 }
0x1716   :  { %19040 = vpow2.f32 %v9899_v47  ;;  %v9867_v43 = vsub.f32 %v21184_v15, %v9829_v60  ;;  %v21307_v16 = vpop.permute.xlu0 %8601 }
0x1717   :  { %19042 = vpow2.f32 %v9889_v13 }
0x1718   :  { %v9887_v35 = vmul.f32 1.442695, %v9867_v43 }
0x1719   :  { %v21274_v25 = vpop.eup %19038  ;;  %v9853_v21 = vpop.xlane.xlu1 %9852 }
0x171a   :  { %19044 = vpow2.f32 %v9887_v35  ;;  %v9875_v1 = vsub.f32 %v21193_v58, %v9853_v21  ;;  %v9920_v17 = vsel %vm306_vm2, %v21274_v25, 0.0  ;;  %v21309_v19 = vpop.permute.xlu0 %8607 }
0x171b   :  { %9921 = vadd.xlane.f32.xlu0 %v9920_v17 }
0x171c   :  { %v9903_v23 = vmul.f32 1.442695, %v9875_v1 }
0x171e   :  { %19046 = vpow2.f32 %v9903_v23 }
0x1720   :  { %v21279_v56 = vpop.eup %19040 }
0x1721   :  { %v21281_v14 = vpop.eup %19042  ;;  %v9859_v62 = vpop.xlane.xlu1 %9858  ;;  %v9941_v15 = vsel %vm306_vm2, %v21279_v56, 0.0 }
0x1722   :  { %v9877_v3 = vsub.f32 %v21198_v20, %v9859_v62  ;;  %9942 = vadd.xlane.f32.xlu1 %v9941_v15  ;;  %v9926_v58 = vsel %vm306_vm2, %v21281_v14, 0.0 }
0x1723   :  { %9927 = vadd.xlane.f32.xlu0 %v9926_v58 }
0x1724   :  { %v21288_v28 = vpop.eup %19044  ;;  %v9907_v30 = vmul.f32 1.442695, %v9877_v3 }
0x1725   :  { %v9835_v34 = vpop.xlane.xlu1 %9834  ;;  %v9923_v37 = vsel %vm306_vm2, %v21288_v28, 0.0 }
0x1726   :  { %19048 = vpow2.f32 %v9907_v30  ;;  %v9869_v41 = vsub.f32 %v21201_v24, %v9835_v34  ;;  %9924 = vadd.xlane.f32.xlu1 %v9923_v37 }
0x1728   :  { %v21293_v38 = vpop.eup %19046  ;;  %v9891_v53 = vmul.f32 1.442695, %v9869_v41 }
0x1729   :  { %v9947_v20 = vsel %vm306_vm2, %v21293_v38, 0.0  ;;  %v21319_v22 = vpop.permute.xlu1 %8597 }
0x172a   :  { %19050 = vpow2.f32 %v9891_v53  ;;  %9948 = vadd.xlane.f32.xlu1 %v9947_v20 }
0x172d   :  { %v21322_v13 = vpop.permute.xlu1 %8603 }
0x1730   :  { %v21297_v54 = vpop.eup %19048 }
0x1731   :  { %v9953_v6 = vsel %vm306_vm2, %v21297_v54, 0.0 }
0x1732   :  { %9954 = vadd.xlane.f32.xlu1 %v9953_v6 }
0x1734   :  { %v21301_v36 = vpop.eup %19050 }
0x1735   :  { %v9929_v24 = vsel %vm306_vm2, %v21301_v36, 0.0 }
0x1736   :  { %9930 = vadd.xlane.f32.xlu1 %v9929_v24 }
0x1739   :  { %8619 = vrot.lane.b32.xlu0 %v21072_v45, %s19607_s16 }
0x1747   :  { %8615 = vrot.lane.b32.xlu1 %v21066_v7, %s19606_s27 }
0x174b   :  { %v9838_v18 = vpop.xlane.xlu0 %9837  ;;  %8621 = vrot.lane.b32.xlu1 %v21066_v7, %s19607_s16 }
0x174c   :  { %v9870_v61 = vsub.f32 %v21220_v4, %v9838_v18 }
0x174e   :  { %v9893_v57 = vmul.f32 1.442695, %v9870_v61 }
0x174f   :  { %v9844_v26 = vpop.xlane.xlu0 %9843  ;;  %8627 = vrot.lane.b32.xlu1 %v21066_v7, %s22057_s8 }
0x1750   :  { %19052 = vpow2.f32 %v9893_v57  ;;  %v9872_v46 = vsub.f32 %v21223_v49, %v9844_v26 }
0x1752   :  { %v9897_v51 = vmul.f32 1.442695, %v9872_v46 }
0x1753   :  { %v9850_v33 = vpop.xlane.xlu0 %9849 }
0x1754   :  { %19054 = vpow2.f32 %v9897_v51  ;;  %v9874_v39 = vsub.f32 %v21229_v59, %v9850_v33  ;;  %v21332_v59 = vpop.permute.xlu1 %8609 }
0x1756   :  { %v9901_v29 = vmul.f32 1.442695, %v9874_v39 }
0x1757   :  { %v9856_v47 = vpop.xlane.xlu0 %9855 }
0x1758   :  { %19056 = vpow2.f32 %v9901_v29  ;;  %v9876_v4 = vsub.f32 %v21234_v12, %v9856_v47 }
0x175a   :  { %v21325_v60 = vpop.eup %19052  ;;  %v9905_v7 = vmul.f32 1.442695, %v9876_v4 }
0x175b   :  { %v9862_v43 = vpop.xlane.xlu0 %9861  ;;  %v9932_v49 = vsel %vm306_vm2, %v21325_v60, 0.0 }
0x175c   :  { %19058 = vpow2.f32 %v9905_v7  ;;  %v9878_v35 = vsub.f32 %v21239_v11, %v9862_v43  ;;  %9933 = vadd.xlane.f32.xlu0 %v9932_v49 }
0x175e   :  { %v21330_v21 = vpop.eup %19054  ;;  %v9909_v1 = vmul.f32 1.442695, %v9878_v35 }
0x175f   :  { %v9938_v17 = vsel %vm306_vm2, %v21330_v21, 0.0  ;;  %v8614_v37 = vpop.permute.xlu0 %8613 }
0x1760   :  { %19060 = vpow2.f32 %v9909_v1  ;;  %9939 = vadd.xlane.f32.xlu0 %v9938_v17 }
0x1762   :  { %v21336_v12 = vpop.eup %19056  ;;  %v9913_v23 = vpop.xlane.xlu1 %9912 }
0x1763   :  { %19062 = vrcp.f32 %v9913_v23  ;;  %v9944_v62 = vsel %vm306_vm2, %v21336_v12, 0.0 }
0x1764   :  { %9945 = vadd.xlane.f32.xlu0 %v9944_v62 }
0x1766   :  { %v21340_v11 = vpop.eup %19058 }
0x1767   :  { %v9950_v15 = vsel %vm306_vm2, %v21340_v11, 0.0 }
0x1768   :  { %9951 = vadd.xlane.f32.xlu0 %v9950_v15 }
0x176a   :  { %v21344_v3 = vpop.eup %19060 }
0x176b   :  { %v9956_v58 = vsel %vm306_vm2, %v21344_v3, 0.0 }
0x176c   :  { %9957 = vadd.xlane.f32.xlu0 %v9956_v58 }
0x176d   :  { %v19063_v30 = vpop.eup %19062 }
0x176e   :  { %v9960_v34 = vmul.f32 %v19063_v30, %v21245_v44 }
0x1770   :  { %17864 = vmatmul.mubr.msk.f32.vlgmr.msra.gmra.mrb[96].mxu1 %vm306_vm2, %v9960_v34 }
0x1771   :  { %17872 = vmatpush3.msra.mxu1 %v21249_v63  ;;  %17873 = vmatprep.mubr.msk.f32.mxu1 %vm19601_vm0, %v19600_v0 }
0x1772   :  { %17881 = vmatprep.subr.mxu1 %v19600_v0 }
0x1782   :  { %8625 = vrot.lane.b32.xlu0 %v21072_v45, %s22057_s8 }
0x1790   :  { %v9916_v41 = vpop.xlane.xlu0 %9915 }
0x1791   :  { %19064 = vrcp.f32 %v9916_v41 }
0x179b   :  { %v19065_v53 = vpop.eup %19064  ;;  %v9919_v20 = vpop.xlane.xlu1 %9918 }
0x179c   :  { %19066 = vrcp.f32 %v9919_v20  ;;  %v9962_v44 = vmul.f32 %v19065_v53, %v21257_v55 }
0x179e   :  { %17869 = vmatmul.mubr.msk.f32.vlgmr.msra.gmra.mrb[136].mxu0 %vm306_vm2, %v9962_v44 }
0x179f   :  { %17877 = vmatpush3.msra.mxu0 %v21217_v40  ;;  %17878 = vmatprep.mubr.msk.f32.mxu0 %vm19601_vm0, %v19600_v0  ;;  %v9937_v55 = vpop.xlane.xlu1 %9936 }
0x17a0   :  { %17886 = vmatprep.subr.mxu0 %v19600_v0 }
0x17a6   :  { %v19067_v63 = vpop.eup %19066 }
0x17a7   :  { %v9964_v45 = vmul.f32 %v19067_v63, %v21263_v50 }
0x17a8   :  { %v9922_v6 = vpop.xlane.xlu0 %9921 }
0x17a9   :  { %19068 = vrcp.f32 %v9922_v6  ;;  %17874 = vmatmul.mubr.msk.f32.vlgmr.msra.gmra.mrb[98].mxu1 %vm306_vm2, %v9964_v45  ;;  %v18622_v6 = vld [vmem:[#allocation10 + $0x80] sm:$0xff]  }
0x17aa   :  { %17882 = vmatpush3.msra.mxu1 %v21253_v31  ;;  %17883 = vmatprep.mubr.msk.f32.mxu1 %vm19601_vm0, %v19600_v0 }
0x17ab   :  { %17891 = vmatprep.subr.mxu1 %v19600_v0 }
0x17af   :  { %v9943_v40 = vpop.xlane.xlu1 %9942 }
0x17b0   :  { %v9928_v24 = vpop.xlane.xlu0 %9927 }
0x17b1   :  { %19070 = vrcp.f32 %v9928_v24  ;;  %v18624_v24 = vld [vmem:[#allocation10 + $0x90] sm:$0xff]  }
0x17b3   :  { %v19069_v18 = vpop.eup %19068  ;;  %v9925_v61 = vpop.xlane.xlu1 %9924 }
0x17b4   :  { %19072 = vrcp.f32 %v9925_v61  ;;  %v9966_v50 = vmul.f32 %v19069_v18, %v21274_v25 }
0x17b6   :  { %17879 = vmatmul.mubr.msk.f32.vlgmr.msra.gmra.mrb[138].mxu0 %vm306_vm2, %v9966_v50 }
0x17b7   :  { %17887 = vmatpush3.msra.mxu0 %v21319_v22  ;;  %17888 = vmatprep.mubr.msk.f32.mxu0 %vm19601_vm0, %v19600_v0  ;;  %v9949_v57 = vpop.xlane.xlu1 %9948 }
0x17b8   :  { %17896 = vmatprep.subr.mxu0 %v19600_v0 }
0x17bb   :  { %v19071_v31 = vpop.eup %19070 }
0x17bc   :  { %v9970_v26 = vmul.f32 %v19071_v31, %v21281_v14 }
0x17be   :  { %v19073_v46 = vpop.eup %19072  ;;  %17889 = vmatmul.mubr.msk.f32.vlgmr.msra.gmra.mrb[140].mxu0 %vm306_vm2, %v9970_v26 }
0x17bf   :  { %17897 = vmatpush3.msra.mxu0 %v21322_v13  ;;  %v9955_v51 = vpop.xlane.xlu1 %9954  ;;  %v9968_v25 = vmul.f32 %v19073_v46, %v21288_v28  ;;  %17898 = vmatprep.mubr.msk.f32.mxu0 %vm19601_vm0, %v19600_v0 }
0x17c0   :  { %17906 = vmatprep.subr.mxu0 %v19600_v0 }
0x17c1   :  { %17884 = vmatmul.mubr.msk.f32.vlgmr.msra.gmra.mrb[100].mxu1 %vm306_vm2, %v9968_v25 }
0x17c2   :  { %17892 = vmatpush3.msra.mxu1 %v21307_v16  ;;  %17893 = vmatprep.mubr.msk.f32.mxu1 %vm19601_vm0, %v19600_v0 }
0x17c3   :  { %v9931_v14 = vpop.xlane.xlu1 %9930  ;;  %17901 = vmatprep.subr.mxu1 %v19600_v0 }
0x17c4   :  { %19074 = vrcp.f32 %v9931_v14 }
0x17c5   :  { %19076 = vrcp.f32 %v9937_v55 }
0x17c6   :  { %19078 = vrcp.f32 %v9943_v40 }
0x17c7   :  { %19080 = vrcp.f32 %v9949_v57 }
0x17ce   :  { %v19075_v22 = vpop.eup %19074 }
0x17cf   :  { %v9972_v28 = vmul.f32 %v19075_v22, %v21301_v36  ;;  %v19077_v33 = vpop.eup %19076 }
0x17d0   :  { %v9976_v16 = vmul.f32 %v19077_v33, %v21267_v2  ;;  %v19079_v39 = vpop.eup %19078  ;;  %v18626_v33 = vld [vmem:[#allocation10 + $0xa0] sm:$0xff]  }
0x17d1   :  { %17894 = vmatmul.mubr.msk.f32.vlgmr.msra.gmra.mrb[102].mxu1 %vm306_vm2, %v9972_v28  ;;  %v9980_v36 = vmul.f32 %v19079_v39, %v21279_v56  ;;  %v19081_v29 = vpop.eup %19080  ;;  %v18625_v28 = vld [vmem:[#allocation10 + $0x98] sm:$0xff]  }
0x17d2   :  { %17902 = vmatpush3.msra.mxu1 %v21309_v19  ;;  %17903 = vmatprep.mubr.msk.f32.mxu1 %vm19601_vm0, %v19600_v0  ;;  %v8620_v19 = vpop.permute.xlu0 %8619  ;;  %v9984_v2 = vmul.f32 %v19081_v29, %v21293_v38  ;;  %v8616_v38 = vpop.permute.xlu1 %8615 }
0x17d3   :  { %17911 = vmatprep.subr.mxu1 %v19600_v0 }
0x17d5   :  { %17904 = vmatmul.mubr.msk.f32.vlgmr.msra.gmra.mrb[104].mxu1 %vm306_vm2, %v9976_v16  ;;  %v18627_v16 = vld [vmem:[#allocation10 + $0xa8] sm:$0xff]  }
0x17d6   :  { %17912 = vmatpush3.msra.mxu1 %v8614_v37  ;;  %17913 = vmatprep.mubr.msk.f32.mxu1 %vm19601_vm0, %v19600_v0  ;;  %v8622_v23 = vpop.permute.xlu1 %8621 }
0x17d7   :  { %17921 = vmatprep.subr.mxu1 %v19600_v0 }
0x17d9   :  { %17914 = vmatmul.mubr.msk.f32.vlgmr.msra.gmra.mrb[106].mxu1 %vm306_vm2, %v9980_v36 }
0x17da   :  { %17922 = vmatpush3.msra.mxu1 %v8620_v19  ;;  %17923 = vmatprep.mubr.msk.f32.mxu1 %vm19601_vm0, %v19600_v0  ;;  %v18628_v19 = vld [vmem:[#allocation10 + $0xb0] sm:$0xff]  }
0x17db   :  { %17931 = vmatprep.subr.mxu1 %v19600_v0 }
0x17dd   :  { %17924 = vmatmul.mubr.msk.f32.vlgmr.msra.gmra.mrb[108].mxu1 %vm306_vm2, %v9984_v2 }
0x17de   :  { %17933 = vmatprep.mubr.msk.f32.mxu1 %vm19601_vm0, %v19600_v0 }
0x17e9   :  { %v9934_v47 = vpop.xlane.xlu0 %9933 }
0x17ea   :  { %19082 = vrcp.f32 %v9934_v47 }
0x17ed   :  { %v9940_v56 = vpop.xlane.xlu0 %9939 }
0x17ee   :  { %19084 = vrcp.f32 %v9940_v56 }
0x17ef   :  { %19086 = vrcp.f32 %v9955_v51 }
0x17f1   :  { %v9946_v13 = vpop.xlane.xlu0 %9945 }
0x17f2   :  { %19088 = vrcp.f32 %v9946_v13  ;;  %v18629_v13 = vld [vmem:[#allocation10 + $0xb8] sm:$0xff]  }
0x17f4   :  { %v19083_v4 = vpop.eup %19082 }
0x17f5   :  { %v9952_v7 = vpop.xlane.xlu0 %9951  ;;  %v9974_v43 = vmul.f32 %v19083_v4, %v21325_v60 }
0x17f6   :  { %19090 = vrcp.f32 %v9952_v7 }
0x17f7   :  { %17899 = vmatmul.mubr.msk.f32.vlgmr.msra.gmra.mrb[142].mxu0 %vm306_vm2, %v9974_v43 }
0x17f8   :  { %v19085_v49 = vpop.eup %19084  ;;  %17907 = vmatpush3.msra.mxu0 %v21332_v59  ;;  %17908 = vmatprep.mubr.msk.f32.mxu0 %vm19601_vm0, %v19600_v0 }
0x17f9   :  { %v9958_v35 = vpop.xlane.xlu0 %9957  ;;  %17916 = vmatprep.subr.mxu0 %v19600_v0  ;;  %v9978_v1 = vmul.f32 %v19085_v49, %v21330_v21  ;;  %v19087_v17 = vpop.eup %19086 }
0x17fa   :  { %19092 = vrcp.f32 %v9958_v35  ;;  %v9988_v15 = vmul.f32 %v19087_v17, %v21297_v54  ;;  %v8628_v54 = vpop.permute.xlu1 %8627 }
0x17fb   :  { %17909 = vmatmul.mubr.msk.f32.vlgmr.msra.gmra.mrb[144].mxu0 %vm306_vm2, %v9978_v1 }
0x17fc   :  { %v19089_v60 = vpop.eup %19088  ;;  %17917 = vmatpush3.msra.mxu0 %v8616_v38  ;;  %17918 = vmatprep.mubr.msk.f32.mxu0 %vm19601_vm0, %v19600_v0 }
0x17fd   :  { %v8626_v62 = vpop.permute.xlu0 %8625  ;;  %17926 = vmatprep.subr.mxu0 %v19600_v0  ;;  %v9982_v59 = vmul.f32 %v19089_v60, %v21336_v12 }
0x17fe   :  { %17932 = vmatpush3.msra.mxu1 %v8626_v62 }
0x17ff   :  { %17919 = vmatmul.mubr.msk.f32.vlgmr.msra.gmra.mrb[146].mxu0 %vm306_vm2, %v9982_v59  ;;  %17934 = vmatmul.mubr.msk.f32.vlgmr.msra.gmra.mrb[110].mxu1 %vm306_vm2, %v9988_v15 }
0x1800   :  { %v19091_v21 = vpop.eup %19090  ;;  %17927 = vmatpush3.msra.mxu0 %v8622_v23  ;;  %17928 = vmatprep.mubr.msk.f32.mxu0 %vm19601_vm0, %v19600_v0 }
0x1801   :  { %17936 = vmatprep.subr.mxu0 %v19600_v0  ;;  %v9986_v58 = vmul.f32 %v19091_v21, %v21340_v11  ;;  %17941 = vmatprep.subr.bf16.mxu1 %v19600_v0 }
0x1802   :  { %17957 = vmatprep.mubr.msk.bf16.mxu1 %vm19601_vm0, %v19600_v0  ;;  %17942 = vmatpush3.bf16.msra.mxu1 %v18622_v6 }
0x1803   :  { %17929 = vmatmul.mubr.msk.f32.vlgmr.msra.gmra.mrb[148].mxu0 %vm306_vm2, %v9986_v58  ;;  %17943 = vmatprep.subr.bf16.mxu1 %v19600_v0 }
0x1804   :  { %v19093_v12 = vpop.eup %19092  ;;  %17937 = vmatpush3.msra.mxu0 %v8628_v54  ;;  %17938 = vmatprep.mubr.msk.f32.mxu0 %vm19601_vm0, %v19600_v0 }
0x1805   :  { %v9990_v30 = vmul.f32 %v19093_v12, %v21344_v3  ;;  %v18623_v3 = vld [vmem:[#allocation10 + $0x88] sm:$0xff]  }
0x1806   :  { %17944 = vmatpush3.bf16.msra.mxu1 %v18623_v3 }
0x1807   :  { %17939 = vmatmul.mubr.msk.f32.vlgmr.msra.gmra.mrb[150].mxu0 %vm306_vm2, %v9990_v30  ;;  %17945 = vmatprep.subr.bf16.mxu1 %v19600_v0 }
0x1808   :  { %11641 = vmatprep.mubr.bf16.mxu0 %v19602_v52 }
0x180a   :  { %17946 = vmatpush3.bf16.msra.mxu1 %v18624_v24 }
0x180b   :  { %17947 = vmatprep.subr.bf16.mxu1 %v19600_v0 }
0x180e   :  { %17948 = vmatpush3.bf16.msra.mxu1 %v18625_v28 }
0x180f   :  { %17949 = vmatprep.subr.bf16.mxu1 %v19600_v0 }
0x1812   :  { %17950 = vmatpush3.bf16.msra.mxu1 %v18626_v33 }
0x1813   :  { %17951 = vmatprep.subr.bf16.mxu1 %v19600_v0 }
0x1816   :  { %17952 = vmatpush3.bf16.msra.mxu1 %v18627_v16 }
0x1817   :  { %17953 = vmatprep.subr.bf16.mxu1 %v19600_v0 }
0x181a   :  { %17954 = vmatpush3.bf16.msra.mxu1 %v18628_v19  ;;  %v18633_v19 = vld [vmem:[#allocation14 + $0x208] ss:$16 sps:$4 sm:$0xff]  }
0x181b   :  { %17955 = vmatprep.subr.bf16.mxu1 %v19600_v0 }
0x181e   :  { %17956 = vmatpush3.bf16.msra.mxu1 %v18629_v13 }
0x1843   :  { %v21434_v11 = vpop.f32.mrb[96].mxu1 }
0x1844   :  { %v17865_v34 = vpop.f32.mrb[97].mxu1 }
0x1871   :  { %v21436_v37 = vpop.f32.mrb[136].mxu0 }
0x1872   :  { %v17870_v41 = vpop.f32.mrb[137].mxu0 }
0x187c   :  { %v10206_v53 = vpop.f32.mrb[98].mxu1 }
0x187d   :  { %v17875_v20 = vpop.f32.mrb[99].mxu1 }
0x1889   :  { %v10279_v44 = vpop.f32.mrb[138].mxu0 }
0x188a   :  { %v18264_v63 = vpack.i.bf16 %v10279_v44, %v10206_v53  ;;  %v17880_v45 = vpop.f32.mrb[139].mxu0 }
0x188c   :  { %18265 = vrot.lane.b32.xlu0 %v18264_v63, %s22057_s8 }
0x1891   :  { %v10425_v55 = vpop.f32.mrb[140].mxu0 }
0x1892   :  { %v17890_v40 = vpop.f32.mrb[141].mxu0 }
0x1894   :  { %v10352_v18 = vpop.f32.mrb[100].mxu1 }
0x1895   :  { %v18269_v61 = vpack.i.bf16 %v10425_v55, %v10352_v18  ;;  %v17885_v50 = vpop.f32.mrb[101].mxu1 }
0x1897   :  { %18270 = vrot.lane.b32.xlu1 %v18269_v61, %s19607_s16 }
0x18a4   :  { %v10498_v31 = vpop.f32.mrb[102].mxu1 }
0x18a5   :  { %v17895_v57 = vpop.f32.mrb[103].mxu1 }
0x18a8   :  { %v10644_v26 = vpop.f32.mrb[104].mxu1 }
0x18a9   :  { %v17905_v46 = vpop.f32.mrb[105].mxu1 }
0x18ac   :  { %v10790_v51 = vpop.f32.mrb[106].mxu1 }
0x18ad   :  { %v17915_v25 = vpop.f32.mrb[107].mxu1 }
0x18b0   :  { %v10936_v14 = vpop.f32.mrb[108].mxu1 }
0x18b1   :  { %v17925_v22 = vpop.f32.mrb[109].mxu1 }
0x18ca   :  { %v10571_v39 = vpop.f32.mrb[142].mxu0 }
0x18cb   :  { %v18274_v36 = vpack.i.bf16 %v10571_v39, %v10498_v31  ;;  %v17900_v29 = vpop.f32.mrb[143].mxu0 }
0x18cc   :  { %v18632_v29 = vld [vmem:[#allocation14 + $0x204] ss:$16 sps:$4 sm:$0xff]  }
0x18cd   :  { %18275 = vrot.lane.b32.xlu0 %v18274_v36, %s19606_s27  ;;  %v18630_v36 = vld [vmem:[#allocation14 + $0x200] ss:$16 sps:$4 sm:$0xff]   ;;  %11609 = vmatprep.subr.bf16.mxu0 %v18632_v29 }
0x18ce   :  { %v10717_v2 = vpop.f32.mrb[144].mxu0  ;;  %11610 = vmatpush1.bf16.msra.mxu0 %v18630_v36 }
0x18cf   :  { %v18279_v47 = vpack.i.bf16 %v10717_v2, %v10644_v26  ;;  %v17910_v56 = vpop.f32.mrb[145].mxu0  ;;  %v18635_v2 = vld [vmem:[#allocation14 + $0x20c] ss:$16 sps:$4 sm:$0xff]  }
0x18d0   :  { %11652 = vmatprep.subr.bf16.mxu1 %v18635_v2 }
0x18d1   :  { %18280 = vrot.lane.b32.xlu1 %v18279_v47, %s19587_s30  ;;  %v16580_v47 = vld [vmem:[#allocation11 + $0x2] ss:$0 sm:$0xff] }
0x18d2   :  { %v10863_v4 = vpop.f32.mrb[146].mxu0  ;;  %v11082_v7 = vpop.f32.mrb[110].mxu1 }
0x18d3   :  { %v18284_v43 = vpack.i.bf16 %v10863_v4, %v10790_v51  ;;  %v17920_v38 = vpop.f32.mrb[147].mxu0  ;;  %v17935_v49 = vpop.f32.mrb[111].mxu1 }
0x18d5   :  { %18285 = vrot.lane.b32.xlu0 %v18284_v43, %s19605_s4 }
0x18d6   :  { %v11009_v35 = vpop.f32.mrb[148].mxu0 }
0x18d7   :  { %v18289_v1 = vpack.i.bf16 %v11009_v35, %v10936_v14  ;;  %v17930_v17 = vpop.f32.mrb[149].mxu0 }
0x18d9   :  { %18290 = vrot.lane.b32.xlu1 %v18289_v1, %s19604_s26 }
0x18da   :  { %v11155_v60 = vpop.f32.mrb[150].mxu0 }
0x18db   :  { %v18294_v23 = vpack.i.bf16 %v11155_v60, %v11082_v7  ;;  %v17940_v62 = vpop.f32.mrb[151].mxu0  ;;  %v18638_v60 = vld [vmem:[#allocation14 + $0x224] ss:$16 sps:$4 sm:$0xff]  }
0x18dc   :  { %v18639_v62 = vld [vmem:[#allocation14 + $0x228] ss:$16 sps:$4 sm:$0xff]   ;;  %11611 = vmatprep.subr.bf16.mxu0 %v18638_v60 }
0x18dd   :  { %18295 = vrot.lane.b32.xlu0 %v18294_v23, %s19603_s25  ;;  %v18636_v23 = vld [vmem:[#allocation14 + $0x220] ss:$16 sps:$4 sm:$0xff]  }
0x18de   :  { %11612 = vmatpush1.bf16.msra.mxu0 %v18636_v23  ;;  %v18680_v23 = vld [vmem:[#allocation17 + $0x200] sm:$0xff]  }
0x18fe   :  { %v18266_v59 = vpop.permute.xlu0 %18265 }
0x18ff   :  { %v18268_v54 = vunpack.i.h.bf16 %v18266_v59  ;;  %v18267_v12 = vunpack.i.l.bf16 %v18266_v59  ;;  %v18647_v59 = vld [vmem:[#allocation14 + $0x24c] ss:$16 sps:$4 sm:$0xff]  }
0x1901   :  { %v11216_v6 = vsel %vm887_vm3, %v21436_v37, %v18268_v54  ;;  %v11215_v3 = vsel %vm887_vm3, %v21434_v11, %v18267_v12  ;;  %v18653_v54 = vld [vmem:[#allocation14 + $0x26c] ss:$16 sps:$4 sm:$0xff]   ;;  %v18648_v12 = vld [vmem:[#allocation14 + $0x260] ss:$16 sps:$4 sm:$0xff]  }
0x1909   :  { %v18271_v15 = vpop.permute.xlu1 %18270 }
0x190a   :  { %v18273_v30 = vunpack.i.h.bf16 %v18271_v15  ;;  %v18272_v34 = vunpack.i.l.bf16 %v18271_v15  ;;  %v18642_v15 = vld [vmem:[#allocation14 + $0x240] ss:$16 sps:$4 sm:$0xff]  }
0x190c   :  { %v11218_v24 = vsel %vm3474_vm4, %v11216_v6, %v18273_v30  ;;  %v11217_v18 = vsel %vm3474_vm4, %v11215_v3, %v18272_v34  ;;  %v18651_v30 = vld [vmem:[#allocation14 + $0x268] ss:$16 sps:$4 sm:$0xff]   ;;  %v18656_v34 = vld [vmem:[#allocation14 + $0x284] ss:$16 sps:$4 sm:$0xff]  }
0x190d   :  { %v18663_v6 = vld [vmem:[#allocation14 + $0x2a8] ss:$16 sps:$4 sm:$0xff]   ;;  %v18668_v3 = vld [vmem:[#allocation14 + $0x2c4] ss:$16 sps:$4 sm:$0xff]  }
0x193f   :  { %v18276_v21 = vpop.permute.xlu0 %18275 }
0x1940   :  { %v18278_v53 = vunpack.i.h.bf16 %v18276_v21  ;;  %v18277_v20 = vunpack.i.l.bf16 %v18276_v21  ;;  %v18645_v21 = vld [vmem:[#allocation14 + $0x248] ss:$16 sps:$4 sm:$0xff]  }
0x1942   :  { %v11220_v31 = vsel %vm3477_vm5, %v11218_v24, %v18278_v53  ;;  %v11219_v57 = vsel %vm3477_vm5, %v11217_v18, %v18277_v20  ;;  %v18657_v53 = vld [vmem:[#allocation14 + $0x288] ss:$16 sps:$4 sm:$0xff]   ;;  %v18659_v20 = vld [vmem:[#allocation14 + $0x28c] ss:$16 sps:$4 sm:$0xff]   ;;  %v18674_v18 = vld [vmem:[#allocation14 + $0x2e4] ss:$16 sps:$4 sm:$0xff]  }
0x1943   :  { %v18281_v58 = vpop.permute.xlu1 %18280  ;;  %v18669_v24 = vld [vmem:[#allocation14 + $0x2c8] ss:$16 sps:$4 sm:$0xff]  }
0x1944   :  { %v18283_v44 = vunpack.i.h.bf16 %v18281_v58  ;;  %v18282_v63 = vunpack.i.l.bf16 %v18281_v58  ;;  %v18650_v58 = vld [vmem:[#allocation14 + $0x264] ss:$16 sps:$4 sm:$0xff]  }
0x1946   :  { %v11222_v26 = vsel %vm3480_vm6, %v11220_v31, %v18283_v44  ;;  %v11221_v46 = vsel %vm3480_vm6, %v11219_v57, %v18282_v63  ;;  %v18662_v44 = vld [vmem:[#allocation14 + $0x2a4] ss:$16 sps:$4 sm:$0xff]   ;;  %v18665_v63 = vld [vmem:[#allocation14 + $0x2ac] ss:$16 sps:$4 sm:$0xff]   ;;  %v18675_v31 = vld [vmem:[#allocation14 + $0x2e8] ss:$16 sps:$4 sm:$0xff]  }
0x1947   :  { %v18286_v41 = vpop.permute.xlu0 %18285  ;;  %v18678_v57 = vld [vmem:[#allocation17 + $0x240] sm:$0xff]  }
0x1948   :  { %v18288_v55 = vunpack.i.h.bf16 %v18286_v41  ;;  %v18287_v40 = vunpack.i.l.bf16 %v18286_v41  ;;  %v18654_v41 = vld [vmem:[#allocation14 + $0x280] ss:$16 sps:$4 sm:$0xff]  }
0x194a   :  { %v11224_v51 = vsel %vm3483_vm7, %v11222_v26, %v18288_v55  ;;  %v11223_v11 = vsel %vm3483_vm7, %v11221_v46, %v18287_v40  ;;  %v18671_v55 = vld [vmem:[#allocation14 + $0x2cc] ss:$16 sps:$4 sm:$0xff]   ;;  %v18666_v40 = vld [vmem:[#allocation14 + $0x2c0] ss:$16 sps:$4 sm:$0xff]  }
0x194b   :  { %v18291_v45 = vpop.permute.xlu1 %18290  ;;  %v18679_v26 = vld [vmem:[#allocation17 + $0x2c0] sm:$0xff]  }
0x194c   :  { %v18293_v61 = vunpack.i.h.bf16 %v18291_v45  ;;  %v18292_v50 = vunpack.i.l.bf16 %v18291_v45  ;;  %v18660_v45 = vld [vmem:[#allocation14 + $0x2a0] ss:$16 sps:$4 sm:$0xff]  }
0x194e   :  { %v11226_v22 = vsel %vm3486_vm8, %v11224_v51, %v18293_v61  ;;  %v11225_v28 = vsel %vm3486_vm8, %v11223_v11, %v18292_v50  ;;  %v18677_v61 = vld [vmem:[#allocation14 + $0x2ec] ss:$16 sps:$4 sm:$0xff]   ;;  %v18672_v50 = vld [vmem:[#allocation14 + $0x2e0] ss:$16 sps:$4 sm:$0xff]  }
0x194f   :  { %v18296_v37 = vpop.permute.xlu0 %18295 }
0x1950   :  { %v18298_v25 = vunpack.i.h.bf16 %v18296_v37  ;;  %v18297_v14 = vunpack.i.l.bf16 %v18296_v37 }
0x1952   :  { %v11228_v33 = vsel %vm3489_vm9, %v11226_v22, %v18298_v25  ;;  %v11227_v16 = vsel %vm3489_vm9, %v11225_v28, %v18297_v14 }
0x1953   :  { %v11229_v39 = vpack.c.bf16 %v11228_v33, %v11227_v16 }
0x1955   :  { %17958 = vmatmul.mubr.bf16.vlgmr.msra.gmra.mrb[112].mxu1 %v11229_v39 }
0x1956   :  { %11684 = vmatprep.mubr.bf16.mxu1 %v19602_v52  ;;  %11653 = vmatpush1.bf16.msra.mxu1 %v18633_v19 }
0x1a28   :  { %v11337_v56 = vpop.f32.mrb[112].mxu1 }
0x1a29   :  { %v11338_v13 = vadd.f32 %v16580_v47, %v11337_v56  ;;  %v17959_v4 = vpop.f32.mrb[113].mxu1  ;;  %v16590_v56 = vld [vmem:[%s22031_s10 + $0x2] ss:$0 sm:$0xff] }
0x1a2a   :  { %v11340_v7 = vpop.f32.mrb[114].mxu1 }
0x1a2b   :  { %v21470_v43 = vadd.f32 %v11338_v13, %v21014_v32  ;;  %v11341_v38 = vadd.f32 %v16580_v47, %v11340_v7  ;;  %v17960_v49 = vpop.f32.mrb[115].mxu1  ;;  %v18641_v32 = vld [vmem:[#allocation14 + $0x22c] ss:$16 sps:$4 sm:$0xff]  }
0x1a2c   :  { %11654 = vmatprep.subr.bf16.mxu1 %v18641_v32 }
0x1a2d   :  { %v21473_v35 = vadd.f32 %v11341_v38, %v21016_v48  ;;  %11350 = vadd.xlane.f32.xlu1 %v21470_v43  ;;  %v11356_v17 = vmul.f32 %v21470_v43, %v21470_v43  ;;  %11655 = vmatpush1.bf16.msra.mxu1 %v18639_v62  ;;  %v18644_v48 = vld [vmem:[#allocation14 + $0x244] ss:$16 sps:$4 sm:$0xff]  }
0x1a2e   :  { %11613 = vmatprep.subr.bf16.mxu0 %v18644_v48  ;;  %11656 = vmatprep.subr.bf16.mxu1 %v18647_v59  ;;  %v18681_v62 = vld [vmem:[#allocation17 + $0x280] sm:$0xff]   ;;  %v18682_v48 = vld [vmem:[#allocation17 + $0x248] sm:$0xff]  }
0x1a2f   :  { %11352 = vadd.xlane.f32.xlu0 %v21473_v35  ;;  %v11357_v1 = vmul.f32 %v21473_v35, %v21473_v35  ;;  %11614 = vmatpush1.bf16.msra.mxu0 %v18642_v15  ;;  %v18683_v59 = vld [vmem:[#allocation17 + $0x2c8] sm:$0xff]  }
0x1a30   :  { %11615 = vmatprep.subr.bf16.mxu0 %v18650_v58  ;;  %v18685_v15 = vld [vmem:[#allocation17 + $0x288] sm:$0xff]   ;;  %v18687_v58 = vld [vmem:[#allocation17 + $0x2d0] sm:$0xff]  }
0x1a31   :  { %11360 = vadd.xlane.f32.xlu1 %v11357_v1  ;;  %11657 = vmatpush1.bf16.msra.mxu1 %v18645_v21  ;;  %v16591_v1 = vld [vmem:[#allocation13 + $0x2] ss:$0 sm:$0xff]  ;;  %v18686_v21 = vld [vmem:[#allocation17 + $0x250] sm:$0xff]  }
0x1a32   :  { %11658 = vmatprep.subr.bf16.mxu1 %v18653_v54  ;;  %v18688_v54 = vld [vmem:[#allocation17 + $0x210] sm:$0xff]  }
0x1a33   :  { %11358 = vadd.xlane.f32.xlu0 %v11356_v17  ;;  %11616 = vmatpush1.bf16.msra.mxu0 %v18648_v12  ;;  %v18689_v12 = vld [vmem:[#allocation17 + $0x290] sm:$0xff]  }
0x1a34   :  { %11617 = vmatprep.subr.bf16.mxu0 %v18656_v34  ;;  %v18691_v34 = vld [vmem:[#allocation17 + $0x2d8] sm:$0xff]  }
0x1a35   :  { %11659 = vmatpush1.bf16.msra.mxu1 %v18651_v30  ;;  %v18690_v30 = vld [vmem:[#allocation17 + $0x258] sm:$0xff]  }
0x1a36   :  { %11660 = vmatprep.subr.bf16.mxu1 %v18659_v20  ;;  %v18694_v20 = vld [vmem:[#allocation17 + $0x260] sm:$0xff]  }
0x1a37   :  { %11618 = vmatpush1.bf16.msra.mxu0 %v18654_v41  ;;  %v18692_v41 = vld [vmem:[#allocation17 + $0x218] sm:$0xff]  }
0x1a38   :  { %11619 = vmatprep.subr.bf16.mxu0 %v18662_v44  ;;  %v18695_v44 = vld [vmem:[#allocation17 + $0x2e0] sm:$0xff]  }
0x1a39   :  { %11661 = vmatpush1.bf16.msra.mxu1 %v18657_v53  ;;  %v18693_v53 = vld [vmem:[#allocation17 + $0x298] sm:$0xff]  }
0x1a3a   :  { %11662 = vmatprep.subr.bf16.mxu1 %v18665_v63  ;;  %v18696_v63 = vld [vmem:[#allocation17 + $0x220] sm:$0xff]  }
0x1a3b   :  { %11620 = vmatpush1.bf16.msra.mxu0 %v18660_v45  ;;  %v18697_v45 = vld [vmem:[#allocation17 + $0x2a0] sm:$0xff]  }
0x1a3c   :  { %11621 = vmatprep.subr.bf16.mxu0 %v18668_v3  ;;  %v18699_v3 = vld [vmem:[#allocation17 + $0x2e8] sm:$0xff]  }
0x1a3d   :  { %11663 = vmatpush1.bf16.msra.mxu1 %v18663_v6  ;;  %v18698_v6 = vld [vmem:[#allocation17 + $0x268] sm:$0xff]  }
0x1a3e   :  { %11664 = vmatprep.subr.bf16.mxu1 %v18671_v55  ;;  %v18700_v55 = vld [vmem:[#allocation17 + $0x228] sm:$0xff]  }
0x1a3f   :  { %11622 = vmatpush1.bf16.msra.mxu0 %v18666_v40  ;;  %v18701_v40 = vld [vmem:[#allocation17 + $0x2a8] sm:$0xff]  }
0x1a40   :  { %11623 = vmatprep.subr.bf16.mxu0 %v18674_v18  ;;  %v18703_v18 = vld [vmem:[#allocation17 + $0x2f0] sm:$0xff]  }
0x1a41   :  { %11665 = vmatpush1.bf16.msra.mxu1 %v18669_v24  ;;  %v18702_v24 = vld [vmem:[#allocation17 + $0x270] sm:$0xff]  }
0x1a42   :  { %11666 = vmatprep.subr.bf16.mxu1 %v18677_v61  ;;  %v18704_v61 = vld [vmem:[#allocation17 + $0x230] sm:$0xff]  }
0x1a43   :  { %11624 = vmatpush1.bf16.msra.mxu0 %v18672_v50  ;;  %v18705_v50 = vld [vmem:[#allocation17 + $0x2b0] sm:$0xff]  }
0x1a44   :  { %17185 = vmatprep.subr.bf16.mxu0 %v18678_v57  ;;  %v18707_v57 = vld [vmem:[#allocation17 + $0x2f8] sm:$0xff]  }
0x1a45   :  { %11667 = vmatpush1.bf16.msra.mxu1 %v18675_v31  ;;  %v18706_v31 = vld [vmem:[#allocation17 + $0x278] sm:$0xff]  }
0x1a46   :  { %17207 = vmatprep.subr.bf16.mxu1 %v18679_v26  ;;  %v18708_v26 = vld [vmem:[#allocation17 + $0x238] sm:$0xff]  }
0x1aba   :  { %v11351_v46 = vpop.xlane.xlu1 %11350 }
0x1abb   :  { %v11354_v51 = vmul.f32 0.0078125, %v11351_v46  ;;  %v18709_v46 = vld [vmem:[#allocation17 + $0x2b8] sm:$0xff]  }
0x1abc   :  { %v11353_v37 = vpop.xlane.xlu0 %11352 }
0x1abd   :  { %v11355_v11 = vmul.f32 0.0078125, %v11353_v37  ;;  %v11364_v33 = vmul.f32 %v11354_v51, %v11354_v51  ;;  %v11368_v13 = vsub.f32 %v21470_v43, %v11354_v51  ;;  %v18684_v43 = vld [vmem:[#allocation17 + $0x208] sm:$0xff]   ;;  %v11427_v37 = vld [vmem:[#allocation16 + $0x8] sm:$0xf] }
0x1abe   :  { %v11361_v25 = vpop.xlane.xlu1 %11360  ;;  %v11432_v51 = vrot.slane %v11427_v37, %v19993_v8 }
0x1abf   :  { %v11365_v14 = vmul.f32 %v11355_v11, %v11355_v11  ;;  %v11363_v22 = vmul.f32 0.0078125, %v11361_v25  ;;  %v11369_v2 = vsub.f32 %v21473_v35, %v11355_v11  ;;  %v11440_v11 = vrot.slane %v11427_v37, %v20038_v27 }
0x1ac0   :  { %v11359_v28 = vpop.xlane.xlu0 %11358  ;;  %v11436_v25 = vrot.slane %v11427_v37, %v19999_v10 }
0x1ac1   :  { %v11367_v16 = vsub.f32 %v11363_v22, %v11365_v14  ;;  %v11362_v39 = vmul.f32 0.0078125, %v11359_v28  ;;  %v11444_v14 = vrot.slane %v11427_v37, %v20477_v42 }
0x1ac3   :  { %v11371_v36 = vadd.f32 1e-12, %v11367_v16  ;;  %v11366_v29 = vsub.f32 %v11362_v39, %v11364_v33 }
0x1ac5   :  { %19094 = vrsqrt.f32 %v11371_v36  ;;  %v11370_v19 = vadd.f32 1e-12, %v11366_v29 }
0x1ac7   :  { %19096 = vrsqrt.f32 %v11370_v19 }
0x1acf   :  { %v19095_v47 = vpop.eup %19094 }
0x1ad0   :  { %v11375_v4 = vmul.f32 %v19095_v47, %v11369_v2 }
0x1ad1   :  { %v19097_v7 = vpop.eup %19096 }
0x1ad2   :  { %v11374_v38 = vmul.f32 %v19097_v7, %v11368_v13  ;;  %v11383_v49 = vmul.f32 %v16590_v56, %v11375_v4 }
0x1ad4   :  { %v11382_v17 = vmul.f32 %v16590_v56, %v11374_v38  ;;  %v21488_v32 = vadd.f32 %v16591_v1, %v11383_v49 }
0x1ad6   :  { %v21486_v60 = vadd.f32 %v16591_v1, %v11382_v17 }
0x1ad8   :  { %v11392_v35 = vpack.c.bf16 %v21488_v32, %v21486_v60 }
0x1ada   :  { %11642 = vmatmul.mubr.bf16.vlgmr.msra.gmra.mrb[152].mxu0 %v11392_v35  ;;  %11685 = vmatmul.mubr.bf16.vlgmr.msra.gmra.mrb[116].mxu1 %v11392_v35 }
0x1adb   :  { %17186 = vmatpush3.bf16.msra.mxu0 %v18680_v23  ;;  %17208 = vmatpush3.bf16.msra.mxu1 %v18681_v62 }
0x1adc   :  { %17187 = vmatprep.subr.bf16.mxu0 %v18682_v48  ;;  %17209 = vmatprep.subr.bf16.mxu1 %v18683_v59 }
0x1adf   :  { %17188 = vmatpush3.bf16.msra.mxu0 %v18684_v43  ;;  %17210 = vmatpush3.bf16.msra.mxu1 %v18685_v15 }
0x1ae0   :  { %17189 = vmatprep.subr.bf16.mxu0 %v18686_v21  ;;  %17211 = vmatprep.subr.bf16.mxu1 %v18687_v58 }
0x1ae3   :  { %17190 = vmatpush3.bf16.msra.mxu0 %v18688_v54  ;;  %17212 = vmatpush3.bf16.msra.mxu1 %v18689_v12 }
0x1ae4   :  { %17191 = vmatprep.subr.bf16.mxu0 %v18690_v30  ;;  %17213 = vmatprep.subr.bf16.mxu1 %v18691_v34 }
0x1ae7   :  { %17192 = vmatpush3.bf16.msra.mxu0 %v18692_v41  ;;  %17214 = vmatpush3.bf16.msra.mxu1 %v18693_v53 }
0x1ae8   :  { %17193 = vmatprep.subr.bf16.mxu0 %v18694_v20  ;;  %17215 = vmatprep.subr.bf16.mxu1 %v18695_v44 }
0x1aeb   :  { %17194 = vmatpush3.bf16.msra.mxu0 %v18696_v63  ;;  %17216 = vmatpush3.bf16.msra.mxu1 %v18697_v45 }
0x1aec   :  { %17195 = vmatprep.subr.bf16.mxu0 %v18698_v6  ;;  %17217 = vmatprep.subr.bf16.mxu1 %v18699_v3 }
0x1aef   :  { %17196 = vmatpush3.bf16.msra.mxu0 %v18700_v55  ;;  %17218 = vmatpush3.bf16.msra.mxu1 %v18701_v40 }
0x1af0   :  { %17197 = vmatprep.subr.bf16.mxu0 %v18702_v24  ;;  %17219 = vmatprep.subr.bf16.mxu1 %v18703_v18 }
0x1af3   :  { %17198 = vmatpush3.bf16.msra.mxu0 %v18704_v61  ;;  %17220 = vmatpush3.bf16.msra.mxu1 %v18705_v50 }
0x1af4   :  { %17199 = vmatprep.subr.bf16.mxu0 %v18706_v31  ;;  %17221 = vmatprep.subr.bf16.mxu1 %v18707_v57 }
0x1af7   :  { %17200 = vmatpush3.bf16.msra.mxu0 %v18708_v26  ;;  %17222 = vmatpush3.bf16.msra.mxu1 %v18709_v46 }
0x1af8   :  { %17961 = vmatprep.subr.bf16.mxu1 %v19600_v0 }
0x1bad   :  { %v11643_v22 = vpop.f32.mrb[152].mxu0  ;;  %v11686_v28 = vpop.f32.mrb[116].mxu1 }
0x1bae   :  { %v11644_v33 = vadd.f32 %v11643_v22, %v11432_v51  ;;  %v11687_v16 = vadd.f32 %v11686_v28, %v11440_v11  ;;  %v11645_v39 = vpop.f32.mrb[153].mxu0  ;;  %v11688_v36 = vpop.f32.mrb[117].mxu1 }
0x1baf   :  { %v11646_v29 = vadd.f32 %v11645_v39, %v11436_v25  ;;  %v11689_v19 = vadd.f32 %v11688_v36, %v11444_v14  ;;  %v11647_v2 = vpop.f32.mrb[154].mxu0  ;;  %v11690_v47 = vpop.f32.mrb[118].mxu1 }
0x1bb0   :  { %v11703_v56 = vmul.f32 0.70710677, %v11644_v33  ;;  %v11705_v13 = vmul.f32 0.70710677, %v11687_v16  ;;  %v11648_v38 = vadd.f32 %v11647_v2, %v11432_v51  ;;  %v11691_v49 = vadd.f32 %v11690_v47, %v11440_v11  ;;  %v11649_v1 = vpop.f32.mrb[155].mxu0  ;;  %v11692_v17 = vpop.f32.mrb[119].mxu1 }
0x1bb1   :  { %v11704_v4 = vmul.f32 0.70710677, %v11646_v29  ;;  %v11706_v7 = vmul.f32 0.70710677, %v11689_v19  ;;  %v11650_v23 = vadd.f32 %v11649_v1, %v11436_v25  ;;  %v11693_v62 = vadd.f32 %v11692_v17, %v11444_v14 }
0x1bb2   :  { %19098 = verf.f32 %v11703_v56  ;;  %v11707_v35 = vmul.f32 0.70710677, %v11648_v38  ;;  %v11709_v48 = vmul.f32 0.70710677, %v11691_v49  ;;  %v11695_v34 = vmul.f32 0.5, %v11644_v33 }
0x1bb3   :  { %19100 = verf.f32 %v11705_v13  ;;  %v11708_v59 = vmul.f32 0.70710677, %v11650_v23  ;;  %v11710_v43 = vmul.f32 0.70710677, %v11693_v62  ;;  %v11697_v41 = vmul.f32 0.5, %v11687_v16 }
0x1bb4   :  { %19102 = verf.f32 %v11704_v4  ;;  %v11696_v44 = vmul.f32 0.5, %v11646_v29  ;;  %v11699_v45 = vmul.f32 0.5, %v11648_v38  ;;  %v11698_v55 = vmul.f32 0.5, %v11689_v19  ;;  %v18710_v29 = vld [vmem:[#allocation8 + $0x240] ss:$12 sps:$4 sm:$0xff]  }
0x1bb5   :  { %19104 = verf.f32 %v11706_v7  ;;  %v11701_v24 = vmul.f32 0.5, %v11691_v49  ;;  %v11700_v57 = vmul.f32 0.5, %v11650_v23  ;;  %v11702_v51 = vmul.f32 0.5, %v11693_v62  ;;  %v18712_v19 = vld [vmem:[#allocation8 + $0x244] ss:$12 sps:$4 sm:$0xff]  }
0x1bb6   :  { %19106 = verf.f32 %v11707_v35  ;;  %12314 = vmatprep.subr.bf16.mxu0 %v18712_v19  ;;  %v16624_v56 = vld [vmem:[#allocation19 + $0x2] ss:$0 sm:$0xff] }
0x1bb7   :  { %19108 = verf.f32 %v11709_v48 }
0x1bb8   :  { %19110 = verf.f32 %v11708_v59 }
0x1bb9   :  { %19112 = verf.f32 %v11710_v43 }
0x1bbc   :  { %v19099_v15 = vpop.eup %19098 }
0x1bbd   :  { %v19101_v21 = vpop.eup %19100  ;;  %v11719_v12 = vadd.f32 1.0, %v19099_v15 }
0x1bbe   :  { %v19103_v58 = vpop.eup %19102  ;;  %v11721_v53 = vadd.f32 1.0, %v19101_v21 }
0x1bbf   :  { %v19105_v54 = vpop.eup %19104  ;;  %v11720_v63 = vadd.f32 1.0, %v19103_v58  ;;  %v11727_v50 = vmul.f32 %v11719_v12, %v11695_v34  ;;  %v18716_v34 = vld [vmem:[#allocation8 + $0x25c] ss:$12 sps:$4 sm:$0xff]  }
0x1bc0   :  { %v19107_v30 = vpop.eup %19106  ;;  %v11722_v40 = vadd.f32 1.0, %v19105_v54  ;;  %v11729_v46 = vmul.f32 %v11721_v53, %v11697_v41  ;;  %v18717_v41 = vld [vmem:[#allocation8 + $0x260] ss:$12 sps:$4 sm:$0xff]   ;;  %v18718_v53 = vld [vmem:[#allocation8 + $0x270] ss:$12 sps:$4 sm:$0xff]  }
0x1bc1   :  { %v19109_v20 = vpop.eup %19108  ;;  %v11723_v6 = vadd.f32 1.0, %v19107_v30  ;;  %v11728_v25 = vmul.f32 %v11720_v63, %v11696_v44  ;;  %v18713_v30 = vld [vmem:[#allocation8 + $0x248] ss:$12 sps:$4 sm:$0xff]   ;;  %v18724_v44 = vld [vmem:[#allocation8 + $0x28c] ss:$12 sps:$4 sm:$0xff]  }
0x1bc2   :  { %v19111_v3 = vpop.eup %19110  ;;  %v11725_v18 = vadd.f32 1.0, %v19109_v20  ;;  %v11730_v28 = vmul.f32 %v11722_v40, %v11698_v55  ;;  %v18721_v20 = vld [vmem:[#allocation8 + $0x278] ss:$12 sps:$4 sm:$0xff]   ;;  %v18722_v63 = vld [vmem:[#allocation8 + $0x288] ss:$12 sps:$4 sm:$0xff]  }
0x1bc3   :  { %v19113_v61 = vpop.eup %19112  ;;  %v11731_v31 = vmul.f32 %v11723_v6, %v11699_v45  ;;  %v11724_v26 = vadd.f32 1.0, %v19111_v3  ;;  %v18725_v45 = vld [vmem:[#allocation8 + $0x290] ss:$12 sps:$4 sm:$0xff]   ;;  %v18726_v3 = vld [vmem:[#allocation8 + $0x2a0] ss:$12 sps:$4 sm:$0xff]  }
0x1bc4   :  { %v11733_v37 = vmul.f32 %v11725_v18, %v11701_v24  ;;  %v11726_v11 = vadd.f32 1.0, %v19113_v61  ;;  %v18728_v6 = vld [vmem:[#allocation8 + $0x2a4] ss:$12 sps:$4 sm:$0xff]   ;;  %v18729_v55 = vld [vmem:[#allocation8 + $0x2a8] ss:$12 sps:$4 sm:$0xff]  }
0x1bc5   :  { %v11735_v14 = vpack.c.bf16 %v11731_v31, %v11727_v50  ;;  %v11732_v22 = vmul.f32 %v11724_v26, %v11700_v57  ;;  %v18732_v40 = vld [vmem:[#allocation8 + $0x2bc] ss:$12 sps:$4 sm:$0xff]   ;;  %v18730_v24 = vld [vmem:[#allocation8 + $0x2b8] ss:$12 sps:$4 sm:$0xff]   ;;  %v18733_v18 = vld [vmem:[#allocation8 + $0x2c0] ss:$12 sps:$4 sm:$0xff]  }
0x1bc6   :  { %v11737_v33 = vpack.c.bf16 %v11733_v37, %v11729_v46  ;;  %v11734_v16 = vmul.f32 %v11726_v11, %v11702_v51  ;;  %v18736_v61 = vld [vmem:[#allocation8 + $0x2d4] ss:$12 sps:$4 sm:$0xff]   ;;  %v18734_v50 = vld [vmem:[#allocation8 + $0x2d0] ss:$12 sps:$4 sm:$0xff]   ;;  %v18737_v31 = vld [vmem:[#allocation8 + $0x2d8] ss:$12 sps:$4 sm:$0xff]  }
0x1bc7   :  { %v11736_v39 = vpack.c.bf16 %v11732_v22, %v11728_v25  ;;  %v18740_v57 = vld [vmem:[#allocation8 + $0x2ec] ss:$12 sps:$4 sm:$0xff]   ;;  %v18738_v26 = vld [vmem:[#allocation8 + $0x2e8] ss:$12 sps:$4 sm:$0xff]   ;;  %v18741_v46 = vld [vmem:[#allocation8 + $0x2f0] ss:$12 sps:$4 sm:$0xff]  }
0x1bc8   :  { %v11738_v36 = vpack.c.bf16 %v11734_v16, %v11730_v28 }
0x1bc9   :  { %12036 = vmatprep.mubr.bf16.mxu0 %v11736_v39 }
0x1bca   :  { %12077 = vmatprep.mubr.bf16.mxu1 %v11738_v36  ;;  %12037 = vmatmul.mubr.bf16.vlgmr.msra.gmra.mrb[156].mxu0 %v11735_v14 }
0x1bcb   :  { %12078 = vmatmul.mubr.bf16.vlgmr.msra.gmra.mrb[120].mxu1 %v11737_v33  ;;  %12346 = vmatprep.mubr.bf16.mxu0 %v19602_v52 }
0x1bcc   :  { %17977 = vmatprep.mubr.msk.bf16.mxu1 %vm19601_vm0, %v19600_v0  ;;  %12315 = vmatpush1.bf16.msra.mxu0 %v18710_v29 }
0x1bcd   :  { %17962 = vmatpush3.bf16.msra.mxu1 %v18713_v30  ;;  %12316 = vmatprep.subr.bf16.mxu0 %v18716_v34 }
0x1bce   :  { %17963 = vmatprep.subr.bf16.mxu1 %v19600_v0 }
0x1bd1   :  { %17964 = vmatpush3.bf16.msra.mxu1 %v18717_v41 }
0x1bd2   :  { %17965 = vmatprep.subr.bf16.mxu1 %v19600_v0 }
0x1bd5   :  { %17966 = vmatpush3.bf16.msra.mxu1 %v18721_v20 }
0x1bd6   :  { %17967 = vmatprep.subr.bf16.mxu1 %v19600_v0 }
0x1bd9   :  { %17968 = vmatpush3.bf16.msra.mxu1 %v18725_v45 }
0x1bda   :  { %17969 = vmatprep.subr.bf16.mxu1 %v19600_v0 }
0x1bdd   :  { %17970 = vmatpush3.bf16.msra.mxu1 %v18729_v55 }
0x1bde   :  { %17971 = vmatprep.subr.bf16.mxu1 %v19600_v0 }
0x1be1   :  { %17972 = vmatpush3.bf16.msra.mxu1 %v18733_v18 }
0x1be2   :  { %17973 = vmatprep.subr.bf16.mxu1 %v19600_v0 }
0x1be5   :  { %17974 = vmatpush3.bf16.msra.mxu1 %v18737_v31 }
0x1be6   :  { %17975 = vmatprep.subr.bf16.mxu1 %v19600_v0 }
0x1be9   :  { %17976 = vmatpush3.bf16.msra.mxu1 %v18741_v46 }
0x1bea   :  { %18021 = vmatprep.subr.mxu1 %v19600_v0 }
0x1c9d   :  { %v17201_v2 = vpop.f32.mrb[156].mxu0 }
0x1c9e   :  { %v17223_v47 = vpop.f32.mrb[120].mxu1  ;;  %v17202_v13 = vpop.f32.mrb[157].mxu0 }
0x1c9f   :  { %v17203_v4 = vadd.f32 %v17202_v13, %v17201_v2  ;;  %v17224_v7 = vpop.f32.mrb[121].mxu1  ;;  %v17204_v38 = vpop.f32.mrb[158].mxu0  ;;  %v16657_v13 = vld [vmem:[#allocation20 + $0x2] ss:$0 sm:$0xff] }
0x1ca0   :  { %v17225_v49 = vadd.f32 %v17224_v7, %v17223_v47  ;;  %v17226_v1 = vpop.f32.mrb[122].mxu1  ;;  %v17205_v17 = vpop.f32.mrb[159].mxu0 }
0x1ca1   :  { %v12039_v23 = vadd.f32 %v17203_v4, %v16624_v56  ;;  %v17206_v62 = vadd.f32 %v17205_v17, %v17204_v38  ;;  %v17227_v35 = vpop.f32.mrb[123].mxu1  ;;  %v16658_v17 = vld [vmem:[#allocation22 + $0x2] ss:$0 sm:$0xff] }
0x1ca2   :  { %v17228_v48 = vadd.f32 %v17227_v35, %v17226_v1 }
0x1ca3   :  { %v12080_v59 = vadd.f32 %v17225_v49, %v12039_v23  ;;  %v12042_v43 = vadd.f32 %v17206_v62, %v16624_v56 }
0x1ca5   :  { %v12083_v15 = vadd.f32 %v17228_v48, %v12042_v43  ;;  %v21501_v21 = vadd.f32 %v12080_v59, %v21486_v60  ;;  %v18714_v60 = vld [vmem:[#allocation8 + $0x258] ss:$12 sps:$4 sm:$0xff]  }
0x1ca6   :  { %12317 = vmatpush1.bf16.msra.mxu0 %v18714_v60  ;;  %v21536_v59 = vld [vmem:[%s22028_s7 + $0x9] sm:$0x7] }
0x1ca7   :  { %12092 = vadd.xlane.f32.xlu0 %v21501_v21  ;;  %v21505_v58 = vadd.f32 %v12083_v15, %v21488_v32  ;;  %v12098_v54 = vmul.f32 %v21501_v21, %v21501_v21  ;;  %v18720_v32 = vld [vmem:[#allocation8 + $0x274] ss:$12 sps:$4 sm:$0xff]   ;;  %v12174_v43 = vrot.slane %v21536_v59, %v19993_v8  ;;  %v12178_v15 = vrot.slane %v21536_v59, %v19999_v10 }
0x1ca8   :  { %12318 = vmatprep.subr.bf16.mxu0 %v18720_v32 }
0x1ca9   :  { %12094 = vadd.xlane.f32.xlu1 %v21505_v58  ;;  %v12099_v12 = vmul.f32 %v21505_v58, %v21505_v58 }
0x1caa   :  { %12319 = vmatpush1.bf16.msra.mxu0 %v18718_v53 }
0x1cab   :  { %12100 = vadd.xlane.f32.xlu0 %v12098_v54  ;;  %12320 = vmatprep.subr.bf16.mxu0 %v18724_v44 }
0x1cad   :  { %12102 = vadd.xlane.f32.xlu1 %v12099_v12 }
0x1cae   :  { %12321 = vmatpush1.bf16.msra.mxu0 %v18722_v63 }
0x1caf   :  { %12322 = vmatprep.subr.bf16.mxu0 %v18728_v6 }
0x1cb2   :  { %12323 = vmatpush1.bf16.msra.mxu0 %v18726_v3 }
0x1cb3   :  { %12324 = vmatprep.subr.bf16.mxu0 %v18732_v40 }
0x1cb6   :  { %12325 = vmatpush1.bf16.msra.mxu0 %v18730_v24 }
0x1cb7   :  { %12326 = vmatprep.subr.bf16.mxu0 %v18736_v61 }
0x1cba   :  { %12327 = vmatpush1.bf16.msra.mxu0 %v18734_v50 }
0x1cbb   :  { %12328 = vmatprep.subr.bf16.mxu0 %v18740_v57 }
0x1cbe   :  { %12329 = vmatpush1.bf16.msra.mxu0 %v18738_v26 }
0x1cbf   :  { %17981 = vmatprep.subr.mxu0 %v19600_v0 }
0x1d34   :  { %v12093_v37 = vpop.xlane.xlu0 %12092 }
0x1d35   :  { %v12096_v51 = vmul.f32 0.0078125, %v12093_v37 }
0x1d36   :  { %v12095_v11 = vpop.xlane.xlu1 %12094 }
0x1d37   :  { %v12097_v25 = vmul.f32 0.0078125, %v12095_v11  ;;  %v12106_v22 = vmul.f32 %v12096_v51, %v12096_v51  ;;  %v12110_v47 = vsub.f32 %v21501_v21, %v12096_v51 }
0x1d38   :  { %v12101_v14 = vpop.xlane.xlu0 %12100 }
0x1d39   :  { %v12104_v28 = vmul.f32 0.0078125, %v12101_v14  ;;  %v12107_v16 = vmul.f32 %v12097_v25, %v12097_v25  ;;  %v12111_v4 = vsub.f32 %v21505_v58, %v12097_v25 }
0x1d3a   :  { %v12103_v33 = vpop.xlane.xlu1 %12102 }
0x1d3b   :  { %v12108_v39 = vsub.f32 %v12104_v28, %v12106_v22  ;;  %v12105_v36 = vmul.f32 0.0078125, %v12103_v33 }
0x1d3d   :  { %v12112_v29 = vadd.f32 1e-12, %v12108_v39  ;;  %v12109_v19 = vsub.f32 %v12105_v36, %v12107_v16 }
0x1d3f   :  { %19114 = vrsqrt.f32 %v12112_v29  ;;  %v12113_v2 = vadd.f32 1e-12, %v12109_v19  ;;  %v12182_v19 = vrot.slane %v21536_v59, %v20038_v27 }
0x1d41   :  { %19116 = vrsqrt.f32 %v12113_v2 }
0x1d49   :  { %v19115_v56 = vpop.eup %19114 }
0x1d4a   :  { %v12116_v7 = vmul.f32 %v19115_v56, %v12110_v47 }
0x1d4b   :  { %v19117_v38 = vpop.eup %19116 }
0x1d4c   :  { %v12117_v49 = vmul.f32 %v19117_v38, %v12111_v4  ;;  %v12124_v1 = vmul.f32 %v16657_v13, %v12116_v7 }
0x1d4e   :  { %v12125_v23 = vmul.f32 %v16657_v13, %v12117_v49  ;;  %v21523_v62 = vadd.f32 %v16658_v17, %v12124_v1 }
0x1d50   :  { %v21525_v35 = vadd.f32 %v16658_v17, %v12125_v23 }
0x1d52   :  { %v12134_v48 = vpack.c.bf16 %v21525_v35, %v21523_v62 }
0x1d54   :  { %12347 = vmatmul.mubr.bf16.vlgmr.msra.gmra.mrb[160].mxu0 %v12134_v48  ;;  %17978 = vmatmul.mubr.bf16.vlgmr.msra.gmra.mrb[124].mxu1 %v12134_v48 }
0x1d55   :  { %17983 = vmatprep.mubr.msk.f32.mxu0 %vm19601_vm0, %v19600_v0  ;;  %18023 = vmatprep.mubr.msk.f32.mxu1 %vm19601_vm0, %v19600_v0 }
0x1e27   :  { %v12348_v21 = vpop.f32.mrb[160].mxu0  ;;  %v21542_v58 = vpop.f32.mrb[124].mxu1 }
0x1e28   :  { %v12350_v54 = vpop.f32.mrb[161].mxu0  ;;  %v17979_v12 = vpop.f32.mrb[125].mxu1  ;;  %v12349_v30 = vadd.f32 %v12348_v21, %v12174_v43  ;;  %v21650_v56 = vadd.f32 %v21542_v58, %v12182_v19 }
0x1e29   :  { %v12351_v34 = vadd.f32 %v12350_v54, %v12178_v15  ;;  %v12352_v60 = vpop.f32.mrb[162].mxu0  ;;  %v21544_v41 = vpop.f32.mrb[126].mxu1 }
0x1e2a   :  { %v12354_v32 = vpop.f32.mrb[163].mxu0  ;;  %v17980_v53 = vpop.f32.mrb[127].mxu1  ;;  %v12398_v20 = vmul.f32 0.25, %v12349_v30  ;;  %v12353_v44 = vadd.f32 %v12352_v60, %v12174_v43  ;;  %v21654_v4 = vadd.f32 %v21544_v41, %v12182_v19 }
0x1e2b   :  { %12436 = vrot.lane.b32.xlu1 %v12351_v34, %s19604_s26  ;;  %12432 = vrot.lane.b32.xlu0 %v12351_v34, %s19603_s25  ;;  %v12355_v63 = vadd.f32 %v12354_v32, %v12178_v15 }
0x1e2c   :  { %17982 = vmatpush3.xpose.msk.msra.mxu0 %vm887_vm3, %v12351_v34  ;;  %v12399_v45 = vmul.f32 0.25, %v12353_v44 }
0x1e2d   :  { %17986 = vmatprep.subr.mxu0 %v19600_v0 }
0x1e2f   :  { %17984 = vmatmul.mubr.msk.f32.vlgmr.msra.gmra.mrb[164].mxu0 %vm887_vm3, %v12398_v20  ;;  %12440 = vrot.lane.b32.xlu1 %v12351_v34, %s19605_s4 }
0x1e30   :  { %12406 = vrot.lane.b32.xlu0 %v12398_v20, %s19604_s26  ;;  %17987 = vmatpush3.xpose.msk.msra.mxu0 %vm887_vm3, %v12355_v63 }
0x1e31   :  { %17988 = vmatprep.mubr.msk.f32.mxu0 %vm19601_vm0, %v19600_v0  ;;  %17991 = vmatprep.subr.mxu0 %v19600_v0 }
0x1e33   :  { %17989 = vmatmul.mubr.msk.f32.vlgmr.msra.gmra.mrb[166].mxu0 %vm887_vm3, %v12399_v45  ;;  %12444 = vrot.lane.b32.xlu1 %v12351_v34, %s19587_s30 }
0x1e34   :  { %12410 = vrot.lane.b32.xlu0 %v12398_v20, %s19605_s4  ;;  %17993 = vmatprep.mubr.msk.f32.mxu0 %vm19601_vm0, %v19600_v0 }
0x1e37   :  { %12402 = vrot.lane.b32.xlu1 %v12398_v20, %s19603_s25 }
0x1e38   :  { %12446 = vrot.lane.b32.xlu0 %v12355_v63, %s19587_s30 }
0x1e3b   :  { %12434 = vrot.lane.b32.xlu1 %v12355_v63, %s19603_s25 }
0x1e3c   :  { %12450 = vrot.lane.b32.xlu0 %v12355_v63, %s19606_s27 }
0x1e3f   :  { %12414 = vrot.lane.b32.xlu1 %v12398_v20, %s19587_s30 }
0x1e40   :  { %12404 = vrot.lane.b32.xlu0 %v12399_v45, %s19603_s25 }
0x1e43   :  { %12438 = vrot.lane.b32.xlu1 %v12355_v63, %s19604_s26 }
0x1e44   :  { %12454 = vrot.lane.b32.xlu0 %v12355_v63, %s19607_s16 }
0x1e47   :  { %12448 = vrot.lane.b32.xlu1 %v12351_v34, %s19606_s27 }
0x1e48   :  { %12408 = vrot.lane.b32.xlu0 %v12399_v45, %s19604_s26 }
0x1e4b   :  { %12442 = vrot.lane.b32.xlu1 %v12355_v63, %s19605_s4 }
0x1e4c   :  { %12458 = vrot.lane.b32.xlu0 %v12355_v63, %s22057_s8 }
0x1e4f   :  { %12418 = vrot.lane.b32.xlu1 %v12398_v20, %s19606_s27 }
0x1e50   :  { %12412 = vrot.lane.b32.xlu0 %v12399_v45, %s19605_s4 }
0x1e53   :  { %12452 = vrot.lane.b32.xlu1 %v12351_v34, %s19607_s16 }
0x1e54   :  { %12416 = vrot.lane.b32.xlu0 %v12399_v45, %s19587_s30 }
0x1e57   :  { %12422 = vrot.lane.b32.xlu1 %v12398_v20, %s19607_s16 }
0x1e58   :  { %12420 = vrot.lane.b32.xlu0 %v12399_v45, %s19606_s27 }
0x1e5b   :  { %12456 = vrot.lane.b32.xlu1 %v12351_v34, %s22057_s8 }
0x1e5c   :  { %12424 = vrot.lane.b32.xlu0 %v12399_v45, %s19607_s16 }
0x1e5f   :  { %12426 = vrot.lane.b32.xlu1 %v12398_v20, %s22057_s8 }
0x1e60   :  { %12428 = vrot.lane.b32.xlu0 %v12399_v45, %s22057_s8 }
0x1e9d   :  { %v12437_v6 = vpop.permute.xlu1 %12436  ;;  %v12433_v3 = vpop.permute.xlu0 %12432 }
0x1e9e   :  { %17992 = vmatpush3.xpose.msk.msra.mxu0 %vm887_vm3, %v12433_v3 }
0x1e9f   :  { %17996 = vmatprep.subr.mxu0 %v19600_v0 }
0x1ea1   :  { %v12441_v55 = vpop.permute.xlu1 %12440 }
0x1ea2   :  { %v12407_v40 = vpop.permute.xlu0 %12406 }
0x1ea5   :  { %v12445_v24 = vpop.permute.xlu1 %12444 }
0x1ea6   :  { %v12411_v18 = vpop.permute.xlu0 %12410  ;;  %18022 = vmatpush3.xpose.msk.msra.mxu1 %vm887_vm3, %v12445_v24 }
0x1ea7   :  { %18031 = vmatprep.subr.mxu1 %v19600_v0 }
0x1ea9   :  { %v12403_v61 = vpop.permute.xlu1 %12402 }
0x1eaa   :  { %v12447_v50 = vpop.permute.xlu0 %12446  ;;  %17994 = vmatmul.mubr.msk.f32.vlgmr.msra.gmra.mrb[168].mxu0 %vm887_vm3, %v12403_v61 }
0x1eab   :  { %17998 = vmatprep.mubr.msk.f32.mxu0 %vm19601_vm0, %v19600_v0 }
0x1ead   :  { %v12435_v31 = vpop.permute.xlu1 %12434 }
0x1eae   :  { %v12451_v57 = vpop.permute.xlu0 %12450  ;;  %17997 = vmatpush3.xpose.msk.msra.mxu0 %vm887_vm3, %v12435_v31 }
0x1eaf   :  { %18001 = vmatprep.subr.mxu0 %v19600_v0 }
0x1eb1   :  { %v12415_v26 = vpop.permute.xlu1 %12414 }
0x1eb2   :  { %v12405_v46 = vpop.permute.xlu0 %12404  ;;  %18024 = vmatmul.mubr.msk.f32.vlgmr.msra.gmra.mrb[128].mxu1 %vm887_vm3, %v12415_v26 }
0x1eb3   :  { %17999 = vmatmul.mubr.msk.f32.vlgmr.msra.gmra.mrb[170].mxu0 %vm887_vm3, %v12405_v46  ;;  %18033 = vmatprep.mubr.msk.f32.mxu1 %vm19601_vm0, %v19600_v0 }
0x1eb4   :  { %18002 = vmatpush3.xpose.msk.msra.mxu0 %vm887_vm3, %v12437_v6  ;;  %18003 = vmatprep.mubr.msk.f32.mxu0 %vm19601_vm0, %v19600_v0 }
0x1eb5   :  { %v12439_v37 = vpop.permute.xlu1 %12438  ;;  %18006 = vmatprep.subr.mxu0 %v19600_v0 }
0x1eb6   :  { %v12455_v51 = vpop.permute.xlu0 %12454 }
0x1eb7   :  { %18004 = vmatmul.mubr.msk.f32.vlgmr.msra.gmra.mrb[172].mxu0 %vm887_vm3, %v12407_v40 }
0x1eb8   :  { %18007 = vmatpush3.xpose.msk.msra.mxu0 %vm887_vm3, %v12439_v37  ;;  %18008 = vmatprep.mubr.msk.f32.mxu0 %vm19601_vm0, %v19600_v0 }
0x1eb9   :  { %v12449_v11 = vpop.permute.xlu1 %12448  ;;  %18011 = vmatprep.subr.mxu0 %v19600_v0 }
0x1eba   :  { %v12409_v25 = vpop.permute.xlu0 %12408  ;;  %18032 = vmatpush3.xpose.msk.msra.mxu1 %vm887_vm3, %v12449_v11 }
0x1ebb   :  { %18009 = vmatmul.mubr.msk.f32.vlgmr.msra.gmra.mrb[174].mxu0 %vm887_vm3, %v12409_v25  ;;  %18041 = vmatprep.subr.mxu1 %v19600_v0 }
0x1ebc   :  { %18012 = vmatpush3.xpose.msk.msra.mxu0 %vm887_vm3, %v12441_v55  ;;  %18013 = vmatprep.mubr.msk.f32.mxu0 %vm19601_vm0, %v19600_v0 }
0x1ebd   :  { %v12443_v14 = vpop.permute.xlu1 %12442  ;;  %18016 = vmatprep.subr.mxu0 %v19600_v0 }
0x1ebe   :  { %v12459_v22 = vpop.permute.xlu0 %12458 }
0x1ebf   :  { %18014 = vmatmul.mubr.msk.f32.vlgmr.msra.gmra.mrb[176].mxu0 %vm887_vm3, %v12411_v18 }
0x1ec0   :  { %18017 = vmatpush3.xpose.msk.msra.mxu0 %vm887_vm3, %v12443_v14  ;;  %18018 = vmatprep.mubr.msk.f32.mxu0 %vm19601_vm0, %v19600_v0 }
0x1ec1   :  { %v12419_v28 = vpop.permute.xlu1 %12418  ;;  %18026 = vmatprep.subr.mxu0 %v19600_v0 }
0x1ec2   :  { %v12413_v33 = vpop.permute.xlu0 %12412  ;;  %18034 = vmatmul.mubr.msk.f32.vlgmr.msra.gmra.mrb[130].mxu1 %vm887_vm3, %v12419_v28 }
0x1ec3   :  { %18019 = vmatmul.mubr.msk.f32.vlgmr.msra.gmra.mrb[178].mxu0 %vm887_vm3, %v12413_v33  ;;  %18043 = vmatprep.mubr.msk.f32.mxu1 %vm19601_vm0, %v19600_v0 }
0x1ec4   :  { %18027 = vmatpush3.xpose.msk.msra.mxu0 %vm887_vm3, %v12447_v50  ;;  %18028 = vmatprep.mubr.msk.f32.mxu0 %vm19601_vm0, %v19600_v0 }
0x1ec5   :  { %v12453_v16 = vpop.permute.xlu1 %12452  ;;  %18036 = vmatprep.subr.mxu0 %v19600_v0 }
0x1ec6   :  { %v12417_v39 = vpop.permute.xlu0 %12416  ;;  %18042 = vmatpush3.xpose.msk.msra.mxu1 %vm887_vm3, %v12453_v16 }
0x1ec7   :  { %18029 = vmatmul.mubr.msk.f32.vlgmr.msra.gmra.mrb[180].mxu0 %vm887_vm3, %v12417_v39  ;;  %18051 = vmatprep.subr.mxu1 %v19600_v0 }
0x1ec8   :  { %18037 = vmatpush3.xpose.msk.msra.mxu0 %vm887_vm3, %v12451_v57  ;;  %18038 = vmatprep.mubr.msk.f32.mxu0 %vm19601_vm0, %v19600_v0 }
0x1ec9   :  { %v12423_v36 = vpop.permute.xlu1 %12422  ;;  %18046 = vmatprep.subr.mxu0 %v19600_v0 }
0x1eca   :  { %v12421_v29 = vpop.permute.xlu0 %12420  ;;  %18044 = vmatmul.mubr.msk.f32.vlgmr.msra.gmra.mrb[132].mxu1 %vm887_vm3, %v12423_v36 }
0x1ecb   :  { %18039 = vmatmul.mubr.msk.f32.vlgmr.msra.gmra.mrb[182].mxu0 %vm887_vm3, %v12421_v29  ;;  %18053 = vmatprep.mubr.msk.f32.mxu1 %vm19601_vm0, %v19600_v0 }
0x1ecc   :  { %18047 = vmatpush3.xpose.msk.msra.mxu0 %vm887_vm3, %v12455_v51  ;;  %18048 = vmatprep.mubr.msk.f32.mxu0 %vm19601_vm0, %v19600_v0 }
0x1ecd   :  { %v12457_v2 = vpop.permute.xlu1 %12456  ;;  %18056 = vmatprep.subr.mxu0 %v19600_v0 }
0x1ece   :  { %v12425_v47 = vpop.permute.xlu0 %12424  ;;  %18052 = vmatpush3.xpose.msk.msra.mxu1 %vm887_vm3, %v12457_v2 }
0x1ecf   :  { %18049 = vmatmul.mubr.msk.f32.vlgmr.msra.gmra.mrb[184].mxu0 %vm887_vm3, %v12425_v47  ;;  %18061 = vmatprep.subr.mxu1 %v19600_v0 }
0x1ed0   :  { %18057 = vmatpush3.xpose.msk.msra.mxu0 %vm887_vm3, %v12459_v22  ;;  %18058 = vmatprep.mubr.msk.f32.mxu0 %vm19601_vm0, %v19600_v0 }
0x1ed1   :  { %v12427_v13 = vpop.permute.xlu1 %12426  ;;  %18066 = vmatprep.subr.mxu0 %v19600_v0 }
0x1ed2   :  { %v12429_v7 = vpop.permute.xlu0 %12428  ;;  %18054 = vmatmul.mubr.msk.f32.vlgmr.msra.gmra.mrb[134].mxu1 %vm887_vm3, %v12427_v13 }
0x1ed3   :  { %18059 = vmatmul.mubr.msk.f32.vlgmr.msra.gmra.mrb[186].mxu0 %vm887_vm3, %v12429_v7  ;;  %18062 = vmatpush3.msra.mxu1 %v21650_v56 }
0x1ed4   :  { %18067 = vmatpush3.msra.mxu0 %v21654_v4  ;;  %18068 = vmatprep.mubr.msk.f32.mxu0 %vm19601_vm0, %v19600_v0 }
0x1ed5   :  { %18076 = vmatprep.subr.mxu0 %v19600_v0  ;;  %18063 = vmatprep.mubr.msk.f32.mxu1 %vm19601_vm0, %v19600_v0 }
0x1ed6   :  { %18071 = vmatprep.subr.mxu1 %v19600_v0 }
0x1f02   :  { %v12574_v38 = vpop.f32.mrb[164].mxu0 }
0x1f03   :  { %v21667_v49 = vadd.f32 %v12574_v38, %v20136_v5  ;;  %v17985_v1 = vpop.f32.mrb[165].mxu0 }
0x1f05   :  { %v13688_v17 = vsel %vm306_vm2, %v21667_v49, -inf }
0x1f06   :  { %13689 = vmax.xlane.f32.xlu1 %v13688_v17  ;;  %v12648_v23 = vpop.f32.mrb[166].mxu0 }
0x1f07   :  { %v21672_v48 = vadd.f32 %v12648_v23, %v20139_v9  ;;  %v17990_v59 = vpop.f32.mrb[167].mxu0 }
0x1f09   :  { %v13691_v43 = vsel %vm306_vm2, %v21672_v48, -inf }
0x1f0a   :  { %13692 = vmax.xlane.f32.xlu0 %v13691_v43 }
0x1f7d   :  { %v12722_v15 = vpop.f32.mrb[168].mxu0 }
0x1f7e   :  { %v21677_v21 = vadd.f32 %v12722_v15, %v20136_v5  ;;  %v17995_v58 = vpop.f32.mrb[169].mxu0 }
0x1f80   :  { %v13694_v54 = vsel %vm306_vm2, %v21677_v21, -inf }
0x1f81   :  { %13695 = vmax.xlane.f32.xlu0 %v13694_v54 }
0x1f85   :  { %v13166_v12 = vpop.f32.mrb[128].mxu1 }
0x1f86   :  { %v12796_v30 = vpop.f32.mrb[170].mxu0  ;;  %v21682_v34 = vadd.f32 %v13166_v12, %v20136_v5  ;;  %v18025_v60 = vpop.f32.mrb[129].mxu1 }
0x1f87   :  { %v21685_v41 = vadd.f32 %v12796_v30, %v20139_v9  ;;  %v18000_v32 = vpop.f32.mrb[171].mxu0 }
0x1f88   :  { %v13712_v53 = vsel %vm306_vm2, %v21682_v34, -inf }
0x1f89   :  { %13713 = vmax.xlane.f32.xlu0 %v13712_v53  ;;  %v13697_v20 = vsel %vm306_vm2, %v21685_v41, -inf }
0x1f8a   :  { %13698 = vmax.xlane.f32.xlu1 %v13697_v20  ;;  %v12870_v44 = vpop.f32.mrb[172].mxu0 }
0x1f8b   :  { %v18005_v63 = vpop.f32.mrb[173].mxu0  ;;  %v21700_v26 = vadd.f32 %v12870_v44, %v20136_v5 }
0x1f8d   :  { %v13700_v11 = vsel %vm306_vm2, %v21700_v26, -inf }
0x1f8e   :  { %v12944_v45 = vpop.f32.mrb[174].mxu0 }
0x1f8f   :  { %v21692_v6 = vadd.f32 %v12944_v45, %v20139_v9  ;;  %v18010_v3 = vpop.f32.mrb[175].mxu0 }
0x1f91   :  { %v13703_v55 = vsel %vm306_vm2, %v21692_v6, -inf }
0x1f92   :  { %13704 = vmax.xlane.f32.xlu1 %v13703_v55  ;;  %v13018_v40 = vpop.f32.mrb[176].mxu0 }
0x1f93   :  { %v18015_v24 = vpop.f32.mrb[177].mxu0  ;;  %v21719_v7 = vadd.f32 %v13018_v40, %v20136_v5  ;;  %v13690_v23 = vpop.xlane.xlu1 %13689 }
0x1f94   :  { %v13736_v58 = vsub.f32 %v21667_v49, %v13690_v23 }
0x1f95   :  { %v13314_v18 = vpop.f32.mrb[130].mxu1  ;;  %v13706_v1 = vsel %vm306_vm2, %v21719_v7, -inf }
0x1f96   :  { %v13092_v61 = vpop.f32.mrb[178].mxu0  ;;  %v21697_v50 = vadd.f32 %v13314_v18, %v20136_v5  ;;  %v18035_v31 = vpop.f32.mrb[131].mxu1  ;;  %v13752_v60 = vmul.f32 1.442695, %v13736_v58 }
0x1f97   :  { %v18020_v57 = vpop.f32.mrb[179].mxu0  ;;  %v13693_v17 = vpop.xlane.xlu0 %13692 }
0x1f98   :  { %v13718_v46 = vsel %vm306_vm2, %v21697_v50, -inf  ;;  %v13737_v59 = vsub.f32 %v21672_v48, %v13693_v17 }
0x1f99   :  { %13719 = vmax.xlane.f32.xlu0 %v13718_v46 }
0x1f9a   :  { %v13240_v37 = vpop.f32.mrb[180].mxu0  ;;  %v13754_v54 = vmul.f32 1.442695, %v13737_v59 }
0x1f9b   :  { %v18030_v51 = vpop.f32.mrb[181].mxu0  ;;  %v21740_v43 = vadd.f32 %v13240_v37, %v20139_v9 }
0x1f9c   :  { %19118 = vpow2.f32 %v13754_v54 }
0x1f9d   :  { %v13462_v25 = vpop.f32.mrb[132].mxu1  ;;  %13701 = vmax.xlane.f32.xlu0 %v13700_v11  ;;  %v13715_v30 = vsel %vm306_vm2, %v21740_v43, -inf  ;;  %19120 = vpow2.f32 %v13752_v60 }
0x1f9e   :  { %v21707_v14 = vadd.f32 %v13462_v25, %v20136_v5  ;;  %v13388_v22 = vpop.f32.mrb[182].mxu0  ;;  %v18045_v28 = vpop.f32.mrb[133].mxu1 }
0x1f9f   :  { %v18040_v33 = vpop.f32.mrb[183].mxu0  ;;  %v21746_v12 = vadd.f32 %v13388_v22, %v20139_v9 }
0x1fa0   :  { %v13724_v16 = vsel %vm306_vm2, %v21707_v14, -inf }
0x1fa1   :  { %13725 = vmax.xlane.f32.xlu0 %v13724_v16  ;;  %v13721_v32 = vsel %vm306_vm2, %v21746_v12, -inf }
0x1fa2   :  { %v13536_v39 = vpop.f32.mrb[184].mxu0 }
0x1fa3   :  { %12464 = vrot.lane.b32.xlu1 %v21654_v4, %s19603_s25  ;;  %v18050_v36 = vpop.f32.mrb[185].mxu0  ;;  %v21751_v48 = vadd.f32 %v13536_v39, %v20139_v9 }
0x1fa5   :  { %v13610_v29 = vpop.f32.mrb[134].mxu1  ;;  %v13727_v53 = vsel %vm306_vm2, %v21751_v48, -inf }
0x1fa6   :  { %v21714_v19 = vadd.f32 %v13610_v29, %v20136_v5  ;;  %v13684_v2 = vpop.f32.mrb[186].mxu0  ;;  %v18055_v47 = vpop.f32.mrb[135].mxu1  ;;  %v21736_v5 = vadd.f32 %v13092_v61, %v20139_v9 }
0x1fa7   :  { %12468 = vrot.lane.b32.xlu1 %v21650_v56, %s19604_s26  ;;  %v18060_v13 = vpop.f32.mrb[187].mxu0  ;;  %v21756_v49 = vadd.f32 %v13684_v2, %v20139_v9  ;;  %v21762_v44 = vpop.eup %19118 }
0x1fa8   :  { %v13730_v38 = vsel %vm306_vm2, %v21714_v19, -inf  ;;  %v13709_v15 = vsel %vm306_vm2, %v21736_v5, -inf  ;;  %v21764_v63 = vpop.eup %19120  ;;  %v13787_v45 = vsel %vm306_vm2, %v21762_v44, 0.0 }
0x1fa9   :  { %13731 = vmax.xlane.f32.xlu0 %v13730_v38  ;;  %v13733_v20 = vsel %vm306_vm2, %v21756_v49, -inf  ;;  %v13784_v9 = vsel %vm306_vm2, %v21764_v63, 0.0 }
0x1fab   :  { %12474 = vrot.lane.b32.xlu1 %v21650_v56, %s19605_s4 }
0x1fad   :  { %13707 = vmax.xlane.f32.xlu0 %v13706_v1 }
0x1faf   :  { %12480 = vrot.lane.b32.xlu1 %v21650_v56, %s19587_s30 }
0x1fc3   :  { %12462 = vrot.lane.b32.xlu0 %v21650_v56, %s19603_s25 }
0x1fc7   :  { %12470 = vrot.lane.b32.xlu0 %v21654_v4, %s19604_s26 }
0x1fcb   :  { %12476 = vrot.lane.b32.xlu0 %v21654_v4, %s19605_s4 }
0x1fd3   :  { %13710 = vmax.xlane.f32.xlu1 %v13709_v15 }
0x1fd7   :  { %13716 = vmax.xlane.f32.xlu1 %v13715_v30 }
0x1fdb   :  { %13722 = vmax.xlane.f32.xlu1 %v13721_v32 }
0x1fdf   :  { %13728 = vmax.xlane.f32.xlu1 %v13727_v53 }
0x1fe3   :  { %13734 = vmax.xlane.f32.xlu1 %v13733_v20 }
0x1fe7   :  { %13788 = vadd.xlane.f32.xlu1 %v13787_v45 }
0x1fea   :  { %13785 = vadd.xlane.f32.xlu0 %v13784_v9 }
0x200e   :  { %v13696_v3 = vpop.xlane.xlu0 %13695 }
0x200f   :  { %v13738_v55 = vsub.f32 %v21677_v21, %v13696_v3 }
0x2011   :  { %v13756_v40 = vmul.f32 1.442695, %v13738_v55 }
0x2013   :  { %19122 = vpow2.f32 %v13756_v40 }
0x2016   :  { %v13714_v24 = vpop.xlane.xlu0 %13713 }
0x2017   :  { %v13744_v18 = vsub.f32 %v21682_v34, %v13714_v24  ;;  %v13699_v61 = vpop.xlane.xlu1 %13698 }
0x2018   :  { %v13739_v31 = vsub.f32 %v21685_v41, %v13699_v61 }
0x2019   :  { %v13768_v57 = vmul.f32 1.442695, %v13744_v18 }
0x201a   :  { %v13758_v46 = vmul.f32 1.442695, %v13739_v31 }
0x201b   :  { %19124 = vpow2.f32 %v13768_v57 }
0x201c   :  { %19126 = vpow2.f32 %v13758_v46 }
0x201d   :  { %v21773_v37 = vpop.eup %19122 }
0x201e   :  { %v13790_v51 = vsel %vm306_vm2, %v21773_v37, 0.0 }
0x201f   :  { %v13705_v11 = vpop.xlane.xlu1 %13704  ;;  %13791 = vadd.xlane.f32.xlu0 %v13790_v51 }
0x2020   :  { %v13741_v21 = vsub.f32 %v21692_v6, %v13705_v11 }
0x2022   :  { %v13762_v25 = vmul.f32 1.442695, %v13741_v21 }
0x2023   :  { %v12465_v20 = vpop.permute.xlu1 %12464 }
0x2024   :  { %19128 = vpow2.f32 %v13762_v25 }
0x2025   :  { %v21778_v22 = vpop.eup %19124 }
0x2026   :  { %v21780_v34 = vpop.eup %19126  ;;  %v13720_v41 = vpop.xlane.xlu0 %13719  ;;  %v13808_v28 = vsel %vm306_vm2, %v21778_v22, 0.0 }
0x2027   :  { %v13746_v33 = vsub.f32 %v21697_v50, %v13720_v41  ;;  %13809 = vadd.xlane.f32.xlu0 %v13808_v28  ;;  %v13793_v16 = vsel %vm306_vm2, %v21780_v34, 0.0  ;;  %v21819_v9 = vpop.permute.xlu1 %12468 }
0x2028   :  { %13794 = vadd.xlane.f32.xlu1 %v13793_v16 }
0x2029   :  { %v13772_v39 = vmul.f32 1.442695, %v13746_v33 }
0x202a   :  { %v13702_v36 = vpop.xlane.xlu0 %13701 }
0x202b   :  { %19130 = vpow2.f32 %v13772_v39  ;;  %v13740_v6 = vsub.f32 %v21700_v26, %v13702_v36  ;;  %v21821_v3 = vpop.permute.xlu1 %12474 }
0x202d   :  { %v13760_v29 = vmul.f32 1.442695, %v13740_v6 }
0x202e   :  { %v21788_v2 = vpop.eup %19128  ;;  %v13726_v47 = vpop.xlane.xlu0 %13725 }
0x202f   :  { %19132 = vpow2.f32 %v13760_v29  ;;  %v13748_v13 = vsub.f32 %v21707_v14, %v13726_v47  ;;  %v13799_v50 = vsel %vm306_vm2, %v21788_v2, 0.0  ;;  %v21823_v55 = vpop.permute.xlu1 %12480 }
0x2030   :  { %13800 = vadd.xlane.f32.xlu1 %v13799_v50 }
0x2031   :  { %v13776_v38 = vmul.f32 1.442695, %v13748_v13 }
0x2033   :  { %19134 = vpow2.f32 %v13776_v38 }
0x2035   :  { %v21793_v1 = vpop.eup %19130 }
0x2036   :  { %v13732_v17 = vpop.xlane.xlu0 %13731  ;;  %v13814_v23 = vsel %vm306_vm2, %v21793_v1, 0.0 }
0x2037   :  { %v13750_v26 = vsub.f32 %v21714_v19, %v13732_v17  ;;  %13815 = vadd.xlane.f32.xlu0 %v13814_v23 }
0x2039   :  { %v21798_v59 = vpop.eup %19132  ;;  %v13780_v15 = vmul.f32 1.442695, %v13750_v26 }
0x203a   :  { %v13708_v58 = vpop.xlane.xlu0 %13707  ;;  %v13796_v14 = vsel %vm306_vm2, %v21798_v59, 0.0 }
0x203b   :  { %19136 = vpow2.f32 %v13780_v15  ;;  %v13742_v54 = vsub.f32 %v21719_v7, %v13708_v58  ;;  %13797 = vadd.xlane.f32.xlu0 %v13796_v14 }
0x203d   :  { %v21803_v30 = vpop.eup %19134  ;;  %v13764_v60 = vmul.f32 1.442695, %v13742_v54 }
0x203e   :  { %v13820_v32 = vsel %vm306_vm2, %v21803_v30, 0.0  ;;  %v12463_v57 = vpop.permute.xlu0 %12462 }
0x203f   :  { %19138 = vpow2.f32 %v13764_v60  ;;  %13821 = vadd.xlane.f32.xlu0 %v13820_v32 }
0x2041   :  { %12486 = vrot.lane.b32.xlu1 %v21650_v56, %s19606_s27 }
0x2042   :  { %v12471_v25 = vpop.permute.xlu0 %12470 }
0x2045   :  { %v21809_v19 = vpop.eup %19136  ;;  %12492 = vrot.lane.b32.xlu1 %v21650_v56, %s19607_s16 }
0x2046   :  { %v13826_v7 = vsel %vm306_vm2, %v21809_v19, 0.0  ;;  %v12477_v36 = vpop.permute.xlu0 %12476 }
0x2047   :  { %13827 = vadd.xlane.f32.xlu0 %v13826_v7 }
0x2049   :  { %v21815_v53 = vpop.eup %19138 }
0x204a   :  { %v13802_v45 = vsel %vm306_vm2, %v21815_v53, 0.0 }
0x204b   :  { %13803 = vadd.xlane.f32.xlu0 %v13802_v45 }
0x2060   :  { %v13711_v40 = vpop.xlane.xlu1 %13710 }
0x2061   :  { %v13743_v24 = vsub.f32 %v21736_v5, %v13711_v40  ;;  %12482 = vrot.lane.b32.xlu0 %v21654_v4, %s19587_s30 }
0x2063   :  { %v13766_v18 = vmul.f32 1.442695, %v13743_v24 }
0x2064   :  { %v13717_v61 = vpop.xlane.xlu1 %13716 }
0x2065   :  { %19140 = vpow2.f32 %v13766_v18  ;;  %v13745_v31 = vsub.f32 %v21740_v43, %v13717_v61  ;;  %12488 = vrot.lane.b32.xlu0 %v21654_v4, %s19606_s27 }
0x2067   :  { %v13770_v46 = vmul.f32 1.442695, %v13745_v31 }
0x2068   :  { %v13723_v51 = vpop.xlane.xlu1 %13722 }
0x2069   :  { %19142 = vpow2.f32 %v13770_v46  ;;  %v13747_v11 = vsub.f32 %v21746_v12, %v13723_v51  ;;  %12494 = vrot.lane.b32.xlu0 %v21654_v4, %s19607_s16 }
0x206b   :  { %v13774_v5 = vmul.f32 1.442695, %v13747_v11 }
0x206c   :  { %v13729_v21 = vpop.xlane.xlu1 %13728 }
0x206d   :  { %19144 = vpow2.f32 %v13774_v5  ;;  %v13749_v41 = vsub.f32 %v21751_v48, %v13729_v21  ;;  %12500 = vrot.lane.b32.xlu0 %v21654_v4, %s22057_s8 }
0x206f   :  { %v21837_v43 = vpop.eup %19140  ;;  %v13778_v28 = vmul.f32 1.442695, %v13749_v41 }
0x2070   :  { %v13735_v33 = vpop.xlane.xlu1 %13734  ;;  %v13805_v16 = vsel %vm306_vm2, %v21837_v43, 0.0 }
0x2071   :  { %19146 = vpow2.f32 %v13778_v28  ;;  %v13751_v12 = vsub.f32 %v21756_v49, %v13735_v33  ;;  %13806 = vadd.xlane.f32.xlu1 %v13805_v16 }
0x2073   :  { %v21842_v39 = vpop.eup %19142  ;;  %v13782_v6 = vmul.f32 1.442695, %v13751_v12 }
0x2074   :  { %v13789_v29 = vpop.xlane.xlu1 %13788  ;;  %v13811_v48 = vsel %vm306_vm2, %v21842_v39, 0.0 }
0x2075   :  { %19148 = vpow2.f32 %v13782_v6  ;;  %13812 = vadd.xlane.f32.xlu1 %v13811_v48 }
0x2076   :  { %19150 = vrcp.f32 %v13789_v29 }
0x2077   :  { %v21846_v4 = vpop.eup %19144  ;;  %v13786_v47 = vpop.xlane.xlu0 %13785 }
0x2078   :  { %19152 = vrcp.f32 %v13786_v47  ;;  %v13817_v13 = vsel %vm306_vm2, %v21846_v4, 0.0 }
0x2079   :  { %13818 = vadd.xlane.f32.xlu1 %v13817_v13 }
0x207b   :  { %v21850_v49 = vpop.eup %19146 }
0x207c   :  { %v13823_v50 = vsel %vm306_vm2, %v21850_v49, 0.0 }
0x207d   :  { %13824 = vadd.xlane.f32.xlu1 %v13823_v50 }
0x207f   :  { %v21854_v38 = vpop.eup %19148 }
0x2080   :  { %v19151_v17 = vpop.eup %19150  ;;  %v13829_v23 = vsel %vm306_vm2, %v21854_v38, 0.0 }
0x2081   :  { %v13835_v26 = vmul.f32 %v19151_v17, %v21762_v44  ;;  %13830 = vadd.xlane.f32.xlu1 %v13829_v23 }
0x2082   :  { %v19153_v15 = vpop.eup %19152 }
0x2083   :  { %v13833_v58 = vmul.f32 %v19153_v15, %v21764_v63  ;;  %18069 = vmatmul.mubr.msk.f32.vlgmr.msra.gmra.mrb[188].mxu0 %vm306_vm2, %v13835_v26 }
0x2084   :  { %18077 = vmatpush3.msra.mxu0 %v12465_v20  ;;  %18078 = vmatprep.mubr.msk.f32.mxu0 %vm19601_vm0, %v19600_v0 }
0x2085   :  { %18064 = vmatmul.mubr.msk.f32.vlgmr.msra.gmra.mrb[136].mxu1 %vm306_vm2, %v13833_v58  ;;  %18086 = vmatprep.subr.mxu0 %v19600_v0 }
0x2086   :  { %18072 = vmatpush3.msra.mxu1 %v12463_v57  ;;  %18073 = vmatprep.mubr.msk.f32.mxu1 %vm19601_vm0, %v19600_v0 }
0x2087   :  { %18081 = vmatprep.subr.mxu1 %v19600_v0 }
0x2092   :  { %12498 = vrot.lane.b32.xlu1 %v21650_v56, %s22057_s8 }
0x20ac   :  { %v13792_v44 = vpop.xlane.xlu0 %13791 }
0x20ad   :  { %19154 = vrcp.f32 %v13792_v44 }
0x20b4   :  { %v13810_v56 = vpop.xlane.xlu0 %13809 }
0x20b5   :  { %v13795_v63 = vpop.xlane.xlu1 %13794 }
0x20b6   :  { %19156 = vrcp.f32 %v13795_v63 }
0x20b7   :  { %v19155_v14 = vpop.eup %19154 }
0x20b8   :  { %v13837_v54 = vmul.f32 %v19155_v14, %v21773_v37 }
0x20ba   :  { %18074 = vmatmul.mubr.msk.f32.vlgmr.msra.gmra.mrb[138].mxu1 %vm306_vm2, %v13837_v54 }
0x20bb   :  { %18082 = vmatpush3.msra.mxu1 %v21819_v9  ;;  %18083 = vmatprep.mubr.msk.f32.mxu1 %vm19601_vm0, %v19600_v0 }
0x20bc   :  { %18091 = vmatprep.subr.mxu1 %v19600_v0 }
0x20bd   :  { %v13801_v60 = vpop.xlane.xlu1 %13800 }
0x20be   :  { %19158 = vrcp.f32 %v13801_v60 }
0x20c0   :  { %v19157_v32 = vpop.eup %19156 }
0x20c1   :  { %v13839_v7 = vmul.f32 %v19157_v32, %v21780_v34  ;;  %v18743_v32 = vld [vmem:[#allocation10 + $0xc8] sm:$0xff]  }
0x20c3   :  { %18079 = vmatmul.mubr.msk.f32.vlgmr.msra.gmra.mrb[190].mxu0 %vm306_vm2, %v13839_v7 }
0x20c4   :  { %18087 = vmatpush3.msra.mxu0 %v12471_v25  ;;  %v13816_v20 = vpop.xlane.xlu0 %13815  ;;  %18088 = vmatprep.mubr.msk.f32.mxu0 %vm19601_vm0, %v19600_v0 }
0x20c5   :  { %18096 = vmatprep.subr.mxu0 %v19600_v0 }
0x20c8   :  { %v19159_v37 = vpop.eup %19158  ;;  %v13798_v45 = vpop.xlane.xlu0 %13797 }
0x20c9   :  { %v13843_v9 = vmul.f32 %v19159_v37, %v21788_v2  ;;  %19160 = vrcp.f32 %v13798_v45 }
0x20cb   :  { %18089 = vmatmul.mubr.msk.f32.vlgmr.msra.gmra.mrb[192].mxu0 %vm306_vm2, %v13843_v9 }
0x20cc   :  { %18097 = vmatpush3.msra.mxu0 %v12477_v36  ;;  %18098 = vmatprep.mubr.msk.f32.mxu0 %vm19601_vm0, %v19600_v0  ;;  %v13822_v34 = vpop.xlane.xlu0 %13821 }
0x20cd   :  { %18106 = vmatprep.subr.mxu0 %v19600_v0 }
0x20d3   :  { %v19161_v40 = vpop.eup %19160 }
0x20d4   :  { %v13841_v24 = vmul.f32 %v19161_v40, %v21798_v59  ;;  %v13828_v18 = vpop.xlane.xlu0 %13827 }
0x20d6   :  { %18084 = vmatmul.mubr.msk.f32.vlgmr.msra.gmra.mrb[140].mxu1 %vm306_vm2, %v13841_v24 }
0x20d7   :  { %18092 = vmatpush3.msra.mxu1 %v21821_v3  ;;  %18093 = vmatprep.mubr.msk.f32.mxu1 %vm19601_vm0, %v19600_v0  ;;  %v12487_v3 = vpop.permute.xlu1 %12486 }
0x20d8   :  { %v13804_v2 = vpop.xlane.xlu0 %13803  ;;  %18101 = vmatprep.subr.mxu1 %v19600_v0 }
0x20d9   :  { %19162 = vrcp.f32 %v13804_v2 }
0x20da   :  { %19164 = vrcp.f32 %v13810_v56  ;;  %v18744_v56 = vld [vmem:[#allocation10 + $0xd0] sm:$0xff]  }
0x20db   :  { %19166 = vrcp.f32 %v13816_v20  ;;  %v12493_v51 = vpop.permute.xlu1 %12492 }
0x20dc   :  { %19168 = vrcp.f32 %v13822_v34  ;;  %v12483_v5 = vpop.permute.xlu0 %12482 }
0x20e3   :  { %v19163_v61 = vpop.eup %19162 }
0x20e4   :  { %v13845_v31 = vmul.f32 %v19163_v61, %v21815_v53  ;;  %v19165_v57 = vpop.eup %19164 }
0x20e5   :  { %v13849_v59 = vmul.f32 %v19165_v57, %v21778_v22  ;;  %v19167_v46 = vpop.eup %19166  ;;  %v18746_v57 = vld [vmem:[#allocation10 + $0xe0] sm:$0xff]  }
0x20e6   :  { %18094 = vmatmul.mubr.msk.f32.vlgmr.msra.gmra.mrb[142].mxu1 %vm306_vm2, %v13845_v31  ;;  %v13853_v53 = vmul.f32 %v19167_v46, %v21793_v1  ;;  %v18745_v31 = vld [vmem:[#allocation10 + $0xd8] sm:$0xff]  }
0x20e7   :  { %18102 = vmatpush3.msra.mxu1 %v21823_v55  ;;  %18103 = vmatprep.mubr.msk.f32.mxu1 %vm19601_vm0, %v19600_v0  ;;  %v19169_v55 = vpop.eup %19168 }
0x20e8   :  { %18111 = vmatprep.subr.mxu1 %v19600_v0  ;;  %v13857_v22 = vmul.f32 %v19169_v55, %v21803_v30  ;;  %v12489_v30 = vpop.permute.xlu0 %12488 }
0x20ea   :  { %18104 = vmatmul.mubr.msk.f32.vlgmr.msra.gmra.mrb[144].mxu1 %vm306_vm2, %v13849_v59 }
0x20eb   :  { %18112 = vmatpush3.msra.mxu1 %v12487_v3  ;;  %18113 = vmatprep.mubr.msk.f32.mxu1 %vm19601_vm0, %v19600_v0  ;;  %v18747_v3 = vld [vmem:[#allocation10 + $0xe8] sm:$0xff]  }
0x20ec   :  { %18121 = vmatprep.subr.mxu1 %v19600_v0  ;;  %v12495_v29 = vpop.permute.xlu0 %12494 }
0x20ee   :  { %18114 = vmatmul.mubr.msk.f32.vlgmr.msra.gmra.mrb[146].mxu1 %vm306_vm2, %v13853_v53 }
0x20ef   :  { %18122 = vmatpush3.msra.mxu1 %v12493_v51  ;;  %18123 = vmatprep.mubr.msk.f32.mxu1 %vm19601_vm0, %v19600_v0  ;;  %v18748_v51 = vld [vmem:[#allocation10 + $0xf0] sm:$0xff]  }
0x20f0   :  { %18131 = vmatprep.subr.mxu1 %v19600_v0 }
0x20f2   :  { %18124 = vmatmul.mubr.msk.f32.vlgmr.msra.gmra.mrb[148].mxu1 %vm306_vm2, %v13857_v22 }
0x20f3   :  { %18133 = vmatprep.mubr.msk.f32.mxu1 %vm19601_vm0, %v19600_v0 }
0x20fe   :  { %v13807_v1 = vpop.xlane.xlu1 %13806 }
0x20ff   :  { %19170 = vrcp.f32 %v13807_v1 }
0x2102   :  { %v13813_v11 = vpop.xlane.xlu1 %13812 }
0x2103   :  { %19172 = vrcp.f32 %v13813_v11 }
0x2104   :  { %19174 = vrcp.f32 %v13828_v18 }
0x2106   :  { %v13819_v21 = vpop.xlane.xlu1 %13818 }
0x2107   :  { %19176 = vrcp.f32 %v13819_v21  ;;  %v18749_v21 = vld [vmem:[#allocation10 + $0xf8] sm:$0xff]  }
0x2109   :  { %v19171_v25 = vpop.eup %19170 }
0x210a   :  { %v13847_v41 = vmul.f32 %v19171_v25, %v21837_v43  ;;  %v13825_v28 = vpop.xlane.xlu1 %13824 }
0x210b   :  { %19178 = vrcp.f32 %v13825_v28 }
0x210c   :  { %18099 = vmatmul.mubr.msk.f32.vlgmr.msra.gmra.mrb[194].mxu0 %vm306_vm2, %v13847_v41 }
0x210d   :  { %v19173_v33 = vpop.eup %19172  ;;  %18107 = vmatpush3.msra.mxu0 %v12483_v5  ;;  %18108 = vmatprep.mubr.msk.f32.mxu0 %vm19601_vm0, %v19600_v0 }
0x210e   :  { %v13851_v16 = vmul.f32 %v19173_v33, %v21842_v39  ;;  %v13831_v12 = vpop.xlane.xlu1 %13830  ;;  %18116 = vmatprep.subr.mxu0 %v19600_v0  ;;  %v19175_v36 = vpop.eup %19174 }
0x210f   :  { %19180 = vrcp.f32 %v13831_v12  ;;  %v13861_v6 = vmul.f32 %v19175_v36, %v21809_v19  ;;  %v12501_v19 = vpop.permute.xlu0 %12500 }
0x2110   :  { %18109 = vmatmul.mubr.msk.f32.vlgmr.msra.gmra.mrb[196].mxu0 %vm306_vm2, %v13851_v16 }
0x2111   :  { %v19177_v43 = vpop.eup %19176  ;;  %18117 = vmatpush3.msra.mxu0 %v12489_v30  ;;  %18118 = vmatprep.mubr.msk.f32.mxu0 %vm19601_vm0, %v19600_v0 }
0x2112   :  { %v13855_v48 = vmul.f32 %v19177_v43, %v21846_v4  ;;  %v12499_v47 = vpop.permute.xlu1 %12498  ;;  %18126 = vmatprep.subr.mxu0 %v19600_v0 }
0x2113   :  { %18132 = vmatpush3.msra.mxu1 %v12499_v47 }
0x2114   :  { %18119 = vmatmul.mubr.msk.f32.vlgmr.msra.gmra.mrb[198].mxu0 %vm306_vm2, %v13855_v48  ;;  %18134 = vmatmul.mubr.msk.f32.vlgmr.msra.gmra.mrb[150].mxu1 %vm306_vm2, %v13861_v6 }
0x2115   :  { %v19179_v39 = vpop.eup %19178  ;;  %18127 = vmatpush3.msra.mxu0 %v12495_v29  ;;  %18128 = vmatprep.mubr.msk.f32.mxu0 %vm19601_vm0, %v19600_v0 }
0x2116   :  { %v13859_v13 = vmul.f32 %v19179_v39, %v21850_v49  ;;  %18136 = vmatprep.subr.mxu0 %v19600_v0  ;;  %18141 = vmatprep.subr.bf16.mxu1 %v19600_v0 }
0x2117   :  { %18157 = vmatprep.mubr.msk.bf16.mxu1 %vm19601_vm0, %v19600_v0 }
0x2118   :  { %18129 = vmatmul.mubr.msk.f32.vlgmr.msra.gmra.mrb[200].mxu0 %vm306_vm2, %v13859_v13 }
0x2119   :  { %v19181_v4 = vpop.eup %19180  ;;  %18137 = vmatpush3.msra.mxu0 %v12501_v19  ;;  %18138 = vmatprep.mubr.msk.f32.mxu0 %vm19601_vm0, %v19600_v0 }
0x211a   :  { %v13863_v50 = vmul.f32 %v19181_v4, %v21854_v38  ;;  %v18742_v38 = vld [vmem:[#allocation10 + $0xc0] sm:$0xff]  }
0x211b   :  { %18142 = vmatpush3.bf16.msra.mxu1 %v18742_v38 }
0x211c   :  { %18139 = vmatmul.mubr.msk.f32.vlgmr.msra.gmra.mrb[202].mxu0 %vm306_vm2, %v13863_v50  ;;  %18143 = vmatprep.subr.bf16.mxu1 %v19600_v0 }
0x211d   :  { %15514 = vmatprep.mubr.bf16.mxu0 %v19602_v52 }
0x211f   :  { %18144 = vmatpush3.bf16.msra.mxu1 %v18743_v32 }
0x2120   :  { %18145 = vmatprep.subr.bf16.mxu1 %v19600_v0 }
0x2123   :  { %18146 = vmatpush3.bf16.msra.mxu1 %v18744_v56 }
0x2124   :  { %18147 = vmatprep.subr.bf16.mxu1 %v19600_v0 }
0x2127   :  { %18148 = vmatpush3.bf16.msra.mxu1 %v18745_v31 }
0x2128   :  { %18149 = vmatprep.subr.bf16.mxu1 %v19600_v0 }
0x212b   :  { %18150 = vmatpush3.bf16.msra.mxu1 %v18746_v57  ;;  %v16732_v57 = vld [vmem:[#allocation11 + $0x3] ss:$0 sm:$0xff] }
0x212c   :  { %18151 = vmatprep.subr.bf16.mxu1 %v19600_v0 }
0x212f   :  { %18152 = vmatpush3.bf16.msra.mxu1 %v18747_v3 }
0x2130   :  { %18153 = vmatprep.subr.bf16.mxu1 %v19600_v0 }
0x2133   :  { %18154 = vmatpush3.bf16.msra.mxu1 %v18748_v51 }
0x2134   :  { %18155 = vmatprep.subr.bf16.mxu1 %v19600_v0 }
0x2137   :  { %18156 = vmatpush3.bf16.msra.mxu1 %v18749_v21  ;;  %v18752_v21 = vld [vmem:[#allocation14 + $0x304] ss:$16 sps:$4 sm:$0xff]  }
0x2138   :  { %15482 = vmatprep.subr.bf16.mxu0 %v18752_v21 }
0x2156   :  { %v21939_v49 = vpop.f32.mrb[188].mxu0 }
0x2157   :  { %v18070_v17 = vpop.f32.mrb[189].mxu0 }
0x2158   :  { %v21941_v23 = vpop.f32.mrb[136].mxu1 }
0x2159   :  { %v18065_v26 = vpop.f32.mrb[137].mxu1 }
0x218d   :  { %v14079_v15 = vpop.f32.mrb[138].mxu1 }
0x218e   :  { %v18075_v58 = vpop.f32.mrb[139].mxu1 }
0x2196   :  { %v14152_v44 = vpop.f32.mrb[190].mxu0 }
0x2197   :  { %v18299_v63 = vpack.i.bf16 %v14152_v44, %v14079_v15  ;;  %v18080_v14 = vpop.f32.mrb[191].mxu0 }
0x2199   :  { %18300 = vrot.lane.b32.xlu1 %v18299_v63, %s22057_s8 }
0x219e   :  { %v14298_v54 = vpop.f32.mrb[192].mxu0 }
0x219f   :  { %v18090_v60 = vpop.f32.mrb[193].mxu0 }
0x21a9   :  { %v14225_v7 = vpop.f32.mrb[140].mxu1 }
0x21aa   :  { %v18304_v20 = vpack.i.bf16 %v14298_v54, %v14225_v7  ;;  %v18085_v37 = vpop.f32.mrb[141].mxu1 }
0x21ac   :  { %18305 = vrot.lane.b32.xlu0 %v18304_v20, %s19607_s16 }
0x21b9   :  { %v14371_v45 = vpop.f32.mrb[142].mxu1 }
0x21ba   :  { %v18095_v9 = vpop.f32.mrb[143].mxu1 }
0x21bd   :  { %v14517_v34 = vpop.f32.mrb[144].mxu1 }
0x21be   :  { %v18105_v40 = vpop.f32.mrb[145].mxu1 }
0x21c1   :  { %v14663_v24 = vpop.f32.mrb[146].mxu1 }
0x21c2   :  { %v18115_v18 = vpop.f32.mrb[147].mxu1 }
0x21c5   :  { %v14809_v2 = vpop.f32.mrb[148].mxu1 }
0x21c6   :  { %v18125_v61 = vpop.f32.mrb[149].mxu1 }
0x21df   :  { %v14444_v59 = vpop.f32.mrb[194].mxu0 }
0x21e0   :  { %v18309_v46 = vpack.i.bf16 %v14444_v59, %v14371_v45  ;;  %v18100_v53 = vpop.f32.mrb[195].mxu0 }
0x21e2   :  { %18310 = vrot.lane.b32.xlu1 %v18309_v46, %s19606_s27 }
0x21e3   :  { %v14590_v55 = vpop.f32.mrb[196].mxu0 }
0x21e4   :  { %v18314_v22 = vpack.i.bf16 %v14590_v55, %v14517_v34  ;;  %v18110_v1 = vpop.f32.mrb[197].mxu0 }
0x21e6   :  { %18315 = vrot.lane.b32.xlu0 %v18314_v22, %s19587_s30 }
0x21e7   :  { %v14736_v11 = vpop.f32.mrb[198].mxu0  ;;  %v14955_v5 = vpop.f32.mrb[150].mxu1 }
0x21e8   :  { %v18319_v25 = vpack.i.bf16 %v14736_v11, %v14663_v24  ;;  %v18120_v41 = vpop.f32.mrb[199].mxu0  ;;  %v18135_v28 = vpop.f32.mrb[151].mxu1 }
0x21e9   :  { %v18753_v41 = vld [vmem:[#allocation14 + $0x308] ss:$16 sps:$4 sm:$0xff]   ;;  %v18761_v28 = vld [vmem:[#allocation14 + $0x32c] ss:$16 sps:$4 sm:$0xff]  }
0x21ea   :  { %18320 = vrot.lane.b32.xlu1 %v18319_v25, %s19605_s4  ;;  %v18750_v25 = vld [vmem:[#allocation14 + $0x300] ss:$16 sps:$4 sm:$0xff]  }
0x21eb   :  { %v14882_v30 = vpop.f32.mrb[200].mxu0  ;;  %15483 = vmatpush1.bf16.msra.mxu0 %v18750_v25 }
0x21ec   :  { %v18324_v33 = vpack.i.bf16 %v14882_v30, %v14809_v2  ;;  %v18130_v16 = vpop.f32.mrb[201].mxu0  ;;  %v18756_v30 = vld [vmem:[#allocation14 + $0x320] ss:$16 sps:$4 sm:$0xff]  }
0x21ed   :  { %v18764_v16 = vld [vmem:[#allocation14 + $0x344] ss:$16 sps:$4 sm:$0xff]  }
0x21ee   :  { %18325 = vrot.lane.b32.xlu0 %v18324_v33, %s19604_s26  ;;  %v18759_v33 = vld [vmem:[#allocation14 + $0x328] ss:$16 sps:$4 sm:$0xff]  }
0x21ef   :  { %v15028_v12 = vpop.f32.mrb[202].mxu0 }
0x21f0   :  { %v18329_v36 = vpack.i.bf16 %v15028_v12, %v14955_v5  ;;  %v18140_v43 = vpop.f32.mrb[203].mxu0  ;;  %v18767_v12 = vld [vmem:[#allocation14 + $0x34c] ss:$16 sps:$4 sm:$0xff]  }
0x21f1   :  { %v18765_v43 = vld [vmem:[#allocation14 + $0x348] ss:$16 sps:$4 sm:$0xff]  }
0x21f2   :  { %18330 = vrot.lane.b32.xlu1 %v18329_v36, %s19603_s25  ;;  %v18762_v36 = vld [vmem:[#allocation14 + $0x340] ss:$16 sps:$4 sm:$0xff]  }
0x220b   :  { %v18301_v0 = vpop.permute.xlu1 %18300 }
0x220c   :  { %v18303_v47 = vunpack.i.h.bf16 %v18301_v0  ;;  %v18302_v39 = vunpack.i.l.bf16 %v18301_v0  ;;  %v18770_v0 = vld [vmem:[#allocation14 + $0x364] ss:$16 sps:$4 sm:$0xff]  }
0x220e   :  { %v15089_v44 = vsel %vm887_vm3, %v21939_v49, %v18303_v47  ;;  %v15088_v63 = vsel %vm887_vm3, %v21941_v23, %v18302_v39  ;;  %v18776_v47 = vld [vmem:[#allocation14 + $0x384] ss:$16 sps:$4 sm:$0xff]   ;;  %v18779_v39 = vld [vmem:[#allocation14 + $0x38c] ss:$16 sps:$4 sm:$0xff]  }
0x221e   :  { %v18306_v6 = vpop.permute.xlu0 %18305 }
0x221f   :  { %v18308_v13 = vunpack.i.h.bf16 %v18306_v6  ;;  %v18307_v19 = vunpack.i.l.bf16 %v18306_v6  ;;  %v18773_v6 = vld [vmem:[#allocation14 + $0x36c] ss:$16 sps:$4 sm:$0xff]  }
0x2221   :  { %v15091_v60 = vsel %vm3474_vm4, %v15089_v44, %v18308_v13  ;;  %v15090_v38 = vsel %vm3474_vm4, %v15088_v63, %v18307_v19  ;;  %v18774_v13 = vld [vmem:[#allocation14 + $0x380] ss:$16 sps:$4 sm:$0xff]   ;;  %v18777_v19 = vld [vmem:[#allocation14 + $0x388] ss:$16 sps:$4 sm:$0xff]  }
0x2222   :  { %v18786_v44 = vld [vmem:[#allocation14 + $0x3c0] ss:$16 sps:$4 sm:$0xff]   ;;  %v18789_v63 = vld [vmem:[#allocation14 + $0x3c8] ss:$16 sps:$4 sm:$0xff]  }
0x2254   :  { %v18311_v29 = vpop.permute.xlu1 %18310 }
0x2255   :  { %v18313_v50 = vunpack.i.h.bf16 %v18311_v29  ;;  %v18312_v17 = vunpack.i.l.bf16 %v18311_v29  ;;  %v18768_v29 = vld [vmem:[#allocation14 + $0x360] ss:$16 sps:$4 sm:$0xff]  }
0x2257   :  { %v15093_v7 = vsel %vm3477_vm5, %v15091_v60, %v18313_v50  ;;  %v15092_v20 = vsel %vm3477_vm5, %v15090_v38, %v18312_v17  ;;  %v18785_v50 = vld [vmem:[#allocation14 + $0x3ac] ss:$16 sps:$4 sm:$0xff]   ;;  %v18780_v17 = vld [vmem:[#allocation14 + $0x3a0] ss:$16 sps:$4 sm:$0xff]   ;;  %v18795_v38 = vld [vmem:[#allocation14 + $0x3e8] ss:$16 sps:$4 sm:$0xff]  }
0x2258   :  { %v18316_v48 = vpop.permute.xlu0 %18315  ;;  %v18792_v60 = vld [vmem:[#allocation14 + $0x3e0] ss:$16 sps:$4 sm:$0xff]  }
0x2259   :  { %v18318_v26 = vunpack.i.h.bf16 %v18316_v48  ;;  %v18317_v15 = vunpack.i.l.bf16 %v18316_v48  ;;  %v18771_v48 = vld [vmem:[#allocation14 + $0x368] ss:$16 sps:$4 sm:$0xff]  }
0x225b   :  { %v15095_v37 = vsel %vm3480_vm6, %v15093_v7, %v18318_v26  ;;  %v15094_v45 = vsel %vm3480_vm6, %v15092_v20, %v18317_v15  ;;  %v18783_v26 = vld [vmem:[#allocation14 + $0x3a8] ss:$16 sps:$4 sm:$0xff]   ;;  %v18788_v15 = vld [vmem:[#allocation14 + $0x3c4] ss:$16 sps:$4 sm:$0xff]  }
0x225c   :  { %v18321_v4 = vpop.permute.xlu1 %18320 }
0x225d   :  { %v18323_v14 = vunpack.i.h.bf16 %v18321_v4  ;;  %v18322_v54 = vunpack.i.l.bf16 %v18321_v4  ;;  %v18782_v4 = vld [vmem:[#allocation14 + $0x3a4] ss:$16 sps:$4 sm:$0xff]  }
0x225f   :  { %v15097_v9 = vsel %vm3483_vm7, %v15095_v37, %v18323_v14  ;;  %v15096_v23 = vsel %vm3483_vm7, %v15094_v45, %v18322_v54  ;;  %v18794_v14 = vld [vmem:[#allocation14 + $0x3e4] ss:$16 sps:$4 sm:$0xff]   ;;  %v18797_v54 = vld [vmem:[#allocation14 + $0x3ec] ss:$16 sps:$4 sm:$0xff]  }
0x2260   :  { %v18326_v58 = vpop.permute.xlu0 %18325 }
0x2261   :  { %v18328_v32 = vunpack.i.h.bf16 %v18326_v58  ;;  %v18327_v56 = vunpack.i.l.bf16 %v18326_v58  ;;  %v18791_v58 = vld [vmem:[#allocation14 + $0x3cc] ss:$16 sps:$4 sm:$0xff]  }
0x2263   :  { %v15099_v24 = vsel %vm3486_vm8, %v15097_v9, %v18328_v32  ;;  %v15098_v18 = vsel %vm3486_vm8, %v15096_v23, %v18327_v56  ;;  %v18798_v32 = vld [vmem:[#allocation17 + $0x340] sm:$0xff]  }
0x2264   :  { %v18331_v49 = vpop.permute.xlu1 %18330  ;;  %v18799_v56 = vld [vmem:[#allocation17 + $0x3c0] sm:$0xff]  }
0x2265   :  { %v18333_v34 = vunpack.i.h.bf16 %v18331_v49  ;;  %v18332_v40 = vunpack.i.l.bf16 %v18331_v49 }
0x2267   :  { %v15101_v2 = vsel %vm3489_vm9, %v15099_v24, %v18333_v34  ;;  %v15100_v61 = vsel %vm3489_vm9, %v15098_v18, %v18332_v40 }
0x2268   :  { %v15102_v31 = vpack.c.bf16 %v15101_v2, %v15100_v61 }
0x226a   :  { %18158 = vmatmul.mubr.bf16.vlgmr.msra.gmra.mrb[152].mxu1 %v15102_v31 }
0x226b   :  { %15557 = vmatprep.mubr.bf16.mxu1 %v19602_v52 }
0x233d   :  { %v15210_v59 = vpop.f32.mrb[152].mxu1 }
0x233e   :  { %v15211_v3 = vadd.f32 %v16732_v57, %v15210_v59  ;;  %v18159_v46 = vpop.f32.mrb[153].mxu1 }
0x233f   :  { %v15213_v53 = vpop.f32.mrb[154].mxu1  ;;  %v16742_v46 = vld [vmem:[%s22031_s10 + $0x3] ss:$0 sm:$0xff]  ;;  %s19608_s10 = smov [#allocation26]  }
0x2340   :  { %v21975_v55 = vadd.f32 %v15211_v3, %v21523_v62  ;;  %v15214_v51 = vadd.f32 %v16732_v57, %v15213_v53  ;;  %v18160_v22 = vpop.f32.mrb[155].mxu1  ;;  %v18755_v62 = vld [vmem:[#allocation14 + $0x30c] ss:$16 sps:$4 sm:$0xff]   ;;  %s16168_s12 = sshll.u32 %s19608_s10, 4  ;;  %s16169_s12 = int_to_ptr.vmem [resolvable:$true] %s16168_s12 }
0x2341   :  { %15525 = vmatprep.subr.bf16.mxu1 %v18755_v62  ;;  %s19536_s15 = scalar_lea.vmem %s16169_s12, 512  ;;  %p19541_p9 = scmp.lt.s32.totalorder %s16169_s12, %s16169_s12 }
0x2342   :  { %v21978_v1 = vadd.f32 %v15214_v51, %v21525_v35  ;;  %15223 = vadd.xlane.f32.xlu0 %v21975_v55  ;;  %v15229_v11 = vmul.f32 %v21975_v55, %v21975_v55  ;;  %15526 = vmatpush1.bf16.msra.mxu1 %v18753_v41  ;;  %v18758_v35 = vld [vmem:[#allocation14 + $0x324] ss:$16 sps:$4 sm:$0xff]   ;;  %p19537_p8 = scmp.ne.s32.totalorder %s16169_s12, %s19536_s15  ;;  %p19542_p10 = scmp.lt.s32.totalorder %s19536_s15, %s19536_s15 }
0x2343   :  { %15484 = vmatprep.subr.bf16.mxu0 %v18758_v35  ;;  %15527 = vmatprep.subr.bf16.mxu1 %v18761_v28  ;;  %v18800_v41 = vld [vmem:[#allocation17 + $0x300] sm:$0xff]   ;;  %v18802_v28 = vld [vmem:[#allocation17 + $0x348] sm:$0xff]  }
0x2344   :  { %15225 = vadd.xlane.f32.xlu1 %v21978_v1  ;;  %v15230_v5 = vmul.f32 %v21978_v1, %v21978_v1  ;;  %15485 = vmatpush1.bf16.msra.mxu0 %v18756_v30  ;;  %v18801_v35 = vld [vmem:[#allocation17 + $0x380] sm:$0xff]   ;;  %v18803_v30 = vld [vmem:[#allocation17 + $0x3c8] sm:$0xff]   ;;  %p19543_p11 = por %p19542_p10, %p19541_p9 }
0x2345   :  { %15486 = vmatprep.subr.bf16.mxu0 %v18764_v16  ;;  %v18806_v16 = vld [vmem:[#allocation17 + $0x350] sm:$0xff]  }
0x2346   :  { %15231 = vadd.xlane.f32.xlu0 %v15229_v11  ;;  %15528 = vmatpush1.bf16.msra.mxu1 %v18759_v33  ;;  %v18805_v33 = vld [vmem:[#allocation17 + $0x388] sm:$0xff]   ;;  %p19544_p12 = pnand %p19543_p11, %p19537_p8 }
0x2347   :  { %15529 = vmatprep.subr.bf16.mxu1 %v18767_v12  ;;  %v18807_v12 = vld [vmem:[#allocation17 + $0x3d0] sm:$0xff]  }
0x2348   :  { %15487 = vmatpush1.bf16.msra.mxu0 %v18762_v36  ;;  %v18808_v36 = vld [vmem:[#allocation17 + $0x310] sm:$0xff]  }
0x2349   :  { %15488 = vmatprep.subr.bf16.mxu0 %v18770_v0  ;;  %v18810_v0 = vld [vmem:[#allocation17 + $0x358] sm:$0xff]  }
0x234a   :  { %15233 = vadd.xlane.f32.xlu0 %v15230_v5  ;;  %15530 = vmatpush1.bf16.msra.mxu1 %v18765_v43  ;;  %v16743_v5 = vld [vmem:[#allocation13 + $0x3] ss:$0 sm:$0xff]  ;;  %v18809_v43 = vld [vmem:[#allocation17 + $0x390] sm:$0xff]  }
0x234b   :  { %15531 = vmatprep.subr.bf16.mxu1 %v18773_v6  ;;  %v18811_v6 = vld [vmem:[#allocation17 + $0x3d8] sm:$0xff]  }
0x234c   :  { %15489 = vmatpush1.bf16.msra.mxu0 %v18768_v29  ;;  %v18812_v29 = vld [vmem:[#allocation17 + $0x318] sm:$0xff]  }
0x234d   :  { %15490 = vmatprep.subr.bf16.mxu0 %v18776_v47  ;;  %v18814_v47 = vld [vmem:[#allocation17 + $0x360] sm:$0xff]  }
0x234e   :  { %15532 = vmatpush1.bf16.msra.mxu1 %v18771_v48  ;;  %v18813_v48 = vld [vmem:[#allocation17 + $0x398] sm:$0xff]  }
0x234f   :  { %15533 = vmatprep.subr.bf16.mxu1 %v18779_v39  ;;  %v18815_v39 = vld [vmem:[#allocation17 + $0x3e0] sm:$0xff]  }
0x2350   :  { %15491 = vmatpush1.bf16.msra.mxu0 %v18774_v13  ;;  %v18816_v13 = vld [vmem:[#allocation17 + $0x320] sm:$0xff]  }
0x2351   :  { %15492 = vmatprep.subr.bf16.mxu0 %v18782_v4  ;;  %v18818_v4 = vld [vmem:[#allocation17 + $0x368] sm:$0xff]  }
0x2352   :  { %15534 = vmatpush1.bf16.msra.mxu1 %v18777_v19  ;;  %v18817_v19 = vld [vmem:[#allocation17 + $0x3a0] sm:$0xff]  }
0x2353   :  { %15535 = vmatprep.subr.bf16.mxu1 %v18785_v50  ;;  %v18819_v50 = vld [vmem:[#allocation17 + $0x3e8] sm:$0xff]  }
0x2354   :  { %15493 = vmatpush1.bf16.msra.mxu0 %v18780_v17  ;;  %v18820_v17 = vld [vmem:[#allocation17 + $0x328] sm:$0xff]  }
0x2355   :  { %15494 = vmatprep.subr.bf16.mxu0 %v18788_v15  ;;  %v18822_v15 = vld [vmem:[#allocation17 + $0x370] sm:$0xff]  }
0x2356   :  { %15536 = vmatpush1.bf16.msra.mxu1 %v18783_v26  ;;  %v18821_v26 = vld [vmem:[#allocation17 + $0x3a8] sm:$0xff]  }
0x2357   :  { %15537 = vmatprep.subr.bf16.mxu1 %v18791_v58  ;;  %v18823_v58 = vld [vmem:[#allocation17 + $0x3f0] sm:$0xff]  }
0x2358   :  { %15495 = vmatpush1.bf16.msra.mxu0 %v18786_v44  ;;  %v18824_v44 = vld [vmem:[#allocation17 + $0x330] sm:$0xff]  }
0x2359   :  { %15496 = vmatprep.subr.bf16.mxu0 %v18794_v14  ;;  %v18826_v14 = vld [vmem:[#allocation17 + $0x378] sm:$0xff]  }
0x235a   :  { %15538 = vmatpush1.bf16.msra.mxu1 %v18789_v63  ;;  %v18825_v63 = vld [vmem:[#allocation17 + $0x3b0] sm:$0xff]  }
0x235b   :  { %15539 = vmatprep.subr.bf16.mxu1 %v18797_v54  ;;  %v18827_v54 = vld [vmem:[#allocation17 + $0x3f8] sm:$0xff]  }
0x235c   :  { %15497 = vmatpush1.bf16.msra.mxu0 %v18792_v60  ;;  %v18828_v60 = vld [vmem:[#allocation17 + $0x338] sm:$0xff]  }
0x235d   :  { %17311 = vmatprep.subr.bf16.mxu0 %v18798_v32  ;;  %v15300_v32 = vld [vmem:[#allocation16 + $0xc] sm:$0xf] }
0x235e   :  { %15540 = vmatpush1.bf16.msra.mxu1 %v18795_v38  ;;  %v18829_v38 = vld [vmem:[#allocation17 + $0x3b8] sm:$0xff]  }
0x235f   :  { %17333 = vmatprep.subr.bf16.mxu1 %v18799_v56  ;;  %v15305_v56 = vrot.slane %v15300_v32, %v19993_v8 }
0x23cf   :  { %v15224_v7 = vpop.xlane.xlu0 %15223 }
0x23d0   :  { %v15227_v20 = vmul.f32 0.0078125, %v15224_v7  ;;  %v15313_v7 = vrot.slane %v15300_v32, %v20038_v27 }
0x23d1   :  { %v15226_v37 = vpop.xlane.xlu1 %15225 }
0x23d2   :  { %v15237_v49 = vmul.f32 %v15227_v20, %v15227_v20  ;;  %v15228_v9 = vmul.f32 0.0078125, %v15226_v37  ;;  %v15241_v57 = vsub.f32 %v21975_v55, %v15227_v20  ;;  %v15309_v20 = vrot.slane %v15300_v32, %v19999_v10 }
0x23d3   :  { %v15232_v45 = vpop.xlane.xlu0 %15231  ;;  %v15317_v37 = vrot.slane %v15300_v32, %v20477_v42 }
0x23d4   :  { %v15235_v23 = vmul.f32 0.0078125, %v15232_v45  ;;  %v15238_v24 = vmul.f32 %v15228_v9, %v15228_v9  ;;  %v15242_v53 = vsub.f32 %v21978_v1, %v15228_v9  ;;  %v18804_v1 = vld [vmem:[#allocation17 + $0x308] sm:$0xff]  }
0x23d6   :  { %v15239_v34 = vsub.f32 %v15235_v23, %v15237_v49 }
0x23d7   :  { %v15234_v40 = vpop.xlane.xlu0 %15233 }
0x23d8   :  { %v15243_v18 = vadd.f32 1e-12, %v15239_v34  ;;  %v15236_v2 = vmul.f32 0.0078125, %v15234_v40 }
0x23da   :  { %19182 = vrsqrt.f32 %v15243_v18  ;;  %v15240_v61 = vsub.f32 %v15236_v2, %v15238_v24 }
0x23dc   :  { %v15244_v31 = vadd.f32 1e-12, %v15240_v61 }
0x23de   :  { %19184 = vrsqrt.f32 %v15244_v31 }
0x23e4   :  { %v19183_v59 = vpop.eup %19182 }
0x23e5   :  { %v15247_v3 = vmul.f32 %v19183_v59, %v15241_v57 }
0x23e7   :  { %v15255_v11 = vmul.f32 %v16742_v46, %v15247_v3 }
0x23e8   :  { %v19185_v51 = vpop.eup %19184 }
0x23e9   :  { %v15248_v22 = vmul.f32 %v19185_v51, %v15242_v53  ;;  %v21991_v62 = vadd.f32 %v16743_v5, %v15255_v11 }
0x23eb   :  { %v15256_v21 = vmul.f32 %v16742_v46, %v15248_v22 }
0x23ed   :  { %v21993_v25 = vadd.f32 %v16743_v5, %v15256_v21 }
0x23ef   :  { %v15265_v55 = vpack.c.bf16 %v21993_v25, %v21991_v62 }
0x23f1   :  { %15515 = vmatmul.mubr.bf16.vlgmr.msra.gmra.mrb[204].mxu0 %v15265_v55  ;;  %15558 = vmatmul.mubr.bf16.vlgmr.msra.gmra.mrb[156].mxu1 %v15265_v55 }
0x23f2   :  { %17312 = vmatpush3.bf16.msra.mxu0 %v18800_v41  ;;  %17334 = vmatpush3.bf16.msra.mxu1 %v18801_v35 }
0x23f3   :  { %17313 = vmatprep.subr.bf16.mxu0 %v18802_v28  ;;  %17335 = vmatprep.subr.bf16.mxu1 %v18803_v30 }
0x23f6   :  { %17314 = vmatpush3.bf16.msra.mxu0 %v18804_v1  ;;  %17336 = vmatpush3.bf16.msra.mxu1 %v18805_v33 }
0x23f7   :  { %17315 = vmatprep.subr.bf16.mxu0 %v18806_v16  ;;  %17337 = vmatprep.subr.bf16.mxu1 %v18807_v12 }
0x23fa   :  { %17316 = vmatpush3.bf16.msra.mxu0 %v18808_v36  ;;  %17338 = vmatpush3.bf16.msra.mxu1 %v18809_v43 }
0x23fb   :  { %17317 = vmatprep.subr.bf16.mxu0 %v18810_v0  ;;  %17339 = vmatprep.subr.bf16.mxu1 %v18811_v6 }
0x23fe   :  { %17318 = vmatpush3.bf16.msra.mxu0 %v18812_v29  ;;  %17340 = vmatpush3.bf16.msra.mxu1 %v18813_v48 }
0x23ff   :  { %17319 = vmatprep.subr.bf16.mxu0 %v18814_v47  ;;  %17341 = vmatprep.subr.bf16.mxu1 %v18815_v39 }
0x2402   :  { %17320 = vmatpush3.bf16.msra.mxu0 %v18816_v13  ;;  %17342 = vmatpush3.bf16.msra.mxu1 %v18817_v19 }
0x2403   :  { %17321 = vmatprep.subr.bf16.mxu0 %v18818_v4  ;;  %17343 = vmatprep.subr.bf16.mxu1 %v18819_v50 }
0x2406   :  { %17322 = vmatpush3.bf16.msra.mxu0 %v18820_v17  ;;  %17344 = vmatpush3.bf16.msra.mxu1 %v18821_v26 }
0x2407   :  { %17323 = vmatprep.subr.bf16.mxu0 %v18822_v15  ;;  %17345 = vmatprep.subr.bf16.mxu1 %v18823_v58 }
0x240a   :  { %17324 = vmatpush3.bf16.msra.mxu0 %v18824_v44  ;;  %17346 = vmatpush3.bf16.msra.mxu1 %v18825_v63 }
0x240b   :  { %17325 = vmatprep.subr.bf16.mxu0 %v18826_v14  ;;  %17347 = vmatprep.subr.bf16.mxu1 %v18827_v54 }
0x240e   :  { %17326 = vmatpush3.bf16.msra.mxu0 %v18828_v60  ;;  %17348 = vmatpush3.bf16.msra.mxu1 %v18829_v38 }
0x24c4   :  { %v15516_v45 = vpop.f32.mrb[204].mxu0  ;;  %v15559_v49 = vpop.f32.mrb[156].mxu1 }
0x24c5   :  { %v15517_v9 = vadd.f32 %v15516_v45, %v15305_v56  ;;  %v15560_v23 = vadd.f32 %v15559_v49, %v15313_v7  ;;  %v15518_v34 = vpop.f32.mrb[205].mxu0  ;;  %v15561_v40 = vpop.f32.mrb[157].mxu1  ;;  %v18830_v49 = vld [vmem:[#allocation23] ss:$8 sps:$4 sm:$0xff]  }
0x24c6   :  { %v15519_v24 = vadd.f32 %v15518_v34, %v15309_v20  ;;  %v15562_v18 = vadd.f32 %v15561_v40, %v15317_v37  ;;  %v15520_v2 = vpop.f32.mrb[206].mxu0  ;;  %v15563_v61 = vpop.f32.mrb[158].mxu1  ;;  %v16776_v40 = vld [vmem:[#allocation19 + $0x3] ss:$0 sm:$0xff] }
0x24c7   :  { %v15576_v31 = vmul.f32 0.70710677, %v15517_v9  ;;  %v15578_v57 = vmul.f32 0.70710677, %v15560_v23  ;;  %v15521_v27 = vadd.f32 %v15520_v2, %v15305_v56  ;;  %v15564_v46 = vadd.f32 %v15563_v61, %v15313_v7  ;;  %v15522_v53 = vpop.f32.mrb[207].mxu0  ;;  %v15565_v51 = vpop.f32.mrb[159].mxu1 }
0x24c8   :  { %v15577_v59 = vmul.f32 0.70710677, %v15519_v24  ;;  %v15579_v3 = vmul.f32 0.70710677, %v15562_v18  ;;  %v15523_v42 = vadd.f32 %v15522_v53, %v15309_v20  ;;  %v15566_v22 = vadd.f32 %v15565_v51, %v15317_v37 }
0x24c9   :  { %19186 = verf.f32 %v15576_v31  ;;  %v15580_v11 = vmul.f32 0.70710677, %v15521_v27  ;;  %v15582_v5 = vmul.f32 0.70710677, %v15564_v46  ;;  %v15568_v16 = vmul.f32 0.5, %v15517_v9 }
0x24ca   :  { %19188 = verf.f32 %v15578_v57  ;;  %v15581_v21 = vmul.f32 0.70710677, %v15523_v42  ;;  %v15583_v41 = vmul.f32 0.70710677, %v15566_v22  ;;  %v15570_v12 = vmul.f32 0.5, %v15560_v23 }
0x24cb   :  { %19190 = verf.f32 %v15577_v59  ;;  %v15569_v0 = vmul.f32 0.5, %v15519_v24  ;;  %v15572_v29 = vmul.f32 0.5, %v15521_v27  ;;  %v15571_v39 = vmul.f32 0.5, %v15562_v18  ;;  %v18832_v9 = vld [vmem:[#allocation23 + $0x4] ss:$8 sps:$4 sm:$0xff]  }
0x24cc   :  { %19192 = verf.f32 %v15579_v3  ;;  %v15574_v19 = vmul.f32 0.5, %v15564_v46  ;;  %v15573_v15 = vmul.f32 0.5, %v15523_v42  ;;  %v15575_v14 = vmul.f32 0.5, %v15566_v22  ;;  %16116 = vmatprep.subr.bf16.mxu0 %v18832_v9 }
0x24cd   :  { %19194 = verf.f32 %v15580_v11 }
0x24ce   :  { %19196 = verf.f32 %v15582_v5 }
0x24cf   :  { %19198 = verf.f32 %v15581_v21 }
0x24d0   :  { %19200 = verf.f32 %v15583_v41  ;;  %v18835_v41 = vld [vmem:[#allocation23 + $0x14] ss:$8 sps:$4 sm:$0xff]  }
0x24d3   :  { %v19187_v35 = vpop.eup %19186 }
0x24d4   :  { %v19189_v55 = vpop.eup %19188  ;;  %v15592_v1 = vadd.f32 1.0, %v19187_v35  ;;  %v18833_v35 = vld [vmem:[#allocation23 + $0x10] ss:$8 sps:$4 sm:$0xff]  }
0x24d5   :  { %v19191_v28 = vpop.eup %19190  ;;  %v15594_v36 = vadd.f32 1.0, %v19189_v55  ;;  %v18838_v55 = vld [vmem:[#allocation23 + $0x24] ss:$8 sps:$4 sm:$0xff]  }
0x24d6   :  { %v19193_v30 = vpop.eup %19192  ;;  %v15593_v6 = vadd.f32 1.0, %v19191_v28  ;;  %v15600_v17 = vmul.f32 %v15592_v1, %v15568_v16  ;;  %v18836_v28 = vld [vmem:[#allocation23 + $0x20] ss:$8 sps:$4 sm:$0xff]   ;;  %v18839_v1 = vld [vmem:[#allocation23 + $0x30] ss:$8 sps:$4 sm:$0xff]  }
0x24d7   :  { %v19195_v33 = vpop.eup %19194  ;;  %v15595_v13 = vadd.f32 1.0, %v19193_v30  ;;  %v15602_v44 = vmul.f32 %v15594_v36, %v15570_v12  ;;  %v18841_v30 = vld [vmem:[#allocation23 + $0x34] ss:$8 sps:$4 sm:$0xff]   ;;  %v18845_v16 = vld [vmem:[#allocation23 + $0x50] ss:$8 sps:$4 sm:$0xff]  }
0x24d8   :  { %v19197_v43 = vpop.eup %19196  ;;  %v15596_v48 = vadd.f32 1.0, %v19195_v33  ;;  %v15601_v60 = vmul.f32 %v15593_v6, %v15569_v0  ;;  %v18842_v33 = vld [vmem:[#allocation23 + $0x40] ss:$8 sps:$4 sm:$0xff]   ;;  %v18850_v12 = vld [vmem:[#allocation23 + $0x64] ss:$8 sps:$4 sm:$0xff]  }
0x24d9   :  { %v19199_v47 = vpop.eup %19198  ;;  %v15598_v4 = vadd.f32 1.0, %v19197_v43  ;;  %v15603_v56 = vmul.f32 %v15595_v13, %v15571_v39  ;;  %v18848_v36 = vld [vmem:[#allocation23 + $0x60] ss:$8 sps:$4 sm:$0xff]   ;;  %v18853_v43 = vld [vmem:[#allocation23 + $0x74] ss:$8 sps:$4 sm:$0xff]  }
0x24da   :  { %v19201_v50 = vpop.eup %19200  ;;  %v15604_v26 = vmul.f32 %v15596_v48, %v15572_v29  ;;  %v15597_v58 = vadd.f32 1.0, %v19199_v47  ;;  %v18851_v0 = vld [vmem:[#allocation23 + $0x70] ss:$8 sps:$4 sm:$0xff]  }
0x24db   :  { %v15606_v63 = vmul.f32 %v15598_v4, %v15574_v19  ;;  %v15599_v54 = vadd.f32 1.0, %v19201_v50 }
0x24dc   :  { %v15608_v38 = vpack.c.bf16 %v15604_v26, %v15600_v17  ;;  %v15605_v32 = vmul.f32 %v15597_v58, %v15573_v15 }
0x24dd   :  { %v15610_v7 = vpack.c.bf16 %v15606_v63, %v15602_v44  ;;  %v15607_v20 = vmul.f32 %v15599_v54, %v15575_v14  ;;  %v16809_v54 = vld [vmem:[#allocation20 + $0x3] ss:$0 sm:$0xff] }
0x24de   :  { %v15609_v37 = vpack.c.bf16 %v15605_v32, %v15601_v60 }
0x24df   :  { %v15611_v45 = vpack.c.bf16 %v15607_v20, %v15603_v56  ;;  %v16810_v20 = vld [vmem:[#allocation22 + $0x3] ss:$0 sm:$0xff] }
0x24e0   :  { %15909 = vmatprep.mubr.bf16.mxu0 %v15609_v37 }
0x24e1   :  { %15950 = vmatprep.mubr.bf16.mxu1 %v15611_v45  ;;  %15910 = vmatmul.mubr.bf16.vlgmr.msra.gmra.mrb[208].mxu0 %v15608_v38 }
0x24e2   :  { %15951 = vmatmul.mubr.bf16.vlgmr.msra.gmra.mrb[160].mxu1 %v15610_v7  ;;  %16148 = vmatprep.mubr.bf16.mxu0 %v19602_v52 }
0x24e3   :  { %16117 = vmatpush1.bf16.msra.mxu0 %v18830_v49 }
0x24e4   :  { %16118 = vmatprep.subr.bf16.mxu0 %v18835_v41 }
0x24e7   :  { %16119 = vmatpush1.bf16.msra.mxu0 %v18833_v35 }
0x24e8   :  { %16120 = vmatprep.subr.bf16.mxu0 %v18838_v55 }
0x24eb   :  { %16121 = vmatpush1.bf16.msra.mxu0 %v18836_v28 }
0x24ec   :  { %16122 = vmatprep.subr.bf16.mxu0 %v18841_v30 }
0x24ef   :  { %16123 = vmatpush1.bf16.msra.mxu0 %v18839_v1 }
0x25b4   :  { %v17327_v23 = vpop.f32.mrb[208].mxu0 }
0x25b5   :  { %v17349_v34 = vpop.f32.mrb[160].mxu1  ;;  %v17328_v24 = vpop.f32.mrb[209].mxu0 }
0x25b6   :  { %v17329_v18 = vadd.f32 %v17328_v24, %v17327_v23  ;;  %v17350_v2 = vpop.f32.mrb[161].mxu1  ;;  %v17330_v61 = vpop.f32.mrb[210].mxu0  ;;  %v16024_v23 = vld [vmem:[#allocation25] sm:$0x3] }
0x25b7   :  { %v17351_v31 = vadd.f32 %v17350_v2, %v17349_v34  ;;  %v17352_v57 = vpop.f32.mrb[162].mxu1  ;;  %v17331_v59 = vpop.f32.mrb[211].mxu0  ;;  %v16029_v34 = vrot.slane %v16024_v23, %v19993_v8 }
0x25b8   :  { %v15912_v3 = vadd.f32 %v17329_v18, %v16776_v40  ;;  %v17332_v27 = vadd.f32 %v17331_v59, %v17330_v61  ;;  %v17353_v46 = vpop.f32.mrb[163].mxu1 }
0x25b9   :  { %v17354_v53 = vadd.f32 %v17353_v46, %v17352_v57 }
0x25ba   :  { %v15953_v51 = vadd.f32 %v17351_v31, %v15912_v3  ;;  %v15915_v52 = vadd.f32 %v17332_v27, %v16776_v40  ;;  %v16033_v40 = vrot.slane %v16024_v23, %v19999_v10 }
0x25bc   :  { %v15956_v42 = vadd.f32 %v17354_v53, %v15915_v52  ;;  %v15959_v22 = vadd.f32 %v15953_v51, %v21991_v62  ;;  %v18844_v62 = vld [vmem:[#allocation23 + $0x44] ss:$8 sps:$4 sm:$0xff]  }
0x25bd   :  { %16124 = vmatprep.subr.bf16.mxu0 %v18844_v62 }
0x25be   :  { %15965 = vadd.xlane.f32.xlu1 %v15959_v22  ;;  %v15960_v11 = vadd.f32 %v15956_v42, %v21993_v25  ;;  %v15971_v5 = vmul.f32 %v15959_v22, %v15959_v22  ;;  %v18847_v25 = vld [vmem:[#allocation23 + $0x54] ss:$8 sps:$4 sm:$0xff]   ;;  %16125 = vmatpush1.bf16.msra.mxu0 %v18842_v33 }
0x25bf   :  { %16126 = vmatprep.subr.bf16.mxu0 %v18847_v25 }
0x25c0   :  { %15967 = vadd.xlane.f32.xlu0 %v15960_v11  ;;  %v15972_v21 = vmul.f32 %v15960_v11, %v15960_v11 }
0x25c2   :  { %15973 = vadd.xlane.f32.xlu1 %v15971_v5  ;;  %16127 = vmatpush1.bf16.msra.mxu0 %v18845_v16 }
0x25c3   :  { %16128 = vmatprep.subr.bf16.mxu0 %v18850_v12 }
0x25c4   :  { %15975 = vadd.xlane.f32.xlu0 %v15972_v21 }
0x25c6   :  { %16129 = vmatpush1.bf16.msra.mxu0 %v18848_v36 }
0x25c7   :  { %16130 = vmatprep.subr.bf16.mxu0 %v18853_v43 }
0x25ca   :  { %16131 = vmatpush1.bf16.msra.mxu0 %v18851_v0 }
0x264b   :  { %v15966_v6 = vpop.xlane.xlu1 %15965 }
0x264c   :  { %v15969_v29 = vmul.f32 0.0078125, %v15966_v6 }
0x264d   :  { %v15968_v48 = vpop.xlane.xlu0 %15967 }
0x264e   :  { %v15970_v47 = vmul.f32 0.0078125, %v15968_v48  ;;  %v15979_v13 = vmul.f32 %v15969_v29, %v15969_v29  ;;  %v15983_v63 = vsub.f32 %v15959_v22, %v15969_v29 }
0x264f   :  { %v15974_v39 = vpop.xlane.xlu1 %15973 }
0x2650   :  { %v15977_v19 = vmul.f32 0.0078125, %v15974_v39  ;;  %v15980_v50 = vmul.f32 %v15970_v47, %v15970_v47  ;;  %v15984_v60 = vsub.f32 %v15960_v11, %v15970_v47 }
0x2651   :  { %v15976_v4 = vpop.xlane.xlu0 %15975 }
0x2652   :  { %v15981_v17 = vsub.f32 %v15977_v19, %v15979_v13  ;;  %v15978_v26 = vmul.f32 0.0078125, %v15976_v4 }
0x2654   :  { %v15985_v15 = vadd.f32 1e-12, %v15981_v17  ;;  %v15982_v58 = vsub.f32 %v15978_v26, %v15980_v50 }
0x2656   :  { %19202 = vrsqrt.f32 %v15985_v15  ;;  %v15986_v44 = vadd.f32 1e-12, %v15982_v58 }
0x2658   :  { %19204 = vrsqrt.f32 %v15986_v44 }
0x2660   :  { %v19203_v14 = vpop.eup %19202 }
0x2661   :  { %v15989_v38 = vmul.f32 %v19203_v14, %v15983_v63 }
0x2662   :  { %v19205_v32 = vpop.eup %19204 }
0x2663   :  { %v15990_v56 = vmul.f32 %v19205_v32, %v15984_v60  ;;  %v15997_v7 = vmul.f32 %v16809_v54, %v15989_v38 }
0x2665   :  { %v15998_v37 = vmul.f32 %v16809_v54, %v15990_v56  ;;  %v16005_v45 = vadd.f32 %v16810_v20, %v15997_v7 }
0x2667   :  { %v16006_v49 = vadd.f32 %v16810_v20, %v15998_v37 }
0x2669   :  { %v16007_v9 = vpack.c.bf16 %v16006_v49, %v16005_v45 }
0x266b   :  { %16149 = vmatmul.mubr.bf16.vlgmr.msra.gmra.mrb[212].mxu0 %v16007_v9 }
0x273e   :  { %v16150_v24 = vpop.f32.mrb[212].mxu0 }
0x273f   :  { %v16151_v18 = vadd.f32 %v16150_v24, %v16029_v34  ;;  %v16152_v2 = vpop.f32.mrb[213].mxu0 }
0x2740   :  { %v16153_v61 = vadd.f32 %v16152_v2, %v16033_v40  ;;  %v16154_v31 = vpop.f32.mrb[214].mxu0 }
0x2741   :  { %16159 = vst [vmem:[#allocation26] sm:$0xff] %v16151_v18  ;;  %v16155_v57 = vadd.f32 %v16154_v31, %v16029_v34  ;;  %v16156_v59 = vpop.f32.mrb[215].mxu0 }
0x2742   :  { %16160 = vst [vmem:[#allocation26 + $0x8] sm:$0xff] %v16153_v61  ;;  %v16157_v3 = vadd.f32 %v16156_v59, %v16033_v40 }
0x2743   :  { %16161 = vst [vmem:[#allocation26 + $0x10] sm:$0xff] %v16155_v57 }
0x2744   :  { %16162 = vst [vmem:[#allocation26 + $0x18] sm:$0xff] %v16157_v3 }
0x2745   :  { %19547 = shalt.err (!%p19544_p12)
}
0x2746   :  { %s19548_s25 = scalar_lea.hbm %s22041_s20, 512 }
0x2747   :  { %p19549_p13 = scmp.ne.s32.totalorder %s22041_s20, %s19548_s25  ;;  %p19552_p0 = scmp.lt.u32.totalorder %s19548_s25, %s22041_s20 }
0x2749   :  { %p19554_p1 = pnand %p19552_p0, %p19549_p13 }
0x274b   :  { %19557 = shalt.err (!%p19554_p1)
}
0x274c   :  { %s22061_s0 = smov 256  }
0x274d   :  { %16174 = dma.vmem_to_hbm [thread:$0]  %s16169_s12, 512, %s22041_s20, [#allocation4], %s22061_s0, %s22061_s0, %s22057_s8  }
0x274e   :  { %19574 = dma.done.wait [#allocation4], 512  }
0x274f   :  { %19575 = vsyncadd [#allocation4], 4294966784 }
0x2750   :  { %16178 = vsyncpa [#allocation3], 1 }
0x2751   :  { %16179 = vsyncpa [#allocation6], 1 }
0x2752   :  { %16180 = vsyncpa [#allocation9], 1 }
0x2753   :  { %16181 = vsyncpa [#allocation12], 1 }
0x2754   :  { %16182 = vsyncpa [#allocation15], 1 }
0x2755   :  { %16183 = vsyncpa [#allocation18], 1 }
0x2756   :  { %16184 = vsyncpa [#allocation21], 1 }
0x2757   :  { %16185 = vsyncpa [#allocation24], 1 }
0x2758   :  { %16186 = vsyncpa [#allocation4], 1 }

</bundles_post_ra>
